<compile_context>
chip_gen: v7x
topology: tpu7x:2x2x1
jax: 0.10.0
libtpu: 0.0.40
codegen_flags: <defaults>
</compile_context>

<pallas_src>
import math
import functools

import jax
import jax.numpy as jnp
from jax import lax
from jax.experimental import pallas as pl
from jax.experimental.pallas import tpu as pltpu

# ----------------------------- model constants -----------------------------
LEN_FREQ = [[0, 8], [8, 16], [16, 24], [24, 32], [32, 40]]
N_BRANCH = len(LEN_FREQ)
N_FILTER = 8          # filters per CWConv branch
FILTER_SIZE = 150     # CWConv kernel size
OMEGA = 5.15
C1, C2 = 32, 64
KW = 15               # temporal kernel width of the 2-D convs
NEG_SLOPE = 0.01      # nn.LeakyReLU default
BN_EPS = 1e-5


# ----------------------------- Pallas kernel --------------------------------
def _conv_pool_se_kernel(p_ref, w_ref, b_ref, w1_ref, b1_ref, w2_ref, b2_ref,
                         o_ref, *, n_phase, slope):
    """Fused conv-as-matmul + bias + LeakyReLU + MaxPool + SE + ReLU.

    p_ref : (1, n_phase, K, Wp) bf16  pool-phase-major im2col patches
    w_ref : (1, Cout, K)        bf16  conv weights (BN folded)
    b_ref : (1, Cout, 1)        f32   conv+BN bias
    w1/b1/w2/b2 : SE MLP parameters (f32)
    o_ref : (1, Cout, Wp)             relu((1 + sigmoid(mlp(mean))) * pooled)
    """
    w = w_ref[0]                                   # (Cout, K)
    bias = b_ref[0]                                # (Cout, 1)
    pooled = None
    for k in range(n_phase):                       # static unroll (4 or 8)
        acc = jnp.dot(w, p_ref[0, k], preferred_element_type=jnp.float32)
        acc = acc + bias
        acc = jnp.where(acc >= 0.0, acc, slope * acc)          # LeakyReLU
        pooled = acc if pooled is None else jnp.maximum(pooled, acc)
    # SE channel attention (tiny mat-vecs; f32 epilogue on every generation).
    m = jnp.mean(pooled, axis=1, keepdims=True)                # (Cout, 1)
    h = jnp.dot(w1_ref[0], m, preferred_element_type=jnp.float32) + b1_ref[0]
    h = jnp.maximum(h, 0.0)                                    # ReLU
    g = jnp.dot(w2_ref[0], h, preferred_element_type=jnp.float32) + b2_ref[0]
    g = jax.nn.sigmoid(g)                                      # Mc
    o_ref[0] = jnp.maximum(pooled * (1.0 + g), 0.0).astype(o_ref.dtype)


def conv_pool_se(patches, wm, bias, w1, b1, w2, b2, *, out_dtype,
                 shared_patches):
    """Run the fused conv/pool/SE kernel for S stacked weight sets x B items.

    patches : (B, n_phase, K, Wp) if shared_patches else (S*B, n_phase, K, Wp)
    wm      : (S, Cout, K) bf16 ; bias (S, Cout, 1) ; SE params stacked on S.
    returns : (S, B, Cout, Wp)
    """
    S, Cout, K = wm.shape
    assert patches.ndim == 4 and patches.shape[-2] == K
    n_phase, Wp = patches.shape[-3], patches.shape[-1]
    if shared_patches:
        B = patches.shape[0]
        p_map = lambda b, i: (b, 0, 0, 0)      # re-used across branches
    else:
        B = patches.shape[0] // S
        p_map = lambda b, i: (i * B + b, 0, 0, 0)
    hid = w1.shape[1]
    kern = functools.partial(_conv_pool_se_kernel, n_phase=n_phase,
                             slope=NEG_SLOPE)
    out = pl.pallas_call(
        kern,
        out_shape=jax.ShapeDtypeStruct((S * B, Cout, Wp), out_dtype),
        grid=(B, S),
        in_specs=[
            pl.BlockSpec((1, n_phase, K, Wp), p_map),
            pl.BlockSpec((1, Cout, K), lambda b, i: (i, 0, 0)),
            pl.BlockSpec((1, Cout, 1), lambda b, i: (i, 0, 0)),
            pl.BlockSpec((1, hid, Cout), lambda b, i: (i, 0, 0)),
            pl.BlockSpec((1, hid, 1), lambda b, i: (i, 0, 0)),
            pl.BlockSpec((1, Cout, hid), lambda b, i: (i, 0, 0)),
            pl.BlockSpec((1, Cout, 1), lambda b, i: (i, 0, 0)),
        ],
        out_specs=pl.BlockSpec((1, Cout, Wp), lambda b, i: (i * B + b, 0, 0)),
        compiler_params=pltpu.CompilerParams(
            dimension_semantics=("parallel", "parallel")),
    )(patches, wm, bias, w1, b1, w2, b2)
    return out.reshape(S, B, Cout, Wp)


# ------------------------------- JAX glue -----------------------------------
def _morlet_filters(a):
    """Morlet filter bank from the CWConv parameter a_.  a: (F,) -> (F, M)."""
    M = FILTER_SIZE
    x = jnp.arange(M, dtype=jnp.float32) - (M - 1.0) / 2.0
    s = 2.5 * OMEGA / (jnp.maximum(a, 1e-7)[:, None] * 2.0 * math.pi)
    xs = x[None, :] / s
    wavelet = jnp.cos(OMEGA * xs) * jnp.exp(-0.5 * xs ** 2) * math.pi ** (-0.25)
    return jnp.sqrt(1.0 / s) * wavelet


def _fold_bn(w, b, bn):
    """Fold eval-mode BatchNorm into the preceding conv weight/bias."""
    s = bn["gamma"] / jnp.sqrt(bn["var"] + BN_EPS)
    return w * s[:, None, None, None], (b - bn["mean"]) * s + bn["beta"]


def _compose_cw_conv0(w0f, filt):
    """Fuse CWConv into Conv_0: both are linear, so the pair is one stride-2
    conv with (KW + FILTER_SIZE - 1) taps over the zero-padded raw wave.
    w0f: (S, C1, ch, F, KW), filt: (S, F, M) -> (S, C1, ch, KW + M - 1)."""
    S, c1, ch, F, kw = w0f.shape
    M = filt.shape[-1]
    weff = jnp.zeros((S, c1, ch, kw + M - 1), jnp.float32)
    for k in range(kw):
        term = jnp.einsum('socf,sfm->socm', w0f[..., k], filt)
        weff = weff.at[..., k:k + M].add(term)
    return weff


def _im2col_s2_phase(x, kw, win):
    """Gather-free im2col for a stride-2 conv followed by MaxPool(1, win).
    x: (..., C, W) -> (..., win, C*kw, Wp) with
       out[..., k, c*kw + j, p] = x[..., c, 2*(win*p + k) + j]."""
    W = x.shape[-1]
    Wo = (W - kw) // 2 + 1
    Wp = Wo // win
    xe = x[..., 0::2]
    xo = x[..., 1::2]
    cols = []
    for j in range(kw):
        src = xe if j % 2 == 0 else xo
        a = j // 2
        cols.append(lax.slice_in_dim(src, a, a + Wo, axis=-1))
    q = jnp.stack(cols, axis=-2)                   # (..., C, kw, Wo)
    q = q[..., :Wp * win]
    q = q.reshape(q.shape[:-1] + (Wp, win))        # (..., C, kw, Wp, win)
    q = jnp.moveaxis(q, -1, -4)                    # (..., win, C, kw, Wp)
    lead = q.shape[:-4]
    win_, C_, kw_, Wp_ = q.shape[-4:]
    return q.reshape(lead + (win_, C_ * kw_, Wp_))


def jmnet_forward(params, x):
    """x: (B, 1, ch, tp) float32 (NCHW, as in the PyTorch module)."""
    B, _, ch, tp = x.shape
    branches = params["branches"]

    # ---- Stage A: (CWConv ∘ Conv_0 + BN) -> LeakyReLU -> MaxPool(1,8) -> SE -> ReLU
    pad = (FILTER_SIZE - 1) // 2
    xpad = jnp.pad(x.reshape(B, ch, tp), ((0, 0), (0, 0), (pad, pad)))
    xpad = xpad.astype(jnp.bfloat16)

    filt = jnp.stack([_morlet_filters(br["a"]) for br in branches])   # (5, 8, 150)
    w0f, b0f = zip(*[_fold_bn(br["conv0_w"], br["conv0_b"], br["bn0"])
                     for br in branches])
    w0f = jnp.stack(w0f)                                              # (5, C1, ch, 8, 15)
    b0f = jnp.stack(b0f)                                              # (5, C1)
    weff = _compose_cw_conv0(w0f, filt)                               # (5, C1, ch, 164)
    wm0 = weff.reshape(N_BRANCH, C1, -1).astype(jnp.bfloat16)

    se1 = {k: jnp.stack([br[k] for br in branches])
           for k in ("se1_w1", "se1_b1", "se1_w2", "se1_b2")}
    patches0 = _im2col_s2_phase(xpad, KW + FILTER_SIZE - 1, 8)        # (B, 8, ch*164, 69)
    low = conv_pool_se(patches0, wm0, b0f[:, :, None],
                       se1["se1_w1"], se1["se1_b1"][:, :, None],
                       se1["se1_w2"], se1["se1_b2"][:, :, None],
                       out_dtype=jnp.bfloat16, shared_patches=True)   # (5, B, C1, 69)

    # ---- Stage B: Conv_1 + BN -> LeakyReLU -> MaxPool(1,4) -> SE -> ReLU (per branch)
    w1f, b1f = zip(*[_fold_bn(br["conv1_w"], br["conv1_b"], br["bn1"])
                     for br in branches])
    wm1 = jnp.stack(w1f).reshape(N_BRANCH, C2, C1 * KW).astype(jnp.bfloat16)
    b1f = jnp.stack(b1f)                                              # (5, C2)
    se2 = {k: jnp.stack([br[k] for br in branches])
           for k in ("se2_w1", "se2_b1", "se2_w2", "se2_b2")}
    patches1 = _im2col_s2_phase(low, KW, 4)                           # (5, B, 4, C1*15, 7)
    S, Bv, nph, K1, Wp1 = patches1.shape
    high = conv_pool_se(patches1.reshape(S * Bv, nph, K1, Wp1), wm1,
                        b1f[:, :, None],
                        se2["se2_w1"], se2["se2_b1"][:, :, None],
                        se2["se2_w2"], se2["se2_b2"][:, :, None],
                        out_dtype=jnp.float32, shared_patches=False)  # (5, B, C2, 7)

    # ---- Global branch: Conv + BN -> LeakyReLU -> MaxPool(1,4) -> SE(r=8) -> ReLU
    # (PyTorch's Sequential ends in an SEBlock that returns a tuple; the Linear
    #  in_features implies the attended tensor is the consumed output.)
    wgf, bgf = _fold_bn(params["g_conv_w"], params["g_conv_b"], params["g_bn"])
    wmg = wgf.reshape(1, C2, C1 * N_BRANCH * KW).astype(jnp.bfloat16)
    # torch.cat(low_feat, dim=1) followed by im2col == branch-major concat of
    # the per-branch patches along the K axis (same flattening order).
    patchesG = jnp.transpose(patches1, (1, 2, 0, 3, 4)).reshape(
        Bv, nph, S * K1, Wp1)                                         # (B, 4, 2400, 7)
    gout = conv_pool_se(patchesG, wmg, bgf[None, :, None],
                        params["g_se_w1"][None], params["g_se_b1"][None, :, None],
                        params["g_se_w2"][None], params["g_se_b2"][None, :, None],
                        out_dtype=jnp.float32, shared_patches=False)  # (1, B, C2, 7)

    # ---- head (channel-major flatten exactly like torch .view(batch, -1))
    local = jnp.transpose(high, (1, 0, 2, 3)).reshape(B, N_BRANCH * C2, Wp1)
    feat = jnp.concatenate([local, gout[0]], axis=1)                  # (B, 384, 7)
    flat = feat.reshape(B, -1)                                        # (B, 2688)
    return flat @ params["lin_w"].T + params["lin_b"]                 # plain XLA dot


# ----------------------------- parameter init -------------------------------
def _init_params(key, ch):
    keys = iter(jax.random.split(key, 256))

    def nrm(shape, scale=0.05):
        return scale * jax.random.normal(next(keys), shape, dtype=jnp.float32)

    def bn(c):
        return dict(gamma=1.0 + nrm((c,), 0.1), beta=nrm((c,), 0.05),
                    mean=nrm((c,), 0.05),
                    var=jax.random.uniform(next(keys), (c,), jnp.float32, 0.5, 1.5))

    branches = []
    for lo, hi in LEN_FREQ:
        a = jnp.arange(lo + 1, hi + 1, dtype=jnp.float32) / 100.0     # CWConv a_
        branches.append(dict(
            a=a,
            conv0_w=nrm((C1, ch, N_FILTER, KW)), conv0_b=nrm((C1,)), bn0=bn(C1),
            se1_w1=nrm((C1 // 4, C1)), se1_b1=nrm((C1 // 4,)),
            se1_w2=nrm((C1, C1 // 4)), se1_b2=nrm((C1,)),
            conv1_w=nrm((C2, C1, 1, KW)), conv1_b=nrm((C2,)), bn1=bn(C2),
            se2_w1=nrm((C2 // 4, C2)), se2_b1=nrm((C2 // 4,)),
            se2_w2=nrm((C2, C2 // 4)), se2_b2=nrm((C2,)),
        ))
    n_feat = 448 * N_BRANCH + 448
    return dict(
        branches=branches,
        g_conv_w=nrm((C2, C1 * N_BRANCH, 1, KW)), g_conv_b=nrm((C2,)), g_bn=bn(C2),
        g_se_w1=nrm((C2 // 8, C2)), g_se_b1=nrm((C2 // 8,)),
        g_se_w2=nrm((C2, C2 // 8)), g_se_b2=nrm((C2,)),
        lin_w=nrm((4, n_feat)), lin_b=nrm((4,)),
    )


# ---------------------------------- main -------------------------------------
if __name__ == "__main__":
    key = jax.random.PRNGKey(0)
    k_param, k_x = jax.random.split(key)

    # Small batch/channels; the fixed Linear(2688, 4) (each 64-ch feature ends
    # with width 7) requires tp in [1118, 1133].
    B, ch, tp = 2, 2, 1125
    params = _init_params(k_param, ch)
    x = jax.random.normal(k_x, (B, 1, ch, tp), dtype=jnp.float32)

    fwd = jax.jit(jmnet_forward)
    out = fwd(params, x)
    jax.block_until_ready(out)
    assert out.shape == (B, 4) and out.dtype == jnp.float32
    print("KERNEL_OK")
</pallas_src>

<mosaic_0001>
module attributes {stable_mosaic.version = 11 : i64} {
  func.func @_conv_pool_se_kernel(%arg0: i32, %arg1: i32, %arg2: memref<1x8x328x69xbf16, #tpu.memory_space<vmem>>, %arg3: memref<1x32x328xbf16, #tpu.memory_space<vmem>>, %arg4: memref<1x32x1xf32, #tpu.memory_space<vmem>>, %arg5: memref<1x8x32xf32, #tpu.memory_space<vmem>>, %arg6: memref<1x8x1xf32, #tpu.memory_space<vmem>>, %arg7: memref<1x32x8xf32, #tpu.memory_space<vmem>>, %arg8: memref<1x32x1xf32, #tpu.memory_space<vmem>>, %arg9: memref<1x32x69xbf16, #tpu.memory_space<vmem>>) attributes {dimension_semantics = [#tpu.dimension_semantics<parallel>, #tpu.dimension_semantics<parallel>], iteration_bounds = array<i64: 2, 5>, scalar_prefetch = 0 : i64, scratch_operands = 0 : i64, tpu.core_type = #tpu.core_type<tc>, window_params = [{transform_indices = @transform_0, window_bounds = array<i64: 1, 8, 328, 69>}, {transform_indices = @transform_1, window_bounds = array<i64: 1, 32, 328>}, {transform_indices = @transform_2, window_bounds = array<i64: 1, 32, 1>}, {transform_indices = @transform_3, window_bounds = array<i64: 1, 8, 32>}, {transform_indices = @transform_4, window_bounds = array<i64: 1, 8, 1>}, {transform_indices = @transform_5, window_bounds = array<i64: 1, 32, 8>}, {transform_indices = @transform_6, window_bounds = array<i64: 1, 32, 1>}, {transform_indices = @transform_7, window_bounds = array<i64: 1, 32, 69>}]} {
    %c0 = arith.constant 0 : index
    %c0_0 = arith.constant 0 : index
    %c0_1 = arith.constant 0 : index
    %0 = vector.load %arg3[%c0, %c0_0, %c0_1] : memref<1x32x328xbf16, #tpu.memory_space<vmem>>, vector<1x32x328xbf16>
    %1 = vector.shape_cast %0 : vector<1x32x328xbf16> to vector<32x328xbf16>
    %c0_2 = arith.constant 0 : index
    %c0_3 = arith.constant 0 : index
    %c0_4 = arith.constant 0 : index
    %2 = vector.load %arg4[%c0_2, %c0_3, %c0_4] : memref<1x32x1xf32, #tpu.memory_space<vmem>>, vector<1x32x1xf32>
    %3 = vector.shape_cast %2 : vector<1x32x1xf32> to vector<32x1xf32>
    %c0_5 = arith.constant 0 : index
    %c0_6 = arith.constant 0 : index
    %c0_7 = arith.constant 0 : index
    %c0_8 = arith.constant 0 : index
    %4 = vector.load %arg2[%c0_5, %c0_6, %c0_7, %c0_8] : memref<1x8x328x69xbf16, #tpu.memory_space<vmem>>, vector<1x1x328x69xbf16>
    %5 = vector.shape_cast %4 : vector<1x1x328x69xbf16> to vector<328x69xbf16>
    %cst = arith.constant dense<0.000000e+00> : vector<32x69xf32>
    %6 = tpu.matmul %1, %5, %cst {dimension_numbers = #tpu.dot_dimension_numbers<[1], [0], [0], [1], [0, 0, 1, 1], [], []>} : vector<32x328xbf16>, vector<328x69xbf16>, vector<32x69xf32> -> vector<32x69xf32>
    %7 = vector.broadcast %3 : vector<32x1xf32> to vector<32x69xf32>
    %8 = arith.addf %6, %7 : vector<32x69xf32>
    %cst_9 = arith.constant 0.000000e+00 : f32
    %9 = vector.broadcast %cst_9 : f32 to vector<32x69xf32>
    %10 = arith.cmpf oge, %8, %9 : vector<32x69xf32>
    %cst_10 = arith.constant 0.00999999977 : f32
    %11 = vector.broadcast %cst_10 : f32 to vector<32x69xf32>
    %12 = arith.mulf %11, %8 : vector<32x69xf32>
    %13 = arith.select %10, %8, %12 : vector<32x69xi1>, vector<32x69xf32>
    %c0_11 = arith.constant 0 : index
    %c1 = arith.constant 1 : index
    %c0_12 = arith.constant 0 : index
    %c0_13 = arith.constant 0 : index
    %14 = vector.load %arg2[%c0_11, %c1, %c0_12, %c0_13] : memref<1x8x328x69xbf16, #tpu.memory_space<vmem>>, vector<1x1x328x69xbf16>
    %15 = vector.shape_cast %14 : vector<1x1x328x69xbf16> to vector<328x69xbf16>
    %cst_14 = arith.constant dense<0.000000e+00> : vector<32x69xf32>
    %16 = tpu.matmul %1, %15, %cst_14 {dimension_numbers = #tpu.dot_dimension_numbers<[1], [0], [0], [1], [0, 0, 1, 1], [], []>} : vector<32x328xbf16>, vector<328x69xbf16>, vector<32x69xf32> -> vector<32x69xf32>
    %17 = vector.broadcast %3 : vector<32x1xf32> to vector<32x69xf32>
    %18 = arith.addf %16, %17 : vector<32x69xf32>
    %cst_15 = arith.constant 0.000000e+00 : f32
    %19 = vector.broadcast %cst_15 : f32 to vector<32x69xf32>
    %20 = arith.cmpf oge, %18, %19 : vector<32x69xf32>
    %cst_16 = arith.constant 0.00999999977 : f32
    %21 = vector.broadcast %cst_16 : f32 to vector<32x69xf32>
    %22 = arith.mulf %21, %18 : vector<32x69xf32>
    %23 = arith.select %20, %18, %22 : vector<32x69xi1>, vector<32x69xf32>
    %24 = arith.maximumf %13, %23 : vector<32x69xf32>
    %c0_17 = arith.constant 0 : index
    %c2 = arith.constant 2 : index
    %c0_18 = arith.constant 0 : index
    %c0_19 = arith.constant 0 : index
    %25 = vector.load %arg2[%c0_17, %c2, %c0_18, %c0_19] : memref<1x8x328x69xbf16, #tpu.memory_space<vmem>>, vector<1x1x328x69xbf16>
    %26 = vector.shape_cast %25 : vector<1x1x328x69xbf16> to vector<328x69xbf16>
    %cst_20 = arith.constant dense<0.000000e+00> : vector<32x69xf32>
    %27 = tpu.matmul %1, %26, %cst_20 {dimension_numbers = #tpu.dot_dimension_numbers<[1], [0], [0], [1], [0, 0, 1, 1], [], []>} : vector<32x328xbf16>, vector<328x69xbf16>, vector<32x69xf32> -> vector<32x69xf32>
    %28 = vector.broadcast %3 : vector<32x1xf32> to vector<32x69xf32>
    %29 = arith.addf %27, %28 : vector<32x69xf32>
    %cst_21 = arith.constant 0.000000e+00 : f32
    %30 = vector.broadcast %cst_21 : f32 to vector<32x69xf32>
    %31 = arith.cmpf oge, %29, %30 : vector<32x69xf32>
    %cst_22 = arith.constant 0.00999999977 : f32
    %32 = vector.broadcast %cst_22 : f32 to vector<32x69xf32>
    %33 = arith.mulf %32, %29 : vector<32x69xf32>
    %34 = arith.select %31, %29, %33 : vector<32x69xi1>, vector<32x69xf32>
    %35 = arith.maximumf %24, %34 : vector<32x69xf32>
    %c0_23 = arith.constant 0 : index
    %c3 = arith.constant 3 : index
    %c0_24 = arith.constant 0 : index
    %c0_25 = arith.constant 0 : index
    %36 = vector.load %arg2[%c0_23, %c3, %c0_24, %c0_25] : memref<1x8x328x69xbf16, #tpu.memory_space<vmem>>, vector<1x1x328x69xbf16>
    %37 = vector.shape_cast %36 : vector<1x1x328x69xbf16> to vector<328x69xbf16>
    %cst_26 = arith.constant dense<0.000000e+00> : vector<32x69xf32>
    %38 = tpu.matmul %1, %37, %cst_26 {dimension_numbers = #tpu.dot_dimension_numbers<[1], [0], [0], [1], [0, 0, 1, 1], [], []>} : vector<32x328xbf16>, vector<328x69xbf16>, vector<32x69xf32> -> vector<32x69xf32>
    %39 = vector.broadcast %3 : vector<32x1xf32> to vector<32x69xf32>
    %40 = arith.addf %38, %39 : vector<32x69xf32>
    %cst_27 = arith.constant 0.000000e+00 : f32
    %41 = vector.broadcast %cst_27 : f32 to vector<32x69xf32>
    %42 = arith.cmpf oge, %40, %41 : vector<32x69xf32>
    %cst_28 = arith.constant 0.00999999977 : f32
    %43 = vector.broadcast %cst_28 : f32 to vector<32x69xf32>
    %44 = arith.mulf %43, %40 : vector<32x69xf32>
    %45 = arith.select %42, %40, %44 : vector<32x69xi1>, vector<32x69xf32>
    %46 = arith.maximumf %35, %45 : vector<32x69xf32>
    %c0_29 = arith.constant 0 : index
    %c4 = arith.constant 4 : index
    %c0_30 = arith.constant 0 : index
    %c0_31 = arith.constant 0 : index
    %47 = vector.load %arg2[%c0_29, %c4, %c0_30, %c0_31] : memref<1x8x328x69xbf16, #tpu.memory_space<vmem>>, vector<1x1x328x69xbf16>
    %48 = vector.shape_cast %47 : vector<1x1x328x69xbf16> to vector<328x69xbf16>
    %cst_32 = arith.constant dense<0.000000e+00> : vector<32x69xf32>
    %49 = tpu.matmul %1, %48, %cst_32 {dimension_numbers = #tpu.dot_dimension_numbers<[1], [0], [0], [1], [0, 0, 1, 1], [], []>} : vector<32x328xbf16>, vector<328x69xbf16>, vector<32x69xf32> -> vector<32x69xf32>
    %50 = vector.broadcast %3 : vector<32x1xf32> to vector<32x69xf32>
    %51 = arith.addf %49, %50 : vector<32x69xf32>
    %cst_33 = arith.constant 0.000000e+00 : f32
    %52 = vector.broadcast %cst_33 : f32 to vector<32x69xf32>
    %53 = arith.cmpf oge, %51, %52 : vector<32x69xf32>
    %cst_34 = arith.constant 0.00999999977 : f32
    %54 = vector.broadcast %cst_34 : f32 to vector<32x69xf32>
    %55 = arith.mulf %54, %51 : vector<32x69xf32>
    %56 = arith.select %53, %51, %55 : vector<32x69xi1>, vector<32x69xf32>
    %57 = arith.maximumf %46, %56 : vector<32x69xf32>
    %c0_35 = arith.constant 0 : index
    %c5 = arith.constant 5 : index
    %c0_36 = arith.constant 0 : index
    %c0_37 = arith.constant 0 : index
    %58 = vector.load %arg2[%c0_35, %c5, %c0_36, %c0_37] : memref<1x8x328x69xbf16, #tpu.memory_space<vmem>>, vector<1x1x328x69xbf16>
    %59 = vector.shape_cast %58 : vector<1x1x328x69xbf16> to vector<328x69xbf16>
    %cst_38 = arith.constant dense<0.000000e+00> : vector<32x69xf32>
    %60 = tpu.matmul %1, %59, %cst_38 {dimension_numbers = #tpu.dot_dimension_numbers<[1], [0], [0], [1], [0, 0, 1, 1], [], []>} : vector<32x328xbf16>, vector<328x69xbf16>, vector<32x69xf32> -> vector<32x69xf32>
    %61 = vector.broadcast %3 : vector<32x1xf32> to vector<32x69xf32>
    %62 = arith.addf %60, %61 : vector<32x69xf32>
    %cst_39 = arith.constant 0.000000e+00 : f32
    %63 = vector.broadcast %cst_39 : f32 to vector<32x69xf32>
    %64 = arith.cmpf oge, %62, %63 : vector<32x69xf32>
    %cst_40 = arith.constant 0.00999999977 : f32
    %65 = vector.broadcast %cst_40 : f32 to vector<32x69xf32>
    %66 = arith.mulf %65, %62 : vector<32x69xf32>
    %67 = arith.select %64, %62, %66 : vector<32x69xi1>, vector<32x69xf32>
    %68 = arith.maximumf %57, %67 : vector<32x69xf32>
    %c0_41 = arith.constant 0 : index
    %c6 = arith.constant 6 : index
    %c0_42 = arith.constant 0 : index
    %c0_43 = arith.constant 0 : index
    %69 = vector.load %arg2[%c0_41, %c6, %c0_42, %c0_43] : memref<1x8x328x69xbf16, #tpu.memory_space<vmem>>, vector<1x1x328x69xbf16>
    %70 = vector.shape_cast %69 : vector<1x1x328x69xbf16> to vector<328x69xbf16>
    %cst_44 = arith.constant dense<0.000000e+00> : vector<32x69xf32>
    %71 = tpu.matmul %1, %70, %cst_44 {dimension_numbers = #tpu.dot_dimension_numbers<[1], [0], [0], [1], [0, 0, 1, 1], [], []>} : vector<32x328xbf16>, vector<328x69xbf16>, vector<32x69xf32> -> vector<32x69xf32>
    %72 = vector.broadcast %3 : vector<32x1xf32> to vector<32x69xf32>
    %73 = arith.addf %71, %72 : vector<32x69xf32>
    %cst_45 = arith.constant 0.000000e+00 : f32
    %74 = vector.broadcast %cst_45 : f32 to vector<32x69xf32>
    %75 = arith.cmpf oge, %73, %74 : vector<32x69xf32>
    %cst_46 = arith.constant 0.00999999977 : f32
    %76 = vector.broadcast %cst_46 : f32 to vector<32x69xf32>
    %77 = arith.mulf %76, %73 : vector<32x69xf32>
    %78 = arith.select %75, %73, %77 : vector<32x69xi1>, vector<32x69xf32>
    %79 = arith.maximumf %68, %78 : vector<32x69xf32>
    %c0_47 = arith.constant 0 : index
    %c7 = arith.constant 7 : index
    %c0_48 = arith.constant 0 : index
    %c0_49 = arith.constant 0 : index
    %80 = vector.load %arg2[%c0_47, %c7, %c0_48, %c0_49] : memref<1x8x328x69xbf16, #tpu.memory_space<vmem>>, vector<1x1x328x69xbf16>
    %81 = vector.shape_cast %80 : vector<1x1x328x69xbf16> to vector<328x69xbf16>
    %cst_50 = arith.constant dense<0.000000e+00> : vector<32x69xf32>
    %82 = tpu.matmul %1, %81, %cst_50 {dimension_numbers = #tpu.dot_dimension_numbers<[1], [0], [0], [1], [0, 0, 1, 1], [], []>} : vector<32x328xbf16>, vector<328x69xbf16>, vector<32x69xf32> -> vector<32x69xf32>
    %83 = vector.broadcast %3 : vector<32x1xf32> to vector<32x69xf32>
    %84 = arith.addf %82, %83 : vector<32x69xf32>
    %cst_51 = arith.constant 0.000000e+00 : f32
    %85 = vector.broadcast %cst_51 : f32 to vector<32x69xf32>
    %86 = arith.cmpf oge, %84, %85 : vector<32x69xf32>
    %cst_52 = arith.constant 0.00999999977 : f32
    %87 = vector.broadcast %cst_52 : f32 to vector<32x69xf32>
    %88 = arith.mulf %87, %84 : vector<32x69xf32>
    %89 = arith.select %86, %84, %88 : vector<32x69xi1>, vector<32x69xf32>
    %90 = arith.maximumf %79, %89 : vector<32x69xf32>
    %cst_53 = arith.constant dense<0.000000e+00> : vector<32xf32>
    %91 = vector.multi_reduction <add>, %90, %cst_53 [1] : vector<32x69xf32> to vector<32xf32>
    %92 = vector.shape_cast %91 : vector<32xf32> to vector<32x1xf32>
    %cst_54 = arith.constant 6.900000e+01 : f32
    %93 = vector.broadcast %cst_54 : f32 to vector<32x1xf32>
    %94 = arith.divf %92, %93 : vector<32x1xf32>
    %c0_55 = arith.constant 0 : index
    %c0_56 = arith.constant 0 : index
    %c0_57 = arith.constant 0 : index
    %95 = vector.load %arg5[%c0_55, %c0_56, %c0_57] : memref<1x8x32xf32, #tpu.memory_space<vmem>>, vector<1x8x32xf32>
    %96 = vector.shape_cast %95 : vector<1x8x32xf32> to vector<8x32xf32>
    %cst_58 = arith.constant dense<0.000000e+00> : vector<8x1xf32>
    %97 = tpu.matmul %96, %94, %cst_58 {dimension_numbers = #tpu.dot_dimension_numbers<[1], [0], [0], [1], [0, 0, 1, 1], [], []>} : vector<8x32xf32>, vector<32x1xf32>, vector<8x1xf32> -> vector<8x1xf32>
    %c0_59 = arith.constant 0 : index
    %c0_60 = arith.constant 0 : index
    %c0_61 = arith.constant 0 : index
    %98 = vector.load %arg6[%c0_59, %c0_60, %c0_61] : memref<1x8x1xf32, #tpu.memory_space<vmem>>, vector<1x8x1xf32>
    %99 = vector.shape_cast %98 : vector<1x8x1xf32> to vector<8x1xf32>
    %100 = arith.addf %97, %99 : vector<8x1xf32>
    %cst_62 = arith.constant 0.000000e+00 : f32
    %101 = vector.broadcast %cst_62 : f32 to vector<8x1xf32>
    %102 = arith.maximumf %100, %101 : vector<8x1xf32>
    %c0_63 = arith.constant 0 : index
    %c0_64 = arith.constant 0 : index
    %c0_65 = arith.constant 0 : index
    %103 = vector.load %arg7[%c0_63, %c0_64, %c0_65] : memref<1x32x8xf32, #tpu.memory_space<vmem>>, vector<1x32x8xf32>
    %104 = vector.shape_cast %103 : vector<1x32x8xf32> to vector<32x8xf32>
    %cst_66 = arith.constant dense<0.000000e+00> : vector<32x1xf32>
    %105 = tpu.matmul %104, %102, %cst_66 {dimension_numbers = #tpu.dot_dimension_numbers<[1], [0], [0], [1], [0, 0, 1, 1], [], []>} : vector<32x8xf32>, vector<8x1xf32>, vector<32x1xf32> -> vector<32x1xf32>
    %c0_67 = arith.constant 0 : index
    %c0_68 = arith.constant 0 : index
    %c0_69 = arith.constant 0 : index
    %106 = vector.load %arg8[%c0_67, %c0_68, %c0_69] : memref<1x32x1xf32, #tpu.memory_space<vmem>>, vector<1x32x1xf32>
    %107 = vector.shape_cast %106 : vector<1x32x1xf32> to vector<32x1xf32>
    %108 = arith.addf %105, %107 : vector<32x1xf32>
    %109 = arith.negf %108 : vector<32x1xf32>
    %110 = math.exp %109 : vector<32x1xf32>
    %cst_70 = arith.constant 1.000000e+00 : f32
    %111 = vector.broadcast %cst_70 : f32 to vector<32x1xf32>
    %112 = arith.addf %111, %110 : vector<32x1xf32>
    %113 = arith.divf %111, %112 : vector<32x1xf32>
    %cst_71 = arith.constant 1.000000e+00 : f32
    %114 = vector.broadcast %cst_71 : f32 to vector<32x1xf32>
    %115 = arith.addf %114, %113 : vector<32x1xf32>
    %116 = vector.broadcast %115 : vector<32x1xf32> to vector<32x69xf32>
    %117 = arith.mulf %90, %116 : vector<32x69xf32>
    %cst_72 = arith.constant 0.000000e+00 : f32
    %118 = vector.broadcast %cst_72 : f32 to vector<32x69xf32>
    %119 = arith.maximumf %117, %118 : vector<32x69xf32>
    %120 = arith.truncf %119 : vector<32x69xf32> to vector<32x69xbf16>
    %c0_73 = arith.constant 0 : index
    %c0_74 = arith.constant 0 : index
    %c0_75 = arith.constant 0 : index
    %121 = vector.load %arg9[%c0_73, %c0_74, %c0_75] : memref<1x32x69xbf16, #tpu.memory_space<vmem>>, vector<1x32x69xbf16>
    %122 = vector.shape_cast %121 : vector<1x32x69xbf16> to vector<32x69xbf16>
    %123 = vector.shape_cast %120 : vector<32x69xbf16> to vector<1x32x69xbf16>
    tpu.vector_store %arg9[%c0_73, %c0_74, %c0_75], %123 {strides = array<i32>} : memref<1x32x69xbf16, #tpu.memory_space<vmem>>, vector<1x32x69xbf16>,
    return
  }
  func.func @transform_0(%arg0: i32, %arg1: i32) -> (i32, i32, i32, i32) {
    %c0_i32 = arith.constant 0 : i32
    %c0_i32_0 = arith.constant 0 : i32
    %c0_i32_1 = arith.constant 0 : i32
    %c0_i32_2 = arith.constant 0 : i32
    return %arg0, %c0_i32, %c0_i32_0, %c0_i32_1 : i32, i32, i32, i32
  }
  func.func @transform_1(%arg0: i32, %arg1: i32) -> (i32, i32, i32) {
    %c0_i32 = arith.constant 0 : i32
    %c0_i32_0 = arith.constant 0 : i32
    %c0_i32_1 = arith.constant 0 : i32
    return %arg1, %c0_i32, %c0_i32_0 : i32, i32, i32
  }
  func.func @transform_2(%arg0: i32, %arg1: i32) -> (i32, i32, i32) {
    %c0_i32 = arith.constant 0 : i32
    %c0_i32_0 = arith.constant 0 : i32
    %c0_i32_1 = arith.constant 0 : i32
    return %arg1, %c0_i32, %c0_i32_0 : i32, i32, i32
  }
  func.func @transform_3(%arg0: i32, %arg1: i32) -> (i32, i32, i32) {
    %c0_i32 = arith.constant 0 : i32
    %c0_i32_0 = arith.constant 0 : i32
    %c0_i32_1 = arith.constant 0 : i32
    return %arg1, %c0_i32, %c0_i32_0 : i32, i32, i32
  }
  func.func @transform_4(%arg0: i32, %arg1: i32) -> (i32, i32, i32) {
    %c0_i32 = arith.constant 0 : i32
    %c0_i32_0 = arith.constant 0 : i32
    %c0_i32_1 = arith.constant 0 : i32
    return %arg1, %c0_i32, %c0_i32_0 : i32, i32, i32
  }
  func.func @transform_5(%arg0: i32, %arg1: i32) -> (i32, i32, i32) {
    %c0_i32 = arith.constant 0 : i32
    %c0_i32_0 = arith.constant 0 : i32
    %c0_i32_1 = arith.constant 0 : i32
    return %arg1, %c0_i32, %c0_i32_0 : i32, i32, i32
  }
  func.func @transform_6(%arg0: i32, %arg1: i32) -> (i32, i32, i32) {
    %c0_i32 = arith.constant 0 : i32
    %c0_i32_0 = arith.constant 0 : i32
    %c0_i32_1 = arith.constant 0 : i32
    return %arg1, %c0_i32, %c0_i32_0 : i32, i32, i32
  }
  func.func @transform_7(%arg0: i32, %arg1: i32) -> (i32, i32, i32) {
    %c2_i32 = arith.constant 2 : i32
    %0 = arith.muli %arg1, %c2_i32 : i32
    %1 = arith.addi %0, %arg0 : i32
    %c0_i32 = arith.constant 0 : i32
    %c0_i32_0 = arith.constant 0 : i32
    %c0_i32_1 = arith.constant 0 : i32
    return %1, %c0_i32, %c0_i32_0 : i32, i32, i32
  }
}

module attributes {stable_mosaic.version = 11 : i64} {
  func.func @_conv_pool_se_kernel(%arg0: i32, %arg1: i32, %arg2: memref<1x4x2400x7xbf16, #tpu.memory_space<vmem>>, %arg3: memref<1x64x2400xbf16, #tpu.memory_space<vmem>>, %arg4: memref<1x64x1xf32, #tpu.memory_space<vmem>>, %arg5: memref<1x8x64xf32, #tpu.memory_space<vmem>>, %arg6: memref<1x8x1xf32, #tpu.memory_space<vmem>>, %arg7: memref<1x64x8xf32, #tpu.memory_space<vmem>>, %arg8: memref<1x64x1xf32, #tpu.memory_space<vmem>>, %arg9: memref<1x64x7xf32, #tpu.memory_space<vmem>>) attributes {dimension_semantics = [#tpu.dimension_semantics<parallel>, #tpu.dimension_semantics<parallel>], iteration_bounds = array<i64: 2, 1>, scalar_prefetch = 0 : i64, scratch_operands = 0 : i64, tpu.core_type = #tpu.core_type<tc>, window_params = [{transform_indices = @transform_0, window_bounds = array<i64: 1, 4, 2400, 7>}, {transform_indices = @transform_1, window_bounds = array<i64: 1, 64, 2400>}, {transform_indices = @transform_2, window_bounds = array<i64: 1, 64, 1>}, {transform_indices = @transform_3, window_bounds = array<i64: 1, 8, 64>}, {transform_indices = @transform_4, window_bounds = array<i64: 1, 8, 1>}, {transform_indices = @transform_5, window_bounds = array<i64: 1, 64, 8>}, {transform_indices = @transform_6, window_bounds = array<i64: 1, 64, 1>}, {transform_indices = @transform_7, window_bounds = array<i64: 1, 64, 7>}]} {
    %c0 = arith.constant 0 : index
    %c0_0 = arith.constant 0 : index
    %c0_1 = arith.constant 0 : index
    %0 = vector.load %arg3[%c0, %c0_0, %c0_1] : memref<1x64x2400xbf16, #tpu.memory_space<vmem>>, vector<1x64x2400xbf16>
    %1 = vector.shape_cast %0 : vector<1x64x2400xbf16> to vector<64x2400xbf16>
    %c0_2 = arith.constant 0 : index
    %c0_3 = arith.constant 0 : index
    %c0_4 = arith.constant 0 : index
    %2 = vector.load %arg4[%c0_2, %c0_3, %c0_4] : memref<1x64x1xf32, #tpu.memory_space<vmem>>, vector<1x64x1xf32>
    %3 = vector.shape_cast %2 : vector<1x64x1xf32> to vector<64x1xf32>
    %c0_5 = arith.constant 0 : index
    %c0_6 = arith.constant 0 : index
    %c0_7 = arith.constant 0 : index
    %c0_8 = arith.constant 0 : index
    %4 = vector.load %arg2[%c0_5, %c0_6, %c0_7, %c0_8] : memref<1x4x2400x7xbf16, #tpu.memory_space<vmem>>, vector<1x1x2400x7xbf16>
    %5 = vector.shape_cast %4 : vector<1x1x2400x7xbf16> to vector<2400x7xbf16>
    %cst = arith.constant dense<0.000000e+00> : vector<64x7xf32>
    %6 = tpu.matmul %1, %5, %cst {dimension_numbers = #tpu.dot_dimension_numbers<[1], [0], [0], [1], [0, 0, 1, 1], [], []>} : vector<64x2400xbf16>, vector<2400x7xbf16>, vector<64x7xf32> -> vector<64x7xf32>
    %7 = vector.broadcast %3 : vector<64x1xf32> to vector<64x7xf32>
    %8 = arith.addf %6, %7 : vector<64x7xf32>
    %cst_9 = arith.constant 0.000000e+00 : f32
    %9 = vector.broadcast %cst_9 : f32 to vector<64x7xf32>
    %10 = arith.cmpf oge, %8, %9 : vector<64x7xf32>
    %cst_10 = arith.constant 0.00999999977 : f32
    %11 = vector.broadcast %cst_10 : f32 to vector<64x7xf32>
    %12 = arith.mulf %11, %8 : vector<64x7xf32>
    %13 = arith.select %10, %8, %12 : vector<64x7xi1>, vector<64x7xf32>
    %c0_11 = arith.constant 0 : index
    %c1 = arith.constant 1 : index
    %c0_12 = arith.constant 0 : index
    %c0_13 = arith.constant 0 : index
    %14 = vector.load %arg2[%c0_11, %c1, %c0_12, %c0_13] : memref<1x4x2400x7xbf16, #tpu.memory_space<vmem>>, vector<1x1x2400x7xbf16>
    %15 = vector.shape_cast %14 : vector<1x1x2400x7xbf16> to vector<2400x7xbf16>
    %cst_14 = arith.constant dense<0.000000e+00> : vector<64x7xf32>
    %16 = tpu.matmul %1, %15, %cst_14 {dimension_numbers = #tpu.dot_dimension_numbers<[1], [0], [0], [1], [0, 0, 1, 1], [], []>} : vector<64x2400xbf16>, vector<2400x7xbf16>, vector<64x7xf32> -> vector<64x7xf32>
    %17 = vector.broadcast %3 : vector<64x1xf32> to vector<64x7xf32>
    %18 = arith.addf %16, %17 : vector<64x7xf32>
    %cst_15 = arith.constant 0.000000e+00 : f32
    %19 = vector.broadcast %cst_15 : f32 to vector<64x7xf32>
    %20 = arith.cmpf oge, %18, %19 : vector<64x7xf32>
    %cst_16 = arith.constant 0.00999999977 : f32
    %21 = vector.broadcast %cst_16 : f32 to vector<64x7xf32>
    %22 = arith.mulf %21, %18 : vector<64x7xf32>
    %23 = arith.select %20, %18, %22 : vector<64x7xi1>, vector<64x7xf32>
    %24 = arith.maximumf %13, %23 : vector<64x7xf32>
    %c0_17 = arith.constant 0 : index
    %c2 = arith.constant 2 : index
    %c0_18 = arith.constant 0 : index
    %c0_19 = arith.constant 0 : index
    %25 = vector.load %arg2[%c0_17, %c2, %c0_18, %c0_19] : memref<1x4x2400x7xbf16, #tpu.memory_space<vmem>>, vector<1x1x2400x7xbf16>
    %26 = vector.shape_cast %25 : vector<1x1x2400x7xbf16> to vector<2400x7xbf16>
    %cst_20 = arith.constant dense<0.000000e+00> : vector<64x7xf32>
    %27 = tpu.matmul %1, %26, %cst_20 {dimension_numbers = #tpu.dot_dimension_numbers<[1], [0], [0], [1], [0, 0, 1, 1], [], []>} : vector<64x2400xbf16>, vector<2400x7xbf16>, vector<64x7xf32> -> vector<64x7xf32>
    %28 = vector.broadcast %3 : vector<64x1xf32> to vector<64x7xf32>
    %29 = arith.addf %27, %28 : vector<64x7xf32>
    %cst_21 = arith.constant 0.000000e+00 : f32
    %30 = vector.broadcast %cst_21 : f32 to vector<64x7xf32>
    %31 = arith.cmpf oge, %29, %30 : vector<64x7xf32>
    %cst_22 = arith.constant 0.00999999977 : f32
    %32 = vector.broadcast %cst_22 : f32 to vector<64x7xf32>
    %33 = arith.mulf %32, %29 : vector<64x7xf32>
    %34 = arith.select %31, %29, %33 : vector<64x7xi1>, vector<64x7xf32>
    %35 = arith.maximumf %24, %34 : vector<64x7xf32>
    %c0_23 = arith.constant 0 : index
    %c3 = arith.constant 3 : index
    %c0_24 = arith.constant 0 : index
    %c0_25 = arith.constant 0 : index
    %36 = vector.load %arg2[%c0_23, %c3, %c0_24, %c0_25] : memref<1x4x2400x7xbf16, #tpu.memory_space<vmem>>, vector<1x1x2400x7xbf16>
    %37 = vector.shape_cast %36 : vector<1x1x2400x7xbf16> to vector<2400x7xbf16>
    %cst_26 = arith.constant dense<0.000000e+00> : vector<64x7xf32>
    %38 = tpu.matmul %1, %37, %cst_26 {dimension_numbers = #tpu.dot_dimension_numbers<[1], [0], [0], [1], [0, 0, 1, 1], [], []>} : vector<64x2400xbf16>, vector<2400x7xbf16>, vector<64x7xf32> -> vector<64x7xf32>
    %39 = vector.broadcast %3 : vector<64x1xf32> to vector<64x7xf32>
    %40 = arith.addf %38, %39 : vector<64x7xf32>
    %cst_27 = arith.constant 0.000000e+00 : f32
    %41 = vector.broadcast %cst_27 : f32 to vector<64x7xf32>
    %42 = arith.cmpf oge, %40, %41 : vector<64x7xf32>
    %cst_28 = arith.constant 0.00999999977 : f32
    %43 = vector.broadcast %cst_28 : f32 to vector<64x7xf32>
    %44 = arith.mulf %43, %40 : vector<64x7xf32>
    %45 = arith.select %42, %40, %44 : vector<64x7xi1>, vector<64x7xf32>
    %46 = arith.maximumf %35, %45 : vector<64x7xf32>
    %cst_29 = arith.constant dense<0.000000e+00> : vector<64xf32>
    %47 = vector.multi_reduction <add>, %46, %cst_29 [1] : vector<64x7xf32> to vector<64xf32>
    %48 = vector.shape_cast %47 : vector<64xf32> to vector<64x1xf32>
    %cst_30 = arith.constant 7.000000e+00 : f32
    %49 = vector.broadcast %cst_30 : f32 to vector<64x1xf32>
    %50 = arith.divf %48, %49 : vector<64x1xf32>
    %c0_31 = arith.constant 0 : index
    %c0_32 = arith.constant 0 : index
    %c0_33 = arith.constant 0 : index
    %51 = vector.load %arg5[%c0_31, %c0_32, %c0_33] : memref<1x8x64xf32, #tpu.memory_space<vmem>>, vector<1x8x64xf32>
    %52 = vector.shape_cast %51 : vector<1x8x64xf32> to vector<8x64xf32>
    %cst_34 = arith.constant dense<0.000000e+00> : vector<8x1xf32>
    %53 = tpu.matmul %52, %50, %cst_34 {dimension_numbers = #tpu.dot_dimension_numbers<[1], [0], [0], [1], [0, 0, 1, 1], [], []>} : vector<8x64xf32>, vector<64x1xf32>, vector<8x1xf32> -> vector<8x1xf32>
    %c0_35 = arith.constant 0 : index
    %c0_36 = arith.constant 0 : index
    %c0_37 = arith.constant 0 : index
    %54 = vector.load %arg6[%c0_35, %c0_36, %c0_37] : memref<1x8x1xf32, #tpu.memory_space<vmem>>, vector<1x8x1xf32>
    %55 = vector.shape_cast %54 : vector<1x8x1xf32> to vector<8x1xf32>
    %56 = arith.addf %53, %55 : vector<8x1xf32>
    %cst_38 = arith.constant 0.000000e+00 : f32
    %57 = vector.broadcast %cst_38 : f32 to vector<8x1xf32>
    %58 = arith.maximumf %56, %57 : vector<8x1xf32>
    %c0_39 = arith.constant 0 : index
    %c0_40 = arith.constant 0 : index
    %c0_41 = arith.constant 0 : index
    %59 = vector.load %arg7[%c0_39, %c0_40, %c0_41] : memref<1x64x8xf32, #tpu.memory_space<vmem>>, vector<1x64x8xf32>
    %60 = vector.shape_cast %59 : vector<1x64x8xf32> to vector<64x8xf32>
    %cst_42 = arith.constant dense<0.000000e+00> : vector<64x1xf32>
    %61 = tpu.matmul %60, %58, %cst_42 {dimension_numbers = #tpu.dot_dimension_numbers<[1], [0], [0], [1], [0, 0, 1, 1], [], []>} : vector<64x8xf32>, vector<8x1xf32>, vector<64x1xf32> -> vector<64x1xf32>
    %c0_43 = arith.constant 0 : index
    %c0_44 = arith.constant 0 : index
    %c0_45 = arith.constant 0 : index
    %62 = vector.load %arg8[%c0_43, %c0_44, %c0_45] : memref<1x64x1xf32, #tpu.memory_space<vmem>>, vector<1x64x1xf32>
    %63 = vector.shape_cast %62 : vector<1x64x1xf32> to vector<64x1xf32>
    %64 = arith.addf %61, %63 : vector<64x1xf32>
    %65 = arith.negf %64 : vector<64x1xf32>
    %66 = math.exp %65 : vector<64x1xf32>
    %cst_46 = arith.constant 1.000000e+00 : f32
    %67 = vector.broadcast %cst_46 : f32 to vector<64x1xf32>
    %68 = arith.addf %67, %66 : vector<64x1xf32>
    %69 = arith.divf %67, %68 : vector<64x1xf32>
    %cst_47 = arith.constant 1.000000e+00 : f32
    %70 = vector.broadcast %cst_47 : f32 to vector<64x1xf32>
    %71 = arith.addf %70, %69 : vector<64x1xf32>
    %72 = vector.broadcast %71 : vector<64x1xf32> to vector<64x7xf32>
    %73 = arith.mulf %46, %72 : vector<64x7xf32>
    %cst_48 = arith.constant 0.000000e+00 : f32
    %74 = vector.broadcast %cst_48 : f32 to vector<64x7xf32>
    %75 = arith.maximumf %73, %74 : vector<64x7xf32>
    %c0_49 = arith.constant 0 : index
    %c0_50 = arith.constant 0 : index
    %c0_51 = arith.constant 0 : index
    %76 = vector.load %arg9[%c0_49, %c0_50, %c0_51] : memref<1x64x7xf32, #tpu.memory_space<vmem>>, vector<1x64x7xf32>
    %77 = vector.shape_cast %76 : vector<1x64x7xf32> to vector<64x7xf32>
    %78 = vector.shape_cast %75 : vector<64x7xf32> to vector<1x64x7xf32>
    tpu.vector_store %arg9[%c0_49, %c0_50, %c0_51], %78 {strides = array<i32>} : memref<1x64x7xf32, #tpu.memory_space<vmem>>, vector<1x64x7xf32>,
    return
  }
  func.func @transform_0(%arg0: i32, %arg1: i32) -> (i32, i32, i32, i32) {
    %c2_i32 = arith.constant 2 : i32
    %0 = arith.muli %arg1, %c2_i32 : i32
    %1 = arith.addi %0, %arg0 : i32
    %c0_i32 = arith.constant 0 : i32
    %c0_i32_0 = arith.constant 0 : i32
    %c0_i32_1 = arith.constant 0 : i32
    %c0_i32_2 = arith.constant 0 : i32
    return %1, %c0_i32, %c0_i32_0, %c0_i32_1 : i32, i32, i32, i32
  }
  func.func @transform_1(%arg0: i32, %arg1: i32) -> (i32, i32, i32) {
    %c0_i32 = arith.constant 0 : i32
    %c0_i32_0 = arith.constant 0 : i32
    %c0_i32_1 = arith.constant 0 : i32
    return %arg1, %c0_i32, %c0_i32_0 : i32, i32, i32
  }
  func.func @transform_2(%arg0: i32, %arg1: i32) -> (i32, i32, i32) {
    %c0_i32 = arith.constant 0 : i32
    %c0_i32_0 = arith.constant 0 : i32
    %c0_i32_1 = arith.constant 0 : i32
    return %arg1, %c0_i32, %c0_i32_0 : i32, i32, i32
  }
  func.func @transform_3(%arg0: i32, %arg1: i32) -> (i32, i32, i32) {
    %c0_i32 = arith.constant 0 : i32
    %c0_i32_0 = arith.constant 0 : i32
    %c0_i32_1 = arith.constant 0 : i32
    return %arg1, %c0_i32, %c0_i32_0 : i32, i32, i32
  }
  func.func @transform_4(%arg0: i32, %arg1: i32) -> (i32, i32, i32) {
    %c0_i32 = arith.constant 0 : i32
    %c0_i32_0 = arith.constant 0 : i32
    %c0_i32_1 = arith.constant 0 : i32
    return %arg1, %c0_i32, %c0_i32_0 : i32, i32, i32
  }
  func.func @transform_5(%arg0: i32, %arg1: i32) -> (i32, i32, i32) {
    %c0_i32 = arith.constant 0 : i32
    %c0_i32_0 = arith.constant 0 : i32
    %c0_i32_1 = arith.constant 0 : i32
    return %arg1, %c0_i32, %c0_i32_0 : i32, i32, i32
  }
  func.func @transform_6(%arg0: i32, %arg1: i32) -> (i32, i32, i32) {
    %c0_i32 = arith.constant 0 : i32
    %c0_i32_0 = arith.constant 0 : i32
    %c0_i32_1 = arith.constant 0 : i32
    return %arg1, %c0_i32, %c0_i32_0 : i32, i32, i32
  }
  func.func @transform_7(%arg0: i32, %arg1: i32) -> (i32, i32, i32) {
    %c2_i32 = arith.constant 2 : i32
    %0 = arith.muli %arg1, %c2_i32 : i32
    %1 = arith.addi %0, %arg0 : i32
    %c0_i32 = arith.constant 0 : i32
    %c0_i32_0 = arith.constant 0 : i32
    %c0_i32_1 = arith.constant 0 : i32
    return %1, %c0_i32, %c0_i32_0 : i32, i32, i32
  }
}

module attributes {stable_mosaic.version = 11 : i64} {
  func.func @_conv_pool_se_kernel(%arg0: i32, %arg1: i32, %arg2: memref<1x4x480x7xbf16, #tpu.memory_space<vmem>>, %arg3: memref<1x64x480xbf16, #tpu.memory_space<vmem>>, %arg4: memref<1x64x1xf32, #tpu.memory_space<vmem>>, %arg5: memref<1x16x64xf32, #tpu.memory_space<vmem>>, %arg6: memref<1x16x1xf32, #tpu.memory_space<vmem>>, %arg7: memref<1x64x16xf32, #tpu.memory_space<vmem>>, %arg8: memref<1x64x1xf32, #tpu.memory_space<vmem>>, %arg9: memref<1x64x7xf32, #tpu.memory_space<vmem>>) attributes {dimension_semantics = [#tpu.dimension_semantics<parallel>, #tpu.dimension_semantics<parallel>], iteration_bounds = array<i64: 2, 5>, scalar_prefetch = 0 : i64, scratch_operands = 0 : i64, tpu.core_type = #tpu.core_type<tc>, window_params = [{transform_indices = @transform_0, window_bounds = array<i64: 1, 4, 480, 7>}, {transform_indices = @transform_1, window_bounds = array<i64: 1, 64, 480>}, {transform_indices = @transform_2, window_bounds = array<i64: 1, 64, 1>}, {transform_indices = @transform_3, window_bounds = array<i64: 1, 16, 64>}, {transform_indices = @transform_4, window_bounds = array<i64: 1, 16, 1>}, {transform_indices = @transform_5, window_bounds = array<i64: 1, 64, 16>}, {transform_indices = @transform_6, window_bounds = array<i64: 1, 64, 1>}, {transform_indices = @transform_7, window_bounds = array<i64: 1, 64, 7>}]} {
    %c0 = arith.constant 0 : index
    %c0_0 = arith.constant 0 : index
    %c0_1 = arith.constant 0 : index
    %0 = vector.load %arg3[%c0, %c0_0, %c0_1] : memref<1x64x480xbf16, #tpu.memory_space<vmem>>, vector<1x64x480xbf16>
    %1 = vector.shape_cast %0 : vector<1x64x480xbf16> to vector<64x480xbf16>
    %c0_2 = arith.constant 0 : index
    %c0_3 = arith.constant 0 : index
    %c0_4 = arith.constant 0 : index
    %2 = vector.load %arg4[%c0_2, %c0_3, %c0_4] : memref<1x64x1xf32, #tpu.memory_space<vmem>>, vector<1x64x1xf32>
    %3 = vector.shape_cast %2 : vector<1x64x1xf32> to vector<64x1xf32>
    %c0_5 = arith.constant 0 : index
    %c0_6 = arith.constant 0 : index
    %c0_7 = arith.constant 0 : index
    %c0_8 = arith.constant 0 : index
    %4 = vector.load %arg2[%c0_5, %c0_6, %c0_7, %c0_8] : memref<1x4x480x7xbf16, #tpu.memory_space<vmem>>, vector<1x1x480x7xbf16>
    %5 = vector.shape_cast %4 : vector<1x1x480x7xbf16> to vector<480x7xbf16>
    %cst = arith.constant dense<0.000000e+00> : vector<64x7xf32>
    %6 = tpu.matmul %1, %5, %cst {dimension_numbers = #tpu.dot_dimension_numbers<[1], [0], [0], [1], [0, 0, 1, 1], [], []>} : vector<64x480xbf16>, vector<480x7xbf16>, vector<64x7xf32> -> vector<64x7xf32>
    %7 = vector.broadcast %3 : vector<64x1xf32> to vector<64x7xf32>
    %8 = arith.addf %6, %7 : vector<64x7xf32>
    %cst_9 = arith.constant 0.000000e+00 : f32
    %9 = vector.broadcast %cst_9 : f32 to vector<64x7xf32>
    %10 = arith.cmpf oge, %8, %9 : vector<64x7xf32>
    %cst_10 = arith.constant 0.00999999977 : f32
    %11 = vector.broadcast %cst_10 : f32 to vector<64x7xf32>
    %12 = arith.mulf %11, %8 : vector<64x7xf32>
    %13 = arith.select %10, %8, %12 : vector<64x7xi1>, vector<64x7xf32>
    %c0_11 = arith.constant 0 : index
    %c1 = arith.constant 1 : index
    %c0_12 = arith.constant 0 : index
    %c0_13 = arith.constant 0 : index
    %14 = vector.load %arg2[%c0_11, %c1, %c0_12, %c0_13] : memref<1x4x480x7xbf16, #tpu.memory_space<vmem>>, vector<1x1x480x7xbf16>
    %15 = vector.shape_cast %14 : vector<1x1x480x7xbf16> to vector<480x7xbf16>
    %cst_14 = arith.constant dense<0.000000e+00> : vector<64x7xf32>
    %16 = tpu.matmul %1, %15, %cst_14 {dimension_numbers = #tpu.dot_dimension_numbers<[1], [0], [0], [1], [0, 0, 1, 1], [], []>} : vector<64x480xbf16>, vector<480x7xbf16>, vector<64x7xf32> -> vector<64x7xf32>
    %17 = vector.broadcast %3 : vector<64x1xf32> to vector<64x7xf32>
    %18 = arith.addf %16, %17 : vector<64x7xf32>
    %cst_15 = arith.constant 0.000000e+00 : f32
    %19 = vector.broadcast %cst_15 : f32 to vector<64x7xf32>
    %20 = arith.cmpf oge, %18, %19 : vector<64x7xf32>
    %cst_16 = arith.constant 0.00999999977 : f32
    %21 = vector.broadcast %cst_16 : f32 to vector<64x7xf32>
    %22 = arith.mulf %21, %18 : vector<64x7xf32>
    %23 = arith.select %20, %18, %22 : vector<64x7xi1>, vector<64x7xf32>
    %24 = arith.maximumf %13, %23 : vector<64x7xf32>
    %c0_17 = arith.constant 0 : index
    %c2 = arith.constant 2 : index
    %c0_18 = arith.constant 0 : index
    %c0_19 = arith.constant 0 : index
    %25 = vector.load %arg2[%c0_17, %c2, %c0_18, %c0_19] : memref<1x4x480x7xbf16, #tpu.memory_space<vmem>>, vector<1x1x480x7xbf16>
    %26 = vector.shape_cast %25 : vector<1x1x480x7xbf16> to vector<480x7xbf16>
    %cst_20 = arith.constant dense<0.000000e+00> : vector<64x7xf32>
    %27 = tpu.matmul %1, %26, %cst_20 {dimension_numbers = #tpu.dot_dimension_numbers<[1], [0], [0], [1], [0, 0, 1, 1], [], []>} : vector<64x480xbf16>, vector<480x7xbf16>, vector<64x7xf32> -> vector<64x7xf32>
    %28 = vector.broadcast %3 : vector<64x1xf32> to vector<64x7xf32>
    %29 = arith.addf %27, %28 : vector<64x7xf32>
    %cst_21 = arith.constant 0.000000e+00 : f32
    %30 = vector.broadcast %cst_21 : f32 to vector<64x7xf32>
    %31 = arith.cmpf oge, %29, %30 : vector<64x7xf32>
    %cst_22 = arith.constant 0.00999999977 : f32
    %32 = vector.broadcast %cst_22 : f32 to vector<64x7xf32>
    %33 = arith.mulf %32, %29 : vector<64x7xf32>
    %34 = arith.select %31, %29, %33 : vector<64x7xi1>, vector<64x7xf32>
    %35 = arith.maximumf %24, %34 : vector<64x7xf32>
    %c0_23 = arith.constant 0 : index
    %c3 = arith.constant 3 : index
    %c0_24 = arith.constant 0 : index
    %c0_25 = arith.constant 0 : index
    %36 = vector.load %arg2[%c0_23, %c3, %c0_24, %c0_25] : memref<1x4x480x7xbf16, #tpu.memory_space<vmem>>, vector<1x1x480x7xbf16>
    %37 = vector.shape_cast %36 : vector<1x1x480x7xbf16> to vector<480x7xbf16>
    %cst_26 = arith.constant dense<0.000000e+00> : vector<64x7xf32>
    %38 = tpu.matmul %1, %37, %cst_26 {dimension_numbers = #tpu.dot_dimension_numbers<[1], [0], [0], [1], [0, 0, 1, 1], [], []>} : vector<64x480xbf16>, vector<480x7xbf16>, vector<64x7xf32> -> vector<64x7xf32>
    %39 = vector.broadcast %3 : vector<64x1xf32> to vector<64x7xf32>
    %40 = arith.addf %38, %39 : vector<64x7xf32>
    %cst_27 = arith.constant 0.000000e+00 : f32
    %41 = vector.broadcast %cst_27 : f32 to vector<64x7xf32>
    %42 = arith.cmpf oge, %40, %41 : vector<64x7xf32>
    %cst_28 = arith.constant 0.00999999977 : f32
    %43 = vector.broadcast %cst_28 : f32 to vector<64x7xf32>
    %44 = arith.mulf %43, %40 : vector<64x7xf32>
    %45 = arith.select %42, %40, %44 : vector<64x7xi1>, vector<64x7xf32>
    %46 = arith.maximumf %35, %45 : vector<64x7xf32>
    %cst_29 = arith.constant dense<0.000000e+00> : vector<64xf32>
    %47 = vector.multi_reduction <add>, %46, %cst_29 [1] : vector<64x7xf32> to vector<64xf32>
    %48 = vector.shape_cast %47 : vector<64xf32> to vector<64x1xf32>
    %cst_30 = arith.constant 7.000000e+00 : f32
    %49 = vector.broadcast %cst_30 : f32 to vector<64x1xf32>
    %50 = arith.divf %48, %49 : vector<64x1xf32>
    %c0_31 = arith.constant 0 : index
    %c0_32 = arith.constant 0 : index
    %c0_33 = arith.constant 0 : index
    %51 = vector.load %arg5[%c0_31, %c0_32, %c0_33] : memref<1x16x64xf32, #tpu.memory_space<vmem>>, vector<1x16x64xf32>
    %52 = vector.shape_cast %51 : vector<1x16x64xf32> to vector<16x64xf32>
    %cst_34 = arith.constant dense<0.000000e+00> : vector<16x1xf32>
    %53 = tpu.matmul %52, %50, %cst_34 {dimension_numbers = #tpu.dot_dimension_numbers<[1], [0], [0], [1], [0, 0, 1, 1], [], []>} : vector<16x64xf32>, vector<64x1xf32>, vector<16x1xf32> -> vector<16x1xf32>
    %c0_35 = arith.constant 0 : index
    %c0_36 = arith.constant 0 : index
    %c0_37 = arith.constant 0 : index
    %54 = vector.load %arg6[%c0_35, %c0_36, %c0_37] : memref<1x16x1xf32, #tpu.memory_space<vmem>>, vector<1x16x1xf32>
    %55 = vector.shape_cast %54 : vector<1x16x1xf32> to vector<16x1xf32>
    %56 = arith.addf %53, %55 : vector<16x1xf32>
    %cst_38 = arith.constant 0.000000e+00 : f32
    %57 = vector.broadcast %cst_38 : f32 to vector<16x1xf32>
    %58 = arith.maximumf %56, %57 : vector<16x1xf32>
    %c0_39 = arith.constant 0 : index
    %c0_40 = arith.constant 0 : index
    %c0_41 = arith.constant 0 : index
    %59 = vector.load %arg7[%c0_39, %c0_40, %c0_41] : memref<1x64x16xf32, #tpu.memory_space<vmem>>, vector<1x64x16xf32>
    %60 = vector.shape_cast %59 : vector<1x64x16xf32> to vector<64x16xf32>
    %cst_42 = arith.constant dense<0.000000e+00> : vector<64x1xf32>
    %61 = tpu.matmul %60, %58, %cst_42 {dimension_numbers = #tpu.dot_dimension_numbers<[1], [0], [0], [1], [0, 0, 1, 1], [], []>} : vector<64x16xf32>, vector<16x1xf32>, vector<64x1xf32> -> vector<64x1xf32>
    %c0_43 = arith.constant 0 : index
    %c0_44 = arith.constant 0 : index
    %c0_45 = arith.constant 0 : index
    %62 = vector.load %arg8[%c0_43, %c0_44, %c0_45] : memref<1x64x1xf32, #tpu.memory_space<vmem>>, vector<1x64x1xf32>
    %63 = vector.shape_cast %62 : vector<1x64x1xf32> to vector<64x1xf32>
    %64 = arith.addf %61, %63 : vector<64x1xf32>
    %65 = arith.negf %64 : vector<64x1xf32>
    %66 = math.exp %65 : vector<64x1xf32>
    %cst_46 = arith.constant 1.000000e+00 : f32
    %67 = vector.broadcast %cst_46 : f32 to vector<64x1xf32>
    %68 = arith.addf %67, %66 : vector<64x1xf32>
    %69 = arith.divf %67, %68 : vector<64x1xf32>
    %cst_47 = arith.constant 1.000000e+00 : f32
    %70 = vector.broadcast %cst_47 : f32 to vector<64x1xf32>
    %71 = arith.addf %70, %69 : vector<64x1xf32>
    %72 = vector.broadcast %71 : vector<64x1xf32> to vector<64x7xf32>
    %73 = arith.mulf %46, %72 : vector<64x7xf32>
    %cst_48 = arith.constant 0.000000e+00 : f32
    %74 = vector.broadcast %cst_48 : f32 to vector<64x7xf32>
    %75 = arith.maximumf %73, %74 : vector<64x7xf32>
    %c0_49 = arith.constant 0 : index
    %c0_50 = arith.constant 0 : index
    %c0_51 = arith.constant 0 : index
    %76 = vector.load %arg9[%c0_49, %c0_50, %c0_51] : memref<1x64x7xf32, #tpu.memory_space<vmem>>, vector<1x64x7xf32>
    %77 = vector.shape_cast %76 : vector<1x64x7xf32> to vector<64x7xf32>
    %78 = vector.shape_cast %75 : vector<64x7xf32> to vector<1x64x7xf32>
    tpu.vector_store %arg9[%c0_49, %c0_50, %c0_51], %78 {strides = array<i32>} : memref<1x64x7xf32, #tpu.memory_space<vmem>>, vector<1x64x7xf32>,
    return
  }
  func.func @transform_0(%arg0: i32, %arg1: i32) -> (i32, i32, i32, i32) {
    %c2_i32 = arith.constant 2 : i32
    %0 = arith.muli %arg1, %c2_i32 : i32
    %1 = arith.addi %0, %arg0 : i32
    %c0_i32 = arith.constant 0 : i32
    %c0_i32_0 = arith.constant 0 : i32
    %c0_i32_1 = arith.constant 0 : i32
    %c0_i32_2 = arith.constant 0 : i32
    return %1, %c0_i32, %c0_i32_0, %c0_i32_1 : i32, i32, i32, i32
  }
  func.func @transform_1(%arg0: i32, %arg1: i32) -> (i32, i32, i32) {
    %c0_i32 = arith.constant 0 : i32
    %c0_i32_0 = arith.constant 0 : i32
    %c0_i32_1 = arith.constant 0 : i32
    return %arg1, %c0_i32, %c0_i32_0 : i32, i32, i32
  }
  func.func @transform_2(%arg0: i32, %arg1: i32) -> (i32, i32, i32) {
    %c0_i32 = arith.constant 0 : i32
    %c0_i32_0 = arith.constant 0 : i32
    %c0_i32_1 = arith.constant 0 : i32
    return %arg1, %c0_i32, %c0_i32_0 : i32, i32, i32
  }
  func.func @transform_3(%arg0: i32, %arg1: i32) -> (i32, i32, i32) {
    %c0_i32 = arith.constant 0 : i32
    %c0_i32_0 = arith.constant 0 : i32
    %c0_i32_1 = arith.constant 0 : i32
    return %arg1, %c0_i32, %c0_i32_0 : i32, i32, i32
  }
  func.func @transform_4(%arg0: i32, %arg1: i32) -> (i32, i32, i32) {
    %c0_i32 = arith.constant 0 : i32
    %c0_i32_0 = arith.constant 0 : i32
    %c0_i32_1 = arith.constant 0 : i32
    return %arg1, %c0_i32, %c0_i32_0 : i32, i32, i32
  }
  func.func @transform_5(%arg0: i32, %arg1: i32) -> (i32, i32, i32) {
    %c0_i32 = arith.constant 0 : i32
    %c0_i32_0 = arith.constant 0 : i32
    %c0_i32_1 = arith.constant 0 : i32
    return %arg1, %c0_i32, %c0_i32_0 : i32, i32, i32
  }
  func.func @transform_6(%arg0: i32, %arg1: i32) -> (i32, i32, i32) {
    %c0_i32 = arith.constant 0 : i32
    %c0_i32_0 = arith.constant 0 : i32
    %c0_i32_1 = arith.constant 0 : i32
    return %arg1, %c0_i32, %c0_i32_0 : i32, i32, i32
  }
  func.func @transform_7(%arg0: i32, %arg1: i32) -> (i32, i32, i32) {
    %c2_i32 = arith.constant 2 : i32
    %0 = arith.muli %arg1, %c2_i32 : i32
    %1 = arith.addi %0, %arg0 : i32
    %c0_i32 = arith.constant 0 : i32
    %c0_i32_0 = arith.constant 0 : i32
    %c0_i32_1 = arith.constant 0 : i32
    return %1, %c0_i32, %c0_i32_0 : i32, i32, i32
  }
}

</mosaic_0001>

<bundles_post_ra>
// kernel: jmnet_forward.3
= control target key start
LH: loop header
LB: loop body
LE: loop exit
PB: predicated region body
PF: predicated region fallthrough
CT: control target
= control target key end

     0   :  { %s4445_s24 = smov 0   ;;  %s4447_s25 = smov 0   ;;  %s4908_s0 = inlined_call_operand.vmem [shape: bf16[2,8,328,69], index: 0, kind: input, shape index: {}]   ;;  %s4909_s1 = inlined_call_operand.vmem [shape: bf16[5,32,328], index: 1, kind: input, shape index: {}]   ;;  %s4910_s2 = inlined_call_operand.vmem [shape: f32[5,32,1], index: 2, kind: input, shape index: {}]   ;;  %s4911_s3 = inlined_call_operand.vmem [shape: f32[5,8,32], index: 3, kind: input, shape index: {}]   ;;  %s4912_s4 = inlined_call_operand.vmem [shape: f32[5,8,1], index: 4, kind: input, shape index: {}]   ;;  %s4913_s5 = inlined_call_operand.vmem [shape: f32[5,32,8], index: 5, kind: input, shape index: {}]   ;;  %s4914_s6 = inlined_call_operand.vmem [shape: f32[5,32,1], index: 6, kind: input, shape index: {}]   ;;  %s4915_s7 = inlined_call_operand.vmem [shape: bf16[10,32,69], index: 7, kind: output, shape index: {}]  }
   0x1   :  { %s4449_s26 = smov 0   ;;  %s4451_s27 = smov 0  }
   0x2   :  { %s4453_s28 = smov 0  }
   0x3 LB: > { %s26_s29 = sadd.s32 1, %s4391_s26  ;;  %s29_s30 = sadd.s32 1, %s4395_s27  ;;  %s4399_s28 = sphi %s4453_s28, %s17_s28   ;;  %s4395_s27 = sphi %s4451_s27, %s4919_s27   ;;  %s4391_s26 = sphi %s4449_s26, %s4918_s26   ;;  %s4387_s25 = sphi %s4447_s25, %s4917_s25   ;;  %s4383_s24 = sphi %s4445_s24, %s4916_s24  }
   0x4   : > { %p27_p0 = scmp.ge.s32.totalorder %s26_s29, 5  ;;  %p3166_p1 = scmp.ge.s32.totalorder %s4399_s28, 1 }
   0x5   : > { %p311_p2 = scmp.lt.s32.totalorder %s4399_s28, 11 }
   0x6   : > { %s4921_s29 = smov (%p27_p0, %s26_s29), 0  ;;  %s4923_s30 = smov (!%p27_p0, %s29_s30), %s4395_s27 }
   0x7   : > { %p312_p3 = pnand %p3166_p1, %p311_p2  ;;  %p31_p4 = scmp.ge.s32.totalorder %s4923_s30, 2 }
   0x8   : > { %p373_p5 = scmp.lt.s32.totalorder (!%p312_p3), %s4387_s25, 1  ;;  %v4401_v0 = vmov (!%p312_p3), 0   ;;  %p378_p6 = scmp.lt.s32.totalorder (!%p312_p3), %s4383_s24, 4  ;;  %vm649_vm0 = vcmask (!%p312_p3), 1043456   ;;  %vm642_vm1 = vcmask (!%p312_p3), 588800  }
   0x9   : > { %s4925_s30 = smov (%p31_p4, %s4923_s30), 0  ;;  %315 = sbr.rel (%p312_p3) target bundleno = 1221 (0x4c5), region = 48 }
   0xa   : > { %4161 = vset.pattern.permute.xlu0 (!%p312_p3), %v4401_v0  ;;  %4162 = vset.pattern.permute.xlu1 (!%p312_p3), %v4401_v0 }
  0x10   : > { %s374_s8 = scalar_select %p373_p5, %s4387_s25, 1 }
  0x11   : > { %s4493_s13 = scalar_select %p378_p6, %s4383_s24, 4 }
  0x12   : > { %s4115_s9 = smul.u32 1312, %s374_s8 }
  0x13   : > { %s4116_s14 = smul.u32 48, %s4493_s13  ;;  %s4624_s18 = sshll.u32 %s4493_s13, 5 }
  0x14   : > { %s4484_s12 = scalar_lea.vmem %s4908_s0, %s4115_s9  ;;  %s4633_s21 = scalar_lea.vmem %s4910_s2, %s4624_s18 }
  0x15   : > { %v4163_v1 = vld [vmem:[%s4484_s12 + $0x40] sm:$0xff]   ;;  %v4166_v4 = vld [vmem:[%s4484_s12 + $0x48] sm:$0xff]   ;;  %v4169_v7 = vld [vmem:[%s4484_s12 + $0x50] sm:$0xff]   ;;  %s4507_s17 = scalar_lea.vmem %s4909_s1, %s4116_s14  ;;  %s3171_s22 = sshll.u32 %s4493_s13, 3 }
  0x16   : > { %v4164_v2 = vld [vmem:[%s4484_s12 + $0x80] sm:$0xff]   ;;  %3680 = vmatprep.subr.bf16.mxu0 %v4163_v1  ;;  %v4167_v5 = vld [vmem:[%s4484_s12 + $0x88] sm:$0xff]   ;;  %v4170_v8 = vld [vmem:[%s4484_s12 + $0x90] sm:$0xff]   ;;  %s391_s9 = scalar_lea.vmem %s4911_s3, %s3171_s22  ;;  %s395_s15 = scalar_lea.vmem %s4912_s4, %s3171_s22 }
  0x17   : > { %v4165_v3 = vld [vmem:[%s4484_s12] sm:$0xff]   ;;  %3970 = vmatprep.subr.bf16.mxu1 %v4164_v2  ;;  %v4168_v6 = vld [vmem:[%s4484_s12 + $0x8] sm:$0xff]   ;;  %v4171_v9 = vld [vmem:[%s4484_s12 + $0x10] sm:$0xff]   ;;  %s405_s19 = scalar_lea.vmem %s4914_s6, %s4624_s18 }
  0x18   : > { %3681 = vmatpush3.bf16.msra.mxu0 %v4165_v3  ;;  %3971 = vmatpush3.bf16.msra.mxu1 %v4164_v2  ;;  %v4172_v10 = vld [vmem:[%s4484_s12 + $0x58] sm:$0xff]   ;;  %v4175_v13 = vld [vmem:[%s4484_s12 + $0x60] sm:$0xff]   ;;  %v4513_v17 = vld [vmem:[%s4507_s17 + $0x8] ss:$12 sps:$4 sm:$0xff]  }
  0x19   : > { %3682 = vmatprep.subr.bf16.mxu0 %v4166_v4  ;;  %3972 = vmatprep.subr.bf16.mxu1 %v4167_v5  ;;  %v4173_v11 = vld [vmem:[%s4484_s12 + $0x98] sm:$0xff]   ;;  %v4176_v14 = vld [vmem:[%s4484_s12 + $0xa0] ss:$0 sps:$4 sm:$0xff]   ;;  %v4179_v18 = vld [vmem:[%s4484_s12 + $0x68] sm:$0xff]  }
  0x1a   : > { %v4174_v12 = vld [vmem:[%s4484_s12 + $0x18] sm:$0xff]   ;;  %v4177_v15 = vld [vmem:[%s4484_s12 + $0x20] sm:$0xff]   ;;  %v651_v16 = vsel %vm649_vm0, %v4176_v14, 0  ;;  %3980 = vmatprep.mubr.msk.bf16.mxu1 %vm642_vm1, %v4513_v17  ;;  %v4182_v21 = vld [vmem:[%s4484_s12 + $0x28] sm:$0xff]  }
  0x1b   : > { %v4518_v19 = vld [vmem:[%s4507_s17 + $0x20] ss:$12 sps:$4 sm:$0xff]   ;;  %v4181_v20 = vld [vmem:[%s4484_s12 + $0xe4] sm:$0xff]   ;;  %v4184_v23 = vld [vmem:[%s4484_s12 + $0x70] sm:$0xff]  }
  0x1c   : > { %3683 = vmatpush3.bf16.msra.mxu0 %v4168_v6  ;;  %3973 = vmatpush3.bf16.msra.mxu1 %v4167_v5  ;;  %v4183_v22 = vld [vmem:[%s4484_s12 + $0xa4] sm:$0xff]   ;;  %v4185_v24 = vld [vmem:[%s4484_s12 + $0xec] sm:$0xff]   ;;  %v4188_v27 = vld [vmem:[%s4484_s12 + $0x78] sm:$0xff]  }
  0x1d   : > { %3684 = vmatprep.subr.bf16.mxu0 %v4169_v7  ;;  %3974 = vmatprep.subr.bf16.mxu1 %v4170_v8  ;;  %v4186_v25 = vld [vmem:[%s4484_s12 + $0x30] sm:$0xff]   ;;  %v4190_v29 = vld [vmem:[%s4484_s12 + $0x38] sm:$0xff]   ;;  %v4539_v32 = vld [vmem:[%s4507_s17] ss:$12 sps:$4 sm:$0xff]  }
  0x1e   : > { %v4187_v26 = vld [vmem:[%s4484_s12 + $0xac] sm:$0xff]   ;;  %v4189_v28 = vld [vmem:[%s4484_s12 + $0xf4] sm:$0xff]   ;;  %v4195_v33 = vld [vmem:[%s4484_s12 + $0xfc] sm:$0xff]  }
  0x1f   : > { %v4191_v30 = vld [vmem:[%s4484_s12 + $0xb4] sm:$0xff]   ;;  %v4536_v31 = vld [vmem:[%s4507_s17 + $0x4] ss:$12 sps:$4 sm:$0xff]   ;;  %v4197_v35 = vld [vmem:[%s4484_s12 + $0xbc] sm:$0xff]  }
  0x20   : > { %3685 = vmatpush3.bf16.msra.mxu0 %v4171_v9  ;;  %3975 = vmatpush3.bf16.msra.mxu1 %v4170_v8  ;;  %v4196_v34 = vld [vmem:[%s4484_s12 + $0x124] sm:$0xff]   ;;  %v4199_v37 = vld [vmem:[%s4484_s12 + $0x12c] sm:$0xff]   ;;  %v4205_v42 = vld [vmem:[%s4484_s12 + $0x134] sm:$0xff]  }
  0x21   : > { %3686 = vmatprep.subr.bf16.mxu0 %v4172_v10  ;;  %3976 = vmatprep.subr.bf16.mxu1 %v4173_v11  ;;  %v4198_v36 = vld [vmem:[%s4484_s12 + $0x104] sm:$0xff]   ;;  %v4204_v41 = vld [vmem:[%s4484_s12 + $0x10c] sm:$0xff]   ;;  %v4207_v44 = vld [vmem:[%s4484_s12 + $0x114] sm:$0xff]  }
  0x22   : > { %685 = vmatprep.mubr.bf16.mxu0 %v4536_v31  ;;  %v4200_v38 = vld [vmem:[%s4484_s12 + $0xc4] sm:$0xff]   ;;  %v4206_v43 = vld [vmem:[%s4484_s12 + $0xcc] sm:$0xff]   ;;  %v4208_v45 = vld [vmem:[%s4484_s12 + $0x13c] sm:$0xff]  }
  0x23   : > { %v4551_v39 = vld [vmem:[%s4507_s17 + $0x1c] ss:$12 sps:$4 sm:$0xff]   ;;  %v4554_v40 = vld [vmem:[%s4507_s17 + $0x18] ss:$12 sps:$4 sm:$0xff]   ;;  %v4216_v54 = vld [vmem:[%s4484_s12 + $0x190] sm:$0xff]  }
  0x24   : > { %3687 = vmatpush3.bf16.msra.mxu0 %v4174_v12  ;;  %3977 = vmatpush3.bf16.msra.mxu1 %v4173_v11  ;;  %v4209_v46 = vld [vmem:[%s4484_s12 + $0xd4] sm:$0xff]   ;;  %v4210_v47 = vld [vmem:[%s4484_s12 + $0x11c] sm:$0xff]   ;;  %v4211_v48 = vld [vmem:[%s4484_s12 + $0x144] ss:$0 sps:$4 sm:$0xff]  }
  0x25   : > { %3688 = vmatprep.subr.bf16.mxu0 %v4175_v13  ;;  %4107 = vmatprep.subr.msk.bf16.mxu1 %vm649_vm0, %v4176_v14  ;;  %v4212_v49 = vld [vmem:[%s4484_s12 + $0xdc] sm:$0xff]   ;;  %v4213_v50 = vld [vmem:[%s4484_s12 + $0x188] sm:$0xff]   ;;  %v929_v51 = vsel %vm649_vm0, %v4211_v48, 0  ;;  %v4217_v55 = vld [vmem:[%s4484_s12 + $0x1d0] sm:$0xff]  }
  0x26   : > { %v4214_v52 = vld [vmem:[%s4484_s12 + $0x1c8] sm:$0xff]   ;;  %v4218_v56 = vld [vmem:[%s4484_s12 + $0x150] sm:$0xff]   ;;  %v4219_v57 = vld [vmem:[%s4484_s12 + $0x198] sm:$0xff]  }
  0x27   : > { %v4215_v53 = vld [vmem:[%s4484_s12 + $0x148] sm:$0xff]   ;;  %v4220_v58 = vld [vmem:[%s4484_s12 + $0x1d8] sm:$0xff]   ;;  %v4222_v60 = vld [vmem:[%s4484_s12 + $0x1a0] sm:$0xff]  }
  0x28   : > { %3689 = vmatpush3.bf16.msra.mxu0 %v4177_v15  ;;  %3979 = vmatpush3.bf16.msra.mxu1 %v651_v16  ;;  %v4221_v59 = vld [vmem:[%s4484_s12 + $0x158] sm:$0xff]   ;;  %v4223_v61 = vld [vmem:[%s4484_s12 + $0x1e0] sm:$0xff]   ;;  %v4225_v63 = vld [vmem:[%s4484_s12 + $0x1a8] sm:$0xff]  }
  0x29   : > { %3690 = vmatprep.subr.bf16.mxu0 %v4179_v18  ;;  %3715 = vmatprep.subr.bf16.mxu1 %v4181_v20  ;;  %v4224_v62 = vld [vmem:[%s4484_s12 + $0x160] sm:$0xff]   ;;  %v4226_v0 = vld [vmem:[%s4484_s12 + $0x1e8] ss:$0 sps:$4 sm:$0xff]   ;;  %v4228_v2 = vld [vmem:[%s4484_s12 + $0x1b0] sm:$0xff]  }
  0x2a   : > { %v4227_v1 = vld [vmem:[%s4484_s12 + $0x168] sm:$0xff]   ;;  %v1211_v3 = vsel %vm649_vm0, %v4226_v0, 0  ;;  %v4230_v5 = vld [vmem:[%s4484_s12 + $0x170] sm:$0xff]   ;;  %v4232_v7 = vld [vmem:[%s4484_s12 + $0x1b8] sm:$0xff]  }
  0x2b   : > { %3981 = vmatmul.mubr.msk.bf16.vlgmr.msra.gmra.mrb[0].mxu1 %vm642_vm1, %v4518_v19  ;;  %v4229_v4 = vld [vmem:[%s4484_s12 + $0x22c] sm:$0xff]   ;;  %v4233_v8 = vld [vmem:[%s4484_s12 + $0x234] sm:$0xff]   ;;  %v4236_v11 = vld [vmem:[%s4484_s12 + $0x1c0] sm:$0xff]  }
  0x2c   : > { %3691 = vmatpush3.bf16.msra.mxu0 %v4182_v21  ;;  %3716 = vmatpush3.bf16.msra.mxu1 %v4183_v22  ;;  %v4231_v6 = vld [vmem:[%s4484_s12 + $0x1ec] sm:$0xff]   ;;  %v4234_v9 = vld [vmem:[%s4484_s12 + $0x178] sm:$0xff]   ;;  %v4238_v13 = vld [vmem:[%s4484_s12 + $0x180] sm:$0xff]  }
  0x2d   : > { %3692 = vmatprep.subr.bf16.mxu0 %v4184_v23  ;;  %3717 = vmatprep.subr.bf16.mxu1 %v4185_v24  ;;  %v4235_v10 = vld [vmem:[%s4484_s12 + $0x1f4] sm:$0xff]   ;;  %v4237_v12 = vld [vmem:[%s4484_s12 + $0x23c] sm:$0xff]   ;;  %v4240_v15 = vld [vmem:[%s4484_s12 + $0x244] sm:$0xff]  }
  0x2e   : > { %963 = vmatprep.mubr.bf16.mxu1 %v4536_v31  ;;  %v4239_v14 = vld [vmem:[%s4484_s12 + $0x1fc] sm:$0xff]   ;;  %v4241_v16 = vld [vmem:[%s4484_s12 + $0x26c] sm:$0xff]   ;;  %v4242_v18 = vld [vmem:[%s4484_s12 + $0x204] sm:$0xff]  }
  0x2f   : > { %v4243_v20 = vld [vmem:[%s4484_s12 + $0x24c] sm:$0xff]   ;;  %v4244_v21 = vld [vmem:[%s4484_s12 + $0x274] sm:$0xff]   ;;  %v4247_v24 = vld [vmem:[%s4484_s12 + $0x27c] sm:$0xff]  }
  0x30   : > { %3693 = vmatpush3.bf16.msra.mxu0 %v4186_v25  ;;  %3718 = vmatpush3.bf16.msra.mxu1 %v4187_v26  ;;  %v4245_v22 = vld [vmem:[%s4484_s12 + $0x20c] sm:$0xff]   ;;  %v4246_v23 = vld [vmem:[%s4484_s12 + $0x254] sm:$0xff]   ;;  %v4249_v26 = vld [vmem:[%s4484_s12 + $0x25c] sm:$0xff]  }
  0x31   : > { %3694 = vmatprep.subr.bf16.mxu0 %v4188_v27  ;;  %3719 = vmatprep.subr.bf16.mxu1 %v4189_v28  ;;  %v4248_v25 = vld [vmem:[%s4484_s12 + $0x214] sm:$0xff]   ;;  %v4250_v27 = vld [vmem:[%s4484_s12 + $0x284] sm:$0xff]   ;;  %v4251_v28 = vld [vmem:[%s4484_s12 + $0x21c] sm:$0xff]  }
  0x34   : > { %3695 = vmatpush3.bf16.msra.mxu0 %v4190_v29  ;;  %3720 = vmatpush3.bf16.msra.mxu1 %v4191_v30  ;;  %v4252_v29 = vld [vmem:[%s4484_s12 + $0x264] sm:$0xff]   ;;  %v4253_v30 = vld [vmem:[%s4484_s12 + $0x28c] ss:$0 sps:$4 sm:$0xff]  }
  0x35   : > { %3721 = vmatprep.subr.bf16.mxu1 %v4195_v33  ;;  %3984 = vmatprep.subr.bf16.mxu0 %v4196_v34  ;;  %v424_v33 = vld [vmem:[%s4633_s21] sm:$0xff] }
  0x36   : > { %471 = vperm.xlu0 %4161, %v424_v33   ;;  %v4306_v33 = vld [vmem:[%s4484_s12 + $0x430] sm:$0xff]  }
  0x37   : > { %686 = vmatmul.mubr.bf16.vlgmr.msra.gmra.mrb[0].mxu0 %v4539_v32 }
  0x38   : > { %3722 = vmatpush3.bf16.msra.mxu1 %v4197_v35  ;;  %3985 = vmatpush3.bf16.msra.mxu0 %v4196_v34  ;;  %v4254_v34 = vld [vmem:[%s4484_s12 + $0x224] sm:$0xff]   ;;  %v4255_v35 = vld [vmem:[%s4484_s12 + $0x2d0] sm:$0xff]  }
  0x39   : > { %3723 = vmatprep.subr.bf16.mxu1 %v4198_v36  ;;  %3986 = vmatprep.subr.bf16.mxu0 %v4199_v37  ;;  %v1493_v36 = vsel %vm649_vm0, %v4253_v30, 0 }
  0x3a   : > { %693 = vmatprep.mubr.bf16.mxu0 %v4551_v39 }
  0x3c   : > { %3724 = vmatpush3.bf16.msra.mxu1 %v4200_v38  ;;  %3987 = vmatpush3.bf16.msra.mxu0 %v4199_v37  ;;  %v4256_v37 = vld [vmem:[%s4484_s12 + $0x310] sm:$0xff]   ;;  %v425_v38 = vld [vmem:[%s4633_s21 + $0x8] sm:$0xff] }
  0x3d   : > { %3725 = vmatprep.subr.bf16.mxu1 %v4204_v41  ;;  %3988 = vmatprep.subr.bf16.mxu0 %v4205_v42  ;;  %v4257_v41 = vld [vmem:[%s4484_s12 + $0x290] sm:$0xff]  }
  0x3e   : > { %476 = vperm.xlu0 %4161, %v425_v38   ;;  %v4310_v38 = vld [vmem:[%s4484_s12 + $0x478] ss:$0 sps:$4 sm:$0xff]  }
  0x3f   : > { %694 = vmatmul.mubr.bf16.gmra.mrb[4].mxu0 %v4554_v40 }
  0x40   : > { %3726 = vmatpush3.bf16.msra.mxu1 %v4206_v43  ;;  %3989 = vmatpush3.bf16.msra.mxu0 %v4205_v42  ;;  %v4258_v42 = vld [vmem:[%s4484_s12 + $0x2d8] sm:$0xff]   ;;  %v426_v43 = vld [vmem:[%s4633_s21 + $0x10] sm:$0xff] }
  0x41   : > { %3727 = vmatprep.subr.bf16.mxu1 %v4207_v44  ;;  %3990 = vmatprep.subr.bf16.mxu0 %v4208_v45  ;;  %v4259_v44 = vld [vmem:[%s4484_s12 + $0x318] sm:$0xff]  }
  0x42   : > { %3994 = vmatprep.mubr.msk.bf16.mxu0 %vm642_vm1, %v4513_v17  ;;  %481 = vperm.xlu1 %4162, %v426_v43   ;;  %v4312_v43 = vld [vmem:[%s4484_s12 + $0x440] sm:$0xff]  }
  0x44   : > { %3728 = vmatpush3.bf16.msra.mxu1 %v4209_v46  ;;  %3991 = vmatpush3.bf16.msra.mxu0 %v4208_v45  ;;  %v4260_v45 = vld [vmem:[%s4484_s12 + $0x298] sm:$0xff]   ;;  %v4261_v46 = vld [vmem:[%s4484_s12 + $0x2e0] sm:$0xff]  }
  0x45   : > { %3729 = vmatprep.subr.bf16.mxu1 %v4210_v47  ;;  %4108 = vmatprep.subr.msk.bf16.mxu0 %vm649_vm0, %v4211_v48  ;;  %v4262_v47 = vld [vmem:[%s4484_s12 + $0x320] sm:$0xff]   ;;  %v427_v48 = vld [vmem:[%s4633_s21 + $0x18] sm:$0xff] }
  0x46   : > { %486 = vperm.xlu1 %4162, %v427_v48   ;;  %v4317_v48 = vld [vmem:[%s4484_s12 + $0x4c4] sm:$0xff]  }
  0x48   : > { %3730 = vmatpush3.bf16.msra.mxu1 %v4212_v49  ;;  %3993 = vmatpush3.bf16.msra.mxu0 %v929_v51  ;;  %v4263_v49 = vld [vmem:[%s4484_s12 + $0x2a0] sm:$0xff]   ;;  %v4265_v51 = vld [vmem:[%s4484_s12 + $0x328] sm:$0xff]  }
  0x49   : > { %3750 = vmatprep.subr.bf16.mxu0 %v4213_v50  ;;  %3998 = vmatprep.subr.bf16.mxu1 %v4214_v52  ;;  %v4264_v50 = vld [vmem:[%s4484_s12 + $0x2e8] sm:$0xff]  }
  0x4b   : > { %964 = vmatmul.mubr.bf16.vlgmr.msra.gmra.mrb[4].mxu1 %v4539_v32  ;;  %3995 = vmatmul.mubr.msk.bf16.vlgmr.msra.gmra.mrb[8].mxu0 %vm642_vm1, %v4518_v19 }
  0x4c   : > { %3751 = vmatpush3.bf16.msra.mxu0 %v4215_v53  ;;  %3999 = vmatpush3.bf16.msra.mxu1 %v4214_v52  ;;  %v4266_v52 = vld [vmem:[%s4484_s12 + $0x2a8] sm:$0xff]   ;;  %v4267_v53 = vld [vmem:[%s4484_s12 + $0x2f0] sm:$0xff]  }
  0x4d   : > { %3752 = vmatprep.subr.bf16.mxu0 %v4216_v54  ;;  %4000 = vmatprep.subr.bf16.mxu1 %v4217_v55  ;;  %v4268_v54 = vld [vmem:[%s4484_s12 + $0x330] ss:$0 sps:$4 sm:$0xff]  }
  0x4e   : > { %971 = vmatprep.mubr.bf16.mxu1 %v4551_v39  ;;  %1245 = vmatprep.mubr.bf16.mxu0 %v4536_v31 }
  0x50   : > { %3753 = vmatpush3.bf16.msra.mxu0 %v4218_v56  ;;  %4001 = vmatpush3.bf16.msra.mxu1 %v4217_v55  ;;  %v4269_v55 = vld [vmem:[%s4484_s12 + $0x2b0] sm:$0xff]   ;;  %v4270_v56 = vld [vmem:[%s4484_s12 + $0x2f8] sm:$0xff]  }
  0x51   : > { %3754 = vmatprep.subr.bf16.mxu0 %v4219_v57  ;;  %4002 = vmatprep.subr.bf16.mxu1 %v4220_v58  ;;  %v1775_v57 = vsel %vm649_vm0, %v4268_v54, 0 }
  0x53   : > { %972 = vmatmul.mubr.bf16.gmra.mrb[8].mxu1 %v4554_v40 }
  0x54   : > { %3755 = vmatpush3.bf16.msra.mxu0 %v4221_v59  ;;  %4003 = vmatpush3.bf16.msra.mxu1 %v4220_v58  ;;  %v4271_v58 = vld [vmem:[%s4484_s12 + $0x374] sm:$0xff]  }
  0x55   : > { %3756 = vmatprep.subr.bf16.mxu0 %v4222_v60  ;;  %4004 = vmatprep.subr.bf16.mxu1 %v4223_v61  ;;  %v4272_v59 = vld [vmem:[%s4484_s12 + $0x2b8] sm:$0xff]  }
  0x56   : > { %4008 = vmatprep.mubr.msk.bf16.mxu1 %vm642_vm1, %v4513_v17  ;;  %v4273_v60 = vld [vmem:[%s4484_s12 + $0x334] sm:$0xff]  }
  0x58   : > { %3757 = vmatpush3.bf16.msra.mxu0 %v4224_v62  ;;  %4005 = vmatpush3.bf16.msra.mxu1 %v4223_v61  ;;  %v4275_v61 = vld [vmem:[%s4484_s12 + $0x37c] sm:$0xff]  }
  0x59   : > { %3758 = vmatprep.subr.bf16.mxu0 %v4225_v63  ;;  %4109 = vmatprep.subr.msk.bf16.mxu1 %vm649_vm0, %v4226_v0  ;;  %v4276_v62 = vld [vmem:[%s4484_s12 + $0x2c0] sm:$0xff]   ;;  %v4278_v0 = vld [vmem:[%s4484_s12 + $0x308] sm:$0xff]  }
  0x5a   : > { %v4277_v63 = vld [vmem:[%s4484_s12 + $0x33c] sm:$0xff]  }
  0x5c   : > { %3759 = vmatpush3.bf16.msra.mxu0 %v4227_v1  ;;  %4007 = vmatpush3.bf16.msra.mxu1 %v1211_v3  ;;  %v4279_v1 = vld [vmem:[%s4484_s12 + $0x384] sm:$0xff]  }
  0x5d   : > { %3760 = vmatprep.subr.bf16.mxu0 %v4228_v2  ;;  %3785 = vmatprep.subr.bf16.mxu1 %v4229_v4  ;;  %v4280_v2 = vld [vmem:[%s4484_s12 + $0x2c8] sm:$0xff]   ;;  %v4283_v4 = vld [vmem:[%s4484_s12 + $0x3b4] sm:$0xff]  }
  0x5e   : > { %v4281_v3 = vld [vmem:[%s4484_s12 + $0x344] sm:$0xff]  }
  0x5f   : > { %4009 = vmatmul.mubr.msk.bf16.vlgmr.msra.gmra.mrb[12].mxu1 %vm642_vm1, %v4518_v19 }
  0x60   : > { %3761 = vmatpush3.bf16.msra.mxu0 %v4230_v5  ;;  %3786 = vmatpush3.bf16.msra.mxu1 %v4231_v6  ;;  %v4284_v5 = vld [vmem:[%s4484_s12 + $0x34c] sm:$0xff]   ;;  %v4285_v6 = vld [vmem:[%s4484_s12 + $0x394] sm:$0xff]  }
  0x61   : > { %3762 = vmatprep.subr.bf16.mxu0 %v4232_v7  ;;  %3787 = vmatprep.subr.bf16.mxu1 %v4233_v8  ;;  %v4286_v7 = vld [vmem:[%s4484_s12 + $0x3bc] sm:$0xff]  }
  0x62   : > { %1527 = vmatprep.mubr.bf16.mxu1 %v4536_v31  ;;  %v4288_v8 = vld [vmem:[%s4484_s12 + $0x39c] sm:$0xff]  }
  0x64   : > { %3763 = vmatpush3.bf16.msra.mxu0 %v4234_v9  ;;  %3788 = vmatpush3.bf16.msra.mxu1 %v4235_v10  ;;  %v4289_v9 = vld [vmem:[%s4484_s12 + $0x3c4] sm:$0xff]   ;;  %v4290_v10 = vld [vmem:[%s4484_s12 + $0x35c] sm:$0xff]  }
  0x65   : > { %3764 = vmatprep.subr.bf16.mxu0 %v4236_v11  ;;  %3789 = vmatprep.subr.bf16.mxu1 %v4237_v12  ;;  %v4291_v11 = vld [vmem:[%s4484_s12 + $0x3a4] sm:$0xff]  }
  0x66   : > { %v4293_v12 = vld [vmem:[%s4484_s12 + $0x364] sm:$0xff]  }
  0x68   : > { %3765 = vmatpush3.bf16.msra.mxu0 %v4238_v13  ;;  %3790 = vmatpush3.bf16.msra.mxu1 %v4239_v14  ;;  %v4294_v13 = vld [vmem:[%s4484_s12 + $0x3ac] sm:$0xff]   ;;  %v4704_v14 = vld [vmem:[%s4507_s17 + $0x8] ss:$12 sps:$4 sm:$0xff]  }
  0x69   : > { %3791 = vmatprep.subr.bf16.mxu1 %v4240_v15  ;;  %4012 = vmatprep.subr.bf16.mxu0 %v4241_v16  ;;  %v4296_v15 = vld [vmem:[%s4484_s12 + $0x36c] sm:$0xff]  }
  0x6b   : > { %1246 = vmatmul.mubr.bf16.vlgmr.msra.gmra.mrb[12].mxu0 %v4539_v32 }
  0x6c   : > { %3792 = vmatpush3.bf16.msra.mxu1 %v4242_v18  ;;  %4013 = vmatpush3.bf16.msra.mxu0 %v4241_v16  ;;  %v4298_v18 = vld [vmem:[%s4484_s12 + $0x458] sm:$0xff]  }
  0x6d   : > { %3793 = vmatprep.subr.bf16.mxu1 %v4243_v20  ;;  %4014 = vmatprep.subr.bf16.mxu0 %v4244_v21  ;;  %v4299_v20 = vld [vmem:[%s4484_s12 + $0x3d8] sm:$0xff]  }
  0x6e   : > { %1253 = vmatprep.mubr.bf16.mxu0 %v4551_v39 }
  0x70   : > { %3794 = vmatpush3.bf16.msra.mxu1 %v4245_v22  ;;  %4015 = vmatpush3.bf16.msra.mxu0 %v4244_v21  ;;  %v4300_v21 = vld [vmem:[%s4484_s12 + $0x420] sm:$0xff]  }
  0x71   : > { %3795 = vmatprep.subr.bf16.mxu1 %v4246_v23  ;;  %4016 = vmatprep.subr.bf16.mxu0 %v4247_v24  ;;  %v4301_v22 = vld [vmem:[%s4484_s12 + $0x460] sm:$0xff]  }
  0x72   : > { %v4717_v23 = vld [vmem:[%s4507_s17] ss:$12 sps:$4 sm:$0xff]  }
  0x73   : > { %1254 = vmatmul.mubr.bf16.gmra.mrb[16].mxu0 %v4554_v40 }
  0x74   : > { %3796 = vmatpush3.bf16.msra.mxu1 %v4248_v25  ;;  %4017 = vmatpush3.bf16.msra.mxu0 %v4247_v24  ;;  %v4721_v24 = vld [vmem:[%s4507_s17 + $0x20] ss:$12 sps:$4 sm:$0xff]  }
  0x75   : > { %3797 = vmatprep.subr.bf16.mxu1 %v4249_v26  ;;  %4018 = vmatprep.subr.bf16.mxu0 %v4250_v27  ;;  %v4302_v25 = vld [vmem:[%s4484_s12 + $0x3e0] sm:$0xff]   ;;  %v4303_v26 = vld [vmem:[%s4484_s12 + $0x428] sm:$0xff]  }
  0x76   : > { %4022 = vmatprep.mubr.msk.bf16.mxu0 %vm642_vm1, %v4513_v17 }
  0x78   : > { %3798 = vmatpush3.bf16.msra.mxu1 %v4251_v28  ;;  %4019 = vmatpush3.bf16.msra.mxu0 %v4250_v27  ;;  %v4304_v27 = vld [vmem:[%s4484_s12 + $0x468] sm:$0xff]  }
  0x79   : > { %3799 = vmatprep.subr.bf16.mxu1 %v4252_v29  ;;  %4110 = vmatprep.subr.msk.bf16.mxu0 %vm649_vm0, %v4253_v30  ;;  %v4729_v28 = vld [vmem:[%s4507_s17 + $0x1c] ss:$12 sps:$4 sm:$0xff]   ;;  %v4359_v29 = vld [vmem:[%s4507_s17 + $0x4] ss:$12 sps:$4 sm:$0xff]  }
  0x7a   : > { %v4305_v30 = vld [vmem:[%s4484_s12 + $0x3e8] sm:$0xff]  }
  0x7c   : > { %3800 = vmatpush3.bf16.msra.mxu1 %v4254_v34  ;;  %4021 = vmatpush3.bf16.msra.mxu0 %v1493_v36  ;;  %v4307_v34 = vld [vmem:[%s4484_s12 + $0x470] sm:$0xff]  }
  0x7d   : > { %3820 = vmatprep.subr.bf16.mxu0 %v4255_v35  ;;  %4026 = vmatprep.subr.bf16.mxu1 %v4256_v37  ;;  %v4737_v35 = vld [vmem:[%s4507_s17 + $0x18] ss:$12 sps:$4 sm:$0xff]   ;;  %v4308_v36 = vld [vmem:[%s4484_s12 + $0x3f0] sm:$0xff]  }
  0x7f   : > { %1528 = vmatmul.mubr.bf16.vlgmr.msra.gmra.mrb[16].mxu1 %v4539_v32  ;;  %4023 = vmatmul.mubr.msk.bf16.vlgmr.msra.gmra.mrb[20].mxu0 %vm642_vm1, %v4518_v19 }
  0x80   : > { %3821 = vmatpush3.bf16.msra.mxu0 %v4257_v41  ;;  %4027 = vmatpush3.bf16.msra.mxu1 %v4256_v37  ;;  %v4309_v37 = vld [vmem:[%s4484_s12 + $0x438] sm:$0xff]  }
  0x81   : > { %3822 = vmatprep.subr.bf16.mxu0 %v4258_v42  ;;  %4028 = vmatprep.subr.bf16.mxu1 %v4259_v44  ;;  %v4311_v41 = vld [vmem:[%s4484_s12 + $0x3f8] sm:$0xff]   ;;  %v2339_v42 = vsel %vm649_vm0, %v4310_v38, 0 }
  0x82   : > { %1535 = vmatprep.mubr.bf16.mxu1 %v4551_v39  ;;  %1809 = vmatprep.mubr.bf16.mxu0 %v4536_v31 }
  0x84   : > { %3823 = vmatpush3.bf16.msra.mxu0 %v4260_v45  ;;  %4029 = vmatpush3.bf16.msra.mxu1 %v4259_v44  ;;  %v4313_v44 = vld [vmem:[%s4484_s12 + $0x4bc] sm:$0xff]  }
  0x85   : > { %3824 = vmatprep.subr.bf16.mxu0 %v4261_v46  ;;  %4030 = vmatprep.subr.bf16.mxu1 %v4262_v47  ;;  %v4314_v45 = vld [vmem:[%s4484_s12 + $0x400] sm:$0xff]  }
  0x86   : > { %v4315_v46 = vld [vmem:[%s4484_s12 + $0x47c] sm:$0xff]  }
  0x87   : > { %1536 = vmatmul.mubr.bf16.gmra.mrb[20].mxu1 %v4554_v40 }
  0x88   : > { %3825 = vmatpush3.bf16.msra.mxu0 %v4263_v49  ;;  %4031 = vmatpush3.bf16.msra.mxu1 %v4262_v47  ;;  %v4316_v47 = vld [vmem:[%s4484_s12 + $0x448] sm:$0xff]  }
  0x89   : > { %3826 = vmatprep.subr.bf16.mxu0 %v4264_v50  ;;  %4032 = vmatprep.subr.bf16.mxu1 %v4265_v51  ;;  %v4318_v49 = vld [vmem:[%s4484_s12 + $0x408] sm:$0xff]  }
  0x8a   : > { %4036 = vmatprep.mubr.msk.bf16.mxu1 %vm642_vm1, %v4513_v17  ;;  %v4274_v17 = vld [vmem:[%s4484_s12 + $0x300] sm:$0xff]  }
  0x8b   : > { %v4319_v50 = vld [vmem:[%s4484_s12 + $0x484] sm:$0xff]  }
  0x8c   : > { %3827 = vmatpush3.bf16.msra.mxu0 %v4266_v52  ;;  %4033 = vmatpush3.bf16.msra.mxu1 %v4265_v51  ;;  %v4320_v51 = vld [vmem:[%s4484_s12 + $0x450] sm:$0xff]  }
  0x8d   : > { %3828 = vmatprep.subr.bf16.mxu0 %v4267_v53  ;;  %4111 = vmatprep.subr.msk.bf16.mxu1 %vm649_vm0, %v4268_v54  ;;  %v4321_v52 = vld [vmem:[%s4484_s12 + $0x4cc] sm:$0xff]  }
  0x8e   : > { %v4322_v53 = vld [vmem:[%s4484_s12 + $0x410] sm:$0xff]  }
  0x8f   : > { %v4323_v54 = vld [vmem:[%s4484_s12 + $0x48c] sm:$0xff]  }
  0x90   : > { %3829 = vmatpush3.bf16.msra.mxu0 %v4269_v55  ;;  %4035 = vmatpush3.bf16.msra.mxu1 %v1775_v57  ;;  %v4324_v55 = vld [vmem:[%s4484_s12 + $0x4d4] sm:$0xff]  }
  0x91   : > { %3830 = vmatprep.subr.bf16.mxu0 %v4270_v56  ;;  %3855 = vmatprep.subr.bf16.mxu1 %v4271_v58  ;;  %v4327_v56 = vld [vmem:[%s4484_s12 + $0x4fc] sm:$0xff]   ;;  %v4325_v57 = vld [vmem:[%s4484_s12 + $0x494] sm:$0xff]  }
  0x92   : > { %v4326_v58 = vld [vmem:[%s4484_s12 + $0x4dc] sm:$0xff]  }
  0x93   : > { %4037 = vmatmul.mubr.msk.bf16.vlgmr.msra.gmra.mrb[24].mxu1 %vm642_vm1, %v4518_v19  ;;  %v4282_v19 = vld [vmem:[%s4484_s12 + $0x38c] sm:$0xff]  }
  0x94   : > { %3831 = vmatpush3.bf16.msra.mxu0 %v4272_v59  ;;  %3856 = vmatpush3.bf16.msra.mxu1 %v4273_v60  ;;  %v4330_v59 = vld [vmem:[%s4484_s12 + $0x504] sm:$0xff]   ;;  %v4328_v60 = vld [vmem:[%s4484_s12 + $0x49c] sm:$0xff]  }
  0x95   : > { %3832 = vmatprep.subr.bf16.mxu0 %v4274_v17  ;;  %3857 = vmatprep.subr.bf16.mxu1 %v4275_v61  ;;  %v4329_v17 = vld [vmem:[%s4484_s12 + $0x4e4] sm:$0xff]   ;;  %v4333_v61 = vld [vmem:[%s4484_s12 + $0x50c] sm:$0xff]  }
  0x96   : > { %2091 = vmatprep.mubr.bf16.mxu1 %v4536_v31  ;;  %v4287_v31 = vld [vmem:[%s4484_s12 + $0x354] sm:$0xff]  }
  0x98   : > { %3833 = vmatpush3.bf16.msra.mxu0 %v4276_v62  ;;  %3858 = vmatpush3.bf16.msra.mxu1 %v4277_v63  ;;  %v4331_v62 = vld [vmem:[%s4484_s12 + $0x4a4] sm:$0xff]   ;;  %v4332_v63 = vld [vmem:[%s4484_s12 + $0x4ec] sm:$0xff]  }
  0x99   : > { %3834 = vmatprep.subr.bf16.mxu0 %v4278_v0  ;;  %3859 = vmatprep.subr.bf16.mxu1 %v4279_v1  ;;  %v4336_v0 = vld [vmem:[%s4484_s12 + $0x514] sm:$0xff]   ;;  %v4334_v1 = vld [vmem:[%s4484_s12 + $0x4ac] sm:$0xff]  }
  0x9c   : > { %3835 = vmatpush3.bf16.msra.mxu0 %v4280_v2  ;;  %3860 = vmatpush3.bf16.msra.mxu1 %v4281_v3  ;;  %v4335_v2 = vld [vmem:[%s4484_s12 + $0x4f4] sm:$0xff]   ;;  %v4338_v3 = vld [vmem:[%s4484_s12 + $0x51c] ss:$0 sps:$4 sm:$0xff]  }
  0x9d   : > { %3861 = vmatprep.subr.bf16.mxu1 %v4282_v19  ;;  %4040 = vmatprep.subr.bf16.mxu0 %v4283_v4  ;;  %v4337_v19 = vld [vmem:[%s4484_s12 + $0x4b4] sm:$0xff]  }
  0x9f   : > { %1810 = vmatmul.mubr.bf16.vlgmr.msra.gmra.mrb[24].mxu0 %v4539_v32  ;;  %v4292_v32 = vld [vmem:[%s4484_s12 + $0x3cc] sm:$0xff]  }
  0xa0   : > { %3862 = vmatpush3.bf16.msra.mxu1 %v4284_v5  ;;  %4041 = vmatpush3.bf16.msra.mxu0 %v4283_v4  ;;  %v2621_v4 = vsel %vm649_vm0, %v4338_v3, 0 }
  0xa1   : > { %3863 = vmatprep.subr.bf16.mxu1 %v4285_v6  ;;  %4042 = vmatprep.subr.bf16.mxu0 %v4286_v7 }
  0xa2   : > { %1817 = vmatprep.mubr.bf16.mxu0 %v4551_v39  ;;  %v4295_v39 = vld [vmem:[%s4484_s12 + $0x3d4] ss:$0 sps:$4 sm:$0xff]  }
  0xa3   : > { %v2057_v16 = vsel %vm649_vm0, %v4295_v39, 0 }
  0xa4   : > { %3864 = vmatpush3.bf16.msra.mxu1 %v4287_v31  ;;  %4043 = vmatpush3.bf16.msra.mxu0 %v4286_v7 }
  0xa5   : > { %3865 = vmatprep.subr.bf16.mxu1 %v4288_v8  ;;  %4044 = vmatprep.subr.bf16.mxu0 %v4289_v9 }
  0xa7   : > { %1818 = vmatmul.mubr.bf16.gmra.mrb[28].mxu0 %v4554_v40  ;;  %v4297_v40 = vld [vmem:[%s4484_s12 + $0x418] sm:$0xff]   ;;  %s400_s12 = scalar_lea.vmem %s4913_s5, %s4624_s18  ;;  %s3177_s18 = sshll.u32 %s4383_s24, 1 }
  0xa8   : > { %3866 = vmatpush3.bf16.msra.mxu1 %v4290_v10  ;;  %4045 = vmatpush3.bf16.msra.mxu0 %v4289_v9  ;;  %s407_s20 = sadd.s32 %s4387_s25, %s3177_s18 }
  0xa9   : > { %3867 = vmatprep.subr.bf16.mxu1 %v4291_v11  ;;  %4046 = vmatprep.subr.bf16.mxu0 %v4292_v32  ;;  %p408_p7 = scmp.lt.s32.totalorder %s407_s20, 9 }
  0xaa   : > { %4050 = vmatprep.mubr.msk.bf16.mxu0 %vm642_vm1, %v4704_v14 }
  0xab   : > { %s4927_s20 = smov (!%p408_p7, %s407_s20), 9 }
  0xac   : > { %3868 = vmatpush3.bf16.msra.mxu1 %v4293_v12  ;;  %4047 = vmatpush3.bf16.msra.mxu0 %v4292_v32  ;;  %s3675_s21 = sshll.u32 %s4927_s20, 4 }
  0xad   : > { %3869 = vmatprep.subr.bf16.mxu1 %v4294_v13  ;;  %4112 = vmatprep.subr.msk.bf16.mxu0 %vm649_vm0, %v4295_v39  ;;  %s412_s8 = scalar_lea.vmem %s4915_s7, %s3675_s21 }
  0xb0   : > { %3870 = vmatpush3.bf16.msra.mxu1 %v4296_v15  ;;  %4049 = vmatpush3.bf16.msra.mxu0 %v2057_v16 }
  0xb1   : > { %3890 = vmatprep.subr.bf16.mxu0 %v4297_v40  ;;  %4054 = vmatprep.subr.bf16.mxu1 %v4298_v18 }
  0xb3   : > { %2092 = vmatmul.mubr.bf16.vlgmr.msra.gmra.mrb[28].mxu1 %v4717_v23  ;;  %4051 = vmatmul.mubr.msk.bf16.vlgmr.msra.gmra.mrb[32].mxu0 %vm642_vm1, %v4721_v24 }
  0xb4   : > { %3891 = vmatpush3.bf16.msra.mxu0 %v4299_v20  ;;  %4055 = vmatpush3.bf16.msra.mxu1 %v4298_v18 }
  0xb5   : > { %3892 = vmatprep.subr.bf16.mxu0 %v4300_v21  ;;  %4056 = vmatprep.subr.bf16.mxu1 %v4301_v22  ;;  %v4789_v8 = vpop.permute.xlu0 %471 }
  0xb6   : > { %2099 = vmatprep.mubr.bf16.mxu1 %v4729_v28  ;;  %2373 = vmatprep.mubr.bf16.mxu0 %v4359_v29 }
  0xb8   : > { %3893 = vmatpush3.bf16.msra.mxu0 %v4302_v25  ;;  %4057 = vmatpush3.bf16.msra.mxu1 %v4301_v22 }
  0xb9   : > { %3894 = vmatprep.subr.bf16.mxu0 %v4303_v26  ;;  %4058 = vmatprep.subr.bf16.mxu1 %v4304_v27 }
  0xbb   : > { %2100 = vmatmul.mubr.bf16.gmra.mrb[32].mxu1 %v4737_v35 }
  0xbc   : > { %3895 = vmatpush3.bf16.msra.mxu0 %v4305_v30  ;;  %4059 = vmatpush3.bf16.msra.mxu1 %v4304_v27 }
  0xbd   : > { %3896 = vmatprep.subr.bf16.mxu0 %v4306_v33  ;;  %4060 = vmatprep.subr.bf16.mxu1 %v4307_v34  ;;  %v4791_v13 = vpop.permute.xlu0 %476 }
  0xbe   : > { %4064 = vmatprep.mubr.msk.bf16.mxu1 %vm642_vm1, %v4704_v14 }
  0xc0   : > { %3897 = vmatpush3.bf16.msra.mxu0 %v4308_v36  ;;  %4061 = vmatpush3.bf16.msra.mxu1 %v4307_v34 }
  0xc1   : > { %3898 = vmatprep.subr.bf16.mxu0 %v4309_v37  ;;  %4113 = vmatprep.subr.msk.bf16.mxu1 %vm649_vm0, %v4310_v38  ;;  %v4794_v15 = vpop.permute.xlu1 %481 }
  0xc4   : > { %3899 = vmatpush3.bf16.msra.mxu0 %v4311_v41  ;;  %4063 = vmatpush3.bf16.msra.mxu1 %v2339_v42 }
  0xc5   : > { %3900 = vmatprep.subr.bf16.mxu0 %v4312_v43  ;;  %3925 = vmatprep.subr.bf16.mxu1 %v4313_v44  ;;  %v4797_v25 = vpop.permute.xlu1 %486 }
  0xc7   : > { %4065 = vmatmul.mubr.msk.bf16.vlgmr.msra.gmra.mrb[36].mxu1 %vm642_vm1, %v4721_v24 }
  0xc8   : > { %3901 = vmatpush3.bf16.msra.mxu0 %v4314_v45  ;;  %3926 = vmatpush3.bf16.msra.mxu1 %v4315_v46 }
  0xc9   : > { %3902 = vmatprep.subr.bf16.mxu0 %v4316_v47  ;;  %3927 = vmatprep.subr.bf16.mxu1 %v4317_v48 }
  0xca   : > { %2655 = vmatprep.mubr.bf16.mxu1 %v4359_v29 }
  0xcc   : > { %3903 = vmatpush3.bf16.msra.mxu0 %v4318_v49  ;;  %3928 = vmatpush3.bf16.msra.mxu1 %v4319_v50 }
  0xcd   : > { %3904 = vmatprep.subr.bf16.mxu0 %v4320_v51  ;;  %3929 = vmatprep.subr.bf16.mxu1 %v4321_v52 }
  0xd0   : > { %3905 = vmatpush3.bf16.msra.mxu0 %v4322_v53  ;;  %3930 = vmatpush3.bf16.msra.mxu1 %v4323_v54 }
  0xd1   : > { %3931 = vmatprep.subr.bf16.mxu1 %v4324_v55  ;;  %4068 = vmatprep.subr.bf16.mxu0 %v4327_v56 }
  0xd3   : > { %2374 = vmatmul.mubr.bf16.vlgmr.msra.gmra.mrb[36].mxu0 %v4717_v23 }
  0xd4   : > { %3932 = vmatpush3.bf16.msra.mxu1 %v4325_v57  ;;  %4069 = vmatpush3.bf16.msra.mxu0 %v4327_v56 }
  0xd5   : > { %3933 = vmatprep.subr.bf16.mxu1 %v4326_v58  ;;  %2381 = vmatprep.mubr.bf16.mxu0 %v4729_v28 }
  0xd6   : > { %4070 = vmatprep.subr.bf16.mxu0 %v4330_v59 }
  0xd8   : > { %3934 = vmatpush3.bf16.msra.mxu1 %v4328_v60  ;;  %4071 = vmatpush3.bf16.msra.mxu0 %v4330_v59 }
  0xd9   : > { %3935 = vmatprep.subr.bf16.mxu1 %v4329_v17  ;;  %4072 = vmatprep.subr.bf16.mxu0 %v4333_v61 }
  0xdb   : > { %2382 = vmatmul.mubr.bf16.gmra.mrb[40].mxu0 %v4737_v35 }
  0xdc   : > { %3936 = vmatpush3.bf16.msra.mxu1 %v4331_v62  ;;  %4073 = vmatpush3.bf16.msra.mxu0 %v4333_v61 }
  0xdd   : > { %3937 = vmatprep.subr.bf16.mxu1 %v4332_v63  ;;  %4074 = vmatprep.subr.bf16.mxu0 %v4336_v0 }
  0xde   : > { %4078 = vmatprep.mubr.msk.bf16.mxu0 %vm642_vm1, %v4704_v14 }
  0xe0   : > { %3938 = vmatpush3.bf16.msra.mxu1 %v4334_v1  ;;  %4075 = vmatpush3.bf16.msra.mxu0 %v4336_v0 }
  0xe1   : > { %3939 = vmatprep.subr.bf16.mxu1 %v4335_v2  ;;  %4114 = vmatprep.subr.msk.bf16.mxu0 %vm649_vm0, %v4338_v3 }
  0xe4   : > { %3940 = vmatpush3.bf16.msra.mxu1 %v4337_v19  ;;  %4077 = vmatpush3.bf16.msra.mxu0 %v2621_v4 }
  0xe7   : > { %2656 = vmatmul.mubr.bf16.vlgmr.msra.gmra.mrb[40].mxu1 %v4717_v23  ;;  %4079 = vmatmul.mubr.msk.bf16.vlgmr.msra.gmra.mrb[44].mxu0 %vm642_vm1, %v4721_v24 }
  0xe8   : > { %2663 = vmatprep.mubr.bf16.mxu1 %v4729_v28 }
  0xef   : > { %2664 = vmatmul.mubr.bf16.gmra.mrb[44].mxu1 %v4737_v35 }
  0xfe   : > { %v3982_v5 = vpop.f32.mrb[0].mxu1 }
  0xff   : > { %v736_v6 = vpop.f32.mrb[1].mxu1 }
 0x100   : > { %v3983_v7 = vpop.f32.mrb[2].mxu1 }
 0x101   : > { %v739_v31 = vpop.f32.mrb[3].mxu1 }
 0x10a   : > { %v3696_v9 = vpop.f32.mrb[0].mxu0 }
 0x10b   : > { %v3697_v10 = vpop.f32.mrb[1].mxu0 }
 0x10c   : > { %v3698_v11 = vadd.f32 %v3697_v10, %v3696_v9  ;;  %v3699_v32 = vpop.f32.mrb[2].mxu0 }
 0x10d   : > { %v3700_v12 = vpop.f32.mrb[3].mxu0 }
 0x10e   : > { %v688_v39 = vadd.f32 %v3698_v11, %v4789_v8  ;;  %v3701_v14 = vadd.f32 %v3700_v12, %v3699_v32 }
 0x110   : > { %v737_v40 = vadd.f32 %v736_v6, %v688_v39  ;;  %v691_v16 = vadd.f32 %v3701_v14, %v4791_v13 }
 0x112   : > { %v3702_v18 = vpop.f32.mrb[4].mxu0  ;;  %v740_v20 = vadd.f32 %v739_v31, %v691_v16  ;;  %v755_v46 = vmul.f32 0.01, %v737_v40  ;;  %vm751_vm2 = vcmp.ge.f32.partialorder %v737_v40, 0.0 }
 0x113   : > { %v3703_v21 = vpop.f32.mrb[5].mxu0 }
 0x114   : > { %v3704_v22 = vadd.f32 %v3703_v21, %v3702_v18  ;;  %v3705_v23 = vpop.f32.mrb[6].mxu0  ;;  %v756_v50 = vmul.f32 0.01, %v740_v20  ;;  %v759_v53 = vsel %vm751_vm2, %v737_v40, %v755_v46  ;;  %vm752_vm4 = vcmp.ge.f32.partialorder %v740_v20, 0.0 }
 0x115   : > { %v3706_v24 = vpop.f32.mrb[7].mxu0 }
 0x116   : > { %v696_v26 = vadd.f32 %v3704_v22, %v4794_v15  ;;  %v3707_v27 = vadd.f32 %v3706_v24, %v3705_v23  ;;  %v760_v17 = vsel %vm752_vm4, %v740_v20, %v756_v50 }
 0x118   : > { %v745_v28 = vadd.f32 %v3982_v5, %v696_v26  ;;  %v699_v29 = vadd.f32 %v3707_v27, %v4797_v25 }
 0x11a   : > { %v748_v30 = vadd.f32 %v3983_v7, %v699_v29  ;;  %v757_v1 = vmul.f32 0.01, %v745_v28  ;;  %vm753_vm6 = vcmp.ge.f32.partialorder %v745_v28, 0.0 }
 0x11c   : > { %v758_v4 = vmul.f32 0.01, %v748_v30  ;;  %vm754_vm8 = vcmp.ge.f32.partialorder %v748_v30, 0.0  ;;  %v761_v6 = vsel %vm753_vm6, %v745_v28, %v757_v1 }
 0x11e   : > { %v3731_v33 = vpop.f32.mrb[4].mxu1  ;;  %v3996_v34 = vpop.f32.mrb[8].mxu0  ;;  %v762_v10 = vsel %vm754_vm8, %v748_v30, %v758_v4 }
 0x11f   : > { %v3732_v35 = vpop.f32.mrb[5].mxu1  ;;  %v1014_v36 = vpop.f32.mrb[9].mxu0 }
 0x120   : > { %v3733_v37 = vadd.f32 %v3732_v35, %v3731_v33  ;;  %v3734_v38 = vpop.f32.mrb[6].mxu1  ;;  %v3997_v41 = vpop.f32.mrb[10].mxu0 }
 0x121   : > { %v3735_v42 = vpop.f32.mrb[7].mxu1  ;;  %v1017_v43 = vpop.f32.mrb[11].mxu0 }
 0x122   : > { %v3736_v44 = vadd.f32 %v3735_v42, %v3734_v38  ;;  %v966_v45 = vadd.f32 %v3733_v37, %v4789_v8 }
 0x124   : > { %v1015_v47 = vadd.f32 %v1014_v36, %v966_v45  ;;  %v969_v48 = vadd.f32 %v3736_v44, %v4791_v13 }
 0x126   : > { %vm1029_vm3 = vcmp.ge.f32.partialorder %v1015_v47, 0.0  ;;  %v1033_v49 = vmul.f32 0.01, %v1015_v47  ;;  %v1018_v51 = vadd.f32 %v1017_v43, %v969_v48  ;;  %v3737_v52 = vpop.f32.mrb[8].mxu1 }
 0x127   : > { %v3738_v54 = vpop.f32.mrb[9].mxu1 }
 0x128   : > { %v1037_v55 = vsel %vm1029_vm3, %v1015_v47, %v1033_v49  ;;  %vm1030_vm5 = vcmp.ge.f32.partialorder %v1018_v51, 0.0  ;;  %v1034_v56 = vmul.f32 0.01, %v1018_v51  ;;  %v3739_v57 = vadd.f32 %v3738_v54, %v3737_v52  ;;  %v3740_v58 = vpop.f32.mrb[10].mxu1 }
 0x129   : > { %v1041_v59 = vmax.f32 %v759_v53, %v1037_v55  ;;  %v3741_v60 = vpop.f32.mrb[11].mxu1 }
 0x12a   : > { %v1038_v61 = vsel %vm1030_vm5, %v1018_v51, %v1034_v56  ;;  %v974_v62 = vadd.f32 %v3739_v57, %v4794_v15  ;;  %v3742_v63 = vadd.f32 %v3741_v60, %v3740_v58 }
 0x12b   : > { %v1042_v0 = vmax.f32 %v760_v17, %v1038_v61 }
 0x12c   : > { %v1023_v2 = vadd.f32 %v3996_v34, %v974_v62  ;;  %v977_v3 = vadd.f32 %v3742_v63, %v4797_v25 }
 0x12e   : > { %vm1031_vm7 = vcmp.ge.f32.partialorder %v1023_v2, 0.0  ;;  %v1035_v19 = vmul.f32 0.01, %v1023_v2  ;;  %v1026_v5 = vadd.f32 %v3997_v41, %v977_v3 }
 0x130   : > { %v1039_v7 = vsel %vm1031_vm7, %v1023_v2, %v1035_v19  ;;  %vm1032_vm9 = vcmp.ge.f32.partialorder %v1026_v5, 0.0  ;;  %v1036_v31 = vmul.f32 0.01, %v1026_v5 }
 0x131   : > { %v1043_v9 = vmax.f32 %v761_v6, %v1039_v7 }
 0x132   : > { %v1040_v11 = vsel %vm1032_vm9, %v1026_v5, %v1036_v31  ;;  %v4010_v32 = vpop.f32.mrb[12].mxu1 }
 0x133   : > { %v1044_v12 = vmax.f32 %v762_v10, %v1040_v11  ;;  %v1296_v39 = vpop.f32.mrb[13].mxu1 }
 0x134   : > { %v4011_v14 = vpop.f32.mrb[14].mxu1 }
 0x135   : > { %v1299_v40 = vpop.f32.mrb[15].mxu1 }
 0x13e   : > { %v3766_v16 = vpop.f32.mrb[12].mxu0 }
 0x13f   : > { %v3767_v18 = vpop.f32.mrb[13].mxu0 }
 0x140   : > { %v3768_v20 = vadd.f32 %v3767_v18, %v3766_v16  ;;  %v3769_v21 = vpop.f32.mrb[14].mxu0 }
 0x141   : > { %v3770_v22 = vpop.f32.mrb[15].mxu0 }
 0x142   : > { %v1248_v23 = vadd.f32 %v3768_v20, %v4789_v8  ;;  %v3771_v24 = vadd.f32 %v3770_v22, %v3769_v21 }
 0x144   : > { %v1297_v26 = vadd.f32 %v1296_v39, %v1248_v23  ;;  %v1251_v27 = vadd.f32 %v3771_v24, %v4791_v13 }
 0x146   : > { %vm1311_vm10 = vcmp.ge.f32.partialorder %v1297_v26, 0.0  ;;  %v1315_v28 = vmul.f32 0.01, %v1297_v26  ;;  %v1300_v29 = vadd.f32 %v1299_v40, %v1251_v27  ;;  %v3772_v30 = vpop.f32.mrb[16].mxu0 }
 0x147   : > { %v3773_v33 = vpop.f32.mrb[17].mxu0 }
 0x148   : > { %vm1312_vm11 = vcmp.ge.f32.partialorder %v1300_v29, 0.0  ;;  %v1316_v34 = vmul.f32 0.01, %v1300_v29  ;;  %v3774_v35 = vadd.f32 %v3773_v33, %v3772_v30  ;;  %v3775_v36 = vpop.f32.mrb[18].mxu0  ;;  %v1319_v37 = vsel %vm1311_vm10, %v1297_v26, %v1315_v28 }
 0x149   : > { %v3776_v38 = vpop.f32.mrb[19].mxu0  ;;  %v4807_v41 = vmax.f32 %v1041_v59, %v1319_v37 }
 0x14a   : > { %v1256_v42 = vadd.f32 %v3774_v35, %v4794_v15  ;;  %v3777_v43 = vadd.f32 %v3776_v38, %v3775_v36  ;;  %v1320_v44 = vsel %vm1312_vm11, %v1300_v29, %v1316_v34 }
 0x14b   : > { %v4810_v45 = vmax.f32 %v1042_v0, %v1320_v44 }
 0x14c   : > { %v1305_v46 = vadd.f32 %v4010_v32, %v1256_v42  ;;  %v1259_v47 = vadd.f32 %v3777_v43, %v4797_v25 }
 0x14e   : > { %vm1313_vm12 = vcmp.ge.f32.partialorder %v1305_v46, 0.0  ;;  %v1317_v48 = vmul.f32 0.01, %v1305_v46  ;;  %v1308_v49 = vadd.f32 %v4011_v14, %v1259_v47 }
 0x150   : > { %v1321_v50 = vsel %vm1313_vm12, %v1305_v46, %v1317_v48  ;;  %vm1314_vm13 = vcmp.ge.f32.partialorder %v1308_v49, 0.0  ;;  %v1318_v51 = vmul.f32 0.01, %v1308_v49 }
 0x151   : > { %v4813_v52 = vmax.f32 %v1043_v9, %v1321_v50 }
 0x152   : > { %v1322_v53 = vsel %vm1314_vm13, %v1308_v49, %v1318_v51  ;;  %v3801_v54 = vpop.f32.mrb[16].mxu1  ;;  %v4024_v55 = vpop.f32.mrb[20].mxu0 }
 0x153   : > { %v4815_v56 = vmax.f32 %v1044_v12, %v1322_v53  ;;  %v3802_v57 = vpop.f32.mrb[17].mxu1  ;;  %v1578_v58 = vpop.f32.mrb[21].mxu0 }
 0x154   : > { %v3803_v59 = vadd.f32 %v3802_v57, %v3801_v54  ;;  %v3804_v60 = vpop.f32.mrb[18].mxu1  ;;  %v4025_v17 = vpop.f32.mrb[22].mxu0 }
 0x155   : > { %v3805_v61 = vpop.f32.mrb[19].mxu1  ;;  %v1581_v62 = vpop.f32.mrb[23].mxu0 }
 0x156   : > { %v3806_v63 = vadd.f32 %v3805_v61, %v3804_v60  ;;  %v1530_v0 = vadd.f32 %v3803_v59, %v4789_v8 }
 0x158   : > { %v1579_v1 = vadd.f32 %v1578_v58, %v1530_v0  ;;  %v1533_v2 = vadd.f32 %v3806_v63, %v4791_v13 }
 0x15a   : > { %vm1593_vm14 = vcmp.ge.f32.partialorder %v1579_v1, 0.0  ;;  %v1597_v3 = vmul.f32 0.01, %v1579_v1  ;;  %v1582_v19 = vadd.f32 %v1581_v62, %v1533_v2  ;;  %v3807_v4 = vpop.f32.mrb[20].mxu1 }
 0x15b   : > { %v3808_v5 = vpop.f32.mrb[21].mxu1 }
 0x15c   : > { %v1601_v6 = vsel %vm1593_vm14, %v1579_v1, %v1597_v3  ;;  %vm1594_vm15 = vcmp.ge.f32.partialorder %v1582_v19, 0.0  ;;  %v1598_v7 = vmul.f32 0.01, %v1582_v19  ;;  %v3809_v31 = vadd.f32 %v3808_v5, %v3807_v4  ;;  %v3810_v9 = vpop.f32.mrb[22].mxu1 }
 0x15d   : > { %v1605_v10 = vmax.f32 %v4807_v41, %v1601_v6  ;;  %v3811_v11 = vpop.f32.mrb[23].mxu1 }
 0x15e   : > { %v1602_v32 = vsel %vm1594_vm15, %v1582_v19, %v1598_v7  ;;  %v1538_v12 = vadd.f32 %v3809_v31, %v4794_v15  ;;  %v3812_v39 = vadd.f32 %v3811_v11, %v3810_v9  ;;  %vm2737_vm15 = vcmask 564224  }
 0x15f   : > { %v1606_v14 = vmax.f32 %v4810_v45, %v1602_v32 }
 0x160   : > { %v1587_v40 = vadd.f32 %v4024_v55, %v1538_v12  ;;  %v1541_v16 = vadd.f32 %v3812_v39, %v4797_v25 }
 0x162   : > { %vm1595_vm0 = vcmp.ge.f32.partialorder %v1587_v40, 0.0  ;;  %v1599_v18 = vmul.f32 0.01, %v1587_v40  ;;  %v1590_v20 = vadd.f32 %v4025_v17, %v1541_v16 }
 0x164   : > { %v1603_v21 = vsel %vm1595_vm0, %v1587_v40, %v1599_v18  ;;  %vm1596_vm1 = vcmp.ge.f32.partialorder %v1590_v20, 0.0  ;;  %v1600_v22 = vmul.f32 0.01, %v1590_v20 }
 0x165   : > { %v1607_v23 = vmax.f32 %v4813_v52, %v1603_v21 }
 0x166   : > { %v1604_v24 = vsel %vm1596_vm1, %v1590_v20, %v1600_v22  ;;  %v4038_v26 = vpop.f32.mrb[24].mxu1 }
 0x167   : > { %v1608_v27 = vmax.f32 %v4815_v56, %v1604_v24  ;;  %v1860_v28 = vpop.f32.mrb[25].mxu1 }
 0x168   : > { %v4039_v29 = vpop.f32.mrb[26].mxu1 }
 0x169   : > { %v1863_v30 = vpop.f32.mrb[27].mxu1 }
 0x172   : > { %v3836_v33 = vpop.f32.mrb[24].mxu0 }
 0x173   : > { %v3837_v34 = vpop.f32.mrb[25].mxu0 }
 0x174   : > { %v3838_v35 = vadd.f32 %v3837_v34, %v3836_v33  ;;  %v3839_v36 = vpop.f32.mrb[26].mxu0 }
 0x175   : > { %v3840_v37 = vpop.f32.mrb[27].mxu0 }
 0x176   : > { %v1812_v38 = vadd.f32 %v3838_v35, %v4789_v8  ;;  %v3841_v41 = vadd.f32 %v3840_v37, %v3839_v36 }
 0x178   : > { %v1861_v42 = vadd.f32 %v1860_v28, %v1812_v38  ;;  %v1815_v43 = vadd.f32 %v3841_v41, %v4791_v13 }
 0x17a   : > { %vm1875_vm2 = vcmp.ge.f32.partialorder %v1861_v42, 0.0  ;;  %v1879_v44 = vmul.f32 0.01, %v1861_v42  ;;  %v1864_v45 = vadd.f32 %v1863_v30, %v1815_v43  ;;  %v3842_v46 = vpop.f32.mrb[28].mxu0 }
 0x17b   : > { %v3843_v47 = vpop.f32.mrb[29].mxu0 }
 0x17c   : > { %vm1876_vm3 = vcmp.ge.f32.partialorder %v1864_v45, 0.0  ;;  %v1880_v48 = vmul.f32 0.01, %v1864_v45  ;;  %v3844_v49 = vadd.f32 %v3843_v47, %v3842_v46  ;;  %v3845_v50 = vpop.f32.mrb[30].mxu0  ;;  %v1883_v51 = vsel %vm1875_vm2, %v1861_v42, %v1879_v44 }
 0x17d   : > { %v3846_v52 = vpop.f32.mrb[31].mxu0  ;;  %v4827_v53 = vmax.f32 %v1605_v10, %v1883_v51 }
 0x17e   : > { %v1820_v54 = vadd.f32 %v3844_v49, %v4794_v15  ;;  %v3847_v55 = vadd.f32 %v3846_v52, %v3845_v50  ;;  %v1884_v56 = vsel %vm1876_vm3, %v1864_v45, %v1880_v48  ;;  %vm4403_vm3 = vmmov 0  }
 0x17f   : > { %v4830_v57 = vmax.f32 %v1606_v14, %v1884_v56 }
 0x180   : > { %v1869_v58 = vadd.f32 %v4038_v26, %v1820_v54  ;;  %v1823_v59 = vadd.f32 %v3847_v55, %v4797_v25 }
 0x182   : > { %vm1877_vm4 = vcmp.ge.f32.partialorder %v1869_v58, 0.0  ;;  %v1881_v60 = vmul.f32 0.01, %v1869_v58  ;;  %v1872_v17 = vadd.f32 %v4039_v29, %v1823_v59 }
 0x184   : > { %v1885_v61 = vsel %vm1877_vm4, %v1869_v58, %v1881_v60  ;;  %vm1878_vm5 = vcmp.ge.f32.partialorder %v1872_v17, 0.0  ;;  %v1882_v62 = vmul.f32 0.01, %v1872_v17  ;;  %vm2757_vm4 = vcmask 261120  }
 0x185   : > { %v4833_v63 = vmax.f32 %v1607_v23, %v1885_v61 }
 0x186   : > { %v1886_v0 = vsel %vm1878_vm5, %v1872_v17, %v1882_v62  ;;  %v3871_v1 = vpop.f32.mrb[28].mxu1  ;;  %v4052_v2 = vpop.f32.mrb[32].mxu0  ;;  %vm2840_vm5 = vcmask 64512  }
 0x187   : > { %v3872_v3 = vpop.f32.mrb[29].mxu1  ;;  %v2142_v19 = vpop.f32.mrb[33].mxu0  ;;  %v4835_v4 = vmax.f32 %v1608_v27, %v1886_v0 }
 0x188   : > { %v3873_v5 = vadd.f32 %v3872_v3, %v3871_v1  ;;  %v3874_v6 = vpop.f32.mrb[30].mxu1  ;;  %v4053_v7 = vpop.f32.mrb[34].mxu0 }
 0x189   : > { %v3875_v31 = vpop.f32.mrb[31].mxu1  ;;  %v2145_v9 = vpop.f32.mrb[35].mxu0 }
 0x18a   : > { %v3876_v10 = vadd.f32 %v3875_v31, %v3874_v6  ;;  %v2094_v11 = vadd.f32 %v3873_v5, %v4789_v8 }
 0x18c   : > { %v2143_v32 = vadd.f32 %v2142_v19, %v2094_v11  ;;  %v2097_v12 = vadd.f32 %v3876_v10, %v4791_v13 }
 0x18e   : > { %vm2157_vm6 = vcmp.ge.f32.partialorder %v2143_v32, 0.0  ;;  %v2161_v39 = vmul.f32 0.01, %v2143_v32  ;;  %v2146_v14 = vadd.f32 %v2145_v9, %v2097_v12  ;;  %v3877_v40 = vpop.f32.mrb[32].mxu1 }
 0x18f   : > { %v3878_v16 = vpop.f32.mrb[33].mxu1 }
 0x190   : > { %v2165_v18 = vsel %vm2157_vm6, %v2143_v32, %v2161_v39  ;;  %vm2158_vm7 = vcmp.ge.f32.partialorder %v2146_v14, 0.0  ;;  %v2162_v20 = vmul.f32 0.01, %v2146_v14  ;;  %v3879_v21 = vadd.f32 %v3878_v16, %v3877_v40  ;;  %v3880_v22 = vpop.f32.mrb[34].mxu1 }
 0x191   : > { %v2169_v23 = vmax.f32 %v4827_v53, %v2165_v18  ;;  %v3881_v24 = vpop.f32.mrb[35].mxu1  ;;  %vm3010_vm6 = vcmask 560128  }
 0x192   : > { %v2166_v26 = vsel %vm2158_vm7, %v2146_v14, %v2162_v20  ;;  %v2102_v27 = vadd.f32 %v3879_v21, %v4794_v15  ;;  %v3882_v28 = vadd.f32 %v3881_v24, %v3880_v22 }
 0x193   : > { %v2170_v29 = vmax.f32 %v4830_v57, %v2166_v26 }
 0x194   : > { %v2151_v30 = vadd.f32 %v4052_v2, %v2102_v27  ;;  %v2105_v33 = vadd.f32 %v3882_v28, %v4797_v25 }
 0x196   : > { %vm2159_vm8 = vcmp.ge.f32.partialorder %v2151_v30, 0.0  ;;  %v2163_v34 = vmul.f32 0.01, %v2151_v30  ;;  %v2154_v35 = vadd.f32 %v4053_v7, %v2105_v33 }
 0x198   : > { %vm2160_vm9 = vcmp.ge.f32.partialorder %v2154_v35, 0.0  ;;  %v2164_v36 = vmul.f32 0.01, %v2154_v35  ;;  %v2167_v37 = vsel %vm2159_vm8, %v2151_v30, %v2163_v34 }
 0x199   : > { %v2171_v38 = vmax.f32 %v4833_v63, %v2167_v37 }
 0x19a   : > { %v4066_v41 = vpop.f32.mrb[36].mxu1  ;;  %v2168_v42 = vsel %vm2160_vm9, %v2154_v35, %v2164_v36 }
 0x19b   : > { %v2424_v43 = vpop.f32.mrb[37].mxu1  ;;  %v2172_v44 = vmax.f32 %v4835_v4, %v2168_v42 }
 0x19c   : > { %v4067_v45 = vpop.f32.mrb[38].mxu1 }
 0x19d   : > { %v2427_v46 = vpop.f32.mrb[39].mxu1 }
 0x1a6   : > { %v3906_v47 = vpop.f32.mrb[36].mxu0 }
 0x1a7   : > { %v3907_v48 = vpop.f32.mrb[37].mxu0 }
 0x1a8   : > { %v3908_v49 = vadd.f32 %v3907_v48, %v3906_v47  ;;  %v3909_v50 = vpop.f32.mrb[38].mxu0 }
 0x1a9   : > { %v3910_v51 = vpop.f32.mrb[39].mxu0 }
 0x1aa   : > { %v2376_v52 = vadd.f32 %v3908_v49, %v4789_v8  ;;  %v3911_v53 = vadd.f32 %v3910_v51, %v3909_v50 }
 0x1ac   : > { %v2425_v54 = vadd.f32 %v2424_v43, %v2376_v52  ;;  %v2379_v55 = vadd.f32 %v3911_v53, %v4791_v13 }
 0x1ae   : > { %v2443_v56 = vmul.f32 0.01, %v2425_v54  ;;  %v2428_v57 = vadd.f32 %v2427_v46, %v2379_v55  ;;  %v3912_v58 = vpop.f32.mrb[40].mxu0  ;;  %vm2439_vm10 = vcmp.ge.f32.partialorder %v2425_v54, 0.0  ;;  %v4402_v55 = vmov 0.0|0.0  }
 0x1af   : > { %v3913_v59 = vpop.f32.mrb[41].mxu0  ;;  %4101 = vmatprep.subr.bf16.mxu0 %v4402_v55 }
 0x1b0   : > { %v2444_v60 = vmul.f32 0.01, %v2428_v57  ;;  %v3914_v17 = vadd.f32 %v3913_v59, %v3912_v58  ;;  %v3915_v61 = vpop.f32.mrb[42].mxu0  ;;  %v2447_v62 = vsel %vm2439_vm10, %v2425_v54, %v2443_v56  ;;  %vm2440_vm11 = vcmp.ge.f32.partialorder %v2428_v57, 0.0 }
 0x1b1   : > { %v3916_v63 = vpop.f32.mrb[43].mxu0  ;;  %v2451_v0 = vmax.f32 %v2169_v23, %v2447_v62  ;;  %v4404_v56 = vmov 0.0  }
 0x1b2   : > { %v2384_v1 = vadd.f32 %v3914_v17, %v4794_v15  ;;  %v3917_v2 = vadd.f32 %v3916_v63, %v3915_v61  ;;  %v2448_v3 = vsel %vm2440_vm11, %v2428_v57, %v2444_v60  ;;  %4090 = vmatprep.mubr.msk.f32.mxu0 %vm4403_vm3, %v4404_v56 }
 0x1b3   : > { %v2452_v19 = vmax.f32 %v2170_v29, %v2448_v3  ;;  %v2832_v3 = vld [vmem:[%s400_s12] sm:$0xff] }
 0x1b4   : > { %v2433_v4 = vadd.f32 %v4066_v41, %v2384_v1  ;;  %v2387_v5 = vadd.f32 %v3917_v2, %v4797_v25  ;;  %v2755_v2 = vld [vmem:[%s391_s9] sm:$0xff] }
 0x1b6   : > { %v2445_v6 = vmul.f32 0.01, %v2433_v4  ;;  %v2436_v7 = vadd.f32 %v4067_v45, %v2387_v5  ;;  %vm2441_vm12 = vcmp.ge.f32.partialorder %v2433_v4, 0.0 }
 0x1b8   : > { %v2446_v31 = vmul.f32 0.01, %v2436_v7  ;;  %v2449_v9 = vsel %vm2441_vm12, %v2433_v4, %v2445_v6  ;;  %vm2442_vm13 = vcmp.ge.f32.partialorder %v2436_v7, 0.0 }
 0x1b9   : > { %v2453_v10 = vmax.f32 %v2171_v38, %v2449_v9  ;;  %v2834_v9 = vld [vmem:[%s400_s12 + $0x10] sm:$0xff] }
 0x1ba   : > { %v3941_v11 = vpop.f32.mrb[40].mxu1  ;;  %v4080_v32 = vpop.f32.mrb[44].mxu0  ;;  %v2450_v12 = vsel %vm2442_vm13, %v2436_v7, %v2446_v31  ;;  %v2833_v31 = vld [vmem:[%s400_s12 + $0x8] sm:$0xff] }
 0x1bb   : > { %v3942_v39 = vpop.f32.mrb[41].mxu1  ;;  %v2706_v14 = vpop.f32.mrb[45].mxu0  ;;  %v2454_v40 = vmax.f32 %v2172_v44, %v2450_v12 }
 0x1bc   : > { %v3943_v16 = vadd.f32 %v3942_v39, %v3941_v11  ;;  %v3944_v18 = vpop.f32.mrb[42].mxu1  ;;  %v4081_v20 = vpop.f32.mrb[46].mxu0  ;;  %v2837_v11 = vld [vmem:[%s405_s19 + $0x8] sm:$0xff] }
 0x1bd   : > { %v3945_v21 = vpop.f32.mrb[43].mxu1  ;;  %v2709_v22 = vpop.f32.mrb[47].mxu0 }
 0x1be   : > { %v3946_v23 = vadd.f32 %v3945_v21, %v3944_v18  ;;  %v2658_v24 = vadd.f32 %v3943_v16, %v4789_v8  ;;  %v2839_v16 = vld [vmem:[%s405_s19 + $0x18] sm:$0xff] }
 0x1c0   : > { %v2707_v26 = vadd.f32 %v2706_v14, %v2658_v24  ;;  %v2661_v27 = vadd.f32 %v3946_v23, %v4791_v13 }
 0x1c2   : > { %vm2721_vm14 = vcmp.ge.f32.partialorder %v2707_v26, 0.0  ;;  %v2725_v28 = vmul.f32 0.01, %v2707_v26  ;;  %v2710_v29 = vadd.f32 %v2709_v22, %v2661_v27  ;;  %v3947_v30 = vpop.f32.mrb[44].mxu1 }
 0x1c3   : > { %v3948_v33 = vpop.f32.mrb[45].mxu1 }
 0x1c4   : > { %vm2722_vm0 = vcmp.ge.f32.partialorder %v2710_v29, 0.0  ;;  %v2726_v34 = vmul.f32 0.01, %v2710_v29  ;;  %v3949_v35 = vadd.f32 %v3948_v33, %v3947_v30  ;;  %v3950_v36 = vpop.f32.mrb[46].mxu1  ;;  %v2729_v37 = vsel %vm2721_vm14, %v2707_v26, %v2725_v28 }
 0x1c5   : > { %v3951_v38 = vpop.f32.mrb[47].mxu1  ;;  %v4851_v41 = vmax.f32 %v2451_v0, %v2729_v37 }
 0x1c6   : > { %v2666_v42 = vadd.f32 %v3949_v35, %v4794_v15  ;;  %v3952_v8 = vadd.f32 %v3951_v38, %v3950_v36  ;;  %v2730_v43 = vsel %vm2722_vm0, %v2710_v29, %v2726_v34 }
 0x1c7   : > { %v2738_v13 = vsel %vm2737_vm15, %v4851_v41, 0.0  ;;  %v4856_v44 = vmax.f32 %v2452_v19, %v2730_v43  ;;  %v2756_v19 = vld [vmem:[%s395_s15] sm:$0xff] }
 0x1c8   : > { %v2715_v45 = vadd.f32 %v4080_v32, %v2666_v42  ;;  %v2669_v46 = vadd.f32 %v3952_v8, %v4797_v25  ;;  %2739 = vadd.xlane.f32.xlu0 %v2738_v13  ;;  %v2836_v32 = vld [vmem:[%s405_s19] sm:$0xff] }
 0x1c9   : > { %v2741_v47 = vsel %vm2737_vm15, %v4856_v44, 0.0 }
 0x1ca   : > { %v2718_v48 = vadd.f32 %v4081_v20, %v2669_v46  ;;  %2742 = vadd.xlane.f32.xlu1 %v2741_v47  ;;  %vm2723_vm1 = vcmp.ge.f32.partialorder %v2715_v45, 0.0  ;;  %v2727_v49 = vmul.f32 0.01, %v2715_v45  ;;  %v2838_v20 = vld [vmem:[%s405_s19 + $0x10] sm:$0xff] }
 0x1cc   : > { %v2731_v50 = vsel %vm2723_vm1, %v2715_v45, %v2727_v49  ;;  %vm2724_vm2 = vcmp.ge.f32.partialorder %v2718_v48, 0.0  ;;  %v2728_v15 = vmul.f32 0.01, %v2718_v48 }
 0x1cd   : > { %v4861_v51 = vmax.f32 %v2453_v10, %v2731_v50  ;;  %v2835_v10 = vld [vmem:[%s400_s12 + $0x18] sm:$0xff] }
 0x1ce   : > { %v2732_v52 = vsel %vm2724_vm2, %v2718_v48, %v2728_v15 }
 0x1cf   : > { %v2744_v53 = vsel %vm2737_vm15, %v4861_v51, 0.0  ;;  %v4865_v54 = vmax.f32 %v2454_v40, %v2732_v52 }
 0x1d0   : > { %2745 = vadd.xlane.f32.xlu0 %v2744_v53 }
 0x1d1   : > { %v2747_v25 = vsel %vm2737_vm15, %v4865_v54, 0.0 }
 0x1d4   : > { %2748 = vadd.xlane.f32.xlu0 %v2747_v25 }
 0x255   : > { %v2740_v57 = vpop.xlane.xlu0 %2739 }
 0x256   : > { %v2751_v59 = vmul.f32 0.014492754, %v2740_v57 }
 0x257   : > { %v2743_v58 = vpop.xlane.xlu1 %2742 }
 0x258   : > { %v2752_v60 = vmul.f32 0.014492754, %v2743_v58 }
 0x25a   : > { %v4102_v17 = vpack.c.bf16 %v2752_v60, %v2751_v59 }
 0x25c   : > { %4103 = vmatpush3.bf16.msra.mxu0 %v4102_v17 }
 0x25d   : > { %v2746_v61 = vpop.xlane.xlu0 %2745  ;;  %4104 = vmatprep.subr.bf16.mxu0 %v4402_v55 }
 0x25e   : > { %v2753_v63 = vmul.f32 0.014492754, %v2746_v61 }
 0x261   : > { %v2749_v62 = vpop.xlane.xlu0 %2748 }
 0x262   : > { %v2754_v0 = vmul.f32 0.014492754, %v2749_v62 }
 0x264   : > { %v4105_v1 = vpack.c.bf16 %v2754_v0, %v2753_v63 }
 0x266   : > { %4106 = vmatpush3.bf16.msra.mxu0 %v4105_v1 }
 0x269   : > { %4091 = vmatmul.mubr.msk.f32.vlgmr.msra.gmra.mrb[48].mxu0 %vm2757_vm4, %v2755_v2 }
 0x26a   : > { %4095 = vmatprep.mubr.msk.f32.mxu0 %vm2840_vm5, %v2832_v3 }
 0x33c   : > { %v2827_v4 = vpop.f32.mrb[48].mxu0 }
 0x33d   : > { %v2828_v5 = vadd.f32 %v2827_v4, %v2756_v19  ;;  %v4092_v6 = vpop.f32.mrb[49].mxu0 }
 0x33f   : > { %v2831_v7 = vmax.f32 %v2828_v5, 0.0 }
 0x341   : > { %4093 = vmatprep.subr.mxu0 %v2831_v7 }
 0x342   : > { %4094 = vmatpush3.msra.mxu0 %v2831_v7 }
 0x343   : > { %4096 = vmatmul.mubr.msk.f32.vlgmr.msra.gmra.mrb[50].mxu0 %vm2840_vm5, %v2833_v31 }
 0x344   : > { %4098 = vmatprep.mubr.msk.f32.mxu0 %vm2840_vm5, %v2834_v9 }
 0x347   : > { %4099 = vmatmul.mubr.msk.f32.gmra.mrb[52].mxu0 %vm2840_vm5, %v2835_v10 }
 0x416   : > { %v4097_v12 = vpop.f32.mrb[50].mxu0 }
 0x417   : > { %v2925_v39 = vadd.f32 %v4097_v12, %v2837_v11  ;;  %v2919_v14 = vpop.f32.mrb[51].mxu0 }
 0x418   : > { %v2920_v40 = vadd.f32 %v2919_v14, %v2836_v32 }
 0x419   : > { %v3663_v18 = vmul.f32 -1.442695, %v2925_v39 }
 0x41a   : > { %v3662_v21 = vmul.f32 -1.442695, %v2920_v40  ;;  %v4100_v22 = vpop.f32.mrb[52].mxu0 }
 0x41b   : > { %4339 = vpow2.f32 %v3663_v18  ;;  %v2935_v23 = vadd.f32 %v4100_v22, %v2839_v16  ;;  %v2929_v24 = vpop.f32.mrb[53].mxu0 }
 0x41c   : > { %4341 = vpow2.f32 %v3662_v21  ;;  %v2930_v26 = vadd.f32 %v2929_v24, %v2838_v20 }
 0x41d   : > { %v3665_v27 = vmul.f32 -1.442695, %v2935_v23 }
 0x41e   : > { %v3664_v28 = vmul.f32 -1.442695, %v2930_v26 }
 0x41f   : > { %4343 = vpow2.f32 %v3665_v27 }
 0x420   : > { %4345 = vpow2.f32 %v3664_v28 }
 0x425   : > { %v4340_v29 = vpop.eup %4339 }
 0x426   : > { %v4342_v30 = vpop.eup %4341  ;;  %v2951_v33 = vadd.f32 1.0, %v4340_v29 }
 0x427   : > { %v2950_v34 = vadd.f32 1.0, %v4342_v30 }
 0x428   : > { %4347 = vrcp.f32 %v2951_v33 }
 0x429   : > { %v4344_v35 = vpop.eup %4343  ;;  %4349 = vrcp.f32 %v2950_v34 }
 0x42a   : > { %v4346_v36 = vpop.eup %4345  ;;  %v2953_v37 = vadd.f32 1.0, %v4344_v35 }
 0x42b   : > { %v2952_v38 = vadd.f32 1.0, %v4346_v36 }
 0x42d   : > { %4351 = vrcp.f32 %v2952_v38 }
 0x42e   : > { %4353 = vrcp.f32 %v2953_v37 }
 0x432   : > { %v4348_v42 = vpop.eup %4347 }
 0x433   : > { %v4350_v8 = vpop.eup %4349  ;;  %v2963_v43 = vadd.f32 1.0, %v4348_v42 }
 0x434   : > { %v2962_v13 = vadd.f32 1.0, %v4350_v8 }
 0x435   : > { %2973 = vperm.xlu0 %4161, %v2963_v43  }
 0x436   : > { %2968 = vperm.xlu1 %4162, %v2962_v13  }
 0x437   : > { %v4352_v45 = vpop.eup %4351 }
 0x438   : > { %v2964_v46 = vadd.f32 1.0, %v4352_v45  ;;  %v4354_v47 = vpop.eup %4353 }
 0x439   : > { %v2965_v48 = vadd.f32 1.0, %v4354_v47 }
 0x43a   : > { %2978 = vperm.xlu1 %4162, %v2964_v46  }
 0x43e   : > { %2983 = vperm.xlu1 %4162, %v2965_v48  }
 0x4b4   : > { %v2974_v49 = vpop.permute.xlu0 %2973 }
 0x4b5   : > { %v2987_v50 = vmul.f32 %v2974_v49, %v4856_v44  ;;  %v2969_v15 = vpop.permute.xlu1 %2968 }
 0x4b6   : > { %v2986_v52 = vmul.f32 %v2969_v15, %v4851_v41 }
 0x4b7   : > { %v2991_v53 = vmax.f32 %v2987_v50, 0.0 }
 0x4b8   : > { %v2990_v25 = vmax.f32 %v2986_v52, 0.0 }
 0x4b9   : > { %v3677_v55 = vpack.c.bf16 %v2991_v53, %v2991_v53  ;;  %v2979_v56 = vpop.permute.xlu1 %2978 }
 0x4ba   : > { %v3676_v57 = vpack.c.bf16 %v2990_v25, %v2990_v25  ;;  %v2988_v58 = vmul.f32 %v2979_v56, %v4861_v51 }
 0x4bb   : > { %3012 = vst.msk [vmem:[%s412_s8 + $0x4] sm:$0xf] %vm3010_vm6, %v3677_v55 }
 0x4bc   : > { %3011 = vst.msk [vmem:[%s412_s8] sm:$0xf] %vm3010_vm6, %v3676_v57  ;;  %v2992_v59 = vmax.f32 %v2988_v58, 0.0 }
 0x4bd   : > { %v2984_v60 = vpop.permute.xlu1 %2983 }
 0x4be   : > { %v3678_v44 = vpack.c.bf16 %v2992_v59, %v2992_v59  ;;  %v2989_v17 = vmul.f32 %v2984_v60, %v4865_v54 }
 0x4c0   : > { %3013 = vst.msk [vmem:[%s412_s8 + $0x8] sm:$0xf] %vm3010_vm6, %v3678_v44  ;;  %v2993_v41 = vmax.f32 %v2989_v17, 0.0 }
 0x4c2   : > { %v3679_v61 = vpack.c.bf16 %v2993_v41, %v2993_v41 }
 0x4c4   : > { %3014 = vst.msk [vmem:[%s412_s8 + $0xc] sm:$0xf] %vm3010_vm6, %v3679_v61 }
 0x4c5 PF: > { %s17_s28 = sadd.s32 1, %s4399_s28   ;;  %s4916_s24 = smov %s4391_s26 }
 0x4c6   : > { %p14_p8 = scmp.ge.s32.totalorder %s17_s28, 12   ;;  %s4917_s25 = smov %s4395_s27 }
 0x4c7   : > { %s4918_s26 = smov %s4921_s29  ;;  %s4919_s27 = smov %s4925_s30 }
 0x4c8   :  { %16 = sbr.rel (!%p14_p8) target bundleno = 3 (0x3), region = 103 }

// kernel: jmnet_forward.4
= control target key start
LH: loop header
LB: loop body
LE: loop exit
PB: predicated region body
PF: predicated region fallthrough
CT: control target
= control target key end

     0   :  { %s3647_s24 = smov 0   ;;  %s3649_s25 = smov 0   ;;  %s4363_s0 = inlined_call_operand.vmem [shape: bf16[10,4,480,7], index: 0, kind: input, shape index: {}]   ;;  %s4364_s1 = inlined_call_operand.vmem [shape: bf16[5,64,480], index: 1, kind: input, shape index: {}]   ;;  %s4365_s2 = inlined_call_operand.vmem [shape: f32[5,64,1], index: 2, kind: input, shape index: {}]   ;;  %s4366_s3 = inlined_call_operand.vmem [shape: f32[5,16,64], index: 3, kind: input, shape index: {}]   ;;  %s4367_s4 = inlined_call_operand.vmem [shape: f32[5,16,1], index: 4, kind: input, shape index: {}]   ;;  %s4368_s5 = inlined_call_operand.vmem [shape: f32[5,64,16], index: 5, kind: input, shape index: {}]   ;;  %s4369_s6 = inlined_call_operand.vmem [shape: f32[5,64,1], index: 6, kind: input, shape index: {}]   ;;  %s4370_s7 = inlined_call_operand.vmem [shape: f32[10,64,7], index: 7, kind: output, shape index: {}]  }
   0x1   :  { %s3651_s26 = smov 0   ;;  %s3653_s27 = smov 0  }
   0x2   :  { %s3655_s28 = smov 0  }
   0x3 LB: > { %s26_s29 = sadd.s32 1, %s3596_s26  ;;  %s29_s30 = sadd.s32 1, %s3600_s27  ;;  %s3604_s28 = sphi %s3655_s28, %s17_s28   ;;  %s3600_s27 = sphi %s3653_s27, %s4374_s27   ;;  %s3596_s26 = sphi %s3651_s26, %s4373_s26   ;;  %s3592_s25 = sphi %s3649_s25, %s4372_s25   ;;  %s3588_s24 = sphi %s3647_s24, %s4371_s24  }
   0x4   : > { %p27_p0 = scmp.ge.s32.totalorder %s26_s29, 5  ;;  %p2733_p1 = scmp.ge.s32.totalorder %s3604_s28, 1 }
   0x5   : > { %p321_p2 = scmp.lt.s32.totalorder %s3604_s28, 11 }
   0x6   : > { %s4376_s29 = smov (%p27_p0, %s26_s29), 0  ;;  %s4378_s30 = smov (!%p27_p0, %s29_s30), %s3600_s27 }
   0x7   : > { %p322_p3 = pnand %p2733_p1, %p321_p2  ;;  %p31_p4 = scmp.ge.s32.totalorder %s4378_s30, 2 }
   0x8   : > { %s2734_s8 = sshll.u32 (!%p322_p3), %s3588_s24, 1  ;;  %p396_p5 = scmp.lt.s32.totalorder (!%p322_p3), %s3588_s24, 4  ;;  %v3606_v0 = vmov (!%p322_p3), 0   ;;  %vm816_vm0 = vcmask (!%p322_p3), 785408  }
   0x9   : > { %s4380_s30 = smov (%p31_p4, %s4378_s30), 0  ;;  %325 = sbr.rel (%p322_p3) target bundleno = 1232 (0x4d0), region = 48 }
   0xa   : > { %894 = vmatprep.subr.bf16.mxu1 (!%p322_p3), %v3606_v0  ;;  %s388_s9 = sadd.s32 (!%p322_p3), %s3592_s25, %s2734_s8  ;;  %3387 = vset.pattern.permute.xlu0 (!%p322_p3), %v3606_v0 }
   0xb   : > { %p389_p6 = scmp.lt.s32.totalorder (!%p322_p3), %s388_s9, 9  ;;  %3388 = vset.pattern.permute.xlu1 (!%p322_p3), %v3606_v0 }
  0x10   : > { %s4382_s24 = smov (!%p396_p5, %s3588_s24), 4  ;;  %s4384_s9 = smov (!%p389_p6, %s388_s9), 9 }
  0x11   : > { %s3103_s10 = sshll.u32 %s4382_s24, 7  ;;  %s3345_s11 = smul.u32 960, %s4384_s9 }
  0x12   : > { %s3689_s14 = scalar_lea.vmem %s4364_s1, %s3103_s10  ;;  %s3879_s18 = sshll.u32 %s4382_s24, 6 }
  0x13   : > { %v3692_v1 = vld [vmem:[%s3689_s14 + $0x4] ss:$16 sps:$4 sm:$0xff]   ;;  %s3697_s17 = scalar_lea.vmem %s4363_s0, %s3345_s11  ;;  %v3733_v27 = vld [vmem:[%s3689_s14] ss:$16 sps:$4 sm:$0xff]   ;;  %v3763_v42 = vld [vmem:[%s3689_s14 + $0xc] ss:$16 sps:$4 sm:$0xff]   ;;  %s3888_s21 = scalar_lea.vmem %s4365_s2, %s3879_s18 }
  0x14   : > { %v3389_v2 = vld [vmem:[%s3697_s17 + $0x40] sm:$0xff]   ;;  %861 = vmatprep.mubr.bf16.mxu0 %v3692_v1  ;;  %v3392_v5 = vld [vmem:[%s3697_s17 + $0x48] sm:$0xff]   ;;  %v3395_v8 = vld [vmem:[%s3697_s17 + $0x50] sm:$0xff]   ;;  %2797 = vmatprep.mubr.msk.bf16.mxu1 %vm816_vm0, %v3763_v42  ;;  %s3105_s22 = sshll.u32 %s4382_s24, 4  ;;  %s420_s12 = scalar_lea.vmem %s4368_s5, %s3879_s18 }
  0x15   : > { %v3390_v3 = vld [vmem:[%s3697_s17 + $0x80] sm:$0xff]   ;;  %3110 = vmatprep.subr.bf16.mxu0 %v3389_v2  ;;  %v3393_v6 = vld [vmem:[%s3697_s17 + $0x88] sm:$0xff]   ;;  %v3396_v9 = vld [vmem:[%s3697_s17 + $0x90] sm:$0xff]   ;;  %s4301_s8 = scalar_lea.vmem %s4366_s3, %s3105_s22  ;;  %s415_s15 = scalar_lea.vmem %s4367_s4, %s3105_s22 }
  0x16   : > { %v3391_v4 = vld [vmem:[%s3697_s17] sm:$0xff]   ;;  %895 = vmatpush1.bf16.msra.mxu1 %v3390_v3  ;;  %v3394_v7 = vld [vmem:[%s3697_s17 + $0x8] sm:$0xff]   ;;  %v3397_v10 = vld [vmem:[%s3697_s17 + $0x10] sm:$0xff]  }
  0x17   : > { %3111 = vmatpush3.bf16.msra.mxu0 %v3391_v4  ;;  %896 = vmatprep.subr.bf16.mxu1 %v3606_v0  ;;  %v3398_v11 = vld [vmem:[%s3697_s17 + $0x58] sm:$0xff]   ;;  %v3401_v14 = vld [vmem:[%s3697_s17 + $0x60] sm:$0xff]   ;;  %v3404_v17 = vld [vmem:[%s3697_s17 + $0x68] sm:$0xff]  }
  0x18   : > { %3112 = vmatprep.subr.bf16.mxu0 %v3392_v5  ;;  %v3399_v12 = vld [vmem:[%s3697_s17 + $0x98] sm:$0xff]   ;;  %v3402_v15 = vld [vmem:[%s3697_s17 + $0xa0] sm:$0xff]   ;;  %v3405_v18 = vld [vmem:[%s3697_s17 + $0xa8] sm:$0xff]  }
  0x19   : > { %v3400_v13 = vld [vmem:[%s3697_s17 + $0x18] sm:$0xff]   ;;  %v3403_v16 = vld [vmem:[%s3697_s17 + $0x20] sm:$0xff]   ;;  %v3406_v19 = vld [vmem:[%s3697_s17 + $0x28] sm:$0xff]  }
  0x1a   : > { %897 = vmatpush1.bf16.msra.mxu1 %v3393_v6  ;;  %v3407_v20 = vld [vmem:[%s3697_s17 + $0x70] sm:$0xff]   ;;  %v3410_v23 = vld [vmem:[%s3697_s17 + $0x78] sm:$0xff]   ;;  %v3415_v28 = vld [vmem:[%s3697_s17 + $0xc0] sm:$0xff]  }
  0x1b   : > { %3113 = vmatpush3.bf16.msra.mxu0 %v3394_v7  ;;  %898 = vmatprep.subr.bf16.mxu1 %v3606_v0  ;;  %v3408_v21 = vld [vmem:[%s3697_s17 + $0xb0] sm:$0xff]   ;;  %v3411_v24 = vld [vmem:[%s3697_s17 + $0xb8] sm:$0xff]   ;;  %v3419_v32 = vld [vmem:[%s3697_s17 + $0xc8] sm:$0xff]  }
  0x1c   : > { %3114 = vmatprep.subr.bf16.mxu0 %v3395_v8  ;;  %v3409_v22 = vld [vmem:[%s3697_s17 + $0x30] sm:$0xff]   ;;  %v3412_v25 = vld [vmem:[%s3697_s17 + $0x38] sm:$0xff]   ;;  %v3425_v34 = vld [vmem:[%s3697_s17 + $0x140] sm:$0xff]  }
  0x1d   : > { %v3416_v26 = vld [vmem:[%s3697_s17 + $0x130] sm:$0xff]   ;;  %v3420_v30 = vld [vmem:[%s3697_s17 + $0x138] sm:$0xff]   ;;  %v3427_v37 = vld [vmem:[%s3697_s17 + $0x100] sm:$0xff]  }
  0x1e   : > { %899 = vmatpush1.bf16.msra.mxu1 %v3396_v9  ;;  %v3418_v29 = vld [vmem:[%s3697_s17 + $0xf0] sm:$0xff]   ;;  %v3421_v33 = vld [vmem:[%s3697_s17 + $0xf8] sm:$0xff]   ;;  %v3429_v38 = vld [vmem:[%s3697_s17 + $0x148] sm:$0xff]  }
  0x1f   : > { %3115 = vmatpush3.bf16.msra.mxu0 %v3397_v10  ;;  %900 = vmatprep.subr.bf16.mxu1 %v3606_v0  ;;  %v3740_v31 = vld [vmem:[%s3689_s14 + $0x24] ss:$16 sps:$4 sm:$0xff]   ;;  %v3750_v36 = vld [vmem:[%s3689_s14 + $0x20] ss:$16 sps:$4 sm:$0xff]   ;;  %v3428_v40 = vld [vmem:[%s3697_s17 + $0xd8] sm:$0xff]  }
  0x20   : > { %3116 = vmatprep.subr.bf16.mxu0 %v3398_v11  ;;  %v3424_v35 = vld [vmem:[%s3697_s17 + $0xd0] sm:$0xff]   ;;  %v3430_v41 = vld [vmem:[%s3697_s17 + $0x108] sm:$0xff]   ;;  %v3433_v44 = vld [vmem:[%s3697_s17 + $0xe0] sm:$0xff]  }
  0x21   : > { %v3756_v39 = vld [vmem:[%s3689_s14 + $0x44] ss:$16 sps:$4 sm:$0xff]   ;;  %v3771_v45 = vld [vmem:[%s3689_s14 + $0x40] ss:$16 sps:$4 sm:$0xff]   ;;  %v3438_v47 = vld [vmem:[%s3697_s17 + $0x158] sm:$0xff]  }
  0x22   : > { %901 = vmatpush1.bf16.msra.mxu1 %v3399_v12  ;;  %v3434_v43 = vld [vmem:[%s3697_s17 + $0x150] sm:$0xff]   ;;  %v3437_v49 = vld [vmem:[%s3697_s17 + $0xe8] sm:$0xff]   ;;  %v3439_v50 = vld [vmem:[%s3697_s17 + $0x118] sm:$0xff]  }
  0x23   : > { %3117 = vmatpush3.bf16.msra.mxu0 %v3400_v13  ;;  %902 = vmatprep.subr.bf16.mxu1 %v3606_v0  ;;  %v3436_v46 = vld [vmem:[%s3697_s17 + $0x110] sm:$0xff]   ;;  %v3784_v51 = vld [vmem:[%s3689_s14 + $0x8] ss:$16 sps:$4 sm:$0xff]   ;;  %v3445_v52 = vld [vmem:[%s3697_s17 + $0x160] sm:$0xff]  }
  0x24   : > { %3118 = vmatprep.subr.bf16.mxu0 %v3401_v14  ;;  %v3777_v48 = vld [vmem:[%s3689_s14 + $0x64] ss:$16 sps:$4 sm:$0xff]   ;;  %v3790_v54 = vld [vmem:[%s3689_s14 + $0x60] ss:$16 sps:$4 sm:$0xff]   ;;  %v3449_v56 = vld [vmem:[%s3697_s17 + $0x168] sm:$0xff]  }
  0x25   : > { %v3446_v53 = vld [vmem:[%s3697_s17 + $0x170] sm:$0xff]   ;;  %v3448_v55 = vld [vmem:[%s3697_s17 + $0x120] sm:$0xff]   ;;  %v3450_v57 = vld [vmem:[%s3697_s17 + $0x178] sm:$0xff]  }
  0x26   : > { %903 = vmatpush1.bf16.msra.mxu1 %v3402_v15  ;;  %v3451_v58 = vld [vmem:[%s3697_s17 + $0x128] sm:$0xff]   ;;  %v3453_v59 = vld [vmem:[%s3697_s17 + $0x220] sm:$0xff]   ;;  %v3459_v3 = vld [vmem:[%s3697_s17 + $0x230] sm:$0xff]  }
  0x27   : > { %3119 = vmatpush3.bf16.msra.mxu0 %v3403_v16  ;;  %904 = vmatprep.subr.bf16.mxu1 %v3606_v0  ;;  %v3452_v60 = vld [vmem:[%s3697_s17 + $0x180] sm:$0xff]   ;;  %v3456_v62 = vld [vmem:[%s3697_s17 + $0x228] sm:$0xff]   ;;  %v3458_v6 = vld [vmem:[%s3697_s17 + $0x190] sm:$0xff]  }
  0x28   : > { %3120 = vmatprep.subr.bf16.mxu0 %v3404_v17  ;;  %v3454_v61 = vld [vmem:[%s3697_s17 + $0x1e0] sm:$0xff]   ;;  %v3455_v63 = vld [vmem:[%s3697_s17 + $0x188] sm:$0xff]   ;;  %v3460_v7 = vld [vmem:[%s3697_s17 + $0x1f0] sm:$0xff]  }
  0x29   : > { %v3457_v2 = vld [vmem:[%s3697_s17 + $0x1e8] sm:$0xff]   ;;  %v3461_v8 = vld [vmem:[%s3697_s17 + $0x198] sm:$0xff]   ;;  %v3465_v12 = vld [vmem:[%s3697_s17 + $0x240] sm:$0xff]  }
  0x2a   : > { %905 = vmatpush1.bf16.msra.mxu1 %v3405_v18  ;;  %v3812_v4 = vld [vmem:[%s3689_s14 + $0x2c] ss:$16 sps:$4 sm:$0xff]   ;;  %v3816_v5 = vld [vmem:[%s3689_s14 + $0x28] ss:$16 sps:$4 sm:$0xff]   ;;  %v3464_v14 = vld [vmem:[%s3697_s17 + $0x1a0] sm:$0xff]  }
  0x2b   : > { %3121 = vmatpush3.bf16.msra.mxu0 %v3406_v19  ;;  %906 = vmatprep.subr.bf16.mxu1 %v3606_v0  ;;  %v3462_v9 = vld [vmem:[%s3697_s17 + $0x238] sm:$0xff]   ;;  %v3466_v15 = vld [vmem:[%s3697_s17 + $0x200] sm:$0xff]   ;;  %v3471_v16 = vld [vmem:[%s3697_s17 + $0x248] sm:$0xff]  }
  0x2c   : > { %3122 = vmatprep.subr.bf16.mxu0 %v3407_v20  ;;  %v3463_v10 = vld [vmem:[%s3697_s17 + $0x1f8] sm:$0xff]   ;;  %v3470_v17 = vld [vmem:[%s3697_s17 + $0x1a8] sm:$0xff]   ;;  %v3474_v20 = vld [vmem:[%s3697_s17 + $0x250] sm:$0xff]  }
  0x2d   : > { %v3829_v11 = vld [vmem:[%s3689_s14 + $0x4c] ss:$16 sps:$4 sm:$0xff]   ;;  %v3835_v13 = vld [vmem:[%s3689_s14 + $0x48] ss:$16 sps:$4 sm:$0xff]  }
  0x2e   : > { %907 = vmatpush1.bf16.msra.mxu1 %v3408_v21  ;;  %v3846_v18 = vld [vmem:[%s3689_s14 + $0x6c] ss:$16 sps:$4 sm:$0xff]   ;;  %v3854_v21 = vld [vmem:[%s3689_s14 + $0x68] ss:$16 sps:$4 sm:$0xff]  }
  0x2f   : > { %3123 = vmatpush3.bf16.msra.mxu0 %v3409_v22  ;;  %908 = vmatprep.subr.bf16.mxu1 %v3606_v0  ;;  %v3472_v19 = vld [vmem:[%s3697_s17 + $0x208] sm:$0xff]   ;;  %v3473_v22 = vld [vmem:[%s3697_s17 + $0x1b0] sm:$0xff]  }
  0x30   : > { %3124 = vmatprep.subr.bf16.mxu0 %v3410_v23  ;;  %v3475_v23 = vld [vmem:[%s3697_s17 + $0x210] sm:$0xff]  }
  0x32   : > { %909 = vmatpush1.bf16.msra.mxu1 %v3411_v24  ;;  %v3480_v24 = vld [vmem:[%s3697_s17 + $0x258] sm:$0xff]  }
  0x33   : > { %3125 = vmatpush3.bf16.msra.mxu0 %v3412_v25  ;;  %910 = vmatprep.subr.bf16.mxu1 %v3606_v0  ;;  %v3479_v25 = vld [vmem:[%s3697_s17 + $0x1b8] sm:$0xff]  }
  0x34   : > { %3150 = vmatprep.subr.bf16.mxu0 %v3416_v26  ;;  %v3481_v26 = vld [vmem:[%s3697_s17 + $0x218] sm:$0xff]  }
  0x36   : > { %911 = vmatpush1.bf16.msra.mxu1 %v3415_v28  ;;  %862 = vmatmul.mubr.bf16.vlgmr.msra.gmra.mrb[0].mxu0 %v3733_v27  ;;  %v3482_v28 = vld [vmem:[%s3697_s17 + $0x1c0] sm:$0xff]  }
  0x37   : > { %3151 = vmatpush3.bf16.msra.mxu0 %v3418_v29  ;;  %912 = vmatprep.subr.bf16.mxu1 %v3606_v0  ;;  %v3483_v29 = vld [vmem:[%s3697_s17 + $0x260] sm:$0xff]  }
  0x38   : > { %3152 = vmatprep.subr.bf16.mxu0 %v3420_v30  ;;  %869 = vmatprep.mubr.bf16.mxu0 %v3740_v31  ;;  %v3487_v30 = vld [vmem:[%s3697_s17 + $0x1c8] sm:$0xff]  }
  0x3a   : > { %913 = vmatpush1.bf16.msra.mxu1 %v3419_v32  ;;  %v3489_v32 = vld [vmem:[%s3697_s17 + $0x1d0] sm:$0xff]  }
  0x3b   : > { %3153 = vmatpush3.bf16.msra.mxu0 %v3421_v33  ;;  %914 = vmatprep.subr.bf16.mxu1 %v3606_v0  ;;  %v3490_v33 = vld [vmem:[%s3697_s17 + $0x270] sm:$0xff]  }
  0x3c   : > { %3154 = vmatprep.subr.bf16.mxu0 %v3425_v34  ;;  %v3491_v34 = vld [vmem:[%s3697_s17 + $0x1d8] sm:$0xff]  }
  0x3e   : > { %915 = vmatpush1.bf16.msra.mxu1 %v3424_v35  ;;  %870 = vmatmul.mubr.bf16.gmra.mrb[4].mxu0 %v3750_v36  ;;  %v452_v35 = vld [vmem:[%s3888_s21] sm:$0xff] }
  0x3f   : > { %3155 = vmatpush3.bf16.msra.mxu0 %v3427_v37  ;;  %916 = vmatprep.subr.bf16.mxu1 %v3606_v0  ;;  %v3492_v37 = vld [vmem:[%s3697_s17 + $0x278] sm:$0xff]  }
  0x40   : > { %3156 = vmatprep.subr.bf16.mxu0 %v3429_v38  ;;  %877 = vmatprep.mubr.bf16.mxu0 %v3756_v39  ;;  %v3493_v38 = vld [vmem:[%s3697_s17 + $0x310] sm:$0xff]  }
  0x41   : > { %522 = vperm.xlu0 %3387, %v452_v35  }
  0x42   : > { %917 = vmatpush1.bf16.msra.mxu1 %v3428_v40  ;;  %v3494_v40 = vld [vmem:[%s3697_s17 + $0x2d0] sm:$0xff]  }
  0x43   : > { %3157 = vmatpush3.bf16.msra.mxu0 %v3430_v41  ;;  %918 = vmatprep.subr.bf16.mxu1 %v3606_v0  ;;  %v453_v41 = vld [vmem:[%s3888_s21 + $0x8] sm:$0xff] }
  0x44   : > { %3158 = vmatprep.subr.bf16.mxu0 %v3434_v43  ;;  %v3495_v43 = vld [vmem:[%s3697_s17 + $0x280] sm:$0xff]  }
  0x45   : > { %527 = vperm.xlu0 %3387, %v453_v41  }
  0x46   : > { %919 = vmatpush1.bf16.msra.mxu1 %v3433_v44  ;;  %878 = vmatmul.mubr.bf16.gmra.mrb[8].mxu0 %v3771_v45  ;;  %v3496_v44 = vld [vmem:[%s3697_s17 + $0x318] sm:$0xff]  }
  0x47   : > { %3159 = vmatpush3.bf16.msra.mxu0 %v3436_v46  ;;  %920 = vmatprep.subr.bf16.mxu1 %v3606_v0  ;;  %v3497_v46 = vld [vmem:[%s3697_s17 + $0x2d8] sm:$0xff]  }
  0x48   : > { %3160 = vmatprep.subr.bf16.mxu0 %v3438_v47  ;;  %885 = vmatprep.mubr.bf16.mxu0 %v3777_v48  ;;  %v3498_v47 = vld [vmem:[%s3697_s17 + $0x288] sm:$0xff]  }
  0x4a   : > { %921 = vmatpush1.bf16.msra.mxu1 %v3437_v49  ;;  %v3499_v49 = vld [vmem:[%s3697_s17 + $0x320] sm:$0xff]  }
  0x4b   : > { %3161 = vmatpush3.bf16.msra.mxu0 %v3439_v50  ;;  %1289 = vmatprep.subr.bf16.mxu1 %v3606_v0  ;;  %v3500_v50 = vld [vmem:[%s3697_s17 + $0x2e0] sm:$0xff]  }
  0x4c   : > { %3162 = vmatprep.subr.bf16.mxu0 %v3445_v52  ;;  %v3501_v52 = vld [vmem:[%s3697_s17 + $0x290] sm:$0xff]  }
  0x4d   : > { %927 = vmatmul.mubr.bf16.vlgmr.msra.gmra.mrb[0].mxu1 %v3784_v51 }
  0x4e   : > { %1290 = vmatpush1.bf16.msra.mxu1 %v3446_v53  ;;  %886 = vmatmul.mubr.bf16.gmra.mrb[12].mxu0 %v3790_v54  ;;  %v3502_v53 = vld [vmem:[%s3697_s17 + $0x328] sm:$0xff]  }
  0x4f   : > { %3163 = vmatpush3.bf16.msra.mxu0 %v3448_v55  ;;  %1291 = vmatprep.subr.bf16.mxu1 %v3606_v0  ;;  %v454_v55 = vld [vmem:[%s3888_s21 + $0x10] sm:$0xff] }
  0x50   : > { %3164 = vmatprep.subr.bf16.mxu0 %v3449_v56  ;;  %1256 = vmatprep.mubr.bf16.mxu0 %v3692_v1  ;;  %v3503_v56 = vld [vmem:[%s3697_s17 + $0x2e8] sm:$0xff]  }
  0x51   : > { %2798 = vmatprep.mubr.msk.bf16.mxu1 %vm816_vm0, %v3812_v4  ;;  %532 = vperm.xlu1 %3388, %v454_v55  }
  0x52   : > { %1292 = vmatpush1.bf16.msra.mxu1 %v3450_v57  ;;  %v3504_v57 = vld [vmem:[%s3697_s17 + $0x298] sm:$0xff]  }
  0x53   : > { %3165 = vmatpush3.bf16.msra.mxu0 %v3451_v58  ;;  %1293 = vmatprep.subr.bf16.mxu1 %v3606_v0  ;;  %v455_v58 = vld [vmem:[%s3888_s21 + $0x18] sm:$0xff] }
  0x54   : > { %3190 = vmatprep.subr.bf16.mxu0 %v3453_v59  ;;  %v3505_v59 = vld [vmem:[%s3697_s17 + $0x330] sm:$0xff]  }
  0x55   : > { %935 = vmatmul.mubr.bf16.gmra.mrb[4].mxu1 %v3816_v5  ;;  %537 = vperm.xlu1 %3388, %v455_v58  }
  0x56   : > { %1294 = vmatpush1.bf16.msra.mxu1 %v3452_v60  ;;  %1257 = vmatmul.mubr.bf16.vlgmr.msra.gmra.mrb[16].mxu0 %v3733_v27  ;;  %v456_v60 = vld [vmem:[%s3888_s21 + $0x20] sm:$0xff] }
  0x57   : > { %3191 = vmatpush3.bf16.msra.mxu0 %v3454_v61  ;;  %1295 = vmatprep.subr.bf16.mxu1 %v3606_v0  ;;  %v3506_v61 = vld [vmem:[%s3697_s17 + $0x2f0] sm:$0xff]  }
  0x58   : > { %3192 = vmatprep.subr.bf16.mxu0 %v3456_v62  ;;  %1264 = vmatprep.mubr.bf16.mxu0 %v3740_v31  ;;  %v3507_v62 = vld [vmem:[%s3697_s17 + $0x2a0] sm:$0xff]  }
  0x59   : > { %2799 = vmatprep.mubr.msk.bf16.mxu1 %vm816_vm0, %v3829_v11  ;;  %542 = vperm.xlu0 %3387, %v456_v60  }
  0x5a   : > { %1296 = vmatpush1.bf16.msra.mxu1 %v3455_v63  ;;  %v457_v63 = vld [vmem:[%s3888_s21 + $0x28] sm:$0xff] }
  0x5b   : > { %3193 = vmatpush3.bf16.msra.mxu0 %v3457_v2  ;;  %1297 = vmatprep.subr.bf16.mxu1 %v3606_v0  ;;  %v3508_v2 = vld [vmem:[%s3697_s17 + $0x338] sm:$0xff]  }
  0x5c   : > { %3194 = vmatprep.subr.bf16.mxu0 %v3459_v3  ;;  %547 = vperm.xlu1 %3388, %v457_v63   ;;  %v458_v3 = vld [vmem:[%s3888_s21 + $0x30] sm:$0xff] }
  0x5d   : > { %943 = vmatmul.mubr.bf16.gmra.mrb[8].mxu1 %v3835_v13  ;;  %552 = vperm.xlu0 %3387, %v458_v3  }
  0x5e   : > { %1298 = vmatpush1.bf16.msra.mxu1 %v3458_v6  ;;  %1265 = vmatmul.mubr.bf16.gmra.mrb[20].mxu0 %v3750_v36  ;;  %v3509_v6 = vld [vmem:[%s3697_s17 + $0x2f8] sm:$0xff]  }
  0x5f   : > { %3195 = vmatpush3.bf16.msra.mxu0 %v3460_v7  ;;  %1299 = vmatprep.subr.bf16.mxu1 %v3606_v0  ;;  %v459_v7 = vld [vmem:[%s3888_s21 + $0x38] sm:$0xff] }
  0x60   : > { %3196 = vmatprep.subr.bf16.mxu0 %v3462_v9  ;;  %1272 = vmatprep.mubr.bf16.mxu0 %v3756_v39  ;;  %v3511_v9 = vld [vmem:[%s3697_s17 + $0x340] sm:$0xff]  }
  0x61   : > { %2800 = vmatprep.mubr.msk.bf16.mxu1 %vm816_vm0, %v3846_v18  ;;  %557 = vperm.xlu1 %3388, %v459_v7  }
  0x62   : > { %1300 = vmatpush1.bf16.msra.mxu1 %v3461_v8  ;;  %v3510_v8 = vld [vmem:[%s3697_s17 + $0x2a8] sm:$0xff]  }
  0x63   : > { %3197 = vmatpush3.bf16.msra.mxu0 %v3463_v10  ;;  %1301 = vmatprep.subr.bf16.mxu1 %v3606_v0  ;;  %v3512_v10 = vld [vmem:[%s3697_s17 + $0x300] sm:$0xff]  }
  0x64   : > { %3198 = vmatprep.subr.bf16.mxu0 %v3465_v12  ;;  %v3513_v12 = vld [vmem:[%s3697_s17 + $0x2b0] sm:$0xff]  }
  0x65   : > { %951 = vmatmul.mubr.bf16.gmra.mrb[12].mxu1 %v3854_v21 }
  0x66   : > { %1302 = vmatpush1.bf16.msra.mxu1 %v3464_v14  ;;  %1273 = vmatmul.mubr.bf16.gmra.mrb[24].mxu0 %v3771_v45  ;;  %v3514_v14 = vld [vmem:[%s3697_s17 + $0x348] sm:$0xff]  }
  0x67   : > { %3199 = vmatpush3.bf16.msra.mxu0 %v3466_v15  ;;  %1303 = vmatprep.subr.bf16.mxu1 %v3606_v0  ;;  %v3515_v15 = vld [vmem:[%s3697_s17 + $0x308] sm:$0xff]  }
  0x68   : > { %3200 = vmatprep.subr.bf16.mxu0 %v3471_v16  ;;  %1280 = vmatprep.mubr.bf16.mxu0 %v3777_v48  ;;  %v3565_v16 = vld [vmem:[%s3689_s14 + $0x4] ss:$16 sps:$4 sm:$0xff]  }
  0x69   : > { %2891 = vmatprep.mubr.msk.bf16.mxu1 %vm816_vm0, %v3763_v42 }
  0x6a   : > { %1304 = vmatpush1.bf16.msra.mxu1 %v3470_v17  ;;  %v3516_v17 = vld [vmem:[%s3697_s17 + $0x2b8] sm:$0xff]  }
  0x6b   : > { %3201 = vmatpush3.bf16.msra.mxu0 %v3472_v19  ;;  %1305 = vmatprep.subr.bf16.mxu1 %v3606_v0  ;;  %v3517_v19 = vld [vmem:[%s3697_s17 + $0x350] sm:$0xff]  }
  0x6c   : > { %3202 = vmatprep.subr.bf16.mxu0 %v3474_v20  ;;  %v3518_v20 = vld [vmem:[%s3697_s17 + $0x2c0] sm:$0xff]  }
  0x6e   : > { %1306 = vmatpush1.bf16.msra.mxu1 %v3473_v22  ;;  %1281 = vmatmul.mubr.bf16.gmra.mrb[28].mxu0 %v3790_v54  ;;  %v3519_v22 = vld [vmem:[%s3697_s17 + $0x358] sm:$0xff]  }
  0x6f   : > { %3203 = vmatpush3.bf16.msra.mxu0 %v3475_v23  ;;  %1307 = vmatprep.subr.bf16.mxu1 %v3606_v0  ;;  %v3520_v23 = vld [vmem:[%s3697_s17 + $0x2c8] sm:$0xff]  }
  0x70   : > { %3204 = vmatprep.subr.bf16.mxu0 %v3480_v24  ;;  %1659 = vmatprep.mubr.bf16.mxu0 %v3692_v1  ;;  %v3488_v1 = vld [vmem:[%s3697_s17 + $0x268] sm:$0xff]   ;;  %v3521_v24 = vld [vmem:[%s3697_s17 + $0x360] sm:$0xff]  }
  0x72   : > { %1308 = vmatpush1.bf16.msra.mxu1 %v3479_v25  ;;  %v3529_v25 = vld [vmem:[%s3697_s17 + $0x3a0] sm:$0xff]  }
  0x73   : > { %3205 = vmatpush3.bf16.msra.mxu0 %v3481_v26  ;;  %1309 = vmatprep.subr.bf16.mxu1 %v3606_v0  ;;  %v3530_v26 = vld [vmem:[%s3697_s17 + $0x3a8] sm:$0xff]  }
  0x74   : > { %1692 = vmatprep.subr.bf16.mxu0 %v3606_v0 }
  0x76   : > { %1310 = vmatpush1.bf16.msra.mxu1 %v3482_v28  ;;  %1660 = vmatmul.mubr.bf16.vlgmr.msra.gmra.mrb[32].mxu0 %v3733_v27  ;;  %v3532_v28 = vld [vmem:[%s3697_s17 + $0x3b8] sm:$0xff]  }
  0x77   : > { %1693 = vmatpush1.bf16.msra.mxu0 %v3483_v29  ;;  %1311 = vmatprep.subr.bf16.mxu1 %v3606_v0 }
  0x78   : > { %1694 = vmatprep.subr.bf16.mxu0 %v3606_v0  ;;  %1667 = vmatprep.mubr.bf16.mxu0 %v3740_v31 }
  0x7a   : > { %1312 = vmatpush1.bf16.msra.mxu1 %v3487_v30 }
  0x7b   : > { %1695 = vmatpush1.bf16.msra.mxu0 %v3488_v1  ;;  %1313 = vmatprep.subr.bf16.mxu1 %v3606_v0 }
  0x7c   : > { %1696 = vmatprep.subr.bf16.mxu0 %v3606_v0 }
  0x7e   : > { %1314 = vmatpush1.bf16.msra.mxu1 %v3489_v32  ;;  %1668 = vmatmul.mubr.bf16.gmra.mrb[36].mxu0 %v3750_v36 }
  0x7f   : > { %1697 = vmatpush1.bf16.msra.mxu0 %v3490_v33  ;;  %1315 = vmatprep.subr.bf16.mxu1 %v3606_v0 }
  0x80   : > { %1698 = vmatprep.subr.bf16.mxu0 %v3606_v0  ;;  %1675 = vmatprep.mubr.bf16.mxu0 %v3756_v39 }
  0x82   : > { %1316 = vmatpush1.bf16.msra.mxu1 %v3491_v34 }
  0x83   : > { %1699 = vmatpush1.bf16.msra.mxu0 %v3492_v37  ;;  %3230 = vmatprep.subr.bf16.mxu1 %v3493_v38 }
  0x84   : > { %1700 = vmatprep.subr.bf16.mxu0 %v3606_v0 }
  0x85   : > { %1322 = vmatmul.mubr.bf16.vlgmr.msra.gmra.mrb[16].mxu1 %v3784_v51 }
  0x86   : > { %3231 = vmatpush3.bf16.msra.mxu1 %v3494_v40  ;;  %2892 = vmatprep.mubr.msk.bf16.mxu1 %vm816_vm0, %v3812_v4 }
  0x87   : > { %1701 = vmatpush1.bf16.msra.mxu0 %v3495_v43  ;;  %3232 = vmatprep.subr.bf16.mxu1 %v3496_v44 }
  0x88   : > { %1702 = vmatprep.subr.bf16.mxu0 %v3606_v0  ;;  %1676 = vmatmul.mubr.bf16.gmra.mrb[40].mxu0 %v3771_v45 }
  0x89   : > { %1683 = vmatprep.mubr.bf16.mxu0 %v3777_v48 }
  0x8a   : > { %3233 = vmatpush3.bf16.msra.mxu1 %v3497_v46 }
  0x8b   : > { %1703 = vmatpush1.bf16.msra.mxu0 %v3498_v47  ;;  %3234 = vmatprep.subr.bf16.mxu1 %v3499_v49 }
  0x8c   : > { %1704 = vmatprep.subr.bf16.mxu0 %v3606_v0 }
  0x8d   : > { %1330 = vmatmul.mubr.bf16.gmra.mrb[20].mxu1 %v3816_v5 }
  0x8e   : > { %3235 = vmatpush3.bf16.msra.mxu1 %v3500_v50  ;;  %2893 = vmatprep.mubr.msk.bf16.mxu1 %vm816_vm0, %v3829_v11 }
  0x8f   : > { %1705 = vmatpush1.bf16.msra.mxu0 %v3501_v52  ;;  %3236 = vmatprep.subr.bf16.mxu1 %v3502_v53 }
  0x90   : > { %1706 = vmatprep.subr.bf16.mxu0 %v3606_v0  ;;  %1684 = vmatmul.mubr.bf16.gmra.mrb[44].mxu0 %v3790_v54 }
  0x91   : > { %2985 = vmatprep.mubr.msk.bf16.mxu0 %vm816_vm0, %v3763_v42 }
  0x92   : > { %3237 = vmatpush3.bf16.msra.mxu1 %v3503_v56 }
  0x93   : > { %1707 = vmatpush1.bf16.msra.mxu0 %v3504_v57  ;;  %3238 = vmatprep.subr.bf16.mxu1 %v3505_v59 }
  0x94   : > { %1708 = vmatprep.subr.bf16.mxu0 %v3606_v0 }
  0x95   : > { %1338 = vmatmul.mubr.bf16.gmra.mrb[24].mxu1 %v3835_v13 }
  0x96   : > { %3239 = vmatpush3.bf16.msra.mxu1 %v3506_v61  ;;  %2894 = vmatprep.mubr.msk.bf16.mxu1 %vm816_vm0, %v3846_v18 }
  0x97   : > { %1709 = vmatpush1.bf16.msra.mxu0 %v3507_v62  ;;  %3240 = vmatprep.subr.bf16.mxu1 %v3508_v2 }
  0x98   : > { %1710 = vmatprep.subr.bf16.mxu0 %v3606_v0 }
  0x9a   : > { %3241 = vmatpush3.bf16.msra.mxu1 %v3509_v6 }
  0x9b   : > { %1711 = vmatpush1.bf16.msra.mxu0 %v3510_v8  ;;  %3242 = vmatprep.subr.bf16.mxu1 %v3511_v9 }
  0x9c   : > { %1712 = vmatprep.subr.bf16.mxu0 %v3606_v0 }
  0x9d   : > { %1346 = vmatmul.mubr.bf16.gmra.mrb[28].mxu1 %v3854_v21 }
  0x9e   : > { %3243 = vmatpush3.bf16.msra.mxu1 %v3512_v10  ;;  %2062 = vmatprep.mubr.bf16.mxu1 %v3565_v16 }
  0x9f   : > { %1713 = vmatpush1.bf16.msra.mxu0 %v3513_v12  ;;  %3244 = vmatprep.subr.bf16.mxu1 %v3514_v14 }
  0xa0   : > { %1714 = vmatprep.subr.bf16.mxu0 %v3606_v0 }
  0xa2   : > { %3245 = vmatpush3.bf16.msra.mxu1 %v3515_v15 }
  0xa3   : > { %1715 = vmatpush1.bf16.msra.mxu0 %v3516_v17  ;;  %2095 = vmatprep.subr.bf16.mxu1 %v3606_v0 }
  0xa4   : > { %1716 = vmatprep.subr.bf16.mxu0 %v3606_v0 }
  0xa5   : > { %2063 = vmatmul.mubr.bf16.vlgmr.msra.gmra.mrb[32].mxu1 %v3733_v27  ;;  %v3522_v27 = vld [vmem:[%s3697_s17 + $0x368] sm:$0xff]  }
  0xa6   : > { %2096 = vmatpush1.bf16.msra.mxu1 %v3517_v19  ;;  %2070 = vmatprep.mubr.bf16.mxu1 %v3740_v31  ;;  %v3523_v31 = vld [vmem:[%s3697_s17 + $0x370] sm:$0xff]  }
  0xa7   : > { %1717 = vmatpush1.bf16.msra.mxu0 %v3518_v20  ;;  %2097 = vmatprep.subr.bf16.mxu1 %v3606_v0 }
  0xa8   : > { %1718 = vmatprep.subr.bf16.mxu0 %v3606_v0 }
  0xaa   : > { %2098 = vmatpush1.bf16.msra.mxu1 %v3519_v22 }
  0xab   : > { %1719 = vmatpush1.bf16.msra.mxu0 %v3520_v23  ;;  %2099 = vmatprep.subr.bf16.mxu1 %v3606_v0 }
  0xad   : > { %2071 = vmatmul.mubr.bf16.gmra.mrb[36].mxu1 %v3750_v36  ;;  %v3524_v36 = vld [vmem:[%s3697_s17 + $0x378] sm:$0xff]  }
  0xae   : > { %1725 = vmatmul.mubr.bf16.vlgmr.msra.gmra.mrb[48].mxu0 %v3784_v51  ;;  %2100 = vmatpush1.bf16.msra.mxu1 %v3521_v24 }
  0xaf   : > { %2101 = vmatprep.subr.bf16.mxu1 %v3606_v0  ;;  %2986 = vmatprep.mubr.msk.bf16.mxu0 %vm816_vm0, %v3812_v4 }
  0xb0   : > { %2078 = vmatprep.mubr.bf16.mxu1 %v3756_v39  ;;  %v3525_v39 = vld [vmem:[%s3697_s17 + $0x380] sm:$0xff]  }
  0xb2   : > { %2102 = vmatpush1.bf16.msra.mxu1 %v3522_v27 }
  0xb3   : > { %2103 = vmatprep.subr.bf16.mxu1 %v3606_v0 }
  0xb5   : > { %2079 = vmatmul.mubr.bf16.gmra.mrb[40].mxu1 %v3771_v45  ;;  %v3526_v45 = vld [vmem:[%s3697_s17 + $0x388] sm:$0xff]  }
  0xb6   : > { %1733 = vmatmul.mubr.bf16.gmra.mrb[52].mxu0 %v3816_v5  ;;  %2104 = vmatpush1.bf16.msra.mxu1 %v3523_v31 }
  0xb7   : > { %2105 = vmatprep.subr.bf16.mxu1 %v3606_v0  ;;  %2987 = vmatprep.mubr.msk.bf16.mxu0 %vm816_vm0, %v3829_v11 }
  0xb8   : > { %2086 = vmatprep.mubr.bf16.mxu1 %v3777_v48  ;;  %v3527_v48 = vld [vmem:[%s3697_s17 + $0x390] sm:$0xff]  }
  0xba   : > { %2106 = vmatpush1.bf16.msra.mxu1 %v3524_v36 }
  0xbb   : > { %2107 = vmatprep.subr.bf16.mxu1 %v3606_v0 }
  0xbd   : > { %2087 = vmatmul.mubr.bf16.gmra.mrb[44].mxu1 %v3790_v54  ;;  %v3528_v54 = vld [vmem:[%s3697_s17 + $0x398] sm:$0xff]  }
  0xbe   : > { %1741 = vmatmul.mubr.bf16.gmra.mrb[56].mxu0 %v3835_v13  ;;  %2108 = vmatpush1.bf16.msra.mxu1 %v3525_v39 }
  0xbf   : > { %2109 = vmatprep.subr.bf16.mxu1 %v3606_v0  ;;  %2988 = vmatprep.mubr.msk.bf16.mxu0 %vm816_vm0, %v3846_v18 }
  0xc0   : > { %3079 = vmatprep.mubr.msk.bf16.mxu1 %vm816_vm0, %v3763_v42  ;;  %v3531_v42 = vld [vmem:[%s3697_s17 + $0x3b0] sm:$0xff]   ;;  %s425_s17 = scalar_lea.vmem %s4369_s6, %s3879_s18  ;;  %s3109_s18 = sshll.u32 %s4384_s9, 6 }
  0xc1   : > { %s432_s21 = scalar_lea.vmem %s4370_s7, %s3109_s18 }
  0xc2   : > { %2110 = vmatpush1.bf16.msra.mxu1 %v3526_v45 }
  0xc3   : > { %2111 = vmatprep.subr.bf16.mxu1 %v3606_v0 }
  0xc6   : > { %1749 = vmatmul.mubr.bf16.gmra.mrb[60].mxu0 %v3854_v21  ;;  %2112 = vmatpush1.bf16.msra.mxu1 %v3527_v48 }
  0xc7   : > { %2113 = vmatprep.subr.bf16.mxu1 %v3606_v0 }
  0xca   : > { %2114 = vmatpush1.bf16.msra.mxu1 %v3528_v54 }
  0xcb   : > { %2115 = vmatprep.subr.bf16.mxu1 %v3606_v0 }
  0xce   : > { %2116 = vmatpush1.bf16.msra.mxu1 %v3529_v25 }
  0xcf   : > { %2117 = vmatprep.subr.bf16.mxu1 %v3606_v0 }
  0xd0   : > { %v4026_v61 = vpop.permute.xlu1 %532 }
  0xd2   : > { %2118 = vmatpush1.bf16.msra.mxu1 %v3530_v26 }
  0xd3   : > { %2119 = vmatprep.subr.bf16.mxu1 %v3606_v0 }
  0xd4   : > { %v4028_v3 = vpop.permute.xlu1 %537 }
  0xd6   : > { %2120 = vmatpush1.bf16.msra.mxu1 %v3531_v42 }
  0xd7   : > { %2121 = vmatprep.subr.bf16.mxu1 %v3606_v0 }
  0xda   : > { %2122 = vmatpush1.bf16.msra.mxu1 %v3532_v28 }
  0xdb   : > { %v4038_v27 = vpop.permute.xlu1 %547 }
  0xdd   : > { %2128 = vmatmul.mubr.bf16.vlgmr.msra.gmra.mrb[48].mxu1 %v3784_v51 }
  0xde   : > { %3080 = vmatprep.mubr.msk.bf16.mxu1 %vm816_vm0, %v3812_v4 }
  0xe5   : > { %2136 = vmatmul.mubr.bf16.gmra.mrb[52].mxu1 %v3816_v5 }
  0xe6   : > { %3081 = vmatprep.mubr.msk.bf16.mxu1 %vm816_vm0, %v3829_v11  ;;  %v4016_v11 = vpop.permute.xlu0 %522 }
  0xea   : > { %v4018_v41 = vpop.permute.xlu0 %527 }
  0xed   : > { %2144 = vmatmul.mubr.bf16.gmra.mrb[56].mxu1 %v3835_v13 }
  0xee   : > { %3082 = vmatprep.mubr.msk.bf16.mxu1 %vm816_vm0, %v3846_v18  ;;  %v4034_v17 = vpop.permute.xlu0 %542 }
  0xf2   : > { %v4046_v28 = vpop.permute.xlu0 %552 }
  0xf5   : > { %2152 = vmatmul.mubr.bf16.gmra.mrb[60].mxu1 %v3854_v21 }
 0x109   : > { %v3126_v29 = vpop.f32.mrb[0].mxu0 }
 0x10a   : > { %v3127_v0 = vpop.f32.mrb[1].mxu0 }
 0x10b   : > { %v3128_v30 = vadd.f32 %v3127_v0, %v3126_v29  ;;  %v3129_v1 = vpop.f32.mrb[2].mxu0 }
 0x10c   : > { %v3130_v51 = vpop.f32.mrb[3].mxu0 }
 0x10d   : > { %v3131_v32 = vadd.f32 %v3130_v51, %v3129_v1  ;;  %v864_v43 = vadd.f32 %v3128_v30, %v4016_v11 }
 0x10f   : > { %v867_v46 = vadd.f32 %v3131_v32, %v4018_v41  ;;  %v4050_v32 = vpop.permute.xlu1 %557 }
 0x111   : > { %v3132_v33 = vpop.f32.mrb[4].mxu0 }
 0x112   : > { %v3133_v4 = vpop.f32.mrb[5].mxu0 }
 0x113   : > { %v3134_v34 = vadd.f32 %v3133_v4, %v3132_v33  ;;  %v3135_v5 = vpop.f32.mrb[6].mxu0 }
 0x114   : > { %v3136_v35 = vpop.f32.mrb[7].mxu0 }
 0x115   : > { %v3137_v37 = vadd.f32 %v3136_v35, %v3135_v5  ;;  %v872_v8 = vadd.f32 %v3134_v34, %v4026_v61 }
 0x117   : > { %v875_v12 = vadd.f32 %v3137_v37, %v4028_v3 }
 0x119   : > { %v3138_v13 = vpop.f32.mrb[8].mxu0 }
 0x11a   : > { %v3139_v38 = vpop.f32.mrb[9].mxu0 }
 0x11b   : > { %v3140_v40 = vadd.f32 %v3139_v38, %v3138_v13  ;;  %v3141_v18 = vpop.f32.mrb[10].mxu0 }
 0x11c   : > { %v3142_v21 = vpop.f32.mrb[11].mxu0 }
 0x11d   : > { %v3143_v44 = vadd.f32 %v3142_v21, %v3141_v18  ;;  %v880_v39 = vadd.f32 %v3140_v40, %v4034_v17 }
 0x11f   : > { %v883_v54 = vadd.f32 %v3143_v44, %v4038_v27 }
 0x120   : > { %v928_v47 = vpop.f32.mrb[0].mxu1 }
 0x121   : > { %v4022_v49 = vadd.f32 %v928_v47, %v864_v43  ;;  %v930_v50 = vpop.f32.mrb[1].mxu1  ;;  %v3144_v52 = vpop.f32.mrb[12].mxu0 }
 0x122   : > { %v931_v53 = vpop.f32.mrb[2].mxu1  ;;  %v3145_v55 = vpop.f32.mrb[13].mxu0 }
 0x123   : > { %v4024_v56 = vadd.f32 %v931_v53, %v867_v46  ;;  %v933_v57 = vpop.f32.mrb[3].mxu1  ;;  %v3146_v58 = vadd.f32 %v3145_v55, %v3144_v52  ;;  %v3147_v59 = vpop.f32.mrb[14].mxu0  ;;  %vm959_vm1 = vcmp.ge.f32.partialorder %v4022_v49, 0.0 }
 0x124   : > { %v3148_v60 = vpop.f32.mrb[15].mxu0 }
 0x125   : > { %v3149_v62 = vadd.f32 %v3148_v60, %v3147_v59  ;;  %v888_v34 = vadd.f32 %v3146_v58, %v4046_v28  ;;  %vm960_vm3 = vcmp.ge.f32.partialorder %v4024_v56, 0.0 }
 0x127   : > { %v891_v37 = vadd.f32 %v3149_v62, %v4050_v32 }
 0x128   : > { %v936_v14 = vpop.f32.mrb[4].mxu1 }
 0x129   : > { %v3166_v63 = vpop.f32.mrb[16].mxu0  ;;  %v4032_v15 = vadd.f32 %v936_v14, %v872_v8  ;;  %v938_v16 = vpop.f32.mrb[5].mxu1 }
 0x12a   : > { %v3167_v2 = vpop.f32.mrb[17].mxu0  ;;  %v939_v19 = vpop.f32.mrb[6].mxu1 }
 0x12b   : > { %v3168_v6 = vadd.f32 %v3167_v2, %v3166_v63  ;;  %v3169_v7 = vpop.f32.mrb[18].mxu0  ;;  %v4036_v22 = vadd.f32 %v939_v19, %v875_v12  ;;  %v941_v23 = vpop.f32.mrb[7].mxu1  ;;  %v967_v19 = vmul.f32 0.01, %v4022_v49  ;;  %vm961_vm5 = vcmp.ge.f32.partialorder %v4032_v15, 0.0 }
 0x12c   : > { %v3170_v9 = vpop.f32.mrb[19].mxu0 }
 0x12d   : > { %v3171_v10 = vadd.f32 %v3170_v9, %v3169_v7  ;;  %v1259_v12 = vadd.f32 %v3168_v6, %v4016_v11  ;;  %v4080_v6 = vsel %vm959_vm1, %v4022_v49, %v967_v19  ;;  %vm962_vm7 = vcmp.ge.f32.partialorder %v4036_v22, 0.0 }
 0x12f   : > { %v1262_v16 = vadd.f32 %v3171_v10, %v4018_v41 }
 0x130   : > { %v944_v25 = vpop.f32.mrb[8].mxu1 }
 0x131   : > { %v3172_v20 = vpop.f32.mrb[20].mxu0  ;;  %v4044_v26 = vadd.f32 %v944_v25, %v880_v39  ;;  %v946_v42 = vpop.f32.mrb[9].mxu1 }
 0x132   : > { %v3173_v24 = vpop.f32.mrb[21].mxu0  ;;  %v947_v29 = vpop.f32.mrb[10].mxu1 }
 0x133   : > { %v3174_v31 = vadd.f32 %v3173_v24, %v3172_v20  ;;  %v3175_v36 = vpop.f32.mrb[22].mxu0  ;;  %v4048_v30 = vadd.f32 %v947_v29, %v883_v54  ;;  %v949_v1 = vpop.f32.mrb[11].mxu1  ;;  %vm963_vm9 = vcmp.ge.f32.partialorder %v4044_v26, 0.0 }
 0x134   : > { %v3176_v45 = vpop.f32.mrb[23].mxu0 }
 0x135   : > { %v4041_v48 = vadd.f32 %v3176_v45, %v3175_v36  ;;  %v968_v36 = vmul.f32 0.01, %v4024_v56  ;;  %v1267_v10 = vadd.f32 %v3174_v31, %v4026_v61  ;;  %vm964_vm11 = vcmp.ge.f32.partialorder %v4048_v30, 0.0 }
 0x137   : > { %v1270_v31 = vadd.f32 %v4041_v48, %v4028_v3 }
 0x138   : > { %v952_v13 = vpop.f32.mrb[12].mxu1 }
 0x139   : > { %v3178_v0 = vpop.f32.mrb[24].mxu0  ;;  %v4058_v38 = vadd.f32 %v952_v13, %v888_v34  ;;  %v954_v40 = vpop.f32.mrb[13].mxu1 }
 0x13a   : > { %v3179_v51 = vpop.f32.mrb[25].mxu0  ;;  %v955_v18 = vpop.f32.mrb[14].mxu1  ;;  %v969_v40 = vmul.f32 0.01, %v4032_v15 }
 0x13b   : > { %v4052_v33 = vadd.f32 %v3179_v51, %v3178_v0  ;;  %v3181_v4 = vpop.f32.mrb[26].mxu0  ;;  %v4060_v43 = vadd.f32 %v955_v18, %v891_v37  ;;  %v957_v44 = vpop.f32.mrb[15].mxu1  ;;  %v4091_v37 = vsel %vm960_vm3, %v4024_v56, %v968_v36  ;;  %v970_v56 = vmul.f32 0.01, %v4036_v22 }
 0x13c   : > { %v3182_v5 = vpop.f32.mrb[27].mxu0  ;;  %vm965_vm13 = vcmp.ge.f32.partialorder %v4058_v38, 0.0 }
 0x13d   : > { %v4055_v35 = vadd.f32 %v3182_v5, %v3181_v4  ;;  %vm966_vm15 = vcmp.ge.f32.partialorder %v4060_v43, 0.0 }
 0x141   : > { %v3184_v21 = vpop.f32.mrb[28].mxu0 }
 0x142   : > { %v3185_v46 = vpop.f32.mrb[29].mxu0 }
 0x143   : > { %v4062_v47 = vadd.f32 %v3185_v46, %v3184_v21  ;;  %v3187_v50 = vpop.f32.mrb[30].mxu0 }
 0x144   : > { %v3188_v52 = vpop.f32.mrb[31].mxu0 }
 0x145   : > { %v4064_v53 = vadd.f32 %v3188_v52, %v3187_v50 }
 0x149   : > { %v3206_v55 = vpop.f32.mrb[32].mxu0 }
 0x14a   : > { %v3207_v57 = vpop.f32.mrb[33].mxu0 }
 0x14b   : > { %v4066_v58 = vadd.f32 %v3207_v57, %v3206_v55  ;;  %v3209_v59 = vpop.f32.mrb[34].mxu0 }
 0x14c   : > { %v3210_v60 = vpop.f32.mrb[35].mxu0 }
 0x14d   : > { %v4068_v62 = vadd.f32 %v3210_v60, %v3209_v59  ;;  %v4105_v59 = vsel %vm961_vm5, %v4032_v15, %v969_v40  ;;  %v1275_v60 = vadd.f32 %v4052_v33, %v4034_v17  ;;  %v4117_v15 = vsel %vm962_vm7, %v4036_v22, %v970_v56 }
 0x14e   : > { %v1278_v33 = vadd.f32 %v4055_v35, %v4038_v27  ;;  %v972_v22 = vmul.f32 0.01, %v4048_v30  ;;  %v973_v56 = vmul.f32 0.01, %v4058_v38 }
 0x150   : > { %v4141_v40 = vsel %vm964_vm11, %v4048_v30, %v972_v22  ;;  %v1662_v22 = vadd.f32 %v4066_v58, %v4016_v11  ;;  %vm2192_vm11 = vcmask 56320  }
 0x151   : > { %v3212_v63 = vpop.f32.mrb[36].mxu0 }
 0x152   : > { %v3213_v2 = vpop.f32.mrb[37].mxu0 }
 0x153   : > { %v4070_v7 = vadd.f32 %v3213_v2, %v3212_v63  ;;  %v3215_v8 = vpop.f32.mrb[38].mxu0 }
 0x154   : > { %v3216_v9 = vpop.f32.mrb[39].mxu0 }
 0x155   : > { %v4073_v14 = vadd.f32 %v3216_v9, %v3215_v8 }
 0x158   : > { %v1323_v20 = vpop.f32.mrb[16].mxu1 }
 0x159   : > { %v1324_v23 = vadd.f32 %v1323_v20, %v1259_v12  ;;  %v1325_v24 = vpop.f32.mrb[17].mxu1 }
 0x15a   : > { %v1326_v39 = vpop.f32.mrb[18].mxu1  ;;  %v971_v24 = vmul.f32 0.01, %v4044_v26 }
 0x15b   : > { %vm1354_vm2 = vcmp.ge.f32.partialorder %v1324_v23, 0.0  ;;  %v1362_v45 = vmul.f32 0.01, %v1324_v23  ;;  %v1327_v54 = vadd.f32 %v1326_v39, %v1262_v16  ;;  %v1328_v25 = vpop.f32.mrb[19].mxu1  ;;  %v3218_v42 = vpop.f32.mrb[40].mxu0 }
 0x15c   : > { %v3219_v29 = vpop.f32.mrb[41].mxu0  ;;  %v4131_v35 = vsel %vm963_vm9, %v4044_v26, %v971_v24  ;;  %v1286_v26 = vadd.f32 %v4064_v53, %v4050_v32  ;;  %v4154_v53 = vsel %vm965_vm13, %v4058_v38, %v973_v56 }
 0x15d   : > { %v4084_v0 = vsel %vm1354_vm2, %v1324_v23, %v1362_v45  ;;  %vm1355_vm4 = vcmp.ge.f32.partialorder %v1327_v54, 0.0  ;;  %v1363_v1 = vmul.f32 0.01, %v1327_v54  ;;  %v4086_v51 = vadd.f32 %v3219_v29, %v3218_v42  ;;  %v3221_v4 = vpop.f32.mrb[42].mxu0 }
 0x15e   : > { %v1378_v34 = vmax.f32 %v4080_v6, %v4084_v0  ;;  %v3222_v5 = vpop.f32.mrb[43].mxu0 }
 0x15f   : > { %v4093_v49 = vsel %vm1355_vm4, %v1327_v54, %v1363_v1  ;;  %v4097_v13 = vadd.f32 %v3222_v5, %v3221_v4  ;;  %v1283_v5 = vadd.f32 %v4062_v47, %v4046_v28 }
 0x160   : > { %v1379_v18 = vmax.f32 %v4091_v37, %v4093_v49  ;;  %v1331_v21 = vpop.f32.mrb[20].mxu1  ;;  %v1678_v37 = vadd.f32 %v4086_v51, %v4034_v17 }
 0x161   : > { %v1332_v44 = vadd.f32 %v1331_v21, %v1267_v10  ;;  %v1333_v46 = vpop.f32.mrb[21].mxu1 }
 0x162   : > { %v1334_v50 = vpop.f32.mrb[22].mxu1 }
 0x163   : > { %vm1356_vm6 = vcmp.ge.f32.partialorder %v1332_v44, 0.0  ;;  %v1364_v52 = vmul.f32 0.01, %v1332_v44  ;;  %v1335_v55 = vadd.f32 %v1334_v50, %v1270_v31  ;;  %v1336_v57 = vpop.f32.mrb[23].mxu1  ;;  %v3224_v48 = vpop.f32.mrb[44].mxu0 }
 0x164   : > { %v3225_v63 = vpop.f32.mrb[45].mxu0 }
 0x165   : > { %v4110_v2 = vsel %vm1356_vm6, %v1332_v44, %v1364_v52  ;;  %vm1357_vm8 = vcmp.ge.f32.partialorder %v1335_v55, 0.0  ;;  %v1365_v8 = vmul.f32 0.01, %v1335_v55  ;;  %v4112_v9 = vadd.f32 %v3225_v63, %v3224_v48  ;;  %v3227_v12 = vpop.f32.mrb[46].mxu0 }
 0x166   : > { %v1380_v16 = vmax.f32 %v4105_v59, %v4110_v2  ;;  %v3228_v19 = vpop.f32.mrb[47].mxu0 }
 0x167   : > { %v4119_v20 = vsel %vm1357_vm8, %v1335_v55, %v1365_v8  ;;  %v4123_v23 = vadd.f32 %v3228_v19, %v3227_v12  ;;  %v974_v55 = vmul.f32 0.01, %v4060_v43 }
 0x168   : > { %v1381_v36 = vmax.f32 %v4117_v15, %v4119_v20  ;;  %v1339_v39 = vpop.f32.mrb[24].mxu1  ;;  %v1686_v15 = vadd.f32 %v4112_v9, %v4046_v28 }
 0x169   : > { %v1340_v45 = vadd.f32 %v1339_v39, %v1275_v60  ;;  %v1341_v54 = vpop.f32.mrb[25].mxu1  ;;  %v4161_v12 = vsel %vm966_vm15, %v4060_v43, %v974_v55 }
 0x16a   : > { %v1342_v25 = vpop.f32.mrb[26].mxu1 }
 0x16b   : > { %vm1358_vm10 = vcmp.ge.f32.partialorder %v1340_v45, 0.0  ;;  %v1366_v42 = vmul.f32 0.01, %v1340_v45  ;;  %v1343_v10 = vadd.f32 %v1342_v25, %v1278_v33  ;;  %v1344_v29 = vpop.f32.mrb[27].mxu1 }
 0x16d   : > { %v4134_v1 = vsel %vm1358_vm10, %v1340_v45, %v1366_v42  ;;  %vm1359_vm12 = vcmp.ge.f32.partialorder %v1343_v10, 0.0  ;;  %v1367_v4 = vmul.f32 0.01, %v1343_v10 }
 0x16e   : > { %v1382_v31 = vmax.f32 %v4131_v35, %v4134_v1 }
 0x16f   : > { %v4143_v21 = vsel %vm1359_vm12, %v1343_v10, %v1367_v4 }
 0x170   : > { %v1383_v44 = vmax.f32 %v4141_v40, %v4143_v21  ;;  %v1347_v46 = vpop.f32.mrb[28].mxu1 }
 0x171   : > { %v1348_v50 = vadd.f32 %v1347_v46, %v1283_v5  ;;  %v1349_v52 = vpop.f32.mrb[29].mxu1  ;;  %v1665_v5 = vadd.f32 %v4068_v62, %v4018_v41 }
 0x172   : > { %v1350_v47 = vpop.f32.mrb[30].mxu1 }
 0x173   : > { %vm1360_vm14 = vcmp.ge.f32.partialorder %v1348_v50, 0.0  ;;  %v1368_v30 = vmul.f32 0.01, %v1348_v50  ;;  %v1351_v57 = vadd.f32 %v1350_v47, %v1286_v26  ;;  %v1352_v48 = vpop.f32.mrb[31].mxu1 }
 0x174   : > { %v1670_v48 = vadd.f32 %v4070_v7, %v4026_v61 }
 0x175   : > { %v4156_v60 = vsel %vm1360_vm14, %v1348_v50, %v1368_v30  ;;  %vm1361_vm0 = vcmp.ge.f32.partialorder %v1351_v57, 0.0  ;;  %v1369_v63 = vmul.f32 0.01, %v1351_v57 }
 0x176   : > { %v1384_v8 = vmax.f32 %v4154_v53, %v4156_v60 }
 0x177   : > { %v4163_v19 = vsel %vm1361_vm0, %v1351_v57, %v1369_v63 }
 0x178   : > { %v1385_v33 = vmax.f32 %v4161_v12, %v4163_v19  ;;  %v3246_v24 = vpop.f32.mrb[32].mxu1 }
 0x179   : > { %v3247_v39 = vpop.f32.mrb[33].mxu1 }
 0x17a   : > { %v4167_v45 = vadd.f32 %v3247_v39, %v3246_v24  ;;  %v3249_v38 = vpop.f32.mrb[34].mxu1  ;;  %v1673_v24 = vadd.f32 %v4073_v14, %v4028_v3 }
 0x17b   : > { %v3250_v54 = vpop.f32.mrb[35].mxu1 }
 0x17c   : > { %v4169_v25 = vadd.f32 %v3250_v54, %v3249_v38  ;;  %v2065_v21 = vadd.f32 %v4167_v45, %v4016_v11 }
 0x180   : > { %v3252_v42 = vpop.f32.mrb[36].mxu1 }
 0x181   : > { %v1726_v10 = vpop.f32.mrb[48].mxu0  ;;  %v3253_v43 = vpop.f32.mrb[37].mxu1 }
 0x182   : > { %v1727_v29 = vadd.f32 %v1726_v10, %v1662_v22  ;;  %v1728_v4 = vpop.f32.mrb[49].mxu0  ;;  %v4175_v26 = vadd.f32 %v3253_v43, %v3252_v42  ;;  %v3255_v46 = vpop.f32.mrb[38].mxu1 }
 0x183   : > { %v1729_v56 = vpop.f32.mrb[50].mxu0  ;;  %v3256_v50 = vpop.f32.mrb[39].mxu1 }
 0x184   : > { %vm1757_vm1 = vcmp.ge.f32.partialorder %v1727_v29, 0.0  ;;  %v1765_v52 = vmul.f32 0.01, %v1727_v29  ;;  %v1730_v47 = vadd.f32 %v1729_v56, %v1665_v5  ;;  %v1731_v55 = vpop.f32.mrb[51].mxu0  ;;  %v4177_v30 = vadd.f32 %v3256_v50, %v3255_v46 }
 0x185   : > { %v1681_v56 = vadd.f32 %v4097_v13, %v4038_v27  ;;  %v2073_v11 = vadd.f32 %v4175_v26, %v4026_v61 }
 0x186   : > { %v1773_v58 = vsel %vm1757_vm1, %v1727_v29, %v1765_v52  ;;  %vm1758_vm2 = vcmp.ge.f32.partialorder %v1730_v47, 0.0  ;;  %v1766_v57 = vmul.f32 0.01, %v1730_v47 }
 0x187   : > { %v4184_v62 = vmax.f32 %v1378_v34, %v1773_v58 }
 0x188   : > { %v1774_v63 = vsel %vm1758_vm2, %v1730_v47, %v1766_v57  ;;  %v3258_v39 = vpop.f32.mrb[40].mxu1  ;;  %vm2230_vm2 = vcmask 523264  }
 0x189   : > { %v1734_v38 = vpop.f32.mrb[52].mxu0  ;;  %v3259_v54 = vpop.f32.mrb[41].mxu1  ;;  %v4191_v22 = vmax.f32 %v1379_v18, %v1774_v63 }
 0x18a   : > { %v1735_v42 = vadd.f32 %v1734_v38, %v1670_v48  ;;  %v1736_v10 = vpop.f32.mrb[53].mxu0  ;;  %v4193_v7 = vadd.f32 %v3259_v54, %v3258_v39  ;;  %v3261_v43 = vpop.f32.mrb[42].mxu1  ;;  %v1689_v54 = vadd.f32 %v4123_v23, %v4050_v32 }
 0x18b   : > { %v1737_v6 = vpop.f32.mrb[54].mxu0  ;;  %v3262_v0 = vpop.f32.mrb[43].mxu1 }
 0x18c   : > { %vm1759_vm3 = vcmp.ge.f32.partialorder %v1735_v42, 0.0  ;;  %v1767_v34 = vmul.f32 0.01, %v1735_v42  ;;  %v1738_v29 = vadd.f32 %v1737_v6, %v1673_v24  ;;  %v1739_v4 = vpop.f32.mrb[55].mxu0  ;;  %v4195_v14 = vadd.f32 %v3262_v0, %v3261_v43 }
 0x18e   : > { %v1775_v5 = vsel %vm1759_vm3, %v1735_v42, %v1767_v34  ;;  %vm1760_vm4 = vcmp.ge.f32.partialorder %v1738_v29, 0.0  ;;  %v1768_v46 = vmul.f32 0.01, %v1738_v29  ;;  %vm2330_vm3 = vcmask 130048  }
 0x18f   : > { %v4202_v49 = vmax.f32 %v1380_v16, %v1775_v5 }
 0x190   : > { %v1776_v18 = vsel %vm1760_vm4, %v1738_v29, %v1768_v46  ;;  %v3264_v50 = vpop.f32.mrb[44].mxu1  ;;  %v2068_v46 = vadd.f32 %v4169_v25, %v4018_v41 }
 0x191   : > { %v1742_v52 = vpop.f32.mrb[56].mxu0  ;;  %v3265_v47 = vpop.f32.mrb[45].mxu1  ;;  %v4209_v55 = vmax.f32 %v1381_v36, %v1776_v18 }
 0x192   : > { %v1743_v58 = vadd.f32 %v1742_v52, %v1678_v37  ;;  %v1744_v57 = vpop.f32.mrb[57].mxu0  ;;  %v4211_v51 = vadd.f32 %v3265_v47, %v3264_v50  ;;  %v3267_v48 = vpop.f32.mrb[46].mxu1  ;;  %v2076_v52 = vadd.f32 %v4177_v30, %v4028_v3 }
 0x193   : > { %v1745_v59 = vpop.f32.mrb[58].mxu0  ;;  %v3268_v2 = vpop.f32.mrb[47].mxu1 }
 0x194   : > { %vm1761_vm5 = vcmp.ge.f32.partialorder %v1743_v58, 0.0  ;;  %v1769_v16 = vmul.f32 0.01, %v1743_v58  ;;  %v1746_v63 = vadd.f32 %v1745_v59, %v1681_v56  ;;  %v1747_v24 = vpop.f32.mrb[59].mxu0  ;;  %v4213_v13 = vadd.f32 %v3268_v2, %v3267_v48 }
 0x195   : > { %v2081_v59 = vadd.f32 %v4193_v7, %v4034_v17 }
 0x196   : > { %v1777_v39 = vsel %vm1761_vm5, %v1743_v58, %v1769_v16  ;;  %vm1762_vm6 = vcmp.ge.f32.partialorder %v1746_v63, 0.0  ;;  %v1770_v38 = vmul.f32 0.01, %v1746_v63 }
 0x197   : > { %v4220_v20 = vmax.f32 %v1382_v31, %v1777_v39  ;;  %v2084_v39 = vadd.f32 %v4195_v14, %v4038_v27 }
 0x198   : > { %v1778_v36 = vsel %vm1762_vm6, %v1746_v63, %v1770_v38 }
 0x199   : > { %v1750_v42 = vpop.f32.mrb[60].mxu0  ;;  %v4227_v10 = vmax.f32 %v1383_v44, %v1778_v36 }
 0x19a   : > { %v1751_v43 = vadd.f32 %v1750_v42, %v1686_v15  ;;  %v1752_v6 = vpop.f32.mrb[61].mxu0  ;;  %v2089_v42 = vadd.f32 %v4211_v51, %v4046_v28 }
 0x19b   : > { %v1753_v0 = vpop.f32.mrb[62].mxu0 }
 0x19c   : > { %vm1763_vm7 = vcmp.ge.f32.partialorder %v1751_v43, 0.0  ;;  %v1771_v9 = vmul.f32 0.01, %v1751_v43  ;;  %v1754_v34 = vadd.f32 %v1753_v0, %v1689_v54  ;;  %v1755_v29 = vpop.f32.mrb[63].mxu0 }
 0x19e   : > { %v1779_v35 = vsel %vm1763_vm7, %v1751_v43, %v1771_v9  ;;  %vm1764_vm8 = vcmp.ge.f32.partialorder %v1754_v34, 0.0  ;;  %v1772_v1 = vmul.f32 0.01, %v1754_v34 }
 0x19f   : > { %v4232_v23 = vmax.f32 %v1384_v8, %v1779_v35 }
 0x1a0   : > { %v1780_v31 = vsel %vm1764_vm8, %v1754_v34, %v1772_v1  ;;  %v2092_v34 = vadd.f32 %v4213_v13, %v4050_v32 }
 0x1a1   : > { %v4237_v40 = vmax.f32 %v1385_v33, %v1780_v31 }
 0x1b0   : > { %v2129_v44 = vpop.f32.mrb[48].mxu1 }
 0x1b1   : > { %v2130_v4 = vadd.f32 %v2129_v44, %v2065_v21  ;;  %v2131_v5 = vpop.f32.mrb[49].mxu1 }
 0x1b2   : > { %v2132_v37 = vpop.f32.mrb[50].mxu1 }
 0x1b3   : > { %vm2160_vm9 = vcmp.ge.f32.partialorder %v2130_v4, 0.0  ;;  %v2168_v53 = vmul.f32 0.01, %v2130_v4  ;;  %v2133_v60 = vadd.f32 %v2132_v37, %v2068_v46  ;;  %v2134_v8 = vpop.f32.mrb[51].mxu1 }
 0x1b5   : > { %vm2161_vm10 = vcmp.ge.f32.partialorder %v2133_v60, 0.0  ;;  %v2169_v18 = vmul.f32 0.01, %v2133_v60  ;;  %v2176_v56 = vsel %vm2160_vm9, %v2130_v4, %v2168_v53 }
 0x1b6   : > { %v4244_v12 = vmax.f32 %v4184_v62, %v2176_v56 }
 0x1b7   : > { %v2177_v19 = vsel %vm2161_vm10, %v2133_v60, %v2169_v18 }
 0x1b8   : > { %v2137_v33 = vpop.f32.mrb[52].mxu1  ;;  %v2193_v41 = vsel %vm2192_vm11, %v4244_v12, 0.0  ;;  %v4251_v45 = vmax.f32 %v4191_v22, %v2177_v19 }
 0x1b9   : > { %v2138_v25 = vadd.f32 %v2137_v33, %v2073_v11  ;;  %v2139_v50 = vpop.f32.mrb[53].mxu1  ;;  %2194 = vadd.xlane.f32.xlu0 %v2193_v41 }
 0x1ba   : > { %v2140_v47 = vpop.f32.mrb[54].mxu1  ;;  %v2196_v62 = vsel %vm2192_vm11, %v4251_v45, 0.0 }
 0x1bb   : > { %vm2162_vm12 = vcmp.ge.f32.partialorder %v2138_v25, 0.0  ;;  %v2170_v61 = vmul.f32 0.01, %v2138_v25  ;;  %v2141_v26 = vadd.f32 %v2140_v47, %v2076_v52  ;;  %v2142_v58 = vpop.f32.mrb[55].mxu1  ;;  %2197 = vadd.xlane.f32.xlu1 %v2196_v62 }
 0x1bc   : > { %v2314_v58 = vld [vmem:[%s420_s12] sm:$0xff] }
 0x1bd   : > { %vm2163_vm13 = vcmp.ge.f32.partialorder %v2141_v26, 0.0  ;;  %v2171_v57 = vmul.f32 0.01, %v2141_v26  ;;  %v2178_v48 = vsel %vm2162_vm12, %v2138_v25, %v2170_v61 }
 0x1be   : > { %v4258_v22 = vmax.f32 %v4202_v49, %v2178_v48  ;;  %v2228_v48 = vld [vmem:[%s415_s15] sm:$0xff] }
 0x1bf   : > { %v2179_v2 = vsel %vm2163_vm13, %v2141_v26, %v2171_v57  ;;  %v2227_v26 = vld [vmem:[%s4301_s8 + $0x8] sm:$0xff] }
 0x1c0   : > { %v2145_v3 = vpop.f32.mrb[56].mxu1  ;;  %v2199_v30 = vsel %vm2192_vm11, %v4258_v22, 0.0  ;;  %v4265_v16 = vmax.f32 %v4209_v55, %v2179_v2  ;;  %v2229_v57 = vld [vmem:[%s415_s15 + $0x8] sm:$0xff] }
 0x1c1   : > { %v2146_v63 = vadd.f32 %v2145_v3, %v2081_v59  ;;  %v2147_v24 = vpop.f32.mrb[57].mxu1  ;;  %2200 = vadd.xlane.f32.xlu0 %v2199_v30 }
 0x1c2   : > { %v2148_v38 = vpop.f32.mrb[58].mxu1  ;;  %v2202_v17 = vsel %vm2192_vm11, %v4265_v16, 0.0 }
 0x1c3   : > { %vm2164_vm14 = vcmp.ge.f32.partialorder %v2146_v63, 0.0  ;;  %v2172_v49 = vmul.f32 0.01, %v2146_v63  ;;  %v2149_v15 = vadd.f32 %v2148_v38, %v2084_v39  ;;  %v2150_v36 = vpop.f32.mrb[59].mxu1  ;;  %v2315_v38 = vld [vmem:[%s420_s12 + $0x8] sm:$0xff] }
 0x1c4   : > { %v2318_v36 = vld [vmem:[%s420_s12 + $0x20] sm:$0xff] }
 0x1c5   : > { %vm2165_vm15 = vcmp.ge.f32.partialorder %v2149_v15, 0.0  ;;  %v2173_v7 = vmul.f32 0.01, %v2149_v15  ;;  %2203 = vadd.xlane.f32.xlu0 %v2202_v17  ;;  %v2180_v54 = vsel %vm2164_vm14, %v2146_v63, %v2172_v49  ;;  %v2316_v49 = vld [vmem:[%s420_s12 + $0x10] sm:$0xff]  ;;  %v2319_v17 = vld [vmem:[%s420_s12 + $0x28] sm:$0xff] }
 0x1c6   : > { %v4272_v55 = vmax.f32 %v4220_v20, %v2180_v54  ;;  %v2321_v54 = vld [vmem:[%s420_s12 + $0x38] sm:$0xff] }
 0x1c7   : > { %v2181_v43 = vsel %vm2165_vm15, %v2149_v15, %v2173_v7  ;;  %v2317_v15 = vld [vmem:[%s420_s12 + $0x18] sm:$0xff]  ;;  %v2320_v7 = vld [vmem:[%s420_s12 + $0x30] sm:$0xff] }
 0x1c8   : > { %v2153_v27 = vpop.f32.mrb[60].mxu1  ;;  %v2205_v14 = vsel %vm2192_vm11, %v4272_v55, 0.0  ;;  %v4279_v6 = vmax.f32 %v4227_v10, %v2181_v43  ;;  %v2322_v43 = vld [vmem:[%s425_s17] sm:$0xff] }
 0x1c9   : > { %v2154_v0 = vadd.f32 %v2153_v27, %v2089_v42  ;;  %v2155_v9 = vpop.f32.mrb[61].mxu1  ;;  %2206 = vadd.xlane.f32.xlu1 %v2205_v14  ;;  %v2323_v42 = vld [vmem:[%s425_s17 + $0x8] sm:$0xff] }
 0x1ca   : > { %v2156_v29 = vpop.f32.mrb[62].mxu1  ;;  %v2208_v20 = vsel %vm2192_vm11, %v4279_v6, 0.0 }
 0x1cb   : > { %vm2166_vm0 = vcmp.ge.f32.partialorder %v2154_v0, 0.0  ;;  %v2174_v28 = vmul.f32 0.01, %v2154_v0  ;;  %v2157_v51 = vadd.f32 %v2156_v29, %v2092_v34  ;;  %v2158_v35 = vpop.f32.mrb[63].mxu1  ;;  %2209 = vadd.xlane.f32.xlu0 %v2208_v20  ;;  %v2325_v34 = vld [vmem:[%s425_s17 + $0x18] sm:$0xff]  ;;  %v2324_v20 = vld [vmem:[%s425_s17 + $0x10] sm:$0xff] }
 0x1cd   : > { %vm2167_vm1 = vcmp.ge.f32.partialorder %v2157_v51, 0.0  ;;  %v2175_v10 = vmul.f32 0.01, %v2157_v51  ;;  %v2182_v1 = vsel %vm2166_vm0, %v2154_v0, %v2174_v28 }
 0x1ce   : > { %v4286_v31 = vmax.f32 %v4232_v23, %v2182_v1  ;;  %v2226_v23 = vld [vmem:[%s4301_s8] sm:$0xff] }
 0x1cf   : > { %v2183_v21 = vsel %vm2167_vm1, %v2157_v51, %v2175_v10  ;;  %3306 = vmatprep.mubr.msk.f32.mxu0 %vm2230_vm2, %v2226_v23 }
 0x1d0   : > { %v2211_v32 = vsel %vm2192_vm11, %v4286_v31, 0.0  ;;  %v4291_v13 = vmax.f32 %v4237_v40, %v2183_v21  ;;  %v2327_v21 = vld [vmem:[%s425_s17 + $0x28] sm:$0xff] }
 0x1d1   : > { %2212 = vadd.xlane.f32.xlu1 %v2211_v32 }
 0x1d2   : > { %v2214_v44 = vsel %vm2192_vm11, %v4291_v13, 0.0 }
 0x1d3   : > { %2215 = vadd.xlane.f32.xlu0 %v2214_v44  ;;  %v2326_v44 = vld [vmem:[%s425_s17 + $0x20] sm:$0xff] }
 0x246   : > { %v2195_v4 = vpop.xlane.xlu0 %2194 }
 0x247   : > { %v2218_v5 = vmul.f32 0.14285715, %v2195_v4 }
 0x248   : > { %v2198_v40 = vpop.xlane.xlu1 %2197 }
 0x249   : > { %v2219_v46 = vmul.f32 0.14285715, %v2198_v40 }
 0x24b   : > { %v3325_v37 = vpack.c.bf16 %v2219_v46, %v2218_v5 }
 0x24d   : > { %3326 = vmatprep.subr.bf16.mxu0 %v3325_v37 }
 0x24e   : > { %3328 = vmatpush3.bf16.msra.mxu0 %v3325_v37  ;;  %v2201_v53 = vpop.xlane.xlu0 %2200  ;;  %v2329_v37 = vld [vmem:[%s425_s17 + $0x38] sm:$0xff] }
 0x24f   : > { %v2220_v8 = vmul.f32 0.14285715, %v2201_v53 }
 0x252   : > { %v2204_v60 = vpop.xlane.xlu0 %2203 }
 0x253   : > { %v2221_v18 = vmul.f32 0.14285715, %v2204_v60  ;;  %v2328_v60 = vld [vmem:[%s425_s17 + $0x30] sm:$0xff] }
 0x255   : > { %v3329_v56 = vpack.c.bf16 %v2221_v18, %v2220_v8 }
 0x256   : > { %v2207_v11 = vpop.xlane.xlu1 %2206 }
 0x257   : > { %3330 = vmatprep.subr.bf16.mxu0 %v3329_v56  ;;  %v2222_v33 = vmul.f32 0.14285715, %v2207_v11 }
 0x258   : > { %3332 = vmatpush3.bf16.msra.mxu0 %v3329_v56  ;;  %v2210_v19 = vpop.xlane.xlu0 %2209 }
 0x259   : > { %v2223_v41 = vmul.f32 0.14285715, %v2210_v19 }
 0x25b   : > { %v3333_v25 = vpack.c.bf16 %v2223_v41, %v2222_v33 }
 0x25d   : > { %3334 = vmatprep.subr.bf16.mxu0 %v3333_v25 }
 0x25e   : > { %v2213_v50 = vpop.xlane.xlu1 %2212  ;;  %3336 = vmatpush3.bf16.msra.mxu0 %v3333_v25 }
 0x25f   : > { %v2224_v47 = vmul.f32 0.14285715, %v2213_v50 }
 0x260   : > { %v2216_v52 = vpop.xlane.xlu0 %2215 }
 0x261   : > { %v2225_v62 = vmul.f32 0.14285715, %v2216_v52 }
 0x263   : > { %v3337_v61 = vpack.c.bf16 %v2225_v62, %v2224_v47 }
 0x265   : > { %3338 = vmatprep.subr.bf16.mxu0 %v3337_v61 }
 0x266   : > { %3340 = vmatpush3.bf16.msra.mxu0 %v3337_v61 }
 0x269   : > { %3307 = vmatmul.mubr.msk.f32.vlgmr.msra.gmra.mrb[64].mxu0 %vm2230_vm2, %v2227_v26 }
 0x26a   : > { %3313 = vmatprep.mubr.msk.f32.mxu0 %vm2330_vm3, %v2314_v58 }
 0x33c   : > { %v3308_v59 = vpop.f32.mrb[64].mxu0 }
 0x33d   : > { %v2309_v2 = vadd.f32 %v3308_v59, %v2229_v57  ;;  %v2303_v3 = vpop.f32.mrb[65].mxu0 }
 0x33e   : > { %v2304_v30 = vadd.f32 %v2303_v3, %v2228_v48 }
 0x33f   : > { %v2313_v63 = vmax.f32 %v2309_v2, 0.0 }
 0x340   : > { %v2312_v24 = vmax.f32 %v2304_v30, 0.0 }
 0x342   : > { %v3341_v39 = vpack.c.bf16 %v2313_v63, %v2312_v24 }
 0x344   : > { %3342 = vmatprep.subr.bf16.mxu0 %v3341_v39 }
 0x345   : > { %3344 = vmatpush3.bf16.msra.mxu0 %v3341_v39 }
 0x348   : > { %3314 = vmatmul.mubr.msk.f32.vlgmr.msra.gmra.mrb[66].mxu0 %vm2330_vm3, %v2315_v38 }
 0x349   : > { %3316 = vmatprep.mubr.msk.f32.mxu0 %vm2330_vm3, %v2316_v49 }
 0x34c   : > { %3317 = vmatmul.mubr.msk.f32.gmra.mrb[68].mxu0 %vm2330_vm3, %v2317_v15 }
 0x34d   : > { %3319 = vmatprep.mubr.msk.f32.mxu0 %vm2330_vm3, %v2318_v36 }
 0x350   : > { %3320 = vmatmul.mubr.msk.f32.gmra.mrb[70].mxu0 %vm2330_vm3, %v2319_v17 }
 0x351   : > { %3322 = vmatprep.mubr.msk.f32.mxu0 %vm2330_vm3, %v2320_v7 }
 0x354   : > { %3323 = vmatmul.mubr.msk.f32.gmra.mrb[72].mxu0 %vm2330_vm3, %v2321_v54 }
 0x41b   : > { %v3315_v27 = vpop.f32.mrb[66].mxu0 }
 0x41c   : > { %v2427_v14 = vadd.f32 %v3315_v27, %v2323_v42  ;;  %v2421_v0 = vpop.f32.mrb[67].mxu0 }
 0x41d   : > { %v2422_v9 = vadd.f32 %v2421_v0, %v2322_v43 }
 0x41e   : > { %v3094_v29 = vmul.f32 -1.442695, %v2427_v14 }
 0x41f   : > { %v3093_v28 = vmul.f32 -1.442695, %v2422_v9  ;;  %v3318_v51 = vpop.f32.mrb[68].mxu0 }
 0x420   : > { %3533 = vpow2.f32 %v3094_v29  ;;  %v2437_v35 = vadd.f32 %v3318_v51, %v2325_v34  ;;  %v2431_v10 = vpop.f32.mrb[69].mxu0 }
 0x421   : > { %3535 = vpow2.f32 %v3093_v28  ;;  %v2432_v1 = vadd.f32 %v2431_v10, %v2324_v20 }
 0x422   : > { %v3096_v32 = vmul.f32 -1.442695, %v2437_v35 }
 0x423   : > { %v3095_v23 = vmul.f32 -1.442695, %v2432_v1  ;;  %v3321_v4 = vpop.f32.mrb[70].mxu0 }
 0x424   : > { %3537 = vpow2.f32 %v3096_v32  ;;  %v2447_v40 = vadd.f32 %v3321_v4, %v2327_v21  ;;  %v2441_v5 = vpop.f32.mrb[71].mxu0 }
 0x425   : > { %3539 = vpow2.f32 %v3095_v23  ;;  %v2442_v46 = vadd.f32 %v2441_v5, %v2326_v44 }
 0x426   : > { %v3098_v53 = vmul.f32 -1.442695, %v2447_v40 }
 0x427   : > { %v3097_v8 = vmul.f32 -1.442695, %v2442_v46  ;;  %v3324_v18 = vpop.f32.mrb[72].mxu0 }
 0x428   : > { %3541 = vpow2.f32 %v3098_v53  ;;  %v2457_v56 = vadd.f32 %v3324_v18, %v2329_v37  ;;  %v2451_v11 = vpop.f32.mrb[73].mxu0 }
 0x429   : > { %3543 = vpow2.f32 %v3097_v8  ;;  %v2452_v19 = vadd.f32 %v2451_v11, %v2328_v60 }
 0x42a   : > { %v3534_v33 = vpop.eup %3533  ;;  %v3100_v41 = vmul.f32 -1.442695, %v2457_v56 }
 0x42b   : > { %v3536_v25 = vpop.eup %3535  ;;  %v2485_v50 = vadd.f32 1.0, %v3534_v33  ;;  %v3099_v52 = vmul.f32 -1.442695, %v2452_v19 }
 0x42c   : > { %v2484_v47 = vadd.f32 1.0, %v3536_v25  ;;  %3545 = vpow2.f32 %v3100_v41 }
 0x42d   : > { %3547 = vrcp.f32 %v2485_v50 }
 0x42e   : > { %v3538_v62 = vpop.eup %3537  ;;  %3549 = vrcp.f32 %v2484_v47 }
 0x42f   : > { %v3540_v61 = vpop.eup %3539  ;;  %v2487_v26 = vadd.f32 1.0, %v3538_v62  ;;  %3551 = vpow2.f32 %v3099_v52 }
 0x430   : > { %v2486_v58 = vadd.f32 1.0, %v3540_v61 }
 0x431   : > { %3553 = vrcp.f32 %v2487_v26 }
 0x432   : > { %v3542_v57 = vpop.eup %3541  ;;  %3555 = vrcp.f32 %v2486_v58 }
 0x433   : > { %v3544_v48 = vpop.eup %3543  ;;  %v2489_v59 = vadd.f32 1.0, %v3542_v57 }
 0x434   : > { %v2488_v2 = vadd.f32 1.0, %v3544_v48 }
 0x435   : > { %3557 = vrcp.f32 %v2489_v59 }
 0x436   : > { %v3546_v3 = vpop.eup %3545  ;;  %3559 = vrcp.f32 %v2488_v2 }
 0x437   : > { %v3548_v30 = vpop.eup %3547  ;;  %v2491_v63 = vadd.f32 1.0, %v3546_v3 }
 0x438   : > { %v3550_v24 = vpop.eup %3549  ;;  %v2509_v39 = vadd.f32 1.0, %v3548_v30 }
 0x439   : > { %v3552_v38 = vpop.eup %3551  ;;  %v2508_v49 = vadd.f32 1.0, %v3550_v24  ;;  %3561 = vrcp.f32 %v2491_v63 }
 0x43a   : > { %v2490_v15 = vadd.f32 1.0, %v3552_v38  ;;  %2523 = vperm.xlu0 %3387, %v2509_v39  }
 0x43b   : > { %v3554_v36 = vpop.eup %3553  ;;  %2518 = vperm.xlu1 %3388, %v2508_v49  }
 0x43c   : > { %3563 = vrcp.f32 %v2490_v15  ;;  %v2511_v17 = vadd.f32 1.0, %v3554_v36  ;;  %v3556_v7 = vpop.eup %3555 }
 0x43d   : > { %v2510_v27 = vadd.f32 1.0, %v3556_v7 }
 0x43f   : > { %v3558_v54 = vpop.eup %3557  ;;  %2533 = vperm.xlu1 %3388, %v2511_v17  }
 0x440   : > { %v3560_v42 = vpop.eup %3559  ;;  %v2513_v14 = vadd.f32 1.0, %v3558_v54 }
 0x441   : > { %v2512_v43 = vadd.f32 1.0, %v3560_v42 }
 0x443   : > { %2538 = vperm.xlu0 %3387, %v2512_v43   ;;  %2528 = vperm.xlu1 %3388, %v2510_v27   ;;  %v3562_v0 = vpop.eup %3561 }
 0x444   : > { %v2515_v29 = vadd.f32 1.0, %v3562_v0 }
 0x446   : > { %v3564_v9 = vpop.eup %3563 }
 0x447   : > { %v2514_v34 = vadd.f32 1.0, %v3564_v9  ;;  %2543 = vperm.xlu1 %3388, %v2513_v14  }
 0x449   : > { %2548 = vperm.xlu0 %3387, %v2514_v34  }
 0x44b   : > { %2553 = vperm.xlu1 %3388, %v2515_v29  }
 0x4b9   : > { %v2524_v20 = vpop.permute.xlu0 %2523 }
 0x4ba   : > { %v2557_v28 = vmul.f32 %v2524_v20, %v4251_v45  ;;  %v2519_v51 = vpop.permute.xlu1 %2518 }
 0x4bb   : > { %v2556_v35 = vmul.f32 %v2519_v51, %v4244_v12 }
 0x4bc   : > { %v2565_v10 = vmax.f32 %v2557_v28, 0.0 }
 0x4bd   : > { %v2564_v1 = vmax.f32 %v2556_v35, 0.0 }
 0x4be   : > { %2573 = vst.msk [vmem:[%s432_s21 + $0x8] sm:$0xff] %vm2192_vm11, %v2565_v10  ;;  %v2534_v21 = vpop.permute.xlu1 %2533 }
 0x4bf   : > { %2572 = vst.msk [vmem:[%s432_s21] sm:$0xff] %vm2192_vm11, %v2564_v1  ;;  %v2559_v32 = vmul.f32 %v2534_v21, %v4265_v16 }
 0x4c1   : > { %v2567_v44 = vmax.f32 %v2559_v32, 0.0 }
 0x4c2   : > { %v2539_v23 = vpop.permute.xlu0 %2538  ;;  %v2529_v4 = vpop.permute.xlu1 %2528 }
 0x4c3   : > { %2575 = vst.msk [vmem:[%s432_s21 + $0x18] sm:$0xff] %vm2192_vm11, %v2567_v44  ;;  %v2560_v45 = vmul.f32 %v2539_v23, %v4272_v55  ;;  %v2558_v40 = vmul.f32 %v2529_v4, %v4258_v22 }
 0x4c5   : > { %v2568_v5 = vmax.f32 %v2560_v45, 0.0  ;;  %v2566_v12 = vmax.f32 %v2558_v40, 0.0 }
 0x4c6   : > { %v2544_v46 = vpop.permute.xlu1 %2543 }
 0x4c7   : > { %2576 = vst.msk [vmem:[%s432_s21 + $0x20] sm:$0xff] %vm2192_vm11, %v2568_v5  ;;  %2574 = vst.msk [vmem:[%s432_s21 + $0x10] sm:$0xff] %vm2192_vm11, %v2566_v12  ;;  %v2561_v37 = vmul.f32 %v2544_v46, %v4279_v6 }
 0x4c8   : > { %v2549_v53 = vpop.permute.xlu0 %2548 }
 0x4c9   : > { %v2562_v16 = vmul.f32 %v2549_v53, %v4286_v31  ;;  %v2569_v60 = vmax.f32 %v2561_v37, 0.0 }
 0x4ca   : > { %v2554_v8 = vpop.permute.xlu1 %2553 }
 0x4cb   : > { %v2570_v18 = vmax.f32 %v2562_v16, 0.0  ;;  %2577 = vst.msk [vmem:[%s432_s21 + $0x28] sm:$0xff] %vm2192_vm11, %v2569_v60  ;;  %v2563_v55 = vmul.f32 %v2554_v8, %v4291_v13 }
 0x4cd   : > { %2578 = vst.msk [vmem:[%s432_s21 + $0x30] sm:$0xff] %vm2192_vm11, %v2570_v18  ;;  %v2571_v22 = vmax.f32 %v2563_v55, 0.0 }
 0x4cf   : > { %2579 = vst.msk [vmem:[%s432_s21 + $0x38] sm:$0xff] %vm2192_vm11, %v2571_v22 }
 0x4d0 PF: > { %s17_s28 = sadd.s32 1, %s3604_s28   ;;  %s4371_s24 = smov %s3596_s26 }
 0x4d1   : > { %p14_p7 = scmp.ge.s32.totalorder %s17_s28, 12   ;;  %s4372_s25 = smov %s3600_s27 }
 0x4d2   : > { %s4373_s26 = smov %s4376_s29  ;;  %s4374_s27 = smov %s4380_s30 }
 0x4d3   :  { %16 = sbr.rel (!%p14_p7) target bundleno = 3 (0x3), region = 99 }

// kernel: jmnet_forward.5
= control target key start
LH: loop header
LB: loop body
LE: loop exit
PB: predicated region body
PF: predicated region fallthrough
CT: control target
= control target key end

     0   :  { %s13331_s24 = smov 0   ;;  %s13333_s25 = smov 0   ;;  %s15611_s0 = inlined_call_operand.vmem [shape: bf16[2,4,2400,7], index: 0, kind: input, shape index: {}]   ;;  %s15612_s1 = inlined_call_operand.vmem [shape: bf16[1,64,2400], index: 1, kind: input, shape index: {}]   ;;  %s15613_s2 = inlined_call_operand.vmem [shape: f32[1,64,1], index: 2, kind: input, shape index: {}]   ;;  %s15614_s3 = inlined_call_operand.vmem [shape: f32[1,8,64], index: 3, kind: input, shape index: {}]   ;;  %s15615_s4 = inlined_call_operand.vmem [shape: f32[1,8,1], index: 4, kind: input, shape index: {}]   ;;  %s15616_s5 = inlined_call_operand.vmem [shape: f32[1,64,8], index: 5, kind: input, shape index: {}]   ;;  %s15617_s6 = inlined_call_operand.vmem [shape: f32[1,64,1], index: 6, kind: input, shape index: {}]   ;;  %s15618_s7 = inlined_call_operand.vmem [shape: f32[2,64,7], index: 7, kind: output, shape index: {}]  }
   0x1   :  { %s13335_s26 = smov 0  }
   0x2 LB: > { %s29_s27 = sadd.s32 1, %s13281_s25  ;;  %p9021_p0 = scmp.ge.s32.totalorder %s13285_s26, 1  ;;  %s13285_s26 = sphi %s13335_s26, %s17_s26   ;;  %s13281_s25 = sphi %s13333_s25, %s15620_s25   ;;  %s13277_s24 = sphi %s13331_s24, %s15619_s24  }
   0x3   : > { %p31_p1 = scmp.ge.s32.totalorder %s29_s27, 2  ;;  %p319_p2 = scmp.lt.s32.totalorder %s13285_s26, 3 }
   0x5   : > { %s15622_s27 = smov (%p31_p1, %s29_s27), 0  ;;  %p320_p3 = pnand %p9021_p0, %p319_p2 }
   0x6   : > { %p385_p4 = scmp.lt.s32.totalorder (!%p320_p3), %s13277_s24, 1  ;;  %v12322_v0 = vld [vmem:[%s15612_s1 + $0x4] ss:$76 sps:$4 sm:$0xff] (!%p320_p3)   ;;  %v12327_v1 = vld [vmem:[%s15612_s1 + $0xc] ss:$76 sps:$4 sm:$0xff] (!%p320_p3)   ;;  %v13287_v16 = vmov (!%p320_p3), 0  }
   0x7   : > { %323 = sbr.rel (%p320_p3) target bundleno = 1696 (0x6a0), region = 48  ;;  %2183 = vmatprep.mubr.bf16.mxu0 (!%p320_p3), %v12322_v0  ;;  %2248 = vmatprep.mubr.bf16.mxu1 (!%p320_p3), %v12327_v1  ;;  %v12325_v32 = vld [vmem:[%s15612_s1] ss:$76 sps:$4 sm:$0xff] (!%p320_p3)   ;;  %v12336_v34 = vld [vmem:[%s15612_s1 + $0x9c] ss:$76 sps:$4 sm:$0xff] (!%p320_p3)   ;;  %vm2138_vm0 = vcmask (!%p320_p3), 785408  }
   0x8   : > { %12289 = vset.pattern.permute.xlu0 (!%p320_p3), %v13287_v16  ;;  %12290 = vset.pattern.permute.xlu1 (!%p320_p3), %v13287_v16  ;;  %v12330_v36 = vld [vmem:[%s15612_s1 + $0x8] ss:$76 sps:$4 sm:$0xff] (!%p320_p3)   ;;  %v12341_v38 = vld [vmem:[%s15612_s1 + $0xa4] ss:$76 sps:$4 sm:$0xff] (!%p320_p3)   ;;  %v12344_v48 = vld [vmem:[%s15612_s1 + $0xa0] ss:$76 sps:$4 sm:$0xff] (!%p320_p3)  }
   0x9   : > { %v12339_v44 = vld [vmem:[%s15612_s1 + $0x98] ss:$76 sps:$4 sm:$0xff] (!%p320_p3)   ;;  %v12350_v46 = vld [vmem:[%s15612_s1 + $0x134] ss:$76 sps:$4 sm:$0xff] (!%p320_p3)   ;;  %v12353_v55 = vld [vmem:[%s15612_s1 + $0x130] ss:$76 sps:$4 sm:$0xff] (!%p320_p3)  }
   0xa   : > { %v12355_v60 = vld [vmem:[%s15612_s1 + $0x13c] ss:$76 sps:$4 sm:$0xff] (!%p320_p3)   ;;  %v12358_v62 = vld [vmem:[%s15612_s1 + $0x138] ss:$76 sps:$4 sm:$0xff] (!%p320_p3)  }
   0xb   : > { %v12378_v16 = vld [vmem:[%s15612_s1 + $0x10] ss:$76 sps:$4 sm:$0xff] (!%p320_p3)  }
   0xe   : > { %s15624_s24 = smov (!%p385_p4, %s13277_s24), 1 }
   0xf   : > { %s12260_s9 = smul.u32 4800, %s15624_s24  ;;  %s10636_s18 = sshll.u32 %s15624_s24, 6 }
  0x10   : > { %s426_s20 = scalar_lea.vmem %s15618_s7, %s10636_s18 }
  0x11   : > { %s13361_s12 = scalar_lea.vmem %s15611_s0, %s12260_s9 }
  0x12   : > { %v12291_v2 = vld [vmem:[%s13361_s12 + $0x40] sm:$0xff]   ;;  %v12295_v6 = vld [vmem:[%s13361_s12 + $0x48] sm:$0xff]   ;;  %v12299_v10 = vld [vmem:[%s13361_s12 + $0x50] sm:$0xff]  }
  0x13   : > { %v12292_v3 = vld [vmem:[%s13361_s12] sm:$0xff]   ;;  %10637 = vmatprep.subr.bf16.mxu0 %v12291_v2  ;;  %v12296_v7 = vld [vmem:[%s13361_s12 + $0x8] sm:$0xff]   ;;  %v12300_v11 = vld [vmem:[%s13361_s12 + $0x10] sm:$0xff]  }
  0x14   : > { %v12293_v4 = vld [vmem:[%s13361_s12 + $0xc0] sm:$0xff]   ;;  %10638 = vmatpush3.bf16.msra.mxu0 %v12292_v3  ;;  %v12297_v8 = vld [vmem:[%s13361_s12 + $0xc8] sm:$0xff]   ;;  %v12301_v12 = vld [vmem:[%s13361_s12 + $0xd0] sm:$0xff]  }
  0x15   : > { %v12294_v5 = vld [vmem:[%s13361_s12 + $0x80] sm:$0xff]   ;;  %10677 = vmatprep.subr.bf16.mxu1 %v12293_v4  ;;  %10639 = vmatprep.subr.bf16.mxu0 %v12295_v6  ;;  %v12298_v9 = vld [vmem:[%s13361_s12 + $0x88] sm:$0xff]   ;;  %v12302_v13 = vld [vmem:[%s13361_s12 + $0x90] sm:$0xff]  }
  0x16   : > { %10678 = vmatpush3.bf16.msra.mxu1 %v12294_v5  ;;  %v12303_v14 = vld [vmem:[%s13361_s12 + $0x58] sm:$0xff]   ;;  %v12307_v19 = vld [vmem:[%s13361_s12 + $0x60] sm:$0xff]   ;;  %v12311_v23 = vld [vmem:[%s13361_s12 + $0x68] sm:$0xff]  }
  0x17   : > { %10679 = vmatprep.subr.bf16.mxu1 %v12297_v8  ;;  %v12304_v15 = vld [vmem:[%s13361_s12 + $0x18] sm:$0xff]   ;;  %v12308_v20 = vld [vmem:[%s13361_s12 + $0x20] sm:$0xff]   ;;  %v12312_v24 = vld [vmem:[%s13361_s12 + $0x28] sm:$0xff]  }
  0x18   : > { %10640 = vmatpush3.bf16.msra.mxu0 %v12296_v7  ;;  %v12305_v17 = vld [vmem:[%s13361_s12 + $0xd8] sm:$0xff]   ;;  %v12309_v21 = vld [vmem:[%s13361_s12 + $0xe0] sm:$0xff]   ;;  %v12313_v25 = vld [vmem:[%s13361_s12 + $0xe8] sm:$0xff]  }
  0x19   : > { %10641 = vmatprep.subr.bf16.mxu0 %v12299_v10  ;;  %v12306_v18 = vld [vmem:[%s13361_s12 + $0x98] sm:$0xff]   ;;  %v12310_v22 = vld [vmem:[%s13361_s12 + $0xa0] sm:$0xff]   ;;  %v12314_v26 = vld [vmem:[%s13361_s12 + $0xa8] sm:$0xff]  }
  0x1a   : > { %10680 = vmatpush3.bf16.msra.mxu1 %v12298_v9  ;;  %v12315_v27 = vld [vmem:[%s13361_s12 + $0x70] sm:$0xff]   ;;  %v12319_v31 = vld [vmem:[%s13361_s12 + $0x78] sm:$0xff]   ;;  %v12326_v39 = vld [vmem:[%s13361_s12 + $0x140] sm:$0xff]  }
  0x1b   : > { %10681 = vmatprep.subr.bf16.mxu1 %v12301_v12  ;;  %v12316_v28 = vld [vmem:[%s13361_s12 + $0x30] sm:$0xff]   ;;  %v12320_v33 = vld [vmem:[%s13361_s12 + $0x38] sm:$0xff]   ;;  %v12329_v40 = vld [vmem:[%s13361_s12 + $0x100] sm:$0xff]  }
  0x1c   : > { %10642 = vmatpush3.bf16.msra.mxu0 %v12300_v11  ;;  %v12317_v29 = vld [vmem:[%s13361_s12 + $0xf0] sm:$0xff]   ;;  %v12321_v35 = vld [vmem:[%s13361_s12 + $0xf8] sm:$0xff]   ;;  %v12331_v41 = vld [vmem:[%s13361_s12 + $0x1c0] sm:$0xff]  }
  0x1d   : > { %10643 = vmatprep.subr.bf16.mxu0 %v12303_v14  ;;  %v12318_v30 = vld [vmem:[%s13361_s12 + $0xb0] sm:$0xff]   ;;  %v12324_v37 = vld [vmem:[%s13361_s12 + $0xb8] sm:$0xff]   ;;  %v12332_v42 = vld [vmem:[%s13361_s12 + $0x180] sm:$0xff]  }
  0x1e   : > { %10682 = vmatpush3.bf16.msra.mxu1 %v12302_v13  ;;  %v12333_v43 = vld [vmem:[%s13361_s12 + $0x148] sm:$0xff]   ;;  %v12340_v50 = vld [vmem:[%s13361_s12 + $0x150] sm:$0xff]   ;;  %v12347_v54 = vld [vmem:[%s13361_s12 + $0x158] sm:$0xff]  }
  0x1f   : > { %10683 = vmatprep.subr.bf16.mxu1 %v12305_v17  ;;  %v12334_v45 = vld [vmem:[%s13361_s12 + $0x108] sm:$0xff]   ;;  %v12343_v51 = vld [vmem:[%s13361_s12 + $0x110] sm:$0xff]   ;;  %v12348_v56 = vld [vmem:[%s13361_s12 + $0x118] sm:$0xff]  }
  0x20   : > { %10644 = vmatpush3.bf16.msra.mxu0 %v12304_v15  ;;  %v12335_v47 = vld [vmem:[%s13361_s12 + $0x1c8] sm:$0xff]   ;;  %v12345_v52 = vld [vmem:[%s13361_s12 + $0x1d0] sm:$0xff]   ;;  %v12349_v57 = vld [vmem:[%s13361_s12 + $0x1d8] sm:$0xff]  }
  0x21   : > { %10645 = vmatprep.subr.bf16.mxu0 %v12307_v19  ;;  %v12338_v49 = vld [vmem:[%s13361_s12 + $0x188] sm:$0xff]   ;;  %v12346_v53 = vld [vmem:[%s13361_s12 + $0x190] sm:$0xff]   ;;  %v12352_v58 = vld [vmem:[%s13361_s12 + $0x198] sm:$0xff]  }
  0x22   : > { %10684 = vmatpush3.bf16.msra.mxu1 %v12306_v18  ;;  %v12354_v59 = vld [vmem:[%s13361_s12 + $0x160] sm:$0xff]   ;;  %v12361_v1 = vld [vmem:[%s13361_s12 + $0x168] sm:$0xff]   ;;  %v12368_v7 = vld [vmem:[%s13361_s12 + $0x170] sm:$0xff]  }
  0x23   : > { %10685 = vmatprep.subr.bf16.mxu1 %v12309_v21  ;;  %v12357_v61 = vld [vmem:[%s13361_s12 + $0x120] sm:$0xff]   ;;  %v12362_v2 = vld [vmem:[%s13361_s12 + $0x128] sm:$0xff]   ;;  %v12371_v9 = vld [vmem:[%s13361_s12 + $0x130] sm:$0xff]  }
  0x24   : > { %10646 = vmatpush3.bf16.msra.mxu0 %v12308_v20  ;;  %v12359_v63 = vld [vmem:[%s13361_s12 + $0x1e0] sm:$0xff]   ;;  %v12363_v3 = vld [vmem:[%s13361_s12 + $0x1e8] sm:$0xff]   ;;  %v12372_v10 = vld [vmem:[%s15612_s1 + $0x1d0] ss:$76 sps:$4 sm:$0xff]  }
  0x25   : > { %10647 = vmatprep.subr.bf16.mxu0 %v12311_v23  ;;  %v12360_v0 = vld [vmem:[%s13361_s12 + $0x1a0] sm:$0xff]   ;;  %v12364_v4 = vld [vmem:[%s15612_s1 + $0x1cc] ss:$76 sps:$4 sm:$0xff]   ;;  %v12367_v6 = vld [vmem:[%s15612_s1 + $0x1c8] ss:$76 sps:$4 sm:$0xff]  }
  0x26   : > { %10686 = vmatpush3.bf16.msra.mxu1 %v12310_v22  ;;  %v12366_v5 = vld [vmem:[%s13361_s12 + $0x1a8] sm:$0xff]   ;;  %v12369_v8 = vld [vmem:[%s15612_s1 + $0x1d4] ss:$76 sps:$4 sm:$0xff]   ;;  %v12375_v13 = vld [vmem:[%s13361_s12 + $0x178] sm:$0xff]  }
  0x27   : > { %10687 = vmatprep.subr.bf16.mxu1 %v12313_v25  ;;  %v12373_v11 = vld [vmem:[%s13361_s12 + $0x1f0] sm:$0xff]   ;;  %v12376_v14 = vld [vmem:[%s13361_s12 + $0x138] sm:$0xff]   ;;  %v12382_v19 = vld [vmem:[%s13361_s12 + $0x240] sm:$0xff]  }
  0x28   : > { %10648 = vmatpush3.bf16.msra.mxu0 %v12312_v24  ;;  %v12374_v12 = vld [vmem:[%s13361_s12 + $0x1b0] sm:$0xff]   ;;  %v12377_v15 = vld [vmem:[%s13361_s12 + $0x1f8] sm:$0xff]   ;;  %v12386_v22 = vld [vmem:[%s13361_s12 + $0x200] sm:$0xff]  }
  0x29   : > { %10649 = vmatprep.subr.bf16.mxu0 %v12315_v27  ;;  %v12380_v17 = vld [vmem:[%s15612_s1 + $0x14] ss:$76 sps:$4 sm:$0xff]   ;;  %v12381_v18 = vld [vmem:[%s13361_s12 + $0x1b8] sm:$0xff]   ;;  %v12389_v25 = vld [vmem:[%s13361_s12 + $0x248] sm:$0xff]  }
  0x2a   : > { %10688 = vmatpush3.bf16.msra.mxu1 %v12314_v26  ;;  %v12383_v20 = vld [vmem:[%s15612_s1 + $0x18] ss:$76 sps:$4 sm:$0xff]   ;;  %v12385_v21 = vld [vmem:[%s15612_s1 + $0x1c] ss:$76 sps:$4 sm:$0xff]  }
  0x2b   : > { %10689 = vmatprep.subr.bf16.mxu1 %v12317_v29  ;;  %v12387_v23 = vld [vmem:[%s13361_s12 + $0x2c0] sm:$0xff]   ;;  %v12390_v26 = vld [vmem:[%s13361_s12 + $0x208] sm:$0xff]  }
  0x2c   : > { %10650 = vmatpush3.bf16.msra.mxu0 %v12316_v28  ;;  %v12388_v24 = vld [vmem:[%s13361_s12 + $0x280] sm:$0xff]   ;;  %v12391_v27 = vld [vmem:[%s13361_s12 + $0x2c8] sm:$0xff]  }
  0x2d   : > { %10651 = vmatprep.subr.bf16.mxu0 %v12319_v31  ;;  %v12392_v28 = vld [vmem:[%s15612_s1 + $0xac] ss:$76 sps:$4 sm:$0xff]   ;;  %v12396_v31 = vld [vmem:[%s13361_s12 + $0x250] sm:$0xff]  }
  0x2e   : > { %10690 = vmatpush3.bf16.msra.mxu1 %v12318_v30  ;;  %v12394_v29 = vld [vmem:[%s13361_s12 + $0x288] sm:$0xff]  }
  0x2f   : > { %10691 = vmatprep.subr.bf16.mxu1 %v12321_v35  ;;  %v12395_v30 = vld [vmem:[%s15612_s1 + $0xa8] ss:$76 sps:$4 sm:$0xff]  }
  0x30   : > { %10652 = vmatpush3.bf16.msra.mxu0 %v12320_v33  ;;  %v12399_v33 = vld [vmem:[%s13361_s12 + $0x210] sm:$0xff]  }
  0x31   : > { %10717 = vmatprep.subr.bf16.mxu0 %v12326_v39  ;;  %v12401_v35 = vld [vmem:[%s13361_s12 + $0x2d0] sm:$0xff]   ;;  %v12405_v39 = vld [vmem:[%s13361_s12 + $0x2d8] sm:$0xff]  }
  0x32   : > { %10692 = vmatpush3.bf16.msra.mxu1 %v12324_v37  ;;  %v12403_v37 = vld [vmem:[%s13361_s12 + $0x258] sm:$0xff]  }
  0x33   : > { %2184 = vmatmul.mubr.bf16.vlgmr.msra.gmra.mrb[0].mxu0 %v12325_v32  ;;  %10757 = vmatprep.subr.bf16.mxu1 %v12331_v41  ;;  %v12397_v32 = vld [vmem:[%s15612_s1 + $0xb4] ss:$76 sps:$4 sm:$0xff]   ;;  %v12408_v41 = vld [vmem:[%s13361_s12 + $0x298] sm:$0xff]  }
  0x34   : > { %10718 = vmatpush3.bf16.msra.mxu0 %v12329_v40  ;;  %2191 = vmatprep.mubr.bf16.mxu0 %v12336_v34  ;;  %v12400_v34 = vld [vmem:[%s15612_s1 + $0xb0] ss:$76 sps:$4 sm:$0xff]  }
  0x35   : > { %2249 = vmatmul.mubr.bf16.vlgmr.msra.gmra.mrb[0].mxu1 %v12330_v36  ;;  %10719 = vmatprep.subr.bf16.mxu0 %v12333_v43  ;;  %v12402_v36 = vld [vmem:[%s13361_s12 + $0x290] sm:$0xff]   ;;  %v12410_v43 = vld [vmem:[%s13361_s12 + $0x260] sm:$0xff]  }
  0x36   : > { %10758 = vmatpush3.bf16.msra.mxu1 %v12332_v42  ;;  %2256 = vmatprep.mubr.bf16.mxu1 %v12341_v38  ;;  %v12404_v38 = vld [vmem:[%s13361_s12 + $0x218] sm:$0xff]   ;;  %v12406_v40 = vld [vmem:[%s15612_s1 + $0x144] ss:$76 sps:$4 sm:$0xff]   ;;  %v12409_v42 = vld [vmem:[%s15612_s1 + $0x140] ss:$76 sps:$4 sm:$0xff]  }
  0x37   : > { %10759 = vmatprep.subr.bf16.mxu1 %v12335_v47  ;;  %v12415_v47 = vld [vmem:[%s13361_s12 + $0x2e0] sm:$0xff]  }
  0x38   : > { %10720 = vmatpush3.bf16.msra.mxu0 %v12334_v45  ;;  %v12413_v45 = vld [vmem:[%s13361_s12 + $0x220] sm:$0xff]  }
  0x39   : > { %10721 = vmatprep.subr.bf16.mxu0 %v12340_v50  ;;  %v12418_v50 = vld [vmem:[%s13361_s12 + $0x228] sm:$0xff]  }
  0x3a   : > { %10760 = vmatpush3.bf16.msra.mxu1 %v12338_v49  ;;  %v12417_v49 = vld [vmem:[%s13361_s12 + $0x268] sm:$0xff]  }
  0x3b   : > { %2192 = vmatmul.mubr.bf16.gmra.mrb[4].mxu0 %v12339_v44  ;;  %10761 = vmatprep.subr.bf16.mxu1 %v12345_v52  ;;  %v12411_v44 = vld [vmem:[%s15612_s1 + $0x14c] ss:$76 sps:$4 sm:$0xff]   ;;  %v12420_v52 = vld [vmem:[%s15612_s1 + $0x1dc] ss:$76 sps:$4 sm:$0xff]  }
  0x3c   : > { %10722 = vmatpush3.bf16.msra.mxu0 %v12343_v51  ;;  %2199 = vmatprep.mubr.bf16.mxu0 %v12350_v46  ;;  %v12414_v46 = vld [vmem:[%s15612_s1 + $0x148] ss:$76 sps:$4 sm:$0xff]  }
  0x3d   : > { %2257 = vmatmul.mubr.bf16.gmra.mrb[4].mxu1 %v12344_v48  ;;  %10723 = vmatprep.subr.bf16.mxu0 %v12347_v54  ;;  %v12416_v48 = vld [vmem:[%s13361_s12 + $0x2a0] sm:$0xff]   ;;  %v12419_v51 = vld [vmem:[%s13361_s12 + $0x2e8] sm:$0xff]  }
  0x3e   : > { %10762 = vmatpush3.bf16.msra.mxu1 %v12346_v53  ;;  %2264 = vmatprep.mubr.bf16.mxu1 %v12355_v60  ;;  %v12422_v53 = vld [vmem:[%s13361_s12 + $0x2a8] sm:$0xff]   ;;  %v12423_v54 = vld [vmem:[%s15612_s1 + $0x1d8] ss:$76 sps:$4 sm:$0xff]   ;;  %v12430_v60 = vld [vmem:[%s13361_s12 + $0x2b0] sm:$0xff]  }
  0x3f   : > { %10763 = vmatprep.subr.bf16.mxu1 %v12349_v57  ;;  %v12427_v57 = vld [vmem:[%s13361_s12 + $0x230] sm:$0xff]  }
  0x40   : > { %10724 = vmatpush3.bf16.msra.mxu0 %v12348_v56  ;;  %v12425_v56 = vld [vmem:[%s15612_s1 + $0x1e4] ss:$76 sps:$4 sm:$0xff]  }
  0x41   : > { %10725 = vmatprep.subr.bf16.mxu0 %v12354_v59  ;;  %v12429_v59 = vld [vmem:[%s13361_s12 + $0x2f0] sm:$0xff]  }
  0x42   : > { %10764 = vmatpush3.bf16.msra.mxu1 %v12352_v58  ;;  %v12428_v58 = vld [vmem:[%s15612_s1 + $0x1e0] ss:$76 sps:$4 sm:$0xff]  }
  0x43   : > { %2200 = vmatmul.mubr.bf16.gmra.mrb[8].mxu0 %v12353_v55  ;;  %10765 = vmatprep.subr.bf16.mxu1 %v12359_v63  ;;  %v12424_v55 = vld [vmem:[%s13361_s12 + $0x270] sm:$0xff]   ;;  %v12433_v63 = vld [vmem:[%s13361_s12 + $0x2f8] sm:$0xff]  }
  0x44   : > { %10726 = vmatpush3.bf16.msra.mxu0 %v12357_v61  ;;  %2207 = vmatprep.mubr.bf16.mxu0 %v12364_v4  ;;  %v12431_v61 = vld [vmem:[%s13361_s12 + $0x278] sm:$0xff]   ;;  %v12439_v4 = vld [vmem:[%s15612_s1 + $0x28] ss:$76 sps:$4 sm:$0xff]  }
  0x45   : > { %2265 = vmatmul.mubr.bf16.gmra.mrb[8].mxu1 %v12358_v62  ;;  %10727 = vmatprep.subr.bf16.mxu0 %v12361_v1  ;;  %v12432_v62 = vld [vmem:[%s13361_s12 + $0x238] sm:$0xff]   ;;  %v12436_v1 = vld [vmem:[%s15612_s1 + $0x24] ss:$76 sps:$4 sm:$0xff]  }
  0x46   : > { %10766 = vmatpush3.bf16.msra.mxu1 %v12360_v0  ;;  %2272 = vmatprep.mubr.bf16.mxu1 %v12369_v8  ;;  %v12434_v0 = vld [vmem:[%s15612_s1 + $0x20] ss:$76 sps:$4 sm:$0xff]  }
  0x47   : > { %10767 = vmatprep.subr.bf16.mxu1 %v12363_v3  ;;  %v12438_v3 = vld [vmem:[%s13361_s12 + $0x340] sm:$0xff]  }
  0x48   : > { %10728 = vmatpush3.bf16.msra.mxu0 %v12362_v2  ;;  %v12437_v2 = vld [vmem:[%s13361_s12 + $0x2b8] sm:$0xff]   ;;  %v12444_v8 = vld [vmem:[%s13361_s12 + $0x380] sm:$0xff]  }
  0x49   : > { %10729 = vmatprep.subr.bf16.mxu0 %v12368_v7  ;;  %v12443_v7 = vld [vmem:[%s13361_s12 + $0x3c0] sm:$0xff]  }
  0x4a   : > { %10768 = vmatpush3.bf16.msra.mxu1 %v12366_v5  ;;  %v12441_v5 = vld [vmem:[%s15612_s1 + $0x2c] ss:$76 sps:$4 sm:$0xff]  }
  0x4b   : > { %2208 = vmatmul.mubr.bf16.gmra.mrb[12].mxu0 %v12367_v6  ;;  %10769 = vmatprep.subr.bf16.mxu1 %v12373_v11  ;;  %v12442_v6 = vld [vmem:[%s13361_s12 + $0x300] sm:$0xff]   ;;  %v12447_v11 = vld [vmem:[%s13361_s12 + $0x3c8] sm:$0xff]  }
  0x4c   : > { %10730 = vmatpush3.bf16.msra.mxu0 %v12371_v9  ;;  %2313 = vmatprep.mubr.bf16.mxu0 %v12380_v17  ;;  %v12445_v9 = vld [vmem:[%s13361_s12 + $0x348] sm:$0xff]   ;;  %v12455_v17 = vld [vmem:[%s13361_s12 + $0x310] sm:$0xff]  }
  0x4d   : > { %2273 = vmatmul.mubr.bf16.gmra.mrb[12].mxu1 %v12372_v10  ;;  %10731 = vmatprep.subr.bf16.mxu0 %v12375_v13  ;;  %v12446_v10 = vld [vmem:[%s13361_s12 + $0x308] sm:$0xff]  }
  0x4e   : > { %10770 = vmatpush3.bf16.msra.mxu1 %v12374_v12  ;;  %2378 = vmatprep.mubr.bf16.mxu1 %v12385_v21  ;;  %v12448_v12 = vld [vmem:[%s15612_s1 + $0xbc] ss:$76 sps:$4 sm:$0xff]  }
  0x4f   : > { %10771 = vmatprep.subr.bf16.mxu1 %v12377_v15  ;;  %v12450_v13 = vld [vmem:[%s13361_s12 + $0x388] sm:$0xff]   ;;  %v12452_v15 = vld [vmem:[%s13361_s12 + $0x350] sm:$0xff]   ;;  %v12459_v21 = vld [vmem:[%s13361_s12 + $0x358] sm:$0xff]  }
  0x50   : > { %10732 = vmatpush3.bf16.msra.mxu0 %v12376_v14  ;;  %v12451_v14 = vld [vmem:[%s15612_s1 + $0xb8] ss:$76 sps:$4 sm:$0xff]  }
  0x51   : > { %10797 = vmatprep.subr.bf16.mxu0 %v12382_v19  ;;  %v12457_v19 = vld [vmem:[%s13361_s12 + $0x3d0] sm:$0xff]  }
  0x52   : > { %10772 = vmatpush3.bf16.msra.mxu1 %v12381_v18  ;;  %v12456_v18 = vld [vmem:[%s15612_s1 + $0xc0] ss:$76 sps:$4 sm:$0xff]  }
  0x53   : > { %2314 = vmatmul.mubr.bf16.vlgmr.msra.gmra.mrb[16].mxu0 %v12378_v16  ;;  %10837 = vmatprep.subr.bf16.mxu1 %v12387_v23  ;;  %v12453_v16 = vld [vmem:[%s15612_s1 + $0xc4] ss:$76 sps:$4 sm:$0xff]   ;;  %v12461_v23 = vld [vmem:[%s13361_s12 + $0x3d8] sm:$0xff]  }
  0x54   : > { %10798 = vmatpush3.bf16.msra.mxu0 %v12386_v22  ;;  %2321 = vmatprep.mubr.bf16.mxu0 %v12392_v28  ;;  %v12460_v22 = vld [vmem:[%s13361_s12 + $0x318] sm:$0xff]  }
  0x55   : > { %2379 = vmatmul.mubr.bf16.vlgmr.msra.gmra.mrb[16].mxu1 %v12383_v20  ;;  %10799 = vmatprep.subr.bf16.mxu0 %v12389_v25  ;;  %v12458_v20 = vld [vmem:[%s13361_s12 + $0x390] sm:$0xff]   ;;  %v12464_v25 = vld [vmem:[%s13361_s12 + $0x398] sm:$0xff]  }
  0x56   : > { %10838 = vmatpush3.bf16.msra.mxu1 %v12388_v24  ;;  %2386 = vmatprep.mubr.bf16.mxu1 %v12397_v32  ;;  %v12462_v24 = vld [vmem:[%s15612_s1 + $0x154] ss:$76 sps:$4 sm:$0xff]   ;;  %v12467_v28 = vld [vmem:[%s15612_s1 + $0x15c] ss:$76 sps:$4 sm:$0xff]  }
  0x57   : > { %10839 = vmatprep.subr.bf16.mxu1 %v12391_v27  ;;  %v12466_v27 = vld [vmem:[%s13361_s12 + $0x360] sm:$0xff]  }
  0x58   : > { %10800 = vmatpush3.bf16.msra.mxu0 %v12390_v26  ;;  %v12465_v26 = vld [vmem:[%s15612_s1 + $0x150] ss:$76 sps:$4 sm:$0xff]   ;;  %v12472_v32 = vld [vmem:[%s13361_s12 + $0x3a0] sm:$0xff]  }
  0x59   : > { %10801 = vmatprep.subr.bf16.mxu0 %v12396_v31  ;;  %v12471_v31 = vld [vmem:[%s13361_s12 + $0x3e0] sm:$0xff]  }
  0x5a   : > { %10840 = vmatpush3.bf16.msra.mxu1 %v12394_v29  ;;  %v12469_v29 = vld [vmem:[%s13361_s12 + $0x320] sm:$0xff]  }
  0x5b   : > { %2322 = vmatmul.mubr.bf16.gmra.mrb[20].mxu0 %v12395_v30  ;;  %10841 = vmatprep.subr.bf16.mxu1 %v12401_v35  ;;  %v12470_v30 = vld [vmem:[%s15612_s1 + $0x158] ss:$76 sps:$4 sm:$0xff]   ;;  %v12474_v35 = vld [vmem:[%s13361_s12 + $0x328] sm:$0xff]  }
  0x5c   : > { %10802 = vmatpush3.bf16.msra.mxu0 %v12399_v33  ;;  %2329 = vmatprep.mubr.bf16.mxu0 %v12406_v40  ;;  %v12473_v33 = vld [vmem:[%s13361_s12 + $0x368] sm:$0xff]   ;;  %v12480_v40 = vld [vmem:[%s13361_s12 + $0x370] sm:$0xff]  }
  0x5d   : > { %2387 = vmatmul.mubr.bf16.gmra.mrb[20].mxu1 %v12400_v34  ;;  %10803 = vmatprep.subr.bf16.mxu0 %v12403_v37  ;;  %v510_v34 = vld [vmem:[%s15613_s2] sm:$0xff]  ;;  %v12476_v37 = vld [vmem:[%s15612_s1 + $0x1ec] ss:$76 sps:$4 sm:$0xff]  }
  0x5e   : > { %10842 = vmatpush3.bf16.msra.mxu1 %v12402_v36  ;;  %2394 = vmatprep.mubr.bf16.mxu1 %v12411_v44  ;;  %v12475_v36 = vld [vmem:[%s13361_s12 + $0x3e8] sm:$0xff]   ;;  %v12484_v44 = vld [vmem:[%s15612_s1 + $0x1f0] ss:$76 sps:$4 sm:$0xff]  }
  0x5f   : > { %10843 = vmatprep.subr.bf16.mxu1 %v12405_v39  ;;  %820 = vperm.xlu0 %12289, %v510_v34   ;;  %v12479_v39 = vld [vmem:[%s15612_s1 + $0x1e8] ss:$76 sps:$4 sm:$0xff]  }
  0x60   : > { %10804 = vmatpush3.bf16.msra.mxu0 %v12404_v38  ;;  %v12478_v38 = vld [vmem:[%s13361_s12 + $0x3a8] sm:$0xff]   ;;  %v12541_v34 = vld [vmem:[%s13361_s12 + $0x4b0] sm:$0xff]  }
  0x61   : > { %10805 = vmatprep.subr.bf16.mxu0 %v12410_v43  ;;  %v12483_v43 = vld [vmem:[%s13361_s12 + $0x330] sm:$0xff]  }
  0x62   : > { %10844 = vmatpush3.bf16.msra.mxu1 %v12408_v41  ;;  %v511_v41 = vld [vmem:[%s15613_s2 + $0x8] sm:$0xff] }
  0x63   : > { %2330 = vmatmul.mubr.bf16.gmra.mrb[24].mxu0 %v12409_v42  ;;  %10845 = vmatprep.subr.bf16.mxu1 %v12415_v47  ;;  %v12481_v42 = vld [vmem:[%s15612_s1 + $0x1f4] ss:$76 sps:$4 sm:$0xff]   ;;  %v12487_v47 = vld [vmem:[%s13361_s12 + $0x378] sm:$0xff]  }
  0x64   : > { %10806 = vmatpush3.bf16.msra.mxu0 %v12413_v45  ;;  %2337 = vmatprep.mubr.bf16.mxu0 %v12420_v52  ;;  %v12485_v45 = vld [vmem:[%s13361_s12 + $0x3f0] sm:$0xff]  }
  0x65   : > { %2395 = vmatmul.mubr.bf16.gmra.mrb[24].mxu1 %v12414_v46  ;;  %10807 = vmatprep.subr.bf16.mxu0 %v12417_v49  ;;  %v12486_v46 = vld [vmem:[%s13361_s12 + $0x3b0] sm:$0xff]   ;;  %v12488_v49 = vld [vmem:[%s13361_s12 + $0x338] sm:$0xff]  }
  0x66   : > { %10846 = vmatpush3.bf16.msra.mxu1 %v12416_v48  ;;  %2402 = vmatprep.mubr.bf16.mxu1 %v12425_v56  ;;  %v512_v48 = vld [vmem:[%s15613_s2 + $0x10] sm:$0xff]  ;;  %v12495_v56 = vld [vmem:[%s15612_s1 + $0x38] ss:$76 sps:$4 sm:$0xff]  }
  0x67   : > { %10847 = vmatprep.subr.bf16.mxu1 %v12419_v51  ;;  %825 = vperm.xlu0 %12289, %v511_v41   ;;  %v12490_v51 = vld [vmem:[%s15612_s1 + $0x30] ss:$76 sps:$4 sm:$0xff]   ;;  %v12492_v52 = vld [vmem:[%s15612_s1 + $0x34] ss:$76 sps:$4 sm:$0xff]  }
  0x68   : > { %10808 = vmatpush3.bf16.msra.mxu0 %v12418_v50  ;;  %830 = vperm.xlu1 %12290, %v512_v48   ;;  %v12489_v50 = vld [vmem:[%s13361_s12 + $0x3f8] sm:$0xff]   ;;  %v12556_v48 = vld [vmem:[%s13361_s12 + $0x540] sm:$0xff]  }
  0x69   : > { %10809 = vmatprep.subr.bf16.mxu0 %v12424_v55  ;;  %v513_v55 = vld [vmem:[%s15613_s2 + $0x18] sm:$0xff] }
  0x6a   : > { %10848 = vmatpush3.bf16.msra.mxu1 %v12422_v53  ;;  %v12493_v53 = vld [vmem:[%s13361_s12 + $0x3b8] sm:$0xff]  }
  0x6b   : > { %2338 = vmatmul.mubr.bf16.gmra.mrb[28].mxu0 %v12423_v54  ;;  %10849 = vmatprep.subr.bf16.mxu1 %v12429_v59  ;;  %v12494_v54 = vld [vmem:[%s13361_s12 + $0x440] sm:$0xff]   ;;  %v12499_v59 = vld [vmem:[%s13361_s12 + $0x448] sm:$0xff]   ;;  %v12548_v41 = vld [vmem:[%s13361_s12 + $0x578] sm:$0xff]  }
  0x6c   : > { %10810 = vmatpush3.bf16.msra.mxu0 %v12427_v57  ;;  %2443 = vmatprep.mubr.bf16.mxu0 %v12436_v1  ;;  %v12497_v57 = vld [vmem:[%s15612_s1 + $0x3c] ss:$76 sps:$4 sm:$0xff]  }
  0x6d   : > { %2403 = vmatmul.mubr.bf16.gmra.mrb[28].mxu1 %v12428_v58  ;;  %10811 = vmatprep.subr.bf16.mxu0 %v12431_v61  ;;  %v12498_v58 = vld [vmem:[%s13361_s12 + $0x400] sm:$0xff]   ;;  %v515_v1 = vld [vmem:[%s15613_s2 + $0x28] sm:$0xff] }
  0x6e   : > { %10850 = vmatpush3.bf16.msra.mxu1 %v12430_v60  ;;  %2508 = vmatprep.mubr.bf16.mxu1 %v12441_v5  ;;  %v12500_v60 = vld [vmem:[%s13361_s12 + $0x408] sm:$0xff]   ;;  %v514_v61 = vld [vmem:[%s15613_s2 + $0x20] sm:$0xff] }
  0x6f   : > { %10851 = vmatprep.subr.bf16.mxu1 %v12433_v63  ;;  %835 = vperm.xlu1 %12290, %v513_v55   ;;  %v12503_v63 = vld [vmem:[%s15612_s1 + $0xc8] ss:$76 sps:$4 sm:$0xff]   ;;  %v12509_v5 = vld [vmem:[%s13361_s12 + $0x480] sm:$0xff]  }
  0x70   : > { %10812 = vmatpush3.bf16.msra.mxu0 %v12432_v62  ;;  %840 = vperm.xlu0 %12289, %v514_v61   ;;  %v12501_v62 = vld [vmem:[%s15612_s1 + $0xcc] ss:$76 sps:$4 sm:$0xff]   ;;  %v12564_v55 = vld [vmem:[%s13361_s12 + $0x510] sm:$0xff]  }
  0x71   : > { %10877 = vmatprep.subr.bf16.mxu0 %v12438_v3  ;;  %v12507_v3 = vld [vmem:[%s13361_s12 + $0x410] sm:$0xff]   ;;  %v12570_v61 = vld [vmem:[%s13361_s12 + $0x518] sm:$0xff]  }
  0x72   : > { %10852 = vmatpush3.bf16.msra.mxu1 %v12437_v2  ;;  %v12505_v2 = vld [vmem:[%s15612_s1 + $0xd4] ss:$76 sps:$4 sm:$0xff]  }
  0x73   : > { %2444 = vmatmul.mubr.bf16.vlgmr.msra.gmra.mrb[32].mxu0 %v12434_v0  ;;  %10917 = vmatprep.subr.bf16.mxu1 %v12443_v7  ;;  %v12504_v0 = vld [vmem:[%s13361_s12 + $0x450] sm:$0xff]   ;;  %v12511_v7 = vld [vmem:[%s13361_s12 + $0x418] sm:$0xff]  }
  0x74   : > { %10878 = vmatpush3.bf16.msra.mxu0 %v12442_v6  ;;  %2451 = vmatprep.mubr.bf16.mxu0 %v12448_v12  ;;  %v12510_v6 = vld [vmem:[%s13361_s12 + $0x458] sm:$0xff]   ;;  %v12516_v12 = vld [vmem:[%s13361_s12 + $0x460] sm:$0xff]  }
  0x75   : > { %2509 = vmatmul.mubr.bf16.vlgmr.msra.gmra.mrb[32].mxu1 %v12439_v4  ;;  %10879 = vmatprep.subr.bf16.mxu0 %v12445_v9  ;;  %v12508_v4 = vld [vmem:[%s15612_s1 + $0xd0] ss:$76 sps:$4 sm:$0xff]  }
  0x76   : > { %10918 = vmatpush3.bf16.msra.mxu1 %v12444_v8  ;;  %2516 = vmatprep.mubr.bf16.mxu1 %v12453_v16  ;;  %v12512_v8 = vld [vmem:[%s13361_s12 + $0x488] sm:$0xff]   ;;  %v516_v9 = vld [vmem:[%s15613_s2 + $0x30] sm:$0xff] }
  0x77   : > { %10919 = vmatprep.subr.bf16.mxu1 %v12447_v11  ;;  %845 = vperm.xlu1 %12290, %v515_v1   ;;  %v12515_v11 = vld [vmem:[%s15612_s1 + $0x160] ss:$76 sps:$4 sm:$0xff]   ;;  %v12520_v16 = vld [vmem:[%s15612_s1 + $0x168] ss:$76 sps:$4 sm:$0xff]  }
  0x78   : > { %10880 = vmatpush3.bf16.msra.mxu0 %v12446_v10  ;;  %850 = vperm.xlu0 %12289, %v516_v9   ;;  %v12513_v10 = vld [vmem:[%s15612_s1 + $0x164] ss:$76 sps:$4 sm:$0xff]   ;;  %v12573_v1 = vld [vmem:[%s15612_s1 + $0x20c] ss:$76 sps:$4 sm:$0xff]  }
  0x79   : > { %10881 = vmatprep.subr.bf16.mxu0 %v12452_v15  ;;  %v12519_v15 = vld [vmem:[%s13361_s12 + $0x420] sm:$0xff]   ;;  %v12581_v9 = vld [vmem:[%s13361_s12 + $0x528] sm:$0xff]  }
  0x7a   : > { %10920 = vmatpush3.bf16.msra.mxu1 %v12450_v13  ;;  %v517_v13 = vld [vmem:[%s15613_s2 + $0x38] sm:$0xff] }
  0x7b   : > { %2452 = vmatmul.mubr.bf16.gmra.mrb[36].mxu0 %v12451_v14  ;;  %10921 = vmatprep.subr.bf16.mxu1 %v12457_v19  ;;  %v12517_v14 = vld [vmem:[%s15612_s1 + $0x16c] ss:$76 sps:$4 sm:$0xff]  }
  0x7c   : > { %10882 = vmatpush3.bf16.msra.mxu0 %v12455_v17  ;;  %2459 = vmatprep.mubr.bf16.mxu0 %v12462_v24  ;;  %v12521_v17 = vld [vmem:[%s13361_s12 + $0x490] sm:$0xff]   ;;  %v12523_v19 = vld [vmem:[%s13361_s12 + $0x428] sm:$0xff]  }
  0x7d   : > { %2517 = vmatmul.mubr.bf16.gmra.mrb[36].mxu1 %v12456_v18  ;;  %10883 = vmatprep.subr.bf16.mxu0 %v12459_v21  ;;  %v12522_v18 = vld [vmem:[%s13361_s12 + $0x468] sm:$0xff]   ;;  %v12529_v24 = vld [vmem:[%s15612_s1 + $0x204] ss:$76 sps:$4 sm:$0xff]  }
  0x7e   : > { %10922 = vmatpush3.bf16.msra.mxu1 %v12458_v20  ;;  %2524 = vmatprep.mubr.bf16.mxu1 %v12467_v28  ;;  %v12524_v20 = vld [vmem:[%s13361_s12 + $0x498] sm:$0xff]  }
  0x7f   : > { %10923 = vmatprep.subr.bf16.mxu1 %v12461_v23  ;;  %855 = vperm.xlu1 %12290, %v517_v13   ;;  %v12525_v21 = vld [vmem:[%s15612_s1 + $0x1fc] ss:$76 sps:$4 sm:$0xff]   ;;  %v12528_v23 = vld [vmem:[%s13361_s12 + $0x470] sm:$0xff]  }
  0x80   : > { %10884 = vmatpush3.bf16.msra.mxu0 %v12460_v22  ;;  %v12527_v22 = vld [vmem:[%s15612_s1 + $0x1f8] ss:$76 sps:$4 sm:$0xff]   ;;  %v12585_v13 = vld [vmem:[%s13361_s12 + $0x5f0] sm:$0xff]  }
  0x81   : > { %10885 = vmatprep.subr.bf16.mxu0 %v12466_v27  ;;  %v12533_v27 = vld [vmem:[%s13361_s12 + $0x4a0] sm:$0xff]   ;;  %v12534_v28 = vld [vmem:[%s13361_s12 + $0x478] sm:$0xff]  }
  0x82   : > { %10924 = vmatpush3.bf16.msra.mxu1 %v12464_v25  ;;  %v12531_v25 = vld [vmem:[%s13361_s12 + $0x430] sm:$0xff]  }
  0x83   : > { %2460 = vmatmul.mubr.bf16.gmra.mrb[40].mxu0 %v12465_v26  ;;  %10925 = vmatprep.subr.bf16.mxu1 %v12471_v31  ;;  %v12532_v26 = vld [vmem:[%s15612_s1 + $0x200] ss:$76 sps:$4 sm:$0xff]  }
  0x84   : > { %10886 = vmatpush3.bf16.msra.mxu0 %v12469_v29  ;;  %2467 = vmatprep.mubr.bf16.mxu0 %v12476_v37  ;;  %v12535_v29 = vld [vmem:[%s13361_s12 + $0x438] sm:$0xff]   ;;  %v12537_v31 = vld [vmem:[%s15612_s1 + $0x40] ss:$76 sps:$4 sm:$0xff]  }
  0x85   : > { %2525 = vmatmul.mubr.bf16.gmra.mrb[40].mxu1 %v12470_v30  ;;  %10887 = vmatprep.subr.bf16.mxu0 %v12473_v33  ;;  %v12536_v30 = vld [vmem:[%s13361_s12 + $0x4a8] sm:$0xff]   ;;  %v12540_v33 = vld [vmem:[%s13361_s12 + $0x4f0] sm:$0xff]  }
  0x86   : > { %10926 = vmatpush3.bf16.msra.mxu1 %v12472_v32  ;;  %2532 = vmatprep.mubr.bf16.mxu1 %v12481_v42  ;;  %v12539_v32 = vld [vmem:[%s15612_s1 + $0x44] ss:$76 sps:$4 sm:$0xff]   ;;  %v12544_v37 = vld [vmem:[%s15612_s1 + $0xe0] ss:$76 sps:$4 sm:$0xff]   ;;  %v12549_v42 = vld [vmem:[%s15612_s1 + $0xdc] ss:$76 sps:$4 sm:$0xff]  }
  0x87   : > { %10927 = vmatprep.subr.bf16.mxu1 %v12475_v36  ;;  %v12543_v36 = vld [vmem:[%s13361_s12 + $0x570] sm:$0xff]  }
  0x88   : > { %10888 = vmatpush3.bf16.msra.mxu0 %v12474_v35  ;;  %v12542_v35 = vld [vmem:[%s15612_s1 + $0x48] ss:$76 sps:$4 sm:$0xff]  }
  0x89   : > { %10889 = vmatprep.subr.bf16.mxu0 %v12480_v40  ;;  %v12547_v40 = vld [vmem:[%s13361_s12 + $0x4b8] sm:$0xff]  }
  0x8a   : > { %10928 = vmatpush3.bf16.msra.mxu1 %v12478_v38  ;;  %v12545_v38 = vld [vmem:[%s13361_s12 + $0x530] sm:$0xff]  }
  0x8b   : > { %2468 = vmatmul.mubr.bf16.gmra.mrb[44].mxu0 %v12479_v39  ;;  %10929 = vmatprep.subr.bf16.mxu1 %v12485_v45  ;;  %v12546_v39 = vld [vmem:[%s13361_s12 + $0x4f8] sm:$0xff]   ;;  %v12553_v45 = vld [vmem:[%s13361_s12 + $0x500] sm:$0xff]  }
  0x8c   : > { %10890 = vmatpush3.bf16.msra.mxu0 %v12483_v43  ;;  %2573 = vmatprep.mubr.bf16.mxu0 %v12492_v52  ;;  %v12551_v43 = vld [vmem:[%s13361_s12 + $0x538] sm:$0xff]   ;;  %v12560_v52 = vld [vmem:[%s15612_s1 + $0x174] ss:$76 sps:$4 sm:$0xff]  }
  0x8d   : > { %2533 = vmatmul.mubr.bf16.gmra.mrb[44].mxu1 %v12484_v44  ;;  %10891 = vmatprep.subr.bf16.mxu0 %v12487_v47  ;;  %v12552_v44 = vld [vmem:[%s15612_s1 + $0xd8] ss:$76 sps:$4 sm:$0xff]  }
  0x8e   : > { %10930 = vmatpush3.bf16.msra.mxu1 %v12486_v46  ;;  %2638 = vmatprep.mubr.bf16.mxu1 %v12497_v57  ;;  %v12554_v46 = vld [vmem:[%s13361_s12 + $0x4c0] sm:$0xff]   ;;  %v12566_v57 = vld [vmem:[%s13361_s12 + $0x590] sm:$0xff]  }
  0x8f   : > { %10931 = vmatprep.subr.bf16.mxu1 %v12489_v50  ;;  %v12555_v47 = vld [vmem:[%s13361_s12 + $0x580] sm:$0xff]   ;;  %v12558_v50 = vld [vmem:[%s13361_s12 + $0x4c8] sm:$0xff]  }
  0x90   : > { %10892 = vmatpush3.bf16.msra.mxu0 %v12488_v49  ;;  %v12557_v49 = vld [vmem:[%s13361_s12 + $0x508] sm:$0xff]  }
  0x91   : > { %10957 = vmatprep.subr.bf16.mxu0 %v12494_v54  ;;  %v12563_v54 = vld [vmem:[%s15612_s1 + $0x170] ss:$76 sps:$4 sm:$0xff]  }
  0x92   : > { %10932 = vmatpush3.bf16.msra.mxu1 %v12493_v53  ;;  %v12562_v53 = vld [vmem:[%s13361_s12 + $0x548] sm:$0xff]  }
  0x93   : > { %2574 = vmatmul.mubr.bf16.vlgmr.msra.gmra.mrb[48].mxu0 %v12490_v51  ;;  %12135 = vmatprep.subr.bf16.mxu1 %v12509_v5  ;;  %v12559_v51 = vld [vmem:[%s13361_s12 + $0x588] sm:$0xff]  }
  0x94   : > { %10958 = vmatpush3.bf16.msra.mxu0 %v12498_v58  ;;  %2581 = vmatprep.mubr.bf16.mxu0 %v12501_v62  ;;  %v12567_v58 = vld [vmem:[%s15612_s1 + $0x178] ss:$76 sps:$4 sm:$0xff]  }
  0x95   : > { %2639 = vmatmul.mubr.bf16.vlgmr.msra.gmra.mrb[48].mxu1 %v12495_v56  ;;  %10959 = vmatprep.subr.bf16.mxu0 %v12499_v59  ;;  %v12565_v56 = vld [vmem:[%s13361_s12 + $0x4d0] sm:$0xff]   ;;  %v12571_v62 = vld [vmem:[%s13361_s12 + $0x4d8] sm:$0xff]  }
  0x96   : > { %2646 = vmatprep.mubr.bf16.mxu1 %v12505_v2  ;;  %12136 = vmatpush3.bf16.msra.mxu1 %v12509_v5  ;;  %v12568_v59 = vld [vmem:[%s13361_s12 + $0x550] sm:$0xff]   ;;  %v12575_v2 = vld [vmem:[%s13361_s12 + $0x558] sm:$0xff]   ;;  %v12578_v5 = vld [vmem:[%s13361_s12 + $0x4e0] sm:$0xff]  }
  0x97   : > { %12137 = vmatprep.subr.bf16.mxu1 %v12512_v8 }
  0x98   : > { %10960 = vmatpush3.bf16.msra.mxu0 %v12500_v60  ;;  %v12569_v60 = vld [vmem:[%s15612_s1 + $0x210] ss:$76 sps:$4 sm:$0xff]  }
  0x99   : > { %10961 = vmatprep.subr.bf16.mxu0 %v12504_v0  ;;  %v13035_v0 = vld [vmem:[%s15612_s1 + $0xc] ss:$76 sps:$4 sm:$0xff]  }
  0x9a   : > { %12138 = vmatpush3.bf16.msra.mxu1 %v12512_v8  ;;  %v12580_v8 = vld [vmem:[%s13361_s12 + $0x560] sm:$0xff]  }
  0x9b   : > { %2582 = vmatmul.mubr.bf16.gmra.mrb[52].mxu0 %v12503_v63  ;;  %12139 = vmatprep.subr.bf16.mxu1 %v12521_v17  ;;  %v12572_v63 = vld [vmem:[%s13361_s12 + $0x598] sm:$0xff]  }
  0x9c   : > { %10962 = vmatpush3.bf16.msra.mxu0 %v12507_v3  ;;  %2589 = vmatprep.mubr.bf16.mxu0 %v12513_v10  ;;  %v12576_v3 = vld [vmem:[%s15612_s1 + $0x208] ss:$76 sps:$4 sm:$0xff]  }
  0x9d   : > { %2647 = vmatmul.mubr.bf16.gmra.mrb[52].mxu1 %v12508_v4  ;;  %10963 = vmatprep.subr.bf16.mxu0 %v12510_v6  ;;  %v12577_v4 = vld [vmem:[%s13361_s12 + $0x520] sm:$0xff]   ;;  %v12582_v10 = vld [vmem:[%s13361_s12 + $0x4e8] sm:$0xff]  }
  0x9e   : > { %2654 = vmatprep.mubr.bf16.mxu1 %v12517_v14  ;;  %12140 = vmatpush3.bf16.msra.mxu1 %v12521_v17  ;;  %v12579_v6 = vld [vmem:[%s13361_s12 + $0x5a0] sm:$0xff]   ;;  %v12586_v14 = vld [vmem:[%s13361_s12 + $0x5b0] sm:$0xff]  }
  0x9f   : > { %12141 = vmatprep.subr.bf16.mxu1 %v12524_v20  ;;  %v12588_v17 = vld [vmem:[%s13361_s12 + $0x630] sm:$0xff]  }
  0xa0   : > { %10964 = vmatpush3.bf16.msra.mxu0 %v12511_v7  ;;  %v13036_v7 = vld [vmem:[%s15612_s1 + $0x4] ss:$76 sps:$4 sm:$0xff]  }
  0xa1   : > { %10965 = vmatprep.subr.bf16.mxu0 %v12516_v12  ;;  %v12584_v12 = vld [vmem:[%s13361_s12 + $0x568] sm:$0xff]  }
  0xa2   : > { %12142 = vmatpush3.bf16.msra.mxu1 %v12524_v20  ;;  %v12589_v20 = vld [vmem:[%s13361_s12 + $0x5f8] sm:$0xff]  }
  0xa3   : > { %2590 = vmatmul.mubr.bf16.gmra.mrb[56].mxu0 %v12515_v11  ;;  %12143 = vmatprep.subr.bf16.mxu1 %v12533_v27  ;;  %v12583_v11 = vld [vmem:[%s13361_s12 + $0x5a8] sm:$0xff]  }
  0xa4   : > { %10966 = vmatpush3.bf16.msra.mxu0 %v12519_v15  ;;  %2597 = vmatprep.mubr.bf16.mxu0 %v12525_v21  ;;  %v13037_v15 = vld [vmem:[%s15612_s1] ss:$76 sps:$4 sm:$0xff]   ;;  %v12590_v21 = vld [vmem:[%s13361_s12 + $0x5b8] sm:$0xff]  }
  0xa5   : > { %2655 = vmatmul.mubr.bf16.gmra.mrb[56].mxu1 %v12520_v16  ;;  %10967 = vmatprep.subr.bf16.mxu0 %v12522_v18  ;;  %v12587_v16 = vld [vmem:[%s13361_s12 + $0x670] sm:$0xff]   ;;  %v13038_v18 = vld [vmem:[%s15612_s1 + $0x9c] ss:$76 sps:$4 sm:$0xff]  }
  0xa6   : > { %2662 = vmatprep.mubr.bf16.mxu1 %v12529_v24  ;;  %12144 = vmatpush3.bf16.msra.mxu1 %v12533_v27  ;;  %v12592_v24 = vld [vmem:[%s13361_s12 + $0x638] sm:$0xff]  }
  0xa7   : > { %12145 = vmatprep.subr.bf16.mxu1 %v12536_v30  ;;  %v13041_v27 = vld [vmem:[%s15612_s1 + $0x98] ss:$76 sps:$4 sm:$0xff]  }
  0xa8   : > { %10968 = vmatpush3.bf16.msra.mxu0 %v12523_v19  ;;  %v13039_v19 = vld [vmem:[%s15612_s1 + $0x8] ss:$76 sps:$4 sm:$0xff]  }
  0xa9   : > { %10969 = vmatprep.subr.bf16.mxu0 %v12528_v23  ;;  %v12591_v23 = vld [vmem:[%s13361_s12 + $0x678] sm:$0xff]  }
  0xaa   : > { %12146 = vmatpush3.bf16.msra.mxu1 %v12536_v30  ;;  %v13042_v30 = vld [vmem:[%s15612_s1 + $0x134] ss:$76 sps:$4 sm:$0xff]  }
  0xab   : > { %2598 = vmatmul.mubr.bf16.gmra.mrb[60].mxu0 %v12527_v22  ;;  %11047 = vmatprep.subr.bf16.mxu1 %v12543_v36  ;;  %v13040_v22 = vld [vmem:[%s15612_s1 + $0xa4] ss:$76 sps:$4 sm:$0xff]   ;;  %v12600_v36 = vld [vmem:[%s13361_s12 + $0x648] sm:$0xff]  }
  0xac   : > { %10970 = vmatpush3.bf16.msra.mxu0 %v12531_v25  ;;  %2703 = vmatprep.mubr.bf16.mxu0 %v12539_v32  ;;  %v12593_v25 = vld [vmem:[%s13361_s12 + $0x600] sm:$0xff]   ;;  %v12597_v32 = vld [vmem:[%s13361_s12 + $0x608] sm:$0xff]  }
  0xad   : > { %2663 = vmatmul.mubr.bf16.gmra.mrb[60].mxu1 %v12532_v26  ;;  %10971 = vmatprep.subr.bf16.mxu0 %v12534_v28  ;;  %v12594_v26 = vld [vmem:[%s13361_s12 + $0x5c0] sm:$0xff]  }
  0xae   : > { %12147 = vmatprep.mubr.msk.bf16.mxu1 %vm2138_vm0, %v12542_v35  ;;  %v12595_v28 = vld [vmem:[%s13361_s12 + $0x680] sm:$0xff]   ;;  %v12599_v35 = vld [vmem:[%s13361_s12 + $0x688] sm:$0xff]  }
  0xb0   : > { %10972 = vmatpush3.bf16.msra.mxu0 %v12535_v29  ;;  %v12596_v29 = vld [vmem:[%s13361_s12 + $0x640] sm:$0xff]  }
  0xb1   : > { %11007 = vmatprep.subr.bf16.mxu0 %v12540_v33  ;;  %v12598_v33 = vld [vmem:[%s13361_s12 + $0x5c8] sm:$0xff]  }
  0xb3   : > { %2704 = vmatmul.mubr.bf16.vlgmr.msra.gmra.mrb[64].mxu0 %v12537_v31  ;;  %v13043_v31 = vld [vmem:[%s15612_s1 + $0xa0] ss:$76 sps:$4 sm:$0xff]  }
  0xb4   : > { %11008 = vmatpush3.bf16.msra.mxu0 %v12541_v34  ;;  %2711 = vmatprep.mubr.bf16.mxu0 %v12549_v42  ;;  %v13044_v34 = vld [vmem:[%s15612_s1 + $0x13c] ss:$76 sps:$4 sm:$0xff]  }
  0xb5   : > { %12148 = vmatmul.mubr.msk.bf16.vlgmr.msra.gmra.mrb[64].mxu1 %vm2138_vm0, %v12544_v37  ;;  %11009 = vmatprep.subr.bf16.mxu0 %v12546_v39 }
  0xb6   : > { %11048 = vmatpush3.bf16.msra.mxu1 %v12545_v38  ;;  %12151 = vmatprep.mubr.msk.bf16.mxu1 %vm2138_vm0, %v12567_v58  ;;  %v12601_v38 = vld [vmem:[%s13361_s12 + $0x610] sm:$0xff]  }
  0xb7   : > { %11049 = vmatprep.subr.bf16.mxu1 %v12548_v41 }
  0xb8   : > { %11010 = vmatpush3.bf16.msra.mxu0 %v12547_v40  ;;  %v12602_v40 = vld [vmem:[%s13361_s12 + $0x5d0] sm:$0xff]  }
  0xb9   : > { %11011 = vmatprep.subr.bf16.mxu0 %v12553_v45 }
  0xba   : > { %11050 = vmatpush3.bf16.msra.mxu1 %v12551_v43  ;;  %v13045_v43 = vld [vmem:[%s15612_s1 + $0x130] ss:$76 sps:$4 sm:$0xff]  }
  0xbb   : > { %2712 = vmatmul.mubr.bf16.gmra.mrb[68].mxu0 %v12552_v44  ;;  %11051 = vmatprep.subr.bf16.mxu1 %v12555_v47  ;;  %v12603_v44 = vld [vmem:[%s13361_s12 + $0x690] sm:$0xff]   ;;  %v13046_v47 = vld [vmem:[%s15612_s1 + $0x1cc] ss:$76 sps:$4 sm:$0xff]  }
  0xbc   : > { %11012 = vmatpush3.bf16.msra.mxu0 %v12554_v46  ;;  %2719 = vmatprep.mubr.bf16.mxu0 %v12560_v52  ;;  %v12604_v46 = vld [vmem:[%s13361_s12 + $0x650] sm:$0xff]  }
  0xbd   : > { %11013 = vmatprep.subr.bf16.mxu0 %v12557_v49  ;;  %12152 = vmatmul.mubr.msk.bf16.gmra.mrb[68].mxu1 %vm2138_vm0, %v12569_v60  ;;  %v13047_v49 = vld [vmem:[%s15612_s1 + $0x138] ss:$76 sps:$4 sm:$0xff]  }
  0xbe   : > { %11052 = vmatpush3.bf16.msra.mxu1 %v12556_v48  ;;  %4123 = vmatprep.mubr.bf16.mxu1 %v13035_v0  ;;  %v12610_v0 = vld [vmem:[%s13361_s12 + $0x5e0] sm:$0xff]  }
  0xbf   : > { %11053 = vmatprep.subr.bf16.mxu1 %v12559_v51 }
  0xc0   : > { %11014 = vmatpush3.bf16.msra.mxu0 %v12558_v50  ;;  %v12605_v50 = vld [vmem:[%s13361_s12 + $0x618] sm:$0xff]  }
  0xc1   : > { %11015 = vmatprep.subr.bf16.mxu0 %v12564_v55 }
  0xc2   : > { %11054 = vmatpush3.bf16.msra.mxu1 %v12562_v53  ;;  %v12606_v53 = vld [vmem:[%s13361_s12 + $0x5d8] sm:$0xff]  }
  0xc3   : > { %2720 = vmatmul.mubr.bf16.gmra.mrb[72].mxu0 %v12563_v54  ;;  %11055 = vmatprep.subr.bf16.mxu1 %v12566_v57  ;;  %v13048_v54 = vld [vmem:[%s15612_s1 + $0x1d4] ss:$76 sps:$4 sm:$0xff]   ;;  %v12607_v57 = vld [vmem:[%s13361_s12 + $0x698] sm:$0xff]  }
  0xc4   : > { %11016 = vmatpush3.bf16.msra.mxu0 %v12565_v56  ;;  %2727 = vmatprep.mubr.bf16.mxu0 %v12573_v1 }
  0xc5   : > { %11017 = vmatprep.subr.bf16.mxu0 %v12570_v61 }
  0xc6   : > { %11056 = vmatpush3.bf16.msra.mxu1 %v12568_v59  ;;  %v12608_v59 = vld [vmem:[%s13361_s12 + $0x658] sm:$0xff]  }
  0xc7   : > { %11057 = vmatprep.subr.bf16.mxu1 %v12572_v63 }
  0xc8   : > { %11018 = vmatpush3.bf16.msra.mxu0 %v12571_v62  ;;  %v12609_v62 = vld [vmem:[%s13361_s12 + $0x620] sm:$0xff]  }
  0xc9   : > { %11019 = vmatprep.subr.bf16.mxu0 %v12577_v4  ;;  %v12611_v4 = vld [vmem:[%s13361_s12 + $0x6a0] sm:$0xff]  }
  0xca   : > { %11058 = vmatpush3.bf16.msra.mxu1 %v12575_v2 }
  0xcb   : > { %2728 = vmatmul.mubr.bf16.gmra.mrb[76].mxu0 %v12576_v3  ;;  %11059 = vmatprep.subr.bf16.mxu1 %v12579_v6  ;;  %v13049_v3 = vld [vmem:[%s15612_s1 + $0x1c8] ss:$76 sps:$4 sm:$0xff]   ;;  %v12612_v6 = vld [vmem:[%s13361_s12 + $0x660] sm:$0xff]  }
  0xcc   : > { %4058 = vmatprep.mubr.bf16.mxu0 %v13036_v7  ;;  %11020 = vmatpush3.bf16.msra.mxu0 %v12578_v5  ;;  %v13050_v7 = vld [vmem:[%s15612_s1 + $0x14] ss:$76 sps:$4 sm:$0xff]  }
  0xcd   : > { %11021 = vmatprep.subr.bf16.mxu0 %v12581_v9  ;;  %v13051_v9 = vld [vmem:[%s15612_s1 + $0x1d0] ss:$76 sps:$4 sm:$0xff]  }
  0xce   : > { %11060 = vmatpush3.bf16.msra.mxu1 %v12580_v8 }
  0xcf   : > { %11061 = vmatprep.subr.bf16.mxu1 %v12583_v11 }
  0xd0   : > { %11022 = vmatpush3.bf16.msra.mxu0 %v12582_v10  ;;  %v12613_v10 = vld [vmem:[%s13361_s12 + $0x628] sm:$0xff]  }
  0xd1   : > { %11087 = vmatprep.subr.bf16.mxu0 %v12585_v13  ;;  %v12614_v13 = vld [vmem:[%s13361_s12 + $0x5e8] sm:$0xff]  }
  0xd2   : > { %11062 = vmatpush3.bf16.msra.mxu1 %v12584_v12 }
  0xd3   : > { %4059 = vmatmul.mubr.bf16.vlgmr.msra.gmra.mrb[80].mxu0 %v13037_v15  ;;  %11127 = vmatprep.subr.bf16.mxu1 %v12587_v16 }
  0xd4   : > { %11088 = vmatpush3.bf16.msra.mxu0 %v12586_v14  ;;  %4066 = vmatprep.mubr.bf16.mxu0 %v13038_v18  ;;  %v13052_v14 = vld [vmem:[%s15612_s1 + $0x1c] ss:$76 sps:$4 sm:$0xff]  }
  0xd5   : > { %4124 = vmatmul.mubr.bf16.vlgmr.msra.gmra.mrb[72].mxu1 %v13039_v19  ;;  %11089 = vmatprep.subr.bf16.mxu0 %v12589_v20  ;;  %v12616_v19 = vld [vmem:[%s13361_s12 + $0x668] sm:$0xff]  }
  0xd6   : > { %11128 = vmatpush3.bf16.msra.mxu1 %v12588_v17  ;;  %4131 = vmatprep.mubr.bf16.mxu1 %v13040_v22  ;;  %v12615_v17 = vld [vmem:[%s13361_s12 + $0x6a8] sm:$0xff]   ;;  %v12617_v22 = vld [vmem:[%s13361_s12 + $0x6f0] sm:$0xff]  }
  0xd7   : > { %11129 = vmatprep.subr.bf16.mxu1 %v12591_v23 }
  0xd8   : > { %11090 = vmatpush3.bf16.msra.mxu0 %v12590_v21 }
  0xd9   : > { %11091 = vmatprep.subr.bf16.mxu0 %v12593_v25 }
  0xda   : > { %11130 = vmatpush3.bf16.msra.mxu1 %v12592_v24  ;;  %v12618_v24 = vld [vmem:[%s13361_s12 + $0x6b0] sm:$0xff]  }
  0xdb   : > { %4067 = vmatmul.mubr.bf16.gmra.mrb[84].mxu0 %v13041_v27  ;;  %11131 = vmatprep.subr.bf16.mxu1 %v12595_v28  ;;  %v13053_v27 = vld [vmem:[%s15612_s1 + $0x10] ss:$76 sps:$4 sm:$0xff]  }
  0xdc   : > { %11092 = vmatpush3.bf16.msra.mxu0 %v12594_v26  ;;  %4074 = vmatprep.mubr.bf16.mxu0 %v13042_v30  ;;  %v12619_v28 = vld [vmem:[%s13361_s12 + $0x770] sm:$0xff]  }
  0xdd   : > { %4132 = vmatmul.mubr.bf16.gmra.mrb[76].mxu1 %v13043_v31  ;;  %11093 = vmatprep.subr.bf16.mxu0 %v12597_v32  ;;  %v12620_v30 = vld [vmem:[%s13361_s12 + $0x730] sm:$0xff]   ;;  %v13054_v31 = vld [vmem:[%s15612_s1 + $0xac] ss:$76 sps:$4 sm:$0xff]  }
  0xde   : > { %11132 = vmatpush3.bf16.msra.mxu1 %v12596_v29  ;;  %4139 = vmatprep.mubr.bf16.mxu1 %v13044_v34  ;;  %v12621_v34 = vld [vmem:[%s13361_s12 + $0x6f8] sm:$0xff]  }
  0xdf   : > { %11133 = vmatprep.subr.bf16.mxu1 %v12599_v35 }
  0xe0   : > { %11094 = vmatpush3.bf16.msra.mxu0 %v12598_v33  ;;  %v13055_v33 = vld [vmem:[%s15612_s1 + $0x18] ss:$76 sps:$4 sm:$0xff]  }
  0xe1   : > { %11095 = vmatprep.subr.bf16.mxu0 %v12601_v38  ;;  %v13056_v38 = vld [vmem:[%s15612_s1 + $0xb4] ss:$76 sps:$4 sm:$0xff]  }
  0xe2   : > { %11134 = vmatpush3.bf16.msra.mxu1 %v12600_v36 }
  0xe3   : > { %4075 = vmatmul.mubr.bf16.gmra.mrb[88].mxu0 %v13045_v43  ;;  %11135 = vmatprep.subr.bf16.mxu1 %v12603_v44  ;;  %v12623_v43 = vld [vmem:[%s13361_s12 + $0x778] sm:$0xff]  }
  0xe4   : > { %11096 = vmatpush3.bf16.msra.mxu0 %v12602_v40  ;;  %4082 = vmatprep.mubr.bf16.mxu0 %v13046_v47 }
  0xe5   : > { %4140 = vmatmul.mubr.bf16.gmra.mrb[80].mxu1 %v13047_v49  ;;  %11097 = vmatprep.subr.bf16.mxu0 %v12605_v50  ;;  %v12626_v50 = vld [vmem:[%s13361_s12 + $0x6c0] sm:$0xff]  }
  0xe6   : > { %11136 = vmatpush3.bf16.msra.mxu1 %v12604_v46  ;;  %4147 = vmatprep.mubr.bf16.mxu1 %v13048_v54  ;;  %v12624_v46 = vld [vmem:[%s13361_s12 + $0x738] sm:$0xff]  }
  0xe7   : > { %11137 = vmatprep.subr.bf16.mxu1 %v12607_v57 }
  0xe8   : > { %11098 = vmatpush3.bf16.msra.mxu0 %v12606_v53  ;;  %v13057_v53 = vld [vmem:[%s15612_s1 + $0xa8] ss:$76 sps:$4 sm:$0xff]  }
  0xe9   : > { %11099 = vmatprep.subr.bf16.mxu0 %v12609_v62  ;;  %v12629_v62 = vld [vmem:[%s13361_s12 + $0x708] sm:$0xff]  }
  0xea   : > { %11138 = vmatpush3.bf16.msra.mxu1 %v12608_v59 }
  0xeb   : > { %4083 = vmatmul.mubr.bf16.gmra.mrb[92].mxu0 %v13049_v3  ;;  %11139 = vmatprep.subr.bf16.mxu1 %v12611_v4  ;;  %v13060_v3 = vld [vmem:[%s15612_s1 + $0x14c] ss:$76 sps:$4 sm:$0xff]  }
  0xec   : > { %11100 = vmatpush3.bf16.msra.mxu0 %v12610_v0  ;;  %4188 = vmatprep.mubr.bf16.mxu0 %v13050_v7 }
  0xed   : > { %4148 = vmatmul.mubr.bf16.gmra.mrb[84].mxu1 %v13051_v9  ;;  %11101 = vmatprep.subr.bf16.mxu0 %v12613_v10 }
  0xee   : > { %11140 = vmatpush3.bf16.msra.mxu1 %v12612_v6  ;;  %4253 = vmatprep.mubr.bf16.mxu1 %v13052_v14 }
  0xef   : > { %11141 = vmatprep.subr.bf16.mxu1 %v12615_v17 }
  0xf0   : > { %11102 = vmatpush3.bf16.msra.mxu0 %v12614_v13  ;;  %v13964_v13 = vpop.permute.xlu1 %830 }
  0xf1   : > { %11167 = vmatprep.subr.bf16.mxu0 %v12617_v22  ;;  %v13062_v22 = vld [vmem:[%s15612_s1 + $0x1dc] ss:$76 sps:$4 sm:$0xff]  }
  0xf2   : > { %11142 = vmatpush3.bf16.msra.mxu1 %v12616_v19  ;;  %v12635_v19 = vld [vmem:[%s13361_s12 + $0x790] sm:$0xff]  }
  0xf3   : > { %4189 = vmatmul.mubr.bf16.vlgmr.msra.gmra.mrb[96].mxu0 %v13053_v27  ;;  %11207 = vmatprep.subr.bf16.mxu1 %v12619_v28  ;;  %v12638_v28 = vld [vmem:[%s13361_s12 + $0x6d8] sm:$0xff]  }
  0xf4   : > { %11168 = vmatpush3.bf16.msra.mxu0 %v12618_v24  ;;  %4196 = vmatprep.mubr.bf16.mxu0 %v13054_v31  ;;  %v13063_v24 = vld [vmem:[%s15612_s1 + $0x148] ss:$76 sps:$4 sm:$0xff]   ;;  %v12639_v31 = vld [vmem:[%s13361_s12 + $0x798] sm:$0xff]  }
  0xf5   : > { %4254 = vmatmul.mubr.bf16.vlgmr.msra.gmra.mrb[88].mxu1 %v13055_v33  ;;  %11169 = vmatprep.subr.bf16.mxu0 %v12621_v34  ;;  %v12640_v33 = vld [vmem:[%s13361_s12 + $0x758] sm:$0xff]   ;;  %v13992_v34 = vpop.permute.xlu1 %835 }
  0xf6   : > { %11208 = vmatpush3.bf16.msra.mxu1 %v12620_v30  ;;  %4261 = vmatprep.mubr.bf16.mxu1 %v13056_v38 }
  0xf7   : > { %11209 = vmatprep.subr.bf16.mxu1 %v12623_v43 }
  0xfa   : > { %11210 = vmatpush3.bf16.msra.mxu1 %v12624_v46 }
  0xfb   : > { %4197 = vmatmul.mubr.bf16.gmra.mrb[100].mxu0 %v13057_v53 }
 0x106   : > { %v10653_v37 = vpop.f32.mrb[0].mxu0 }
 0x107   : > { %v10654_v39 = vpop.f32.mrb[1].mxu0 }
 0x108   : > { %v13843_v41 = vadd.f32 %v10654_v39, %v10653_v37  ;;  %v10656_v42 = vpop.f32.mrb[2].mxu0  ;;  %v10693_v45 = vpop.f32.mrb[0].mxu1  ;;  %v12622_v37 = vld [vmem:[%s13361_s12 + $0x6b8] sm:$0xff]  }
 0x109   : > { %v10657_v48 = vpop.f32.mrb[3].mxu0  ;;  %v10694_v52 = vpop.f32.mrb[1].mxu1  ;;  %11170 = vmatpush3.bf16.msra.mxu0 %v12622_v37 }
 0x10a   : > { %v13857_v51 = vadd.f32 %v10657_v48, %v10656_v42  ;;  %v13863_v55 = vadd.f32 %v10694_v52, %v10693_v45  ;;  %v10696_v56 = vpop.f32.mrb[2].mxu1  ;;  %v13919_v39 = vpop.permute.xlu0 %820  ;;  %v12625_v48 = vld [vmem:[%s13361_s12 + $0x700] sm:$0xff]  }
 0x10b   : > { %v10697_v58 = vpop.f32.mrb[3].mxu1  ;;  %v2186_v44 = vadd.f32 %v13843_v41, %v13919_v39  ;;  %11171 = vmatprep.subr.bf16.mxu0 %v12625_v48  ;;  %v12627_v41 = vld [vmem:[%s13361_s12 + $0x780] sm:$0xff]  }
 0x10c   : > { %v13867_v60 = vadd.f32 %v10697_v58, %v10696_v56  ;;  %v12628_v56 = vld [vmem:[%s13361_s12 + $0x740] sm:$0xff]   ;;  %11211 = vmatprep.subr.bf16.mxu1 %v12627_v41 }
 0x10d   : > { %v13931_v49 = vadd.f32 %v13863_v55, %v2186_v44  ;;  %11172 = vmatpush3.bf16.msra.mxu0 %v12626_v50  ;;  %v13058_v55 = vld [vmem:[%s15612_s1 + $0x144] ss:$76 sps:$4 sm:$0xff]   ;;  %11212 = vmatpush3.bf16.msra.mxu1 %v12628_v56 }
 0x10e   : > { %v10659_v61 = vpop.f32.mrb[4].mxu0  ;;  %4204 = vmatprep.mubr.bf16.mxu0 %v13058_v55  ;;  %v13942_v57 = vpop.permute.xlu0 %825  ;;  %11173 = vmatprep.subr.bf16.mxu0 %v12629_v62 }
 0x10f   : > { %v10660_v63 = vpop.f32.mrb[5].mxu0 }
 0x110   : > { %v13871_v1 = vadd.f32 %v10660_v63, %v10659_v61  ;;  %v10662_v2 = vpop.f32.mrb[6].mxu0  ;;  %v10699_v5 = vpop.f32.mrb[4].mxu1  ;;  %v13059_v61 = vld [vmem:[%s15612_s1 + $0xb0] ss:$76 sps:$4 sm:$0xff]   ;;  %v2189_v63 = vadd.f32 %v13857_v51, %v13942_v57  ;;  %v12632_v51 = vld [vmem:[%s13361_s12 + $0x748] sm:$0xff]  }
 0x111   : > { %v10663_v8 = vpop.f32.mrb[7].mxu0  ;;  %v10700_v12 = vpop.f32.mrb[5].mxu1  ;;  %4262 = vmatmul.mubr.bf16.gmra.mrb[92].mxu1 %v13059_v61  ;;  %v13067_v61 = vld [vmem:[%s15612_s1 + $0x1e0] ss:$76 sps:$4 sm:$0xff]  }
 0x112   : > { %v13885_v11 = vadd.f32 %v10663_v8, %v10662_v2  ;;  %v13891_v15 = vadd.f32 %v10700_v12, %v10699_v5  ;;  %v10702_v16 = vpop.f32.mrb[6].mxu1  ;;  %v12630_v2 = vld [vmem:[%s13361_s12 + $0x6c8] sm:$0xff]   ;;  %4269 = vmatprep.mubr.bf16.mxu1 %v13060_v3  ;;  %v2254_v6 = vadd.f32 %v13867_v60, %v2189_v63  ;;  %v12633_v12 = vld [vmem:[%s13361_s12 + $0x710] sm:$0xff]   ;;  %v2194_v60 = vadd.f32 %v13871_v1, %v13964_v13  ;;  %v14008_v56 = vpop.permute.xlu0 %840 }
 0x113   : > { %v10703_v18 = vpop.f32.mrb[7].mxu1  ;;  %v12631_v5 = vld [vmem:[%s13361_s12 + $0x788] sm:$0xff]   ;;  %11174 = vmatpush3.bf16.msra.mxu0 %v12630_v2 }
 0x114   : > { %v13895_v20 = vadd.f32 %v10703_v18, %v10702_v16  ;;  %11213 = vmatprep.subr.bf16.mxu1 %v12631_v5  ;;  %v12634_v16 = vld [vmem:[%s13361_s12 + $0x6d0] sm:$0xff]   ;;  %v13061_v18 = vld [vmem:[%s15612_s1 + $0x140] ss:$76 sps:$4 sm:$0xff]   ;;  %11175 = vmatprep.subr.bf16.mxu0 %v12633_v12  ;;  %v13980_v1 = vadd.f32 %v13891_v15, %v2194_v60  ;;  %v2197_v43 = vadd.f32 %v13885_v11, %v13992_v34 }
 0x115   : > { %11214 = vmatpush3.bf16.msra.mxu1 %v12632_v51  ;;  %4205 = vmatmul.mubr.bf16.gmra.mrb[104].mxu0 %v13061_v18  ;;  %v12644_v11 = vld [vmem:[%s13361_s12 + $0x760] sm:$0xff]   ;;  %v12646_v63 = vld [vmem:[%s13361_s12 + $0x6e8] sm:$0xff]   ;;  %v12649_v51 = vld [vmem:[%s13361_s12 + $0x7f0] sm:$0xff]  }
 0x116   : > { %v10665_v21 = vpop.f32.mrb[8].mxu0  ;;  %4212 = vmatprep.mubr.bf16.mxu0 %v13062_v22  ;;  %11215 = vmatprep.subr.bf16.mxu1 %v12635_v19  ;;  %v2262_v53 = vadd.f32 %v13895_v20, %v2197_v43  ;;  %v12645_v20 = vld [vmem:[%s13361_s12 + $0x728] sm:$0xff]   ;;  %v12651_v18 = vld [vmem:[%s13361_s12 + $0x870] sm:$0xff]  }
 0x117   : > { %v10666_v23 = vpop.f32.mrb[9].mxu0  ;;  %11176 = vmatpush3.bf16.msra.mxu0 %v12634_v16  ;;  %v12647_v3 = vld [vmem:[%s13361_s12 + $0x7a8] sm:$0xff]   ;;  %v12650_v16 = vld [vmem:[%s13361_s12 + $0x7b0] sm:$0xff]  }
 0x118   : > { %v13899_v25 = vadd.f32 %v10666_v23, %v10665_v21  ;;  %v10668_v26 = vpop.f32.mrb[10].mxu0  ;;  %v10705_v29 = vpop.f32.mrb[8].mxu1  ;;  %v12636_v21 = vld [vmem:[%s13361_s12 + $0x750] sm:$0xff]  }
 0x119   : > { %v10669_v32 = vpop.f32.mrb[11].mxu0  ;;  %v10706_v36 = vpop.f32.mrb[9].mxu1  ;;  %4270 = vmatmul.mubr.bf16.gmra.mrb[96].mxu1 %v13063_v24  ;;  %v12652_v22 = vld [vmem:[%s13361_s12 + $0x830] sm:$0xff]  }
 0x11a   : > { %v13913_v35 = vadd.f32 %v10669_v32, %v10668_v26  ;;  %v13921_v40 = vadd.f32 %v10706_v36, %v10705_v29  ;;  %v10708_v42 = vpop.f32.mrb[10].mxu1  ;;  %v12637_v26 = vld [vmem:[%s13361_s12 + $0x718] sm:$0xff]   ;;  %11216 = vmatpush3.bf16.msra.mxu1 %v12636_v21  ;;  %v13064_v29 = vld [vmem:[%s15612_s1 + $0x1e4] ss:$76 sps:$4 sm:$0xff]   ;;  %v2202_v62 = vadd.f32 %v13899_v25, %v14008_v56  ;;  %v14029_v25 = vpop.permute.xlu1 %845 }
 0x11b   : > { %v10709_v45 = vpop.f32.mrb[11].mxu1  ;;  %4277 = vmatprep.mubr.bf16.mxu1 %v13064_v29  ;;  %11177 = vmatprep.subr.bf16.mxu0 %v12637_v26 }
 0x11c   : > { %v13927_v47 = vadd.f32 %v10709_v45, %v10708_v42  ;;  %11178 = vmatpush3.bf16.msra.mxu0 %v12638_v28  ;;  %11217 = vmatprep.subr.bf16.mxu1 %v12639_v31  ;;  %v12641_v42 = vld [vmem:[%s13361_s12 + $0x720] sm:$0xff]  }
 0x11d   : > { %v12642_v45 = vld [vmem:[%s13361_s12 + $0x6e0] sm:$0xff]   ;;  %11179 = vmatprep.subr.bf16.mxu0 %v12641_v42  ;;  %v12656_v42 = vld [vmem:[%s13361_s12 + $0x838] sm:$0xff]  }
 0x11e   : > { %v10671_v52 = vpop.f32.mrb[12].mxu0  ;;  %11218 = vmatpush3.bf16.msra.mxu1 %v12640_v33 }
 0x11f   : > { %v10672_v54 = vpop.f32.mrb[13].mxu0 }
 0x120   : > { %v13944_v58 = vadd.f32 %v10672_v54, %v10671_v52  ;;  %v10674_v59 = vpop.f32.mrb[14].mxu0  ;;  %v10711_v0 = vpop.f32.mrb[12].mxu1  ;;  %v13065_v52 = vld [vmem:[%s15612_s1 + $0x1d8] ss:$76 sps:$4 sm:$0xff]   ;;  %11180 = vmatpush3.bf16.msra.mxu0 %v12642_v45 }
 0x121   : > { %v10675_v4 = vpop.f32.mrb[15].mxu0  ;;  %v10712_v8 = vpop.f32.mrb[13].mxu1  ;;  %4213 = vmatmul.mubr.bf16.gmra.mrb[108].mxu0 %v13065_v52  ;;  %v13066_v54 = vld [vmem:[%s15612_s1 + $0x24] ss:$76 sps:$4 sm:$0xff]   ;;  %4278 = vmatmul.mubr.bf16.gmra.mrb[100].mxu1 %v13067_v61  ;;  %v12661_v61 = vld [vmem:[%s13361_s12 + $0x808] sm:$0xff]  }
 0x122   : > { %v13958_v7 = vadd.f32 %v10675_v4, %v10674_v59  ;;  %v13961_v9 = vadd.f32 %v10712_v8, %v10711_v0  ;;  %v10714_v10 = vpop.f32.mrb[14].mxu1  ;;  %4318 = vmatprep.mubr.bf16.mxu0 %v13066_v54  ;;  %v13068_v0 = vld [vmem:[%s15612_s1 + $0x2c] ss:$76 sps:$4 sm:$0xff]   ;;  %11181 = vmatprep.subr.bf16.mxu0 %v12645_v20  ;;  %v14026_v4 = vadd.f32 %v13921_v40, %v2202_v62  ;;  %v14067_v45 = vpop.permute.xlu1 %855 }
 0x123   : > { %v10715_v14 = vpop.f32.mrb[15].mxu1  ;;  %4383 = vmatprep.mubr.bf16.mxu1 %v13068_v0  ;;  %v13069_v40 = vld [vmem:[%s15612_s1 + $0x20] ss:$76 sps:$4 sm:$0xff]   ;;  %v13073_v52 = vld [vmem:[%s15612_s1 + $0xb8] ss:$76 sps:$4 sm:$0xff]  }
 0x124   : > { %v13969_v17 = vadd.f32 %v10715_v14, %v10714_v10  ;;  %11182 = vmatpush3.bf16.msra.mxu0 %v12646_v63  ;;  %v2205_v10 = vadd.f32 %v13913_v35, %v14029_v25  ;;  %v12662_v62 = vld [vmem:[%s13361_s12 + $0x7c8] sm:$0xff]  }
 0x125   : > { %11247 = vmatprep.subr.bf16.mxu0 %v12649_v51  ;;  %v13076_v63 = vld [vmem:[%s15612_s1 + $0x15c] ss:$76 sps:$4 sm:$0xff]  }
 0x126   : > { %v10733_v23 = vpop.f32.mrb[16].mxu0  ;;  %v14040_v19 = vadd.f32 %v13927_v47, %v2205_v10  ;;  %v12653_v47 = vld [vmem:[%s13361_s12 + $0x7f8] sm:$0xff]  }
 0x127   : > { %v10734_v27 = vpop.f32.mrb[17].mxu0 }
 0x128   : > { %v10735_v15 = vadd.f32 %v10734_v27, %v10733_v23  ;;  %v10736_v30 = vpop.f32.mrb[18].mxu0  ;;  %v10773_v37 = vpop.f32.mrb[16].mxu1  ;;  %v13070_v23 = vld [vmem:[%s15612_s1 + $0xbc] ss:$76 sps:$4 sm:$0xff]  }
 0x129   : > { %v10737_v32 = vpop.f32.mrb[19].mxu0  ;;  %v10774_v44 = vpop.f32.mrb[17].mxu1  ;;  %4319 = vmatmul.mubr.bf16.vlgmr.msra.gmra.mrb[112].mxu0 %v13069_v40  ;;  %v13071_v27 = vld [vmem:[%s15612_s1 + $0x28] ss:$76 sps:$4 sm:$0xff]  }
 0x12a   : > { %v2316_v36 = vadd.f32 %v10735_v15, %v13931_v49  ;;  %v10738_v38 = vadd.f32 %v10737_v32, %v10736_v30  ;;  %v10775_v48 = vadd.f32 %v10774_v44, %v10773_v37  ;;  %v10776_v50 = vpop.f32.mrb[18].mxu1  ;;  %v12643_v49 = vld [vmem:[%s13361_s12 + $0x7a0] sm:$0xff]   ;;  %11248 = vmatpush3.bf16.msra.mxu0 %v12650_v16  ;;  %4326 = vmatprep.mubr.bf16.mxu0 %v13070_v23  ;;  %v12654_v15 = vld [vmem:[%s13361_s12 + $0x7b8] sm:$0xff]  }
 0x12b   : > { %v10777_v41 = vpop.f32.mrb[19].mxu1  ;;  %11219 = vmatprep.subr.bf16.mxu1 %v12643_v49  ;;  %v13072_v30 = vld [vmem:[%s15612_s1 + $0xc4] ss:$76 sps:$4 sm:$0xff]   ;;  %11249 = vmatprep.subr.bf16.mxu0 %v12653_v47  ;;  %v12670_v47 = vld [vmem:[%s13361_s12 + $0x7d8] sm:$0xff]  }
 0x12c   : > { %v2319_v46 = vadd.f32 %v10738_v38, %v2254_v6  ;;  %v14010_v55 = vadd.f32 %v10775_v48, %v2316_v36  ;;  %v10778_v59 = vadd.f32 %v10777_v41, %v10776_v50  ;;  %11220 = vmatpush3.bf16.msra.mxu1 %v12644_v11  ;;  %v12648_v6 = vld [vmem:[%s13361_s12 + $0x768] sm:$0xff]   ;;  %v12655_v36 = vld [vmem:[%s13361_s12 + $0x878] sm:$0xff]   ;;  %v12657_v44 = vld [vmem:[%s13361_s12 + $0x800] sm:$0xff]   ;;  %v2213_v48 = vadd.f32 %v13958_v7, %v14067_v45 }
 0x12d   : > { %11221 = vmatprep.subr.bf16.mxu1 %v12647_v3  ;;  %v13074_v41 = vld [vmem:[%s15612_s1 + $0x154] ss:$76 sps:$4 sm:$0xff]   ;;  %v12663_v3 = vld [vmem:[%s13361_s12 + $0x888] sm:$0xff]  }
 0x12e   : > { %v14022_v2 = vadd.f32 %v10778_v59, %v2319_v46  ;;  %v10739_v5 = vpop.f32.mrb[20].mxu0  ;;  %11250 = vmatpush3.bf16.msra.mxu0 %v12654_v15  ;;  %v14083_v7 = vadd.f32 %v13969_v17, %v2213_v48  ;;  %v13075_v59 = vld [vmem:[%s15612_s1 + $0xc0] ss:$76 sps:$4 sm:$0xff]  }
 0x12f   : > { %v10740_v8 = vpop.f32.mrb[21].mxu0  ;;  %11251 = vmatprep.subr.bf16.mxu0 %v12657_v44 }
 0x130   : > { %v10741_v12 = vadd.f32 %v10740_v8, %v10739_v5  ;;  %v10742_v14 = vpop.f32.mrb[22].mxu0  ;;  %11222 = vmatpush3.bf16.msra.mxu1 %v12648_v6  ;;  %v10779_v60 = vpop.f32.mrb[20].mxu1  ;;  %v12664_v8 = vld [vmem:[%s13361_s12 + $0x848] sm:$0xff]  }
 0x131   : > { %v10743_v35 = vpop.f32.mrb[23].mxu0  ;;  %v10780_v26 = vpop.f32.mrb[21].mxu1  ;;  %11287 = vmatprep.subr.bf16.mxu1 %v12651_v18  ;;  %4327 = vmatmul.mubr.bf16.gmra.mrb[116].mxu0 %v13073_v52  ;;  %v13077_v18 = vld [vmem:[%s15612_s1 + $0x150] ss:$76 sps:$4 sm:$0xff]  }
 0x132   : > { %v2324_v21 = vadd.f32 %v10741_v12, %v13980_v1  ;;  %v10744_v24 = vadd.f32 %v10743_v35, %v10742_v14  ;;  %v14051_v1 = vpop.permute.xlu0 %850  ;;  %v10781_v28 = vadd.f32 %v10780_v26, %v10779_v60  ;;  %v10782_v29 = vpop.f32.mrb[22].mxu1  ;;  %4334 = vmatprep.mubr.bf16.mxu0 %v13074_v41  ;;  %v12665_v12 = vld [vmem:[%s13361_s12 + $0x810] sm:$0xff]   ;;  %v12669_v26 = vld [vmem:[%s13361_s12 + $0x818] sm:$0xff]  }
 0x133   : > { %4384 = vmatmul.mubr.bf16.vlgmr.msra.gmra.mrb[104].mxu1 %v13071_v27  ;;  %v2210_v31 = vadd.f32 %v13944_v58, %v14051_v1  ;;  %v10783_v33 = vpop.f32.mrb[23].mxu1  ;;  %v12658_v58 = vld [vmem:[%s13361_s12 + $0x7c0] sm:$0xff]   ;;  %v12666_v60 = vld [vmem:[%s13361_s12 + $0x7d0] sm:$0xff]  }
 0x134   : > { %11288 = vmatpush3.bf16.msra.mxu1 %v12652_v22  ;;  %4391 = vmatprep.mubr.bf16.mxu1 %v13072_v30  ;;  %v2327_v32 = vadd.f32 %v10744_v24, %v2262_v53  ;;  %v14060_v37 = vadd.f32 %v10781_v28, %v2324_v21  ;;  %v10784_v38 = vadd.f32 %v10783_v33, %v10782_v29  ;;  %v12660_v53 = vld [vmem:[%s13361_s12 + $0x840] sm:$0xff]   ;;  %v12667_v21 = vld [vmem:[%s13361_s12 + $0x890] sm:$0xff]   ;;  %v12671_v30 = vld [vmem:[%s13361_s12 + $0x898] sm:$0xff]  }
 0x135   : > { %v14064_v43 = vadd.f32 %v13961_v9, %v2210_v31  ;;  %11289 = vmatprep.subr.bf16.mxu1 %v12655_v36  ;;  %v12659_v9 = vld [vmem:[%s13361_s12 + $0x880] sm:$0xff]   ;;  %11252 = vmatpush3.bf16.msra.mxu0 %v12658_v58  ;;  %v12668_v35 = vld [vmem:[%s13361_s12 + $0x850] sm:$0xff]  }
 0x136   : > { %v14069_v46 = vadd.f32 %v10784_v38, %v2327_v32  ;;  %v10745_v50 = vpop.f32.mrb[24].mxu0  ;;  %11253 = vmatprep.subr.bf16.mxu0 %v12661_v61  ;;  %v13079_v24 = vld [vmem:[%s15612_s1 + $0x158] ss:$76 sps:$4 sm:$0xff]   ;;  %v13080_v28 = vld [vmem:[%s15612_s1 + $0x1f4] ss:$76 sps:$4 sm:$0xff]   ;;  %v12678_v61 = vld [vmem:[%s13361_s12 + $0x7e8] sm:$0xff]  }
 0x137   : > { %v10746_v49 = vpop.f32.mrb[25].mxu0  ;;  %v12672_v32 = vld [vmem:[%s13361_s12 + $0x858] sm:$0xff]   ;;  %v12674_v58 = vld [vmem:[%s13361_s12 + $0x7e0] sm:$0xff]  }
 0x138   : > { %11290 = vmatpush3.bf16.msra.mxu1 %v12656_v42  ;;  %v10747_v11 = vadd.f32 %v10746_v49, %v10745_v50  ;;  %v10748_v54 = vpop.f32.mrb[26].mxu0  ;;  %v10785_v20 = vpop.f32.mrb[24].mxu1  ;;  %v12673_v42 = vld [vmem:[%s13361_s12 + $0x820] sm:$0xff]  }
 0x139   : > { %11291 = vmatprep.subr.bf16.mxu1 %v12659_v9  ;;  %v10749_v0 = vpop.f32.mrb[27].mxu0  ;;  %v10786_v6 = vpop.f32.mrb[25].mxu1  ;;  %11254 = vmatpush3.bf16.msra.mxu0 %v12662_v62  ;;  %v13081_v9 = vld [vmem:[%s15612_s1 + $0x1e8] ss:$76 sps:$4 sm:$0xff]  }
 0x13a   : > { %v2332_v17 = vadd.f32 %v10747_v11, %v14026_v4  ;;  %v10750_v5 = vadd.f32 %v10749_v0, %v10748_v54  ;;  %v10787_v51 = vadd.f32 %v10786_v6, %v10785_v20  ;;  %v10788_v10 = vpop.f32.mrb[26].mxu1  ;;  %4335 = vmatmul.mubr.bf16.gmra.mrb[120].mxu0 %v13077_v18  ;;  %11255 = vmatprep.subr.bf16.mxu0 %v12665_v12  ;;  %v13082_v41 = vld [vmem:[%s15612_s1 + $0x34] ss:$76 sps:$4 sm:$0xff]   ;;  %v13083_v54 = vld [vmem:[%s15612_s1 + $0x1f0] ss:$76 sps:$4 sm:$0xff]   ;;  %v12680_v0 = vld [vmem:[%s13361_s12 + $0x868] sm:$0xff]  }
 0x13b   : > { %4392 = vmatmul.mubr.bf16.gmra.mrb[108].mxu1 %v13075_v59  ;;  %v10789_v16 = vpop.f32.mrb[27].mxu1  ;;  %v12677_v59 = vld [vmem:[%s13361_s12 + $0x828] sm:$0xff]   ;;  %v13085_v12 = vld [vmem:[%s15612_s1 + $0x30] ss:$76 sps:$4 sm:$0xff]  }
 0x13c   : > { %11292 = vmatpush3.bf16.msra.mxu1 %v12660_v53  ;;  %4399 = vmatprep.mubr.bf16.mxu1 %v13076_v63  ;;  %v2335_v14 = vadd.f32 %v10750_v5, %v14040_v19  ;;  %v14099_v4 = vadd.f32 %v10787_v51, %v2332_v17  ;;  %v10790_v40 = vadd.f32 %v10789_v16, %v10788_v10  ;;  %v13078_v19 = vld [vmem:[%s15612_s1 + $0x1ec] ss:$76 sps:$4 sm:$0xff]   ;;  %v12676_v53 = vld [vmem:[%s13361_s12 + $0x860] sm:$0xff]   ;;  %v13084_v20 = vld [vmem:[%s15612_s1 + $0x3c] ss:$76 sps:$4 sm:$0xff]  }
 0x13d   : > { %11293 = vmatprep.subr.bf16.mxu1 %v12663_v3  ;;  %11256 = vmatpush3.bf16.msra.mxu0 %v12666_v60  ;;  %v12679_v63 = vld [vmem:[%s13361_s12 + $0x8a8] sm:$0xff]   ;;  %v12681_v5 = vld [vmem:[%s13361_s12 + $0x8f0] sm:$0xff]  }
 0x13e   : > { %4342 = vmatprep.mubr.bf16.mxu0 %v13078_v19  ;;  %v14109_v22 = vadd.f32 %v10790_v40, %v2335_v14  ;;  %v10751_v23 = vpop.f32.mrb[28].mxu0  ;;  %11257 = vmatprep.subr.bf16.mxu0 %v12669_v26  ;;  %v12682_v51 = vld [vmem:[%s13361_s12 + $0x8b0] sm:$0xff]   ;;  %v12683_v14 = vld [vmem:[%s13361_s12 + $0x8f8] sm:$0xff]  }
 0x13f   : > { %v10752_v27 = vpop.f32.mrb[29].mxu0  ;;  %v12684_v40 = vld [vmem:[%s13361_s12 + $0x8b8] sm:$0xff]   ;;  %v13088_v26 = vld [vmem:[%s15612_s1 + $0xd4] ss:$76 sps:$4 sm:$0xff]  }
 0x140   : > { %11294 = vmatpush3.bf16.msra.mxu1 %v12664_v8  ;;  %v10753_v29 = vadd.f32 %v10752_v27, %v10751_v23  ;;  %v10754_v15 = vpop.f32.mrb[30].mxu0  ;;  %v10791_v36 = vpop.f32.mrb[28].mxu1  ;;  %v13086_v18 = vld [vmem:[%s15612_s1 + $0xcc] ss:$76 sps:$4 sm:$0xff]  }
 0x141   : > { %11295 = vmatprep.subr.bf16.mxu1 %v12667_v21  ;;  %v10755_v31 = vpop.f32.mrb[31].mxu0  ;;  %11258 = vmatpush3.bf16.msra.mxu0 %v12670_v47  ;;  %v10792_v44 = vpop.f32.mrb[29].mxu1  ;;  %v13087_v19 = vld [vmem:[%s15612_s1 + $0x38] ss:$76 sps:$4 sm:$0xff]  }
 0x142   : > { %v2340_v33 = vadd.f32 %v10753_v29, %v14064_v43  ;;  %v10756_v38 = vadd.f32 %v10755_v31, %v10754_v15  ;;  %v10793_v50 = vadd.f32 %v10792_v44, %v10791_v36  ;;  %v10794_v52 = vpop.f32.mrb[30].mxu1  ;;  %4343 = vmatmul.mubr.bf16.gmra.mrb[124].mxu0 %v13081_v9  ;;  %11259 = vmatprep.subr.bf16.mxu0 %v12673_v42  ;;  %v12675_v43 = vld [vmem:[%s13361_s12 + $0x8a0] sm:$0xff]   ;;  %v12688_v31 = vld [vmem:[%s13361_s12 + $0x908] sm:$0xff]   ;;  %v12691_v44 = vld [vmem:[%s13361_s12 + $0x910] sm:$0xff]  }
 0x143   : > { %4400 = vmatmul.mubr.bf16.gmra.mrb[112].mxu1 %v13079_v24  ;;  %v10795_v49 = vpop.f32.mrb[31].mxu1  ;;  %4448 = vmatprep.mubr.bf16.mxu0 %v13082_v41  ;;  %v13092_v41 = vld [vmem:[%s15612_s1 + $0x16c] ss:$76 sps:$4 sm:$0xff]  }
 0x144   : > { %11296 = vmatpush3.bf16.msra.mxu1 %v12668_v35  ;;  %4407 = vmatprep.mubr.bf16.mxu1 %v13080_v28  ;;  %v2343_v48 = vadd.f32 %v10756_v38, %v14083_v7  ;;  %v14133_v7 = vadd.f32 %v10793_v50, %v2340_v33  ;;  %v10796_v11 = vadd.f32 %v10795_v49, %v10794_v52  ;;  %v12687_v28 = vld [vmem:[%s13361_s12 + $0x930] sm:$0xff]   ;;  %v12690_v33 = vld [vmem:[%s13361_s12 + $0x938] sm:$0xff]   ;;  %v12689_v38 = vld [vmem:[%s13361_s12 + $0x8c8] sm:$0xff]  }
 0x145   : > { %11297 = vmatprep.subr.bf16.mxu1 %v12671_v30  ;;  %11260 = vmatpush3.bf16.msra.mxu0 %v12674_v58  ;;  %v12686_v30 = vld [vmem:[%s13361_s12 + $0x8c0] sm:$0xff]   ;;  %v13090_v50 = vld [vmem:[%s15612_s1 + $0xd0] ss:$76 sps:$4 sm:$0xff]  }
 0x146   : > { %v14143_v62 = vadd.f32 %v10796_v11, %v2343_v48  ;;  %11261 = vmatprep.subr.bf16.mxu0 %v12677_v59  ;;  %v10813_v17 = vpop.f32.mrb[32].mxu0  ;;  %v12693_v52 = vld [vmem:[%s13361_s12 + $0x940] sm:$0xff]   ;;  %v12692_v11 = vld [vmem:[%s13361_s12 + $0x8d0] sm:$0xff]  }
 0x147   : > { %v10814_v3 = vpop.f32.mrb[33].mxu0 }
 0x148   : > { %11298 = vmatpush3.bf16.msra.mxu1 %v12672_v32  ;;  %v10815_v6 = vadd.f32 %v10814_v3, %v10813_v17  ;;  %v10816_v8 = vpop.f32.mrb[34].mxu0  ;;  %v10853_v10 = vpop.f32.mrb[32].mxu1  ;;  %v12694_v17 = vld [vmem:[%s13361_s12 + $0x918] sm:$0xff]  }
 0x149   : > { %11299 = vmatprep.subr.bf16.mxu1 %v12675_v43  ;;  %11262 = vmatpush3.bf16.msra.mxu0 %v12678_v61  ;;  %v10817_v60 = vpop.f32.mrb[35].mxu0  ;;  %v10854_v35 = vpop.f32.mrb[33].mxu1  ;;  %v13091_v43 = vld [vmem:[%s15612_s1 + $0x164] ss:$76 sps:$4 sm:$0xff]   ;;  %v12696_v61 = vld [vmem:[%s13361_s12 + $0x948] sm:$0xff]  }
 0x14a   : > { %11327 = vmatprep.subr.bf16.mxu0 %v12681_v5  ;;  %v2446_v16 = vadd.f32 %v10815_v6, %v14010_v55  ;;  %v10818_v21 = vadd.f32 %v10817_v60, %v10816_v8  ;;  %v12685_v55 = vld [vmem:[%s13361_s12 + $0x900] sm:$0xff]   ;;  %v10855_v23 = vadd.f32 %v10854_v35, %v10853_v10  ;;  %v10856_v24 = vpop.f32.mrb[34].mxu1  ;;  %v12699_v8 = vld [vmem:[%s13361_s12 + $0x950] sm:$0xff]   ;;  %v12702_v35 = vld [vmem:[%s13361_s12 + $0x958] sm:$0xff]  }
 0x14b   : > { %4408 = vmatmul.mubr.bf16.gmra.mrb[116].mxu1 %v13083_v54  ;;  %v10857_v47 = vpop.f32.mrb[35].mxu1  ;;  %v13093_v6 = vld [vmem:[%s15612_s1 + $0x160] ss:$76 sps:$4 sm:$0xff]  }
 0x14c   : > { %11300 = vmatpush3.bf16.msra.mxu1 %v12676_v53  ;;  %4513 = vmatprep.mubr.bf16.mxu1 %v13084_v20  ;;  %v2449_v27 = vadd.f32 %v10818_v21, %v14022_v2  ;;  %v14167_v29 = vadd.f32 %v10855_v23, %v2446_v16  ;;  %v10858_v15 = vadd.f32 %v10857_v47, %v10856_v24  ;;  %v13089_v2 = vld [vmem:[%s15612_s1 + $0xc8] ss:$76 sps:$4 sm:$0xff]   ;;  %v12697_v16 = vld [vmem:[%s13361_s12 + $0x920] sm:$0xff]  }
 0x14d   : > { %11301 = vmatprep.subr.bf16.mxu1 %v12679_v63  ;;  %4449 = vmatmul.mubr.bf16.vlgmr.msra.gmra.mrb[128].mxu0 %v13085_v12 }
 0x14e   : > { %11328 = vmatpush3.bf16.msra.mxu0 %v12682_v51  ;;  %4456 = vmatprep.mubr.bf16.mxu0 %v13086_v18  ;;  %v14171_v32 = vadd.f32 %v10858_v15, %v2449_v27  ;;  %v10819_v36 = vpop.f32.mrb[36].mxu0  ;;  %v12695_v51 = vld [vmem:[%s13361_s12 + $0x8d8] sm:$0xff]   ;;  %v12700_v27 = vld [vmem:[%s13361_s12 + $0x928] sm:$0xff]  }
 0x14f   : > { %11329 = vmatprep.subr.bf16.mxu0 %v12683_v14  ;;  %v10820_v42 = vpop.f32.mrb[37].mxu0  ;;  %v13095_v14 = vld [vmem:[%s15612_s1 + $0x168] ss:$76 sps:$4 sm:$0xff]  }
 0x150   : > { %11302 = vmatpush3.bf16.msra.mxu1 %v12680_v0  ;;  %v10821_v58 = vadd.f32 %v10820_v42, %v10819_v36  ;;  %v10822_v48 = vpop.f32.mrb[38].mxu0  ;;  %v10859_v9 = vpop.f32.mrb[36].mxu1  ;;  %v12701_v36 = vld [vmem:[%s13361_s12 + $0x8e8] sm:$0xff]  }
 0x151   : > { %12155 = vmatprep.subr.bf16.mxu1 %v12687_v28  ;;  %v10823_v53 = vpop.f32.mrb[39].mxu0  ;;  %v10860_v59 = vpop.f32.mrb[37].mxu1  ;;  %v13099_v42 = vld [vmem:[%s15612_s1 + $0x200] ss:$76 sps:$4 sm:$0xff]  }
 0x152   : > { %11330 = vmatpush3.bf16.msra.mxu0 %v12684_v40  ;;  %v2454_v49 = vadd.f32 %v10821_v58, %v14060_v37  ;;  %v10824_v54 = vadd.f32 %v10823_v53, %v10822_v48  ;;  %v10861_v20 = vadd.f32 %v10860_v59, %v10859_v9  ;;  %v10862_v63 = vpop.f32.mrb[38].mxu1  ;;  %v13096_v40 = vld [vmem:[%s15612_s1 + $0x204] ss:$76 sps:$4 sm:$0xff]   ;;  %v13100_v58 = vld [vmem:[%s15612_s1 + $0x48] ss:$76 sps:$4 sm:$0xff]  }
 0x153   : > { %4514 = vmatmul.mubr.bf16.vlgmr.msra.gmra.mrb[120].mxu1 %v13087_v19  ;;  %11331 = vmatprep.subr.bf16.mxu0 %v12685_v55  ;;  %v10863_v0 = vpop.f32.mrb[39].mxu1  ;;  %v12698_v55 = vld [vmem:[%s13361_s12 + $0x8e0] sm:$0xff]   ;;  %v12709_v59 = vld [vmem:[%s13361_s12 + $0xa28] sm:$0xff]  }
 0x154   : > { %4521 = vmatprep.mubr.bf16.mxu1 %v13088_v26  ;;  %12156 = vmatpush3.bf16.msra.mxu1 %v12687_v28  ;;  %v2457_v37 = vadd.f32 %v10824_v54, %v14069_v46  ;;  %v14194_v3 = vadd.f32 %v10861_v20, %v2454_v49  ;;  %v10864_v5 = vadd.f32 %v10863_v0, %v10862_v63  ;;  %v13094_v46 = vld [vmem:[%s15612_s1 + $0x1fc] ss:$76 sps:$4 sm:$0xff]   ;;  %v13101_v54 = vld [vmem:[%s15612_s1 + $0x40] ss:$76 sps:$4 sm:$0xff]  }
 0x155   : > { %4457 = vmatmul.mubr.bf16.gmra.mrb[132].mxu0 %v13089_v2  ;;  %12157 = vmatprep.subr.bf16.mxu1 %v12690_v33  ;;  %v13098_v2 = vld [vmem:[%s15612_s1 + $0x44] ss:$76 sps:$4 sm:$0xff]  }
 0x156   : > { %11332 = vmatpush3.bf16.msra.mxu0 %v12686_v30  ;;  %4464 = vmatprep.mubr.bf16.mxu0 %v13091_v43  ;;  %v14204_v10 = vadd.f32 %v10864_v5, %v2457_v37  ;;  %v10825_v12 = vpop.f32.mrb[40].mxu0  ;;  %v12707_v43 = vld [vmem:[%s13361_s12 + $0x9a8] sm:$0xff]  }
 0x157   : > { %11333 = vmatprep.subr.bf16.mxu0 %v12688_v31  ;;  %v10826_v60 = vpop.f32.mrb[41].mxu0  ;;  %v13097_v31 = vld [vmem:[%s15612_s1 + $0x1f8] ss:$76 sps:$4 sm:$0xff]   ;;  %v13102_v37 = vld [vmem:[%s15612_s1 + $0xdc] ss:$76 sps:$4 sm:$0xff]  }
 0x158   : > { %12158 = vmatpush3.bf16.msra.mxu1 %v12690_v33  ;;  %v10827_v18 = vadd.f32 %v10826_v60, %v10825_v12  ;;  %v10828_v21 = vpop.f32.mrb[42].mxu0  ;;  %v10865_v24 = vpop.f32.mrb[40].mxu1  ;;  %v12705_v33 = vld [vmem:[%s13361_s12 + $0xa20] sm:$0xff]  }
 0x159   : > { %12159 = vmatprep.subr.bf16.mxu1 %v12693_v52  ;;  %v10829_v19 = vpop.f32.mrb[43].mxu0  ;;  %v10866_v47 = vpop.f32.mrb[41].mxu1  ;;  %v13103_v5 = vld [vmem:[%s15612_s1 + $0xe0] ss:$76 sps:$4 sm:$0xff]  }
 0x15a   : > { %11334 = vmatpush3.bf16.msra.mxu0 %v12689_v38  ;;  %v2462_v23 = vadd.f32 %v10827_v18, %v14099_v4  ;;  %v10830_v26 = vadd.f32 %v10829_v19, %v10828_v21  ;;  %v10867_v28 = vadd.f32 %v10866_v47, %v10865_v24  ;;  %v10868_v15 = vpop.f32.mrb[42].mxu1  ;;  %v12712_v18 = vld [vmem:[%s13361_s12 + $0x970] sm:$0xff]   ;;  %v13105_v19 = vld [vmem:[%s15612_s1 + $0xd8] ss:$76 sps:$4 sm:$0xff]  }
 0x15b   : > { %4522 = vmatmul.mubr.bf16.gmra.mrb[124].mxu1 %v13090_v50  ;;  %11335 = vmatprep.subr.bf16.mxu0 %v12691_v44  ;;  %v10869_v4 = vpop.f32.mrb[43].mxu1  ;;  %v12703_v44 = vld [vmem:[%s13361_s12 + $0x9a0] sm:$0xff]   ;;  %v12716_v24 = vld [vmem:[%s13361_s12 + $0x978] sm:$0xff]  }
 0x15c   : > { %4529 = vmatprep.mubr.bf16.mxu1 %v13092_v41  ;;  %12160 = vmatpush3.bf16.msra.mxu1 %v12693_v52  ;;  %v2465_v30 = vadd.f32 %v10830_v26, %v14109_v22  ;;  %v14226_v38 = vadd.f32 %v10867_v28, %v2462_v23  ;;  %v10870_v22 = vadd.f32 %v10869_v4, %v10868_v15  ;;  %v12704_v52 = vld [vmem:[%s13361_s12 + $0x960] sm:$0xff]   ;;  %v13107_v15 = vld [vmem:[%s15612_s1 + $0x210] ss:$76 sps:$4 sm:$0xff]  }
 0x15d   : > { %4465 = vmatmul.mubr.bf16.gmra.mrb[136].mxu0 %v13093_v6  ;;  %12161 = vmatprep.subr.bf16.mxu1 %v12696_v61  ;;  %v12706_v41 = vld [vmem:[%s13361_s12 + $0x9e0] sm:$0xff]   ;;  %v12711_v6 = vld [vmem:[%s13361_s12 + $0x9b0] sm:$0xff]  }
 0x15e   : > { %11336 = vmatpush3.bf16.msra.mxu0 %v12692_v11  ;;  %4472 = vmatprep.mubr.bf16.mxu0 %v13094_v46  ;;  %v14236_v48 = vadd.f32 %v10870_v22, %v2465_v30  ;;  %v10831_v50 = vpop.f32.mrb[44].mxu0  ;;  %v12710_v46 = vld [vmem:[%s13361_s12 + $0x9e8] sm:$0xff]   ;;  %v13106_v26 = vld [vmem:[%s15612_s1 + $0x174] ss:$76 sps:$4 sm:$0xff]  }
 0x15f   : > { %11337 = vmatprep.subr.bf16.mxu0 %v12694_v17  ;;  %v10832_v9 = vpop.f32.mrb[45].mxu0  ;;  %v12708_v17 = vld [vmem:[%s13361_s12 + $0x968] sm:$0xff]   ;;  %v12719_v47 = vld [vmem:[%s13361_s12 + $0x9c0] sm:$0xff]  }
 0x160   : > { %12162 = vmatpush3.bf16.msra.mxu1 %v12696_v61  ;;  %v10833_v49 = vadd.f32 %v10832_v9, %v10831_v50  ;;  %v10834_v53 = vpop.f32.mrb[46].mxu0  ;;  %v10871_v61 = vpop.f32.mrb[44].mxu1  ;;  %v12721_v22 = vld [vmem:[%s13361_s12 + $0xa40] sm:$0xff]  }
 0x161   : > { %12163 = vmatprep.subr.bf16.mxu1 %v12699_v8  ;;  %v10835_v11 = vpop.f32.mrb[47].mxu0  ;;  %v10872_v0 = vpop.f32.mrb[45].mxu1  ;;  %v12722_v50 = vld [vmem:[%s13361_s12 + $0xa00] sm:$0xff]  }
 0x162   : > { %11338 = vmatpush3.bf16.msra.mxu0 %v12695_v51  ;;  %v10836_v20 = vadd.f32 %v10835_v11, %v10834_v53  ;;  %v2470_v63 = vadd.f32 %v10833_v49, %v14133_v7  ;;  %v10873_v7 = vadd.f32 %v10872_v0, %v10871_v61  ;;  %v12724_v61 = vld [vmem:[%s13361_s12 + $0x988] sm:$0xff]  }
 0x163   : > { %4530 = vmatmul.mubr.bf16.gmra.mrb[128].mxu1 %v13095_v14  ;;  %11339 = vmatprep.subr.bf16.mxu0 %v12697_v16  ;;  %v13104_v14 = vld [vmem:[%s15612_s1 + $0x178] ss:$76 sps:$4 sm:$0xff]   ;;  %v12713_v16 = vld [vmem:[%s13361_s12 + $0xa30] sm:$0xff]  }
 0x164   : > { %4537 = vmatprep.mubr.bf16.mxu1 %v13096_v40  ;;  %12164 = vmatpush3.bf16.msra.mxu1 %v12699_v8  ;;  %v10874_v8 = vpop.f32.mrb[46].mxu1  ;;  %v2473_v51 = vadd.f32 %v10836_v20, %v14143_v62  ;;  %v14262_v60 = vadd.f32 %v10873_v7, %v2470_v63  ;;  %v12715_v62 = vld [vmem:[%s13361_s12 + $0x9b8] sm:$0xff]  }
 0x165   : > { %4473 = vmatmul.mubr.bf16.gmra.mrb[140].mxu0 %v13097_v31  ;;  %12165 = vmatprep.subr.bf16.mxu1 %v12702_v35  ;;  %v10875_v12 = vpop.f32.mrb[47].mxu1  ;;  %v12718_v31 = vld [vmem:[%s13361_s12 + $0x9f8] sm:$0xff]  }
 0x166   : > { %11340 = vmatpush3.bf16.msra.mxu0 %v12698_v55  ;;  %4578 = vmatprep.mubr.bf16.mxu0 %v13098_v2  ;;  %v10876_v40 = vadd.f32 %v10875_v12, %v10874_v8  ;;  %v12717_v55 = vld [vmem:[%s13361_s12 + $0xa38] sm:$0xff]   ;;  %v10893_v23 = vpop.f32.mrb[48].mxu0 }
 0x167   : > { %11341 = vmatprep.subr.bf16.mxu0 %v12700_v27  ;;  %v10894_v27 = vpop.f32.mrb[49].mxu0  ;;  %v13108_v2 = vld [vmem:[%s15612_s1 + $0xc] ss:$76 sps:$4 sm:$0xff]  }
 0x168   : > { %12166 = vmatpush3.bf16.msra.mxu1 %v12702_v35  ;;  %v14266_v21 = vadd.f32 %v10876_v40, %v2473_v51  ;;  %v12714_v35 = vld [vmem:[%s13361_s12 + $0x9f0] sm:$0xff]   ;;  %v10895_v28 = vadd.f32 %v10894_v27, %v10893_v23  ;;  %v10896_v30 = vpop.f32.mrb[50].mxu0  ;;  %v10933_v4 = vpop.f32.mrb[48].mxu1 }
 0x169   : > { %11417 = vmatprep.subr.bf16.mxu1 %v12705_v33  ;;  %v12720_v33 = vld [vmem:[%s13361_s12 + $0x980] sm:$0xff]   ;;  %v12729_v51 = vld [vmem:[%s13361_s12 + $0xa50] sm:$0xff]  }
 0x16a   : > { %11342 = vmatpush3.bf16.msra.mxu0 %v12701_v36  ;;  %v10897_v36 = vpop.f32.mrb[51].mxu0 }
 0x16b   : > { %4538 = vmatmul.mubr.bf16.gmra.mrb[132].mxu1 %v13099_v42  ;;  %11377 = vmatprep.subr.bf16.mxu0 %v12703_v44  ;;  %v10898_v42 = vadd.f32 %v10897_v36, %v10896_v30  ;;  %v2576_v44 = vadd.f32 %v10895_v28, %v14167_v29  ;;  %v13109_v29 = vld [vmem:[%s15612_s1 + $0x170] ss:$76 sps:$4 sm:$0xff]   ;;  %v12735_v28 = vld [vmem:[%s13361_s12 + $0xaa0] sm:$0xff]  }
 0x16c   : > { %12167 = vmatprep.mubr.msk.bf16.mxu1 %vm2138_vm0, %v13100_v58  ;;  %v10934_v58 = vpop.f32.mrb[49].mxu1  ;;  %v12734_v30 = vld [vmem:[%s13361_s12 + $0xa18] sm:$0xff]   ;;  %v12737_v36 = vld [vmem:[%s13361_s12 + $0xb20] sm:$0xff]  }
 0x16d   : > { %4579 = vmatmul.mubr.bf16.vlgmr.msra.gmra.mrb[144].mxu0 %v13101_v54  ;;  %v10936_v9 = vpop.f32.mrb[50].mxu1  ;;  %v2579_v49 = vadd.f32 %v10898_v42, %v14171_v32  ;;  %v12725_v54 = vld [vmem:[%s13361_s12 + $0xa48] sm:$0xff]   ;;  %v12738_v42 = vld [vmem:[%s13361_s12 + $0xae0] sm:$0xff]  }
 0x16e   : > { %11378 = vmatpush3.bf16.msra.mxu0 %v12704_v52  ;;  %4586 = vmatprep.mubr.bf16.mxu0 %v13102_v37  ;;  %v10935_v52 = vadd.f32 %v10934_v58, %v10933_v4  ;;  %v10937_v53 = vpop.f32.mrb[51].mxu1  ;;  %v13110_v32 = vld [vmem:[%s15612_s1 + $0x20c] ss:$76 sps:$4 sm:$0xff]   ;;  %v12736_v4 = vld [vmem:[%s13361_s12 + $0xa60] sm:$0xff]  }
 0x16f   : > { %11379 = vmatprep.subr.bf16.mxu0 %v12707_v43  ;;  %v12723_v43 = vld [vmem:[%s13361_s12 + $0x9c8] sm:$0xff]   ;;  %v10938_v11 = vadd.f32 %v10937_v53, %v10936_v9 }
 0x170   : > { %v10939_v7 = vpop.f32.mrb[52].mxu1 }
 0x171   : > { %v14302_v20 = vadd.f32 %v10938_v11, %v2579_v49  ;;  %v12741_v49 = vld [vmem:[%s13361_s12 + $0xb28] sm:$0xff]  }
 0x172   : > { %11380 = vmatpush3.bf16.msra.mxu0 %v12708_v17  ;;  %v12727_v17 = vld [vmem:[%s13361_s12 + $0x9d0] sm:$0xff]  }
 0x173   : > { %12168 = vmatmul.mubr.msk.bf16.vlgmr.msra.gmra.mrb[136].mxu1 %vm2138_vm0, %v13103_v5  ;;  %11381 = vmatprep.subr.bf16.mxu0 %v12711_v6  ;;  %v12726_v5 = vld [vmem:[%s13361_s12 + $0xa08] sm:$0xff]   ;;  %v12728_v6 = vld [vmem:[%s13361_s12 + $0x990] sm:$0xff]  }
 0x174   : > { %11418 = vmatpush3.bf16.msra.mxu1 %v12706_v41  ;;  %12171 = vmatprep.mubr.msk.bf16.mxu1 %vm2138_vm0, %v13104_v14  ;;  %v14292_v41 = vadd.f32 %v10935_v52, %v2576_v44  ;;  %v10940_v14 = vpop.f32.mrb[53].mxu1  ;;  %v12739_v52 = vld [vmem:[%s13361_s12 + $0xaa8] sm:$0xff]  }
 0x175   : > { %11419 = vmatprep.subr.bf16.mxu1 %v12709_v59  ;;  %4587 = vmatmul.mubr.bf16.gmra.mrb[148].mxu0 %v13105_v19  ;;  %v10899_v59 = vpop.f32.mrb[52].mxu0  ;;  %v10941_v40 = vadd.f32 %v10940_v14, %v10939_v7 }
 0x176   : > { %11382 = vmatpush3.bf16.msra.mxu0 %v12712_v18  ;;  %4594 = vmatprep.mubr.bf16.mxu0 %v13106_v26  ;;  %v10900_v63 = vpop.f32.mrb[53].mxu0  ;;  %v10942_v18 = vpop.f32.mrb[54].mxu1  ;;  %v12732_v26 = vld [vmem:[%s13361_s12 + $0x998] sm:$0xff]  }
 0x177   : > { %11383 = vmatprep.subr.bf16.mxu0 %v12715_v62  ;;  %v10901_v37 = vadd.f32 %v10900_v63, %v10899_v59  ;;  %v10902_v0 = vpop.f32.mrb[54].mxu0  ;;  %v12731_v62 = vld [vmem:[%s13361_s12 + $0x9d8] sm:$0xff]   ;;  %v10943_v19 = vpop.f32.mrb[55].mxu1  ;;  %v12740_v59 = vld [vmem:[%s13361_s12 + $0xa68] sm:$0xff]   ;;  %v12743_v63 = vld [vmem:[%s13361_s12 + $0xab0] sm:$0xff]  }
 0x178   : > { %11420 = vmatpush3.bf16.msra.mxu1 %v12710_v46  ;;  %v10903_v8 = vpop.f32.mrb[55].mxu0  ;;  %v10944_v23 = vadd.f32 %v10943_v19, %v10942_v18 }
 0x179   : > { %11421 = vmatprep.subr.bf16.mxu1 %v12713_v16  ;;  %v10904_v46 = vadd.f32 %v10903_v8, %v10902_v0  ;;  %v2584_v12 = vadd.f32 %v10901_v37, %v14194_v3  ;;  %v12730_v16 = vld [vmem:[%s13361_s12 + $0xa10] sm:$0xff]   ;;  %v12742_v37 = vld [vmem:[%s13361_s12 + $0xae8] sm:$0xff]  }
 0x17a   : > { %11384 = vmatpush3.bf16.msra.mxu0 %v12716_v24  ;;  %v13111_v3 = vld [vmem:[%s15612_s1 + $0x208] ss:$76 sps:$4 sm:$0xff]   ;;  %v12733_v24 = vld [vmem:[%s13361_s12 + $0xa58] sm:$0xff]   ;;  %v13116_v0 = vld [vmem:[%s15612_s1 + $0xa4] ss:$76 sps:$4 sm:$0xff]  }
 0x17b   : > { %12172 = vmatmul.mubr.msk.bf16.gmra.mrb[140].mxu1 %vm2138_vm0, %v13107_v15  ;;  %11385 = vmatprep.subr.bf16.mxu0 %v12719_v47  ;;  %v10905_v47 = vpop.f32.mrb[56].mxu0 }
 0x17c   : > { %11422 = vmatpush3.bf16.msra.mxu1 %v12714_v35  ;;  %6006 = vmatprep.mubr.bf16.mxu1 %v13108_v2  ;;  %v2587_v35 = vadd.f32 %v10904_v46, %v14204_v10  ;;  %v13112_v10 = vld [vmem:[%s15612_s1 + $0x4] ss:$76 sps:$4 sm:$0xff]   ;;  %v10906_v15 = vpop.f32.mrb[57].mxu0  ;;  %v10945_v2 = vpop.f32.mrb[56].mxu1 }
 0x17d   : > { %11423 = vmatprep.subr.bf16.mxu1 %v12717_v55  ;;  %4595 = vmatmul.mubr.bf16.gmra.mrb[152].mxu0 %v13109_v29  ;;  %v14312_v55 = vadd.f32 %v10941_v40, %v2584_v12  ;;  %v13113_v29 = vld [vmem:[%s15612_s1] ss:$76 sps:$4 sm:$0xff]   ;;  %v12746_v46 = vld [vmem:[%s13361_s12 + $0xaf0] sm:$0xff]  }
 0x17e   : > { %11386 = vmatpush3.bf16.msra.mxu0 %v12720_v33  ;;  %4602 = vmatprep.mubr.bf16.mxu0 %v13110_v32  ;;  %v14322_v27 = vadd.f32 %v10944_v23, %v2587_v35  ;;  %v10908_v33 = vpop.f32.mrb[58].mxu0  ;;  %v12748_v35 = vld [vmem:[%s13361_s12 + $0xa78] sm:$0xff]  }
 0x17f   : > { %11387 = vmatprep.subr.bf16.mxu0 %v12723_v43 }
 0x180   : > { %11424 = vmatpush3.bf16.msra.mxu1 %v12718_v31  ;;  %v10907_v31 = vadd.f32 %v10906_v15, %v10905_v47  ;;  %v13118_v47 = vld [vmem:[%s15612_s1 + $0x134] ss:$76 sps:$4 sm:$0xff]  }
 0x181   : > { %11425 = vmatprep.subr.bf16.mxu1 %v12721_v22  ;;  %v10909_v22 = vpop.f32.mrb[59].mxu0  ;;  %v13119_v15 = vld [vmem:[%s15612_s1 + $0xa0] ss:$76 sps:$4 sm:$0xff]  }
 0x182   : > { %11388 = vmatpush3.bf16.msra.mxu0 %v12724_v61  ;;  %v10910_v44 = vadd.f32 %v10909_v22, %v10908_v33  ;;  %v2592_v58 = vadd.f32 %v10907_v31, %v14226_v38  ;;  %v13114_v61 = vld [vmem:[%s15612_s1 + $0x9c] ss:$76 sps:$4 sm:$0xff]   ;;  %v12752_v22 = vld [vmem:[%s13361_s12 + $0xa80] sm:$0xff]  }
 0x183   : > { %11389 = vmatprep.subr.bf16.mxu0 %v12727_v17  ;;  %v10911_v17 = vpop.f32.mrb[60].mxu0  ;;  %v13120_v33 = vld [vmem:[%s15612_s1 + $0x13c] ss:$76 sps:$4 sm:$0xff]  }
 0x184   : > { %11426 = vmatpush3.bf16.msra.mxu1 %v12722_v50  ;;  %v10946_v50 = vpop.f32.mrb[57].mxu1  ;;  %v2595_v53 = vadd.f32 %v10910_v44, %v14236_v48  ;;  %v13115_v48 = vld [vmem:[%s15612_s1 + $0x8] ss:$76 sps:$4 sm:$0xff]  }
 0x185   : > { %11427 = vmatprep.subr.bf16.mxu1 %v12725_v54  ;;  %4603 = vmatmul.mubr.bf16.gmra.mrb[156].mxu0 %v13111_v3  ;;  %v10947_v9 = vadd.f32 %v10946_v50, %v10945_v2  ;;  %v10948_v43 = vpop.f32.mrb[58].mxu1  ;;  %v13117_v3 = vld [vmem:[%s15612_s1 + $0x98] ss:$76 sps:$4 sm:$0xff]  }
 0x186   : > { %11390 = vmatpush3.bf16.msra.mxu0 %v12728_v6  ;;  %5941 = vmatprep.mubr.bf16.mxu0 %v13112_v10  ;;  %v10949_v11 = vpop.f32.mrb[59].mxu1  ;;  %v12745_v6 = vld [vmem:[%s13361_s12 + $0xb30] sm:$0xff]  }
 0x187   : > { %11391 = vmatprep.subr.bf16.mxu0 %v12731_v62  ;;  %v14336_v38 = vadd.f32 %v10947_v9, %v2592_v58  ;;  %v10950_v54 = vadd.f32 %v10949_v11, %v10948_v43  ;;  %v10951_v12 = vpop.f32.mrb[60].mxu1  ;;  %v12755_v58 = vld [vmem:[%s13361_s12 + $0xac8] sm:$0xff]  }
 0x188   : > { %11428 = vmatpush3.bf16.msra.mxu1 %v12726_v5  ;;  %v10912_v5 = vpop.f32.mrb[61].mxu0  ;;  %v10952_v62 = vpop.f32.mrb[61].mxu1  ;;  %v12757_v11 = vld [vmem:[%s13361_s12 + $0xb48] sm:$0xff]  }
 0x189   : > { %11429 = vmatprep.subr.bf16.mxu1 %v12729_v51  ;;  %v14345_v32 = vadd.f32 %v10950_v54, %v2595_v53  ;;  %v10913_v7 = vadd.f32 %v10912_v5, %v10911_v17  ;;  %v10914_v8 = vpop.f32.mrb[62].mxu0  ;;  %v12744_v51 = vld [vmem:[%s13361_s12 + $0xa70] sm:$0xff]   ;;  %v10953_v19 = vadd.f32 %v10952_v62, %v10951_v12  ;;  %v10954_v23 = vpop.f32.mrb[62].mxu1  ;;  %v12756_v54 = vld [vmem:[%s13361_s12 + $0xa88] sm:$0xff]   ;;  %v12763_v12 = vld [vmem:[%s13361_s12 + $0xad8] sm:$0xff]  }
 0x18a   : > { %11392 = vmatpush3.bf16.msra.mxu0 %v12732_v26  ;;  %v10915_v14 = vpop.f32.mrb[63].mxu0  ;;  %v10955_v10 = vpop.f32.mrb[63].mxu1  ;;  %v13121_v53 = vld [vmem:[%s15612_s1 + $0x130] ss:$76 sps:$4 sm:$0xff]   ;;  %v13124_v5 = vld [vmem:[%s15612_s1 + $0x1d4] ss:$76 sps:$4 sm:$0xff]  }
 0x18b   : > { %11457 = vmatprep.subr.bf16.mxu0 %v12735_v28  ;;  %v10916_v40 = vadd.f32 %v10915_v14, %v10914_v8  ;;  %v2600_v18 = vadd.f32 %v10913_v7, %v14262_v60  ;;  %v10956_v28 = vadd.f32 %v10955_v10, %v10954_v23  ;;  %v12149_v43 = vpop.f32.mrb[64].mxu1  ;;  %v12759_v17 = vld [vmem:[%s13361_s12 + $0xad0] sm:$0xff]   ;;  %v12767_v10 = vld [vmem:[%s13361_s12 + $0xba0] sm:$0xff]  }
 0x18c   : > { %11430 = vmatpush3.bf16.msra.mxu1 %v12730_v16  ;;  %v12747_v16 = vld [vmem:[%s13361_s12 + $0xab8] sm:$0xff]   ;;  %v12760_v7 = vld [vmem:[%s13361_s12 + $0xa90] sm:$0xff]  }
 0x18d   : > { %11431 = vmatprep.subr.bf16.mxu1 %v12733_v24  ;;  %5942 = vmatmul.mubr.bf16.vlgmr.msra.gmra.mrb[160].mxu0 %v13113_v29  ;;  %v12749_v24 = vld [vmem:[%s13361_s12 + $0xb38] sm:$0xff]   ;;  %v2603_v26 = vadd.f32 %v10916_v40, %v14266_v21  ;;  %v14363_v60 = vadd.f32 %v10953_v19, %v2600_v18  ;;  %v12751_v21 = vld [vmem:[%s13361_s12 + $0xac0] sm:$0xff]   ;;  %v2770_v29 = vpop.f32.mrb[65].mxu1  ;;  %v13125_v18 = vld [vmem:[%s15612_s1 + $0x1c8] ss:$76 sps:$4 sm:$0xff]  }
 0x18e   : > { %11458 = vmatpush3.bf16.msra.mxu0 %v12736_v4  ;;  %5949 = vmatprep.mubr.bf16.mxu0 %v13114_v61  ;;  %v10973_v4 = vpop.f32.mrb[64].mxu0  ;;  %v12764_v40 = vld [vmem:[%s13361_s12 + $0xa98] sm:$0xff]  }
 0x18f   : > { %11459 = vmatprep.subr.bf16.mxu0 %v12739_v52  ;;  %v14373_v31 = vadd.f32 %v10956_v28, %v2603_v26  ;;  %v10974_v2 = vpop.f32.mrb[65].mxu0  ;;  %v12754_v52 = vld [vmem:[%s13361_s12 + $0xb00] sm:$0xff]   ;;  %v13127_v26 = vld [vmem:[%s15612_s1 + $0x1d0] ss:$76 sps:$4 sm:$0xff]  }
 0x190   : > { %11432 = vmatpush3.bf16.msra.mxu1 %v12734_v30  ;;  %v12750_v30 = vld [vmem:[%s13361_s12 + $0xaf8] sm:$0xff]   ;;  %v10976_v44 = vpop.f32.mrb[66].mxu0 }
 0x191   : > { %11497 = vmatprep.subr.bf16.mxu1 %v12737_v36  ;;  %v12753_v36 = vld [vmem:[%s13361_s12 + $0xb40] sm:$0xff]   ;;  %v10977_v50 = vpop.f32.mrb[67].mxu0  ;;  %v12766_v28 = vld [vmem:[%s13361_s12 + $0xb18] sm:$0xff]  }
 0x192   : > { %11460 = vmatpush3.bf16.msra.mxu0 %v12740_v59  ;;  %v10978_v9 = vadd.f32 %v10977_v50, %v10976_v44  ;;  %v13122_v59 = vld [vmem:[%s15612_s1 + $0x1cc] ss:$76 sps:$4 sm:$0xff]   ;;  %v10979_v8 = vpop.f32.mrb[68].mxu0 }
 0x193   : > { %6007 = vmatmul.mubr.bf16.vlgmr.msra.gmra.mrb[144].mxu1 %v13115_v48  ;;  %11461 = vmatprep.subr.bf16.mxu0 %v12743_v63  ;;  %v13123_v63 = vld [vmem:[%s15612_s1 + $0x138] ss:$76 sps:$4 sm:$0xff]  }
 0x194   : > { %11498 = vmatpush3.bf16.msra.mxu1 %v12738_v42  ;;  %6014 = vmatprep.mubr.bf16.mxu1 %v13116_v0  ;;  %v10975_v42 = vadd.f32 %v10974_v2, %v10973_v4  ;;  %v2709_v48 = vadd.f32 %v10978_v9, %v14302_v20  ;;  %v12758_v0 = vld [vmem:[%s13361_s12 + $0xb08] sm:$0xff]   ;;  %v12761_v20 = vld [vmem:[%s13361_s12 + $0xb50] sm:$0xff]   ;;  %v12768_v4 = vld [vmem:[%s13361_s12 + $0xb60] sm:$0xff]  }
 0x195   : > { %11499 = vmatprep.subr.bf16.mxu1 %v12741_v49  ;;  %5950 = vmatmul.mubr.bf16.gmra.mrb[164].mxu0 %v13117_v3  ;;  %v12770_v2 = vld [vmem:[%s13361_s12 + $0xbe0] sm:$0xff]   ;;  %v13130_v9 = vld [vmem:[%s15612_s1 + $0xac] ss:$76 sps:$4 sm:$0xff]  }
 0x196   : > { %11462 = vmatpush3.bf16.msra.mxu0 %v12744_v51  ;;  %5957 = vmatprep.mubr.bf16.mxu0 %v13118_v47  ;;  %v2706_v49 = vadd.f32 %v10975_v42, %v14292_v41  ;;  %v12150_v41 = vpop.f32.mrb[66].mxu1  ;;  %v12762_v51 = vld [vmem:[%s13361_s12 + $0xb10] sm:$0xff]  }
 0x197   : > { %11463 = vmatprep.subr.bf16.mxu0 %v12747_v16  ;;  %v13129_v42 = vld [vmem:[%s15612_s1 + $0x10] ss:$76 sps:$4 sm:$0xff]  }
 0x198   : > { %11500 = vmatpush3.bf16.msra.mxu1 %v12742_v37  ;;  %v14391_v61 = vadd.f32 %v2770_v29, %v2706_v49  ;;  %v2773_v37 = vpop.f32.mrb[67].mxu1  ;;  %v13131_v49 = vld [vmem:[%s15612_s1 + $0x18] ss:$76 sps:$4 sm:$0xff]  }
 0x199   : > { %11501 = vmatprep.subr.bf16.mxu1 %v12745_v6  ;;  %v14402_v6 = vadd.f32 %v2773_v37, %v2709_v48  ;;  %v12777_v48 = vld [vmem:[%s13361_s12 + $0xc30] sm:$0xff]  }
 0x19a   : > { %11464 = vmatpush3.bf16.msra.mxu0 %v12748_v35  ;;  %v12765_v35 = vld [vmem:[%s13361_s12 + $0xb58] sm:$0xff]   ;;  %v14414_v19 = vmul.f32 0.01, %v14391_v61  ;;  %vm2801_vm1 = vcmp.ge.f32.partialorder %v14391_v61, 0.0 }
 0x19b   : > { %6015 = vmatmul.mubr.bf16.gmra.mrb[148].mxu1 %v13119_v15  ;;  %11465 = vmatprep.subr.bf16.mxu0 %v12751_v21  ;;  %v13128_v15 = vld [vmem:[%s15612_s1 + $0x1c] ss:$76 sps:$4 sm:$0xff]   ;;  %v12769_v21 = vld [vmem:[%s13361_s12 + $0xc20] sm:$0xff]   ;;  %vm2802_vm2 = vcmp.ge.f32.partialorder %v14402_v6, 0.0 }
 0x19c   : > { %11502 = vmatpush3.bf16.msra.mxu1 %v12746_v46  ;;  %6022 = vmatprep.mubr.bf16.mxu1 %v13120_v33  ;;  %v10980_v46 = vpop.f32.mrb[69].mxu0 }
 0x19d   : > { %11503 = vmatprep.subr.bf16.mxu1 %v12749_v24  ;;  %5958 = vmatmul.mubr.bf16.gmra.mrb[168].mxu0 %v13121_v53  ;;  %v10981_v14 = vadd.f32 %v10980_v46, %v10979_v8  ;;  %v10982_v16 = vpop.f32.mrb[70].mxu0  ;;  %v13126_v24 = vld [vmem:[%s15612_s1 + $0x14] ss:$76 sps:$4 sm:$0xff]   ;;  %v12781_v46 = vld [vmem:[%s13361_s12 + $0xc38] sm:$0xff]  }
 0x19e   : > { %11466 = vmatpush3.bf16.msra.mxu0 %v12752_v22  ;;  %5965 = vmatprep.mubr.bf16.mxu0 %v13122_v59  ;;  %v10983_v62 = vpop.f32.mrb[71].mxu0  ;;  %v12772_v22 = vld [vmem:[%s13361_s12 + $0xb68] sm:$0xff]  }
 0x19f   : > { %11467 = vmatprep.subr.bf16.mxu0 %v12755_v58  ;;  %v2714_v23 = vadd.f32 %v10981_v14, %v14312_v55  ;;  %v10984_v3 = vadd.f32 %v10983_v62, %v10982_v16  ;;  %v12773_v58 = vld [vmem:[%s13361_s12 + $0xc28] sm:$0xff]   ;;  %v12780_v14 = vld [vmem:[%s13361_s12 + $0xb78] sm:$0xff]   ;;  %v13134_v16 = vld [vmem:[%s15612_s1 + $0x144] ss:$76 sps:$4 sm:$0xff]  }
 0x1a0   : > { %11504 = vmatpush3.bf16.msra.mxu1 %v12750_v30  ;;  %v14433_v30 = vmul.f32 0.01, %v14402_v6  ;;  %v13133_v8 = vld [vmem:[%s15612_s1 + $0xa8] ss:$76 sps:$4 sm:$0xff]   ;;  %v12783_v62 = vld [vmem:[%s13361_s12 + $0xbc0] sm:$0xff]  }
 0x1a1   : > { %11505 = vmatprep.subr.bf16.mxu1 %v12753_v36  ;;  %v14424_v47 = vadd.f32 %v12149_v43, %v2714_v23  ;;  %v2717_v55 = vadd.f32 %v10984_v3, %v14322_v27  ;;  %v12771_v36 = vld [vmem:[%s13361_s12 + $0xba8] sm:$0xff]   ;;  %v10985_v27 = vpop.f32.mrb[72].mxu0  ;;  %v12782_v3 = vld [vmem:[%s13361_s12 + $0xbf8] sm:$0xff]  }
 0x1a2   : > { %11468 = vmatpush3.bf16.msra.mxu0 %v12756_v54  ;;  %v10986_v44 = vpop.f32.mrb[73].mxu0  ;;  %v12774_v43 = vld [vmem:[%s13361_s12 + $0xbe8] sm:$0xff]  }
 0x1a3   : > { %6023 = vmatmul.mubr.bf16.gmra.mrb[152].mxu1 %v13123_v63  ;;  %11469 = vmatprep.subr.bf16.mxu0 %v12759_v17  ;;  %v14435_v33 = vadd.f32 %v12150_v41, %v2717_v55  ;;  %v10987_v50 = vadd.f32 %v10986_v44, %v10985_v27  ;;  %v14454_v29 = vmul.f32 0.01, %v14424_v47  ;;  %v13132_v41 = vld [vmem:[%s15612_s1 + $0xb4] ss:$76 sps:$4 sm:$0xff]   ;;  %v12153_v63 = vpop.f32.mrb[68].mxu1  ;;  %v12789_v44 = vld [vmem:[%s13361_s12 + $0xc48] sm:$0xff]  }
 0x1a4   : > { %11506 = vmatpush3.bf16.msra.mxu1 %v12754_v52  ;;  %6030 = vmatprep.mubr.bf16.mxu1 %v13124_v5  ;;  %v10988_v52 = vpop.f32.mrb[74].mxu0  ;;  %v12776_v17 = vld [vmem:[%s13361_s12 + $0xb70] sm:$0xff]   ;;  %v12779_v5 = vld [vmem:[%s13361_s12 + $0xbb8] sm:$0xff]   ;;  %v12785_v55 = vld [vmem:[%s13361_s12 + $0xc40] sm:$0xff]   ;;  %vm2803_vm3 = vcmp.ge.f32.partialorder %v14424_v47, 0.0 }
 0x1a5   : > { %11507 = vmatprep.subr.bf16.mxu1 %v12757_v11  ;;  %5966 = vmatmul.mubr.bf16.gmra.mrb[172].mxu0 %v13125_v18  ;;  %v10989_v53 = vpop.f32.mrb[75].mxu0  ;;  %v12775_v11 = vld [vmem:[%s13361_s12 + $0xbb0] sm:$0xff]   ;;  %v2722_v59 = vadd.f32 %v10987_v50, %v14336_v38  ;;  %v12786_v27 = vld [vmem:[%s13361_s12 + $0xc00] sm:$0xff]   ;;  %vm2804_vm6 = vcmp.ge.f32.partialorder %v14435_v33, 0.0 }
 0x1a6   : > { %11470 = vmatpush3.bf16.msra.mxu0 %v12760_v7  ;;  %6071 = vmatprep.mubr.bf16.mxu0 %v13126_v24  ;;  %v10990_v54 = vadd.f32 %v10989_v53, %v10988_v52  ;;  %v12778_v7 = vld [vmem:[%s13361_s12 + $0xbf0] sm:$0xff]   ;;  %v10991_v18 = vpop.f32.mrb[76].mxu0  ;;  %v13136_v24 = vld [vmem:[%s15612_s1 + $0x14c] ss:$76 sps:$4 sm:$0xff]  }
 0x1a7   : > { %11471 = vmatprep.subr.bf16.mxu0 %v12763_v12  ;;  %v10992_v23 = vpop.f32.mrb[77].mxu0  ;;  %v13139_v52 = vld [vmem:[%s15612_s1 + $0x148] ss:$76 sps:$4 sm:$0xff]   ;;  %v13140_v53 = vld [vmem:[%s15612_s1 + $0x1e4] ss:$76 sps:$4 sm:$0xff]  }
 0x1a8   : > { %11508 = vmatpush3.bf16.msra.mxu1 %v12758_v0  ;;  %v2725_v37 = vadd.f32 %v10990_v54, %v14345_v32  ;;  %v2786_v0 = vpop.f32.mrb[69].mxu1  ;;  %v14472_v32 = vmul.f32 0.01, %v14435_v33  ;;  %v12793_v54 = vld [vmem:[%s13361_s12 + $0xc50] sm:$0xff]  }
 0x1a9   : > { %11509 = vmatprep.subr.bf16.mxu1 %v12761_v20  ;;  %v14464_v20 = vadd.f32 %v2786_v0, %v2722_v59  ;;  %v12154_v38 = vpop.f32.mrb[70].mxu1 }
 0x1aa   : > { %11472 = vmatpush3.bf16.msra.mxu0 %v12764_v40  ;;  %v13135_v40 = vld [vmem:[%s15612_s1 + $0xb0] ss:$76 sps:$4 sm:$0xff]  }
 0x1ab   : > { %6031 = vmatmul.mubr.bf16.gmra.mrb[156].mxu1 %v13127_v26  ;;  %11537 = vmatprep.subr.bf16.mxu0 %v12767_v10  ;;  %v10993_v26 = vadd.f32 %v10992_v23, %v10991_v18  ;;  %v10994_v10 = vpop.f32.mrb[78].mxu0  ;;  %v13141_v18 = vld [vmem:[%s15612_s1 + $0x1d8] ss:$76 sps:$4 sm:$0xff]   ;;  %vm2805_vm9 = vcmp.ge.f32.partialorder %v14464_v20, 0.0 }
 0x1ac   : > { %11510 = vmatpush3.bf16.msra.mxu1 %v12762_v51  ;;  %6136 = vmatprep.mubr.bf16.mxu1 %v13128_v15  ;;  %v2789_v51 = vpop.f32.mrb[71].mxu1  ;;  %v12784_v15 = vld [vmem:[%s13361_s12 + $0xb80] sm:$0xff]  }
 0x1ad   : > { %11511 = vmatprep.subr.bf16.mxu1 %v12765_v35  ;;  %6072 = vmatmul.mubr.bf16.vlgmr.msra.gmra.mrb[176].mxu0 %v13129_v42  ;;  %v14474_v12 = vadd.f32 %v2789_v51, %v2725_v37  ;;  %v14485_v35 = vmul.f32 0.01, %v14464_v20  ;;  %v13137_v42 = vld [vmem:[%s15612_s1 + $0x140] ss:$76 sps:$4 sm:$0xff]   ;;  %v11063_v0 = vpop.f32.mrb[72].mxu1 }
 0x1ae   : > { %11538 = vmatpush3.bf16.msra.mxu0 %v12768_v4  ;;  %6079 = vmatprep.mubr.bf16.mxu0 %v13130_v9  ;;  %v12790_v9 = vld [vmem:[%s13361_s12 + $0xc08] sm:$0xff]  }
 0x1af   : > { %11539 = vmatprep.subr.bf16.mxu0 %v12771_v36  ;;  %v12787_v36 = vld [vmem:[%s13361_s12 + $0xbc8] sm:$0xff]   ;;  %v14508_v50 = vmul.f32 0.01, %v14474_v12  ;;  %vm2806_vm10 = vcmp.ge.f32.partialorder %v14474_v12, 0.0 }
 0x1b0   : > { %11512 = vmatpush3.bf16.msra.mxu1 %v12766_v28  ;;  %v10995_v28 = vpop.f32.mrb[79].mxu0 }
 0x1b1   : > { %11577 = vmatprep.subr.bf16.mxu1 %v12769_v21  ;;  %v2730_v21 = vadd.f32 %v10993_v26, %v14363_v60  ;;  %v10996_v4 = vadd.f32 %v10995_v28, %v10994_v10  ;;  %v12788_v60 = vld [vmem:[%s13361_s12 + $0xb88] sm:$0xff]   ;;  %v13142_v26 = vld [vmem:[%s15612_s1 + $0x24] ss:$76 sps:$4 sm:$0xff]   ;;  %v12798_v10 = vld [vmem:[%s13361_s12 + $0xc18] sm:$0xff]  }
 0x1b2   : > { %11540 = vmatpush3.bf16.msra.mxu0 %v12772_v22  ;;  %v12799_v28 = vld [vmem:[%s13361_s12 + $0xca0] sm:$0xff]  }
 0x1b3   : > { %6137 = vmatmul.mubr.bf16.vlgmr.msra.gmra.mrb[160].mxu1 %v13131_v49  ;;  %11541 = vmatprep.subr.bf16.mxu0 %v12775_v11  ;;  %v2733_v22 = vadd.f32 %v10996_v4, %v14373_v31  ;;  %v11023_v49 = vpop.f32.mrb[80].mxu0  ;;  %v12792_v11 = vld [vmem:[%s13361_s12 + $0xb90] sm:$0xff]   ;;  %v13144_v4 = vld [vmem:[%s15612_s1 + $0x2c] ss:$76 sps:$4 sm:$0xff]  }
 0x1b4   : > { %11578 = vmatpush3.bf16.msra.mxu1 %v12770_v2  ;;  %6144 = vmatprep.mubr.bf16.mxu1 %v13132_v41  ;;  %v14496_v2 = vadd.f32 %v12153_v63, %v2730_v21  ;;  %v11024_v41 = vpop.f32.mrb[81].mxu0 }
 0x1b5   : > { %11579 = vmatprep.subr.bf16.mxu1 %v12773_v58  ;;  %6080 = vmatmul.mubr.bf16.gmra.mrb[180].mxu0 %v13133_v8  ;;  %v13138_v58 = vld [vmem:[%s15612_s1 + $0x1dc] ss:$76 sps:$4 sm:$0xff]   ;;  %v14510_v31 = vadd.f32 %v12154_v38, %v2733_v22  ;;  %v11026_v37 = vpop.f32.mrb[82].mxu0  ;;  %v12801_v22 = vld [vmem:[%s13361_s12 + $0xd20] sm:$0xff]  }
 0x1b6   : > { %11542 = vmatpush3.bf16.msra.mxu0 %v12776_v17  ;;  %6087 = vmatprep.mubr.bf16.mxu0 %v13134_v16  ;;  %v14523_v59 = vmul.f32 0.01, %v14496_v2  ;;  %v11025_v17 = vadd.f32 %v11024_v41, %v11023_v49  ;;  %v11027_v38 = vpop.f32.mrb[83].mxu0  ;;  %v12796_v16 = vld [vmem:[%s13361_s12 + $0xb98] sm:$0xff]   ;;  %v12804_v41 = vld [vmem:[%s13361_s12 + $0xc68] sm:$0xff]   ;;  %vm2807_vm13 = vcmp.ge.f32.partialorder %v14496_v2, 0.0 }
 0x1b7   : > { %11543 = vmatprep.subr.bf16.mxu0 %v12779_v5  ;;  %v14527_v63 = vmul.f32 0.01, %v14510_v31  ;;  %v12794_v5 = vld [vmem:[%s13361_s12 + $0xc10] sm:$0xff]   ;;  %v11028_v51 = vadd.f32 %v11027_v38, %v11026_v37  ;;  %v11029_v21 = vpop.f32.mrb[84].mxu0  ;;  %v12805_v37 = vld [vmem:[%s13361_s12 + $0xd28] sm:$0xff]   ;;  %vm2808_vm14 = vcmp.ge.f32.partialorder %v14510_v31, 0.0 }
 0x1b8   : > { %11580 = vmatpush3.bf16.msra.mxu1 %v12774_v43  ;;  %v12791_v43 = vld [vmem:[%s13361_s12 + $0xbd0] sm:$0xff]   ;;  %v4061_v8 = vadd.f32 %v11025_v17, %v13919_v39  ;;  %v13145_v17 = vld [vmem:[%s15612_s1 + $0x20] ss:$76 sps:$4 sm:$0xff]  }
 0x1b9   : > { %11581 = vmatprep.subr.bf16.mxu1 %v12777_v48  ;;  %v12795_v48 = vld [vmem:[%s13361_s12 + $0xbd8] sm:$0xff]   ;;  %v4064_v23 = vadd.f32 %v11028_v51, %v13942_v57  ;;  %v13147_v51 = vld [vmem:[%s15612_s1 + $0x28] ss:$76 sps:$4 sm:$0xff]  }
 0x1ba   : > { %11544 = vmatpush3.bf16.msra.mxu0 %v12780_v14 }
 0x1bb   : > { %6145 = vmatmul.mubr.bf16.gmra.mrb[164].mxu1 %v13135_v40  ;;  %11545 = vmatprep.subr.bf16.mxu0 %v12783_v62  ;;  %v12797_v62 = vld [vmem:[%s13361_s12 + $0xc58] sm:$0xff]  }
 0x1bc   : > { %11582 = vmatpush3.bf16.msra.mxu1 %v12778_v7  ;;  %6152 = vmatprep.mubr.bf16.mxu1 %v13136_v24  ;;  %v11064_v7 = vpop.f32.mrb[73].mxu1 }
 0x1bd   : > { %11583 = vmatprep.subr.bf16.mxu1 %v12781_v46  ;;  %6088 = vmatmul.mubr.bf16.gmra.mrb[184].mxu0 %v13137_v42  ;;  %v11065_v46 = vadd.f32 %v11064_v7, %v11063_v0  ;;  %v11066_v14 = vpop.f32.mrb[74].mxu1  ;;  %v13146_v7 = vld [vmem:[%s15612_s1 + $0xbc] ss:$76 sps:$4 sm:$0xff]  }
 0x1be   : > { %11546 = vmatpush3.bf16.msra.mxu0 %v12784_v15  ;;  %6095 = vmatprep.mubr.bf16.mxu0 %v13138_v58  ;;  %v11067_v40 = vpop.f32.mrb[75].mxu1 }
 0x1bf   : > { %11547 = vmatprep.subr.bf16.mxu0 %v12787_v36  ;;  %v11068_v24 = vadd.f32 %v11067_v40, %v11066_v14  ;;  %v12800_v36 = vld [vmem:[%s13361_s12 + $0xc60] sm:$0xff]  }
 0x1c0   : > { %11584 = vmatpush3.bf16.msra.mxu1 %v12782_v3  ;;  %v14537_v3 = vadd.f32 %v11065_v46, %v4061_v8  ;;  %v12806_v8 = vld [vmem:[%s13361_s12 + $0xce8] sm:$0xff]   ;;  %v12807_v46 = vld [vmem:[%s13361_s12 + $0xcb0] sm:$0xff]  }
 0x1c1   : > { %11585 = vmatprep.subr.bf16.mxu1 %v12785_v55  ;;  %v13143_v55 = vld [vmem:[%s15612_s1 + $0x1e0] ss:$76 sps:$4 sm:$0xff]   ;;  %v14547_v15 = vadd.f32 %v11068_v24, %v4064_v23  ;;  %v13148_v40 = vld [vmem:[%s15612_s1 + $0xc4] ss:$76 sps:$4 sm:$0xff]  }
 0x1c2   : > { %11548 = vmatpush3.bf16.msra.mxu0 %v12788_v60  ;;  %v11069_v60 = vpop.f32.mrb[76].mxu1  ;;  %v12809_v23 = vld [vmem:[%s13361_s12 + $0xd30] sm:$0xff]  }
 0x1c3   : > { %6153 = vmatmul.mubr.bf16.gmra.mrb[168].mxu1 %v13139_v52  ;;  %11549 = vmatprep.subr.bf16.mxu0 %v12791_v43  ;;  %v11070_v52 = vpop.f32.mrb[77].mxu1  ;;  %v12803_v43 = vld [vmem:[%s13361_s12 + $0xca8] sm:$0xff]  }
 0x1c4   : > { %11586 = vmatpush3.bf16.msra.mxu1 %v12786_v27  ;;  %6160 = vmatprep.mubr.bf16.mxu1 %v13140_v53  ;;  %v11030_v27 = vpop.f32.mrb[85].mxu0 }
 0x1c5   : > { %11587 = vmatprep.subr.bf16.mxu1 %v12789_v44  ;;  %6096 = vmatmul.mubr.bf16.gmra.mrb[188].mxu0 %v13141_v18  ;;  %v11031_v42 = vadd.f32 %v11030_v27, %v11029_v21  ;;  %v11032_v44 = vpop.f32.mrb[86].mxu0  ;;  %v12808_v18 = vld [vmem:[%s13361_s12 + $0xc70] sm:$0xff]  }
 0x1c6   : > { %11550 = vmatpush3.bf16.msra.mxu0 %v12792_v11  ;;  %6201 = vmatprep.mubr.bf16.mxu0 %v13142_v26  ;;  %v11033_v58 = vpop.f32.mrb[87].mxu0  ;;  %v11071_v11 = vadd.f32 %v11070_v52, %v11069_v60  ;;  %v12813_v52 = vld [vmem:[%s13361_s12 + $0xd38] sm:$0xff]  }
 0x1c7   : > { %11551 = vmatprep.subr.bf16.mxu0 %v12795_v48  ;;  %v4069_v49 = vadd.f32 %v11031_v42, %v13964_v13  ;;  %v11034_v53 = vadd.f32 %v11033_v58, %v11032_v44  ;;  %v12812_v44 = vld [vmem:[%s13361_s12 + $0xc78] sm:$0xff]  }
 0x1c8   : > { %11588 = vmatpush3.bf16.msra.mxu1 %v12790_v9  ;;  %v12802_v9 = vld [vmem:[%s13361_s12 + $0xce0] sm:$0xff]  }
 0x1c9   : > { %11589 = vmatprep.subr.bf16.mxu1 %v12793_v54  ;;  %v11072_v54 = vpop.f32.mrb[78].mxu1  ;;  %v4072_v0 = vadd.f32 %v11034_v53, %v13992_v34  ;;  %v13149_v58 = vld [vmem:[%s15612_s1 + $0xb8] ss:$76 sps:$4 sm:$0xff]   ;;  %v13150_v53 = vld [vmem:[%s15612_s1 + $0x154] ss:$76 sps:$4 sm:$0xff]  }
 0x1ca   : > { %11552 = vmatpush3.bf16.msra.mxu0 %v12796_v16  ;;  %v11073_v48 = vpop.f32.mrb[79].mxu1  ;;  %v11035_v16 = vpop.f32.mrb[88].mxu0 }
 0x1cb   : > { %6161 = vmatmul.mubr.bf16.gmra.mrb[172].mxu1 %v13143_v55  ;;  %11617 = vmatprep.subr.bf16.mxu0 %v12799_v28  ;;  %v11074_v38 = vadd.f32 %v11073_v48, %v11072_v54  ;;  %v12810_v55 = vld [vmem:[%s13361_s12 + $0xcf0] sm:$0xff]   ;;  %v12811_v28 = vld [vmem:[%s13361_s12 + $0xcb8] sm:$0xff]   ;;  %v13151_v54 = vld [vmem:[%s15612_s1 + $0xc0] ss:$76 sps:$4 sm:$0xff]  }
 0x1cc   : > { %11590 = vmatpush3.bf16.msra.mxu1 %v12794_v5  ;;  %6266 = vmatprep.mubr.bf16.mxu1 %v13144_v4  ;;  %v14563_v5 = vadd.f32 %v11071_v11, %v4069_v49  ;;  %v12814_v11 = vld [vmem:[%s13361_s12 + $0xcf8] sm:$0xff]  }
 0x1cd   : > { %11591 = vmatprep.subr.bf16.mxu1 %v12797_v62  ;;  %6202 = vmatmul.mubr.bf16.vlgmr.msra.gmra.mrb[192].mxu0 %v13145_v17  ;;  %v14573_v14 = vadd.f32 %v11074_v38, %v4072_v0  ;;  %v11036_v62 = vpop.f32.mrb[89].mxu0  ;;  %v12816_v0 = vld [vmem:[%s13361_s12 + $0xc80] sm:$0xff]  }
 0x1ce   : > { %11618 = vmatpush3.bf16.msra.mxu0 %v12800_v36  ;;  %6209 = vmatprep.mubr.bf16.mxu0 %v13146_v7  ;;  %v11037_v24 = vadd.f32 %v11036_v62, %v11035_v16  ;;  %v11038_v26 = vpop.f32.mrb[90].mxu0  ;;  %v12817_v7 = vld [vmem:[%s13361_s12 + $0xd40] sm:$0xff]  }
 0x1cf   : > { %11619 = vmatprep.subr.bf16.mxu0 %v12803_v43  ;;  %v11039_v21 = vpop.f32.mrb[91].mxu0  ;;  %v12818_v16 = vld [vmem:[%s13361_s12 + $0xd00] sm:$0xff]  }
 0x1d0   : > { %11592 = vmatpush3.bf16.msra.mxu1 %v12798_v10  ;;  %v11075_v10 = vpop.f32.mrb[80].mxu1  ;;  %v4077_v36 = vadd.f32 %v11037_v24, %v14008_v56  ;;  %v11040_v27 = vadd.f32 %v11039_v21, %v11038_v26  ;;  %v11041_v17 = vpop.f32.mrb[92].mxu0  ;;  %v13153_v21 = vld [vmem:[%s15612_s1 + $0x150] ss:$76 sps:$4 sm:$0xff]  }
 0x1d1   : > { %11657 = vmatprep.subr.bf16.mxu1 %v12801_v22  ;;  %v11076_v4 = vpop.f32.mrb[81].mxu1  ;;  %v11042_v38 = vpop.f32.mrb[93].mxu0 }
 0x1d2   : > { %11620 = vmatpush3.bf16.msra.mxu0 %v12804_v41  ;;  %v11077_v22 = vadd.f32 %v11076_v4, %v11075_v10  ;;  %v11078_v42 = vpop.f32.mrb[82].mxu1  ;;  %v12815_v41 = vld [vmem:[%s13361_s12 + $0xcc0] sm:$0xff]   ;;  %v12821_v4 = vld [vmem:[%s13361_s12 + $0xd48] sm:$0xff]  }
 0x1d3   : > { %6267 = vmatmul.mubr.bf16.vlgmr.msra.gmra.mrb[176].mxu1 %v13147_v51  ;;  %11621 = vmatprep.subr.bf16.mxu0 %v12807_v46  ;;  %v11079_v60 = vpop.f32.mrb[83].mxu1  ;;  %v11044_v51 = vpop.f32.mrb[94].mxu0 }
 0x1d4   : > { %11658 = vmatpush3.bf16.msra.mxu1 %v12802_v9  ;;  %6274 = vmatprep.mubr.bf16.mxu1 %v13148_v40  ;;  %v4080_v9 = vadd.f32 %v11040_v27, %v14029_v25  ;;  %v14589_v43 = vadd.f32 %v11077_v22, %v4077_v36  ;;  %v11080_v49 = vadd.f32 %v11079_v60, %v11078_v42  ;;  %v11081_v46 = vpop.f32.mrb[84].mxu1  ;;  %v12819_v40 = vld [vmem:[%s13361_s12 + $0xcc8] sm:$0xff]   ;;  %v13155_v60 = vld [vmem:[%s15612_s1 + $0x158] ss:$76 sps:$4 sm:$0xff]  }
 0x1d5   : > { %11659 = vmatprep.subr.bf16.mxu1 %v12805_v37  ;;  %6210 = vmatmul.mubr.bf16.gmra.mrb[196].mxu0 %v13149_v58  ;;  %v13152_v37 = vld [vmem:[%s15612_s1 + $0x15c] ss:$76 sps:$4 sm:$0xff]   ;;  %v11082_v62 = vpop.f32.mrb[85].mxu1  ;;  %v13154_v42 = vld [vmem:[%s15612_s1 + $0x1ec] ss:$76 sps:$4 sm:$0xff]   ;;  %v12823_v58 = vld [vmem:[%s13361_s12 + $0xcd0] sm:$0xff]  }
 0x1d6   : > { %11622 = vmatpush3.bf16.msra.mxu0 %v12808_v18  ;;  %6217 = vmatprep.mubr.bf16.mxu0 %v13150_v53  ;;  %v14599_v48 = vadd.f32 %v11080_v49, %v4080_v9  ;;  %v11045_v18 = vpop.f32.mrb[95].mxu0  ;;  %v11083_v26 = vadd.f32 %v11082_v62, %v11081_v46  ;;  %v11084_v10 = vpop.f32.mrb[86].mxu1  ;;  %v13156_v49 = vld [vmem:[%s15612_s1 + $0x1f4] ss:$76 sps:$4 sm:$0xff]  }
 0x1d7   : > { %11623 = vmatprep.subr.bf16.mxu0 %v12811_v28  ;;  %v11046_v24 = vadd.f32 %v11045_v18, %v11044_v51  ;;  %v11085_v28 = vpop.f32.mrb[87].mxu1  ;;  %v11103_v9 = vpop.f32.mrb[96].mxu0  ;;  %v12824_v53 = vld [vmem:[%s13361_s12 + $0xc90] sm:$0xff]   ;;  %v12828_v18 = vld [vmem:[%s13361_s12 + $0xc98] sm:$0xff]  }
 0x1d8   : > { %11660 = vmatpush3.bf16.msra.mxu1 %v12806_v8  ;;  %v11043_v8 = vadd.f32 %v11042_v38, %v11041_v17  ;;  %v11086_v22 = vadd.f32 %v11085_v28, %v11084_v10  ;;  %v13159_v28 = vld [vmem:[%s15612_s1 + $0x1f0] ss:$76 sps:$4 sm:$0xff]  }
 0x1d9   : > { %11661 = vmatprep.subr.bf16.mxu1 %v12809_v23  ;;  %v4088_v36 = vadd.f32 %v11046_v24, %v14067_v45  ;;  %v12829_v24 = vld [vmem:[%s13361_s12 + $0xd58] sm:$0xff]  }
 0x1da   : > { %11624 = vmatpush3.bf16.msra.mxu0 %v12812_v44  ;;  %v4085_v23 = vadd.f32 %v11043_v8, %v14051_v1  ;;  %v12822_v44 = vld [vmem:[%s13361_s12 + $0xd08] sm:$0xff]   ;;  %v12827_v8 = vld [vmem:[%s13361_s12 + $0xcd8] sm:$0xff]  }
 0x1db   : > { %6275 = vmatmul.mubr.bf16.gmra.mrb[180].mxu1 %v13151_v54  ;;  %11625 = vmatprep.subr.bf16.mxu0 %v12815_v41  ;;  %v12825_v54 = vld [vmem:[%s13361_s12 + $0xd50] sm:$0xff]  }
 0x1dc   : > { %11662 = vmatpush3.bf16.msra.mxu1 %v12810_v55  ;;  %6282 = vmatprep.mubr.bf16.mxu1 %v13152_v37  ;;  %v12820_v55 = vld [vmem:[%s13361_s12 + $0xc88] sm:$0xff]   ;;  %v14615_v27 = vadd.f32 %v11083_v26, %v4085_v23  ;;  %v11143_v37 = vpop.f32.mrb[88].mxu1 }
 0x1dd   : > { %11663 = vmatprep.subr.bf16.mxu1 %v12813_v52  ;;  %6218 = vmatmul.mubr.bf16.gmra.mrb[200].mxu0 %v13153_v21  ;;  %v14625_v52 = vadd.f32 %v11086_v22, %v4088_v36  ;;  %v11144_v38 = vpop.f32.mrb[89].mxu1  ;;  %v13157_v23 = vld [vmem:[%s15612_s1 + $0x1e8] ss:$76 sps:$4 sm:$0xff]   ;;  %v12831_v21 = vld [vmem:[%s13361_s12 + $0xda0] sm:$0xff]   ;;  %v12830_v36 = vld [vmem:[%s13361_s12 + $0xd18] sm:$0xff]  }
 0x1de   : > { %11626 = vmatpush3.bf16.msra.mxu0 %v12816_v0  ;;  %6225 = vmatprep.mubr.bf16.mxu0 %v13154_v42  ;;  %v13160_v22 = vld [vmem:[%s15612_s1 + $0x3c] ss:$76 sps:$4 sm:$0xff]  }
 0x1df   : > { %11627 = vmatprep.subr.bf16.mxu0 %v12819_v40  ;;  %v11146_v40 = vpop.f32.mrb[90].mxu1 }
 0x1e0   : > { %11664 = vmatpush3.bf16.msra.mxu1 %v12814_v11  ;;  %v11104_v11 = vpop.f32.mrb[97].mxu0  ;;  %v11147_v62 = vpop.f32.mrb[91].mxu1 }
 0x1e1   : > { %11665 = vmatprep.subr.bf16.mxu1 %v12817_v7  ;;  %v11105_v41 = vadd.f32 %v11104_v11, %v11103_v9  ;;  %v11106_v17 = vpop.f32.mrb[98].mxu0  ;;  %v12826_v7 = vld [vmem:[%s13361_s12 + $0xd10] sm:$0xff]   ;;  %v12832_v9 = vld [vmem:[%s13361_s12 + $0xd60] sm:$0xff]  }
 0x1e2   : > { %11628 = vmatpush3.bf16.msra.mxu0 %v12820_v55  ;;  %v11107_v0 = vpop.f32.mrb[99].mxu0  ;;  %v13158_v55 = vld [vmem:[%s15612_s1 + $0x34] ss:$76 sps:$4 sm:$0xff]  }
 0x1e3   : > { %6283 = vmatmul.mubr.bf16.gmra.mrb[184].mxu1 %v13155_v60  ;;  %11629 = vmatprep.subr.bf16.mxu0 %v12823_v58  ;;  %v4191_v51 = vadd.f32 %v11105_v41, %v14537_v3  ;;  %v11108_v46 = vadd.f32 %v11107_v0, %v11106_v17  ;;  %v11148_v3 = vadd.f32 %v11147_v62, %v11146_v40  ;;  %v13163_v40 = vld [vmem:[%s15612_s1 + $0x38] ss:$76 sps:$4 sm:$0xff]  }
 0x1e4   : > { %11666 = vmatpush3.bf16.msra.mxu1 %v12818_v16  ;;  %6290 = vmatprep.mubr.bf16.mxu1 %v13156_v49  ;;  %v11145_v16 = vadd.f32 %v11144_v38, %v11143_v37  ;;  %v11149_v58 = vpop.f32.mrb[92].mxu1  ;;  %v12833_v49 = vld [vmem:[%s13361_s12 + $0xda8] sm:$0xff]   ;;  %v13161_v38 = vld [vmem:[%s15612_s1 + $0x30] ss:$76 sps:$4 sm:$0xff]  }
 0x1e5   : > { %11667 = vmatprep.subr.bf16.mxu1 %v12821_v4  ;;  %6226 = vmatmul.mubr.bf16.gmra.mrb[204].mxu0 %v13157_v23  ;;  %v4194_v26 = vadd.f32 %v11108_v46, %v14547_v15  ;;  %v11109_v15 = vpop.f32.mrb[100].mxu0  ;;  %v11150_v11 = vpop.f32.mrb[93].mxu1  ;;  %v13164_v23 = vld [vmem:[%s15612_s1 + $0xd4] ss:$76 sps:$4 sm:$0xff]  }
 0x1e6   : > { %v14641_v10 = vadd.f32 %v11145_v16, %v4191_v51  ;;  %11630 = vmatpush3.bf16.msra.mxu0 %v12824_v53  ;;  %6331 = vmatprep.mubr.bf16.mxu0 %v13158_v55  ;;  %v11110_v42 = vpop.f32.mrb[101].mxu0  ;;  %v11151_v17 = vadd.f32 %v11150_v11, %v11149_v58  ;;  %v11152_v37 = vpop.f32.mrb[94].mxu1  ;;  %v13162_v16 = vld [vmem:[%s15612_s1 + $0xcc] ss:$76 sps:$4 sm:$0xff]  }
 0x1e7   : > { %11631 = vmatprep.subr.bf16.mxu0 %v12827_v8  ;;  %v14650_v4 = vadd.f32 %v11148_v3, %v4194_v26  ;;  %v11112_v60 = vpop.f32.mrb[102].mxu0  ;;  %v11153_v0 = vpop.f32.mrb[95].mxu1  ;;  %v12839_v11 = vld [vmem:[%s13361_s12 + $0xd78] sm:$0xff]  }
 0x1e8   : > { %11668 = vmatpush3.bf16.msra.mxu1 %v12822_v44  ;;  %v11111_v44 = vadd.f32 %v11110_v42, %v11109_v15  ;;  %v11113_v53 = vpop.f32.mrb[103].mxu0  ;;  %v11154_v46 = vadd.f32 %v11153_v0, %v11152_v37  ;;  %v12838_v15 = vld [vmem:[%s13361_s12 + $0xdb8] sm:$0xff]  }
 0x1e9   : > { %11669 = vmatprep.subr.bf16.mxu1 %v12825_v54  ;;  %v11114_v41 = vadd.f32 %v11113_v53, %v11112_v60  ;;  %v11115_v62 = vpop.f32.mrb[104].mxu0  ;;  %v13165_v53 = vld [vmem:[%s15612_s1 + $0xc8] ss:$76 sps:$4 sm:$0xff]   ;;  %v12846_v37 = vld [vmem:[%s13361_s12 + $0xdf8] sm:$0xff]  }
 0x1ea   : > { %11632 = vmatpush3.bf16.msra.mxu0 %v12828_v18  ;;  %v4199_v54 = vadd.f32 %v11111_v44, %v14563_v5  ;;  %v12834_v5 = vld [vmem:[%s13361_s12 + $0xd68] sm:$0xff]   ;;  %v11116_v26 = vpop.f32.mrb[105].mxu0  ;;  %v13167_v0 = vld [vmem:[%s15612_s1 + $0xd0] ss:$76 sps:$4 sm:$0xff]  }
 0x1eb   : > { %6291 = vmatmul.mubr.bf16.gmra.mrb[188].mxu1 %v13159_v28  ;;  %11697 = vmatprep.subr.bf16.mxu0 %v12831_v21  ;;  %v4202_v8 = vadd.f32 %v11114_v41, %v14573_v14  ;;  %v12835_v14 = vld [vmem:[%s13361_s12 + $0xdb0] sm:$0xff]   ;;  %v11117_v3 = vadd.f32 %v11116_v26, %v11115_v62  ;;  %v11118_v55 = vpop.f32.mrb[106].mxu0 }
 0x1ec   : > { %11670 = vmatpush3.bf16.msra.mxu1 %v12826_v7  ;;  %6396 = vmatprep.mubr.bf16.mxu1 %v13160_v22  ;;  %v12837_v7 = vld [vmem:[%s13361_s12 + $0xde0] sm:$0xff]   ;;  %v14664_v51 = vadd.f32 %v11151_v17, %v4199_v54  ;;  %v11155_v28 = vpop.f32.mrb[96].mxu1  ;;  %v12836_v21 = vld [vmem:[%s13361_s12 + $0xd70] sm:$0xff]  }
 0x1ed   : > { %11671 = vmatprep.subr.bf16.mxu1 %v12829_v24  ;;  %6332 = vmatmul.mubr.bf16.vlgmr.msra.gmra.mrb[208].mxu0 %v13161_v38  ;;  %v14674_v18 = vadd.f32 %v11154_v46, %v4202_v8  ;;  %v12840_v24 = vld [vmem:[%s13361_s12 + $0xde8] sm:$0xff]   ;;  %v11156_v22 = vpop.f32.mrb[97].mxu1  ;;  %v4207_v42 = vadd.f32 %v11117_v3, %v14589_v43  ;;  %v13166_v17 = vld [vmem:[%s15612_s1 + $0x164] ss:$76 sps:$4 sm:$0xff]  }
 0x1ee   : > { %11698 = vmatpush3.bf16.msra.mxu0 %v12832_v9  ;;  %6339 = vmatprep.mubr.bf16.mxu0 %v13162_v16  ;;  %v11157_v60 = vadd.f32 %v11156_v22, %v11155_v28  ;;  %v11158_v58 = vpop.f32.mrb[98].mxu1  ;;  %v12843_v9 = vld [vmem:[%s13361_s12 + $0xdf0] sm:$0xff]   ;;  %v12841_v38 = vld [vmem:[%s13361_s12 + $0xdc0] sm:$0xff]   ;;  %v13168_v8 = vld [vmem:[%s15612_s1 + $0x16c] ss:$76 sps:$4 sm:$0xff]  }
 0x1ef   : > { %11699 = vmatprep.subr.bf16.mxu0 %v12833_v49  ;;  %v11159_v49 = vpop.f32.mrb[99].mxu1  ;;  %v13169_v22 = vld [vmem:[%s15612_s1 + $0x160] ss:$76 sps:$4 sm:$0xff]  }
 0x1f0   : > { %11672 = vmatpush3.bf16.msra.mxu1 %v12830_v36  ;;  %v11119_v36 = vpop.f32.mrb[107].mxu0  ;;  %v14689_v41 = vadd.f32 %v11157_v60, %v4207_v42  ;;  %v11160_v43 = vadd.f32 %v11159_v49, %v11158_v58  ;;  %v12852_v42 = vld [vmem:[%s13361_s12 + $0xe08] sm:$0xff]   ;;  %v12847_v49 = vld [vmem:[%s13361_s12 + $0xdd0] sm:$0xff]  }
 0x1f1   : > { %12175 = vmatprep.subr.bf16.mxu1 %v12837_v7  ;;  %v11120_v44 = vadd.f32 %v11119_v36, %v11118_v55 }
 0x1f2   : > { %11700 = vmatpush3.bf16.msra.mxu0 %v12834_v5  ;;  %v12842_v5 = vld [vmem:[%s13361_s12 + $0xd80] sm:$0xff]  }
 0x1f3   : > { %6397 = vmatmul.mubr.bf16.vlgmr.msra.gmra.mrb[192].mxu1 %v13163_v40  ;;  %11701 = vmatprep.subr.bf16.mxu0 %v12835_v14  ;;  %v4210_v54 = vadd.f32 %v11120_v44, %v14599_v48 }
 0x1f4   : > { %6404 = vmatprep.mubr.bf16.mxu1 %v13164_v23  ;;  %12176 = vmatpush3.bf16.msra.mxu1 %v12837_v7  ;;  %v11121_v48 = vpop.f32.mrb[108].mxu0  ;;  %v11161_v14 = vpop.f32.mrb[100].mxu1 }
 0x1f5   : > { %12177 = vmatprep.subr.bf16.mxu1 %v12840_v24  ;;  %6340 = vmatmul.mubr.bf16.gmra.mrb[212].mxu0 %v13165_v53  ;;  %v14699_v7 = vadd.f32 %v11160_v43, %v4210_v54  ;;  %v11122_v46 = vpop.f32.mrb[109].mxu0  ;;  %v11162_v23 = vpop.f32.mrb[101].mxu1 }
 0x1f6   : > { %11702 = vmatpush3.bf16.msra.mxu0 %v12836_v21  ;;  %6347 = vmatprep.mubr.bf16.mxu0 %v13166_v17  ;;  %v11123_v16 = vadd.f32 %v11122_v46, %v11121_v48  ;;  %v11124_v40 = vpop.f32.mrb[110].mxu0  ;;  %v11163_v55 = vadd.f32 %v11162_v23, %v11161_v14  ;;  %v11164_v28 = vpop.f32.mrb[102].mxu1  ;;  %v12845_v21 = vld [vmem:[%s13361_s12 + $0xd88] sm:$0xff]   ;;  %v12855_v14 = vld [vmem:[%s13361_s12 + $0xed0] sm:$0xff]   ;;  %v13173_v23 = vld [vmem:[%s15612_s1 + $0x1f8] ss:$76 sps:$4 sm:$0xff]  }
 0x1f7   : > { %11703 = vmatprep.subr.bf16.mxu0 %v12838_v15  ;;  %v11125_v62 = vpop.f32.mrb[111].mxu0  ;;  %v12849_v15 = vld [vmem:[%s13361_s12 + $0xe00] sm:$0xff]   ;;  %v11165_v36 = vpop.f32.mrb[103].mxu1 }
 0x1f8   : > { %12178 = vmatpush3.bf16.msra.mxu1 %v12840_v24  ;;  %v12844_v24 = vld [vmem:[%s13361_s12 + $0xdc8] sm:$0xff]   ;;  %v4215_v26 = vadd.f32 %v11123_v16, %v14615_v27  ;;  %v11126_v3 = vadd.f32 %v11125_v62, %v11124_v40  ;;  %v11166_v58 = vadd.f32 %v11165_v36, %v11164_v28 }
 0x1f9   : > { %12179 = vmatprep.subr.bf16.mxu1 %v12843_v9  ;;  %v13170_v27 = vld [vmem:[%s15612_s1 + $0x1fc] ss:$76 sps:$4 sm:$0xff]   ;;  %v13175_v28 = vld [vmem:[%s15612_s1 + $0x200] ss:$76 sps:$4 sm:$0xff]  }
 0x1fa   : > { %11704 = vmatpush3.bf16.msra.mxu0 %v12839_v11  ;;  %v4218_v44 = vadd.f32 %v11126_v3, %v14625_v52  ;;  %v14714_v60 = vadd.f32 %v11163_v55, %v4215_v26  ;;  %v13172_v11 = vld [vmem:[%s15612_s1 + $0x204] ss:$76 sps:$4 sm:$0xff]   ;;  %v13176_v36 = vld [vmem:[%s15612_s1 + $0x48] ss:$76 sps:$4 sm:$0xff]  }
 0x1fb   : > { %6405 = vmatmul.mubr.bf16.gmra.mrb[196].mxu1 %v13167_v0  ;;  %11705 = vmatprep.subr.bf16.mxu0 %v12841_v38  ;;  %v12848_v0 = vld [vmem:[%s13361_s12 + $0xd90] sm:$0xff]   ;;  %v12850_v38 = vld [vmem:[%s13361_s12 + $0xdd8] sm:$0xff]  }
 0x1fc   : > { %6412 = vmatprep.mubr.bf16.mxu1 %v13168_v8  ;;  %12180 = vmatpush3.bf16.msra.mxu1 %v12843_v9  ;;  %v13171_v9 = vld [vmem:[%s15612_s1 + $0x168] ss:$76 sps:$4 sm:$0xff]   ;;  %v14723_v53 = vadd.f32 %v11166_v58, %v4218_v44  ;;  %v11183_v52 = vpop.f32.mrb[112].mxu0  ;;  %v13174_v55 = vld [vmem:[%s15612_s1 + $0x44] ss:$76 sps:$4 sm:$0xff]  }
 0x1fd   : > { %12181 = vmatprep.subr.bf16.mxu1 %v12846_v37  ;;  %6348 = vmatmul.mubr.bf16.gmra.mrb[216].mxu0 %v13169_v22  ;;  %v11184_v54 = vpop.f32.mrb[113].mxu0 }
 0x1fe   : > { %11706 = vmatpush3.bf16.msra.mxu0 %v12842_v5  ;;  %6355 = vmatprep.mubr.bf16.mxu0 %v13170_v27  ;;  %v11185_v43 = vadd.f32 %v11184_v54, %v11183_v52  ;;  %v11186_v17 = vpop.f32.mrb[114].mxu0 }
 0x1ff   : > { %11707 = vmatprep.subr.bf16.mxu0 %v12844_v24  ;;  %v11187_v48 = vpop.f32.mrb[115].mxu0 }
 0x200   : > { %12182 = vmatpush3.bf16.msra.mxu1 %v12846_v37  ;;  %v4321_v46 = vadd.f32 %v11185_v43, %v14641_v10  ;;  %v11188_v5 = vadd.f32 %v11187_v48, %v11186_v17  ;;  %v12851_v10 = vld [vmem:[%s13361_s12 + $0xd98] sm:$0xff]   ;;  %v13177_v48 = vld [vmem:[%s15612_s1 + $0x40] ss:$76 sps:$4 sm:$0xff]  }
 0x201   : > { %12183 = vmatprep.subr.bf16.mxu1 %v12849_v15 }
 0x202   : > { %11708 = vmatpush3.bf16.msra.mxu0 %v12845_v21  ;;  %v4324_v24 = vadd.f32 %v11188_v5, %v14650_v4  ;;  %v12853_v4 = vld [vmem:[%s13361_s12 + $0xe50] sm:$0xff]  }
 0x203   : > { %6413 = vmatmul.mubr.bf16.gmra.mrb[200].mxu1 %v13171_v9  ;;  %11709 = vmatprep.subr.bf16.mxu0 %v12847_v49  ;;  %v12856_v9 = vld [vmem:[%s13361_s12 + $0xe90] sm:$0xff]   ;;  %v12857_v49 = vld [vmem:[%s13361_s12 + $0xe58] sm:$0xff]  }
 0x204   : > { %6420 = vmatprep.mubr.bf16.mxu1 %v13172_v11  ;;  %12184 = vmatpush3.bf16.msra.mxu1 %v12849_v15  ;;  %v11189_v15 = vpop.f32.mrb[116].mxu0 }
 0x205   : > { %12185 = vmatprep.subr.bf16.mxu1 %v12852_v42  ;;  %6356 = vmatmul.mubr.bf16.gmra.mrb[220].mxu0 %v13173_v23  ;;  %v11190_v22 = vpop.f32.mrb[117].mxu0 }
 0x206   : > { %v11223_v37 = vpop.f32.mrb[104].mxu1  ;;  %11710 = vmatpush3.bf16.msra.mxu0 %v12848_v0  ;;  %6461 = vmatprep.mubr.bf16.mxu0 %v13174_v55  ;;  %v11191_v44 = vadd.f32 %v11190_v22, %v11189_v15  ;;  %v11192_v58 = vpop.f32.mrb[118].mxu0  ;;  %v12858_v0 = vld [vmem:[%s13361_s12 + $0xe18] sm:$0xff]   ;;  %v12863_v55 = vld [vmem:[%s13361_s12 + $0xee0] sm:$0xff]  }
 0x207   : > { %v11224_v8 = vpop.f32.mrb[105].mxu1  ;;  %11711 = vmatprep.subr.bf16.mxu0 %v12850_v38  ;;  %v11193_v52 = vpop.f32.mrb[119].mxu0 }
 0x208   : > { %v11225_v16 = vadd.f32 %v11224_v8, %v11223_v37  ;;  %v11226_v40 = vpop.f32.mrb[106].mxu1  ;;  %12186 = vmatpush3.bf16.msra.mxu1 %v12852_v42  ;;  %v12854_v42 = vld [vmem:[%s13361_s12 + $0xe10] sm:$0xff]   ;;  %v4329_v54 = vadd.f32 %v11191_v44, %v14664_v51  ;;  %v11194_v43 = vadd.f32 %v11193_v52, %v11192_v58  ;;  %v12859_v8 = vld [vmem:[%s13361_s12 + $0xed8] sm:$0xff]   ;;  %v12865_v44 = vld [vmem:[%s13361_s12 + $0xe68] sm:$0xff]  }
 0x209   : > { %v11227_v62 = vpop.f32.mrb[107].mxu1  ;;  %11787 = vmatprep.subr.bf16.mxu1 %v12855_v14  ;;  %v13178_v51 = vld [vmem:[%s15612_s1 + $0xdc] ss:$76 sps:$4 sm:$0xff]   ;;  %v13179_v14 = vld [vmem:[%s15612_s1 + $0xe0] ss:$76 sps:$4 sm:$0xff]  }
 0x20a   : > { %v14736_v26 = vadd.f32 %v11225_v16, %v4321_v46  ;;  %v11228_v3 = vadd.f32 %v11227_v62, %v11226_v40  ;;  %11712 = vmatpush3.bf16.msra.mxu0 %v12851_v10  ;;  %v4332_v46 = vadd.f32 %v11194_v43, %v14674_v18  ;;  %v12860_v40 = vld [vmem:[%s13361_s12 + $0xe98] sm:$0xff]   ;;  %v12861_v62 = vld [vmem:[%s13361_s12 + $0xe60] sm:$0xff]   ;;  %v12866_v52 = vld [vmem:[%s13361_s12 + $0xe28] sm:$0xff]  }
 0x20b   : > { %6421 = vmatmul.mubr.bf16.gmra.mrb[204].mxu1 %v13175_v28  ;;  %11747 = vmatprep.subr.bf16.mxu0 %v12853_v4  ;;  %v12867_v43 = vld [vmem:[%s13361_s12 + $0xee8] sm:$0xff]  }
 0x20c   : > { %v14746_v21 = vadd.f32 %v11228_v3, %v4324_v24  ;;  %12187 = vmatprep.mubr.msk.bf16.mxu1 %vm2138_vm0, %v13176_v36  ;;  %v12862_v24 = vld [vmem:[%s13361_s12 + $0xe20] sm:$0xff]  }
 0x20d   : > { %6462 = vmatmul.mubr.bf16.vlgmr.msra.gmra.mrb[224].mxu0 %v13177_v48  ;;  %v11195_v23 = vpop.f32.mrb[120].mxu0  ;;  %v13180_v3 = vld [vmem:[%s15612_s1 + $0x178] ss:$76 sps:$4 sm:$0xff]   ;;  %v12869_v48 = vld [vmem:[%s13361_s12 + $0xe70] sm:$0xff]  }
 0x20e   : > { %v11229_v27 = vpop.f32.mrb[108].mxu1  ;;  %11748 = vmatpush3.bf16.msra.mxu0 %v12854_v42  ;;  %6469 = vmatprep.mubr.bf16.mxu0 %v13178_v51  ;;  %v11196_v10 = vpop.f32.mrb[121].mxu0  ;;  %v12864_v42 = vld [vmem:[%s13361_s12 + $0xea0] sm:$0xff]   ;;  %v13184_v51 = vld [vmem:[%s15612_s1 + $0xc] ss:$76 sps:$4 sm:$0xff]  }
 0x20f   : > { %v11230_v11 = vpop.f32.mrb[109].mxu1  ;;  %11749 = vmatprep.subr.bf16.mxu0 %v12857_v49  ;;  %v11197_v28 = vadd.f32 %v11196_v10, %v11195_v23  ;;  %v11198_v4 = vpop.f32.mrb[122].mxu0  ;;  %v12873_v10 = vld [vmem:[%s13361_s12 + $0xe78] sm:$0xff]  }
 0x210   : > { %v11231_v17 = vadd.f32 %v11230_v11, %v11229_v27  ;;  %v11232_v37 = vpop.f32.mrb[110].mxu1  ;;  %v11199_v36 = vpop.f32.mrb[123].mxu0 }
 0x211   : > { %v11233_v38 = vpop.f32.mrb[111].mxu1  ;;  %v4337_v58 = vadd.f32 %v11197_v28, %v14689_v41  ;;  %v11200_v27 = vadd.f32 %v11199_v36, %v11198_v4 }
 0x212   : > { %v14762_v5 = vadd.f32 %v11231_v17, %v4329_v54  ;;  %v11234_v16 = vadd.f32 %v11233_v38, %v11232_v37  ;;  %11750 = vmatpush3.bf16.msra.mxu0 %v12858_v0  ;;  %v13181_v54 = vld [vmem:[%s15612_s1 + $0xd8] ss:$76 sps:$4 sm:$0xff]   ;;  %v13182_v0 = vld [vmem:[%s15612_s1 + $0x174] ss:$76 sps:$4 sm:$0xff]   ;;  %v12868_v38 = vld [vmem:[%s13361_s12 + $0xea8] sm:$0xff]  }
 0x213   : > { %12188 = vmatmul.mubr.msk.bf16.vlgmr.msra.gmra.mrb[208].mxu1 %vm2138_vm0, %v13179_v14  ;;  %11751 = vmatprep.subr.bf16.mxu0 %v12861_v62  ;;  %v4340_v17 = vadd.f32 %v11200_v27, %v14699_v7  ;;  %v12871_v14 = vld [vmem:[%s13361_s12 + $0xef0] sm:$0xff]   ;;  %v12875_v27 = vld [vmem:[%s13361_s12 + $0xef8] sm:$0xff]  }
 0x214   : > { %v14773_v18 = vadd.f32 %v11234_v16, %v4332_v46  ;;  %11788 = vmatpush3.bf16.msra.mxu1 %v12856_v9  ;;  %12191 = vmatprep.mubr.msk.bf16.mxu1 %vm2138_vm0, %v13180_v3  ;;  %v12870_v16 = vld [vmem:[%s13361_s12 + $0xe30] sm:$0xff]  }
 0x215   : > { %11789 = vmatprep.subr.bf16.mxu1 %v12859_v8  ;;  %6470 = vmatmul.mubr.bf16.gmra.mrb[228].mxu0 %v13181_v54  ;;  %v13183_v8 = vld [vmem:[%s15612_s1 + $0x210] ss:$76 sps:$4 sm:$0xff]   ;;  %v11201_v46 = vpop.f32.mrb[124].mxu0  ;;  %v12877_v54 = vld [vmem:[%s13361_s12 + $0xe80] sm:$0xff]  }
 0x216   : > { %v11235_v15 = vpop.f32.mrb[112].mxu1  ;;  %11752 = vmatpush3.bf16.msra.mxu0 %v12862_v24  ;;  %6477 = vmatprep.mubr.bf16.mxu0 %v13182_v0  ;;  %v12872_v3 = vld [vmem:[%s13361_s12 + $0xeb0] sm:$0xff]   ;;  %v12879_v0 = vld [vmem:[%s13361_s12 + $0xf00] sm:$0xff]  }
 0x217   : > { %v11236_v22 = vpop.f32.mrb[113].mxu1  ;;  %11753 = vmatprep.subr.bf16.mxu0 %v12865_v44 }
 0x218   : > { %v11237_v9 = vadd.f32 %v11236_v22, %v11235_v15  ;;  %v11238_v49 = vpop.f32.mrb[114].mxu1  ;;  %11790 = vmatpush3.bf16.msra.mxu1 %v12860_v40  ;;  %v11202_v40 = vpop.f32.mrb[125].mxu0 }
 0x219   : > { %v11239_v11 = vpop.f32.mrb[115].mxu1  ;;  %11791 = vmatprep.subr.bf16.mxu1 %v12863_v55  ;;  %v11203_v62 = vadd.f32 %v11202_v40, %v11201_v46  ;;  %v11204_v23 = vpop.f32.mrb[126].mxu0  ;;  %v12880_v46 = vld [vmem:[%s13361_s12 + $0xec0] sm:$0xff]  }
 0x21a   : > { %v14790_v37 = vadd.f32 %v11237_v9, %v4337_v58  ;;  %v11240_v41 = vadd.f32 %v11239_v11, %v11238_v49  ;;  %11754 = vmatpush3.bf16.msra.mxu0 %v12866_v52  ;;  %v11205_v55 = vpop.f32.mrb[127].mxu0  ;;  %v13185_v58 = vld [vmem:[%s15612_s1 + $0x170] ss:$76 sps:$4 sm:$0xff]   ;;  %v13186_v52 = vld [vmem:[%s15612_s1 + $0x20c] ss:$76 sps:$4 sm:$0xff]  }
 0x21b   : > { %12192 = vmatmul.mubr.msk.bf16.gmra.mrb[212].mxu1 %vm2138_vm0, %v13183_v8  ;;  %11755 = vmatprep.subr.bf16.mxu0 %v12869_v48  ;;  %v4345_v4 = vadd.f32 %v11203_v62, %v14714_v60  ;;  %v11206_v15 = vadd.f32 %v11205_v55, %v11204_v23  ;;  %v12876_v11 = vld [vmem:[%s13361_s12 + $0xeb8] sm:$0xff]   ;;  %v13187_v55 = vld [vmem:[%s15612_s1 + $0x208] ss:$76 sps:$4 sm:$0xff]  }
 0x21c   : > { %v14801_v7 = vadd.f32 %v11240_v41, %v4340_v17  ;;  %11792 = vmatpush3.bf16.msra.mxu1 %v12864_v42  ;;  %7889 = vmatprep.mubr.bf16.mxu1 %v13184_v51  ;;  %v12874_v42 = vld [vmem:[%s13361_s12 + $0xe38] sm:$0xff]   ;;  %v12878_v41 = vld [vmem:[%s13361_s12 + $0xe40] sm:$0xff]  }
 0x21d   : > { %11793 = vmatprep.subr.bf16.mxu1 %v12867_v43  ;;  %6478 = vmatmul.mubr.bf16.gmra.mrb[232].mxu0 %v13185_v58  ;;  %v4348_v9 = vadd.f32 %v11206_v15, %v14723_v53 }
 0x21e   : > { %v11241_v24 = vpop.f32.mrb[116].mxu1  ;;  %11756 = vmatpush3.bf16.msra.mxu0 %v12870_v16  ;;  %6485 = vmatprep.mubr.bf16.mxu0 %v13186_v52  ;;  %v12881_v16 = vld [vmem:[%s13361_s12 + $0xe88] sm:$0xff]  }
 0x21f   : > { %v11242_v28 = vpop.f32.mrb[117].mxu1  ;;  %11757 = vmatprep.subr.bf16.mxu0 %v12873_v10 }
 0x220   : > { %v11243_v36 = vadd.f32 %v11242_v28, %v11241_v24  ;;  %v11244_v22 = vpop.f32.mrb[118].mxu1  ;;  %11794 = vmatpush3.bf16.msra.mxu1 %v12868_v38  ;;  %v11263_v17 = vpop.f32.mrb[128].mxu0  ;;  %v12883_v28 = vld [vmem:[%s13361_s12 + $0xf08] sm:$0xff]  }
 0x221   : > { %v11245_v44 = vpop.f32.mrb[119].mxu1  ;;  %11795 = vmatprep.subr.bf16.mxu1 %v12871_v14  ;;  %v11264_v53 = vpop.f32.mrb[129].mxu0 }
 0x222   : > { %v14817_v60 = vadd.f32 %v11243_v36, %v4345_v4  ;;  %v11246_v49 = vadd.f32 %v11245_v44, %v11244_v22  ;;  %v11265_v38 = vadd.f32 %v11264_v53, %v11263_v17  ;;  %v11266_v48 = vpop.f32.mrb[130].mxu0  ;;  %11758 = vmatpush3.bf16.msra.mxu0 %v12874_v42  ;;  %v13188_v36 = vld [vmem:[%s15612_s1 + $0x4] ss:$76 sps:$4 sm:$0xff]   ;;  %v12884_v22 = vld [vmem:[%s13361_s12 + $0xec8] sm:$0xff]   ;;  %v12889_v53 = vld [vmem:[%s13361_s12 + $0xf58] sm:$0xff]  }
 0x223   : > { %v11267_v51 = vpop.f32.mrb[131].mxu0  ;;  %11759 = vmatprep.subr.bf16.mxu0 %v12877_v54  ;;  %v12885_v42 = vld [vmem:[%s13361_s12 + $0xf50] sm:$0xff]  }
 0x224   : > { %v14824_v43 = vadd.f32 %v11246_v49, %v4348_v9  ;;  %11796 = vmatpush3.bf16.msra.mxu1 %v12872_v3  ;;  %v4451_v14 = vadd.f32 %v11265_v38, %v14736_v26  ;;  %v11268_v62 = vadd.f32 %v11267_v51, %v11266_v48  ;;  %v12882_v3 = vld [vmem:[%s13361_s12 + $0xe48] sm:$0xff]   ;;  %v12887_v9 = vld [vmem:[%s13361_s12 + $0xfd0] sm:$0xff]  }
 0x225   : > { %11797 = vmatprep.subr.bf16.mxu1 %v12875_v27  ;;  %6486 = vmatmul.mubr.bf16.gmra.mrb[236].mxu0 %v13187_v55  ;;  %v12886_v27 = vld [vmem:[%s13361_s12 + $0xf10] sm:$0xff]   ;;  %v13189_v51 = vld [vmem:[%s15612_s1] ss:$76 sps:$4 sm:$0xff]  }
 0x226   : > { %v11303_v8 = vpop.f32.mrb[120].mxu1  ;;  %v4454_v4 = vadd.f32 %v11268_v62, %v14746_v21  ;;  %11760 = vmatpush3.bf16.msra.mxu0 %v12878_v41  ;;  %7824 = vmatprep.mubr.bf16.mxu0 %v13188_v36  ;;  %v12888_v41 = vld [vmem:[%s13361_s12 + $0xf90] sm:$0xff]   ;;  %v12895_v36 = vld [vmem:[%s13361_s12 + $0xfe0] sm:$0xff]  }
 0x227   : > { %v11304_v40 = vpop.f32.mrb[121].mxu1  ;;  %11761 = vmatprep.subr.bf16.mxu0 %v12881_v16 }
 0x228   : > { %v11305_v23 = vadd.f32 %v11304_v40, %v11303_v8  ;;  %v11306_v24 = vpop.f32.mrb[122].mxu1  ;;  %11798 = vmatpush3.bf16.msra.mxu1 %v12876_v11  ;;  %v11269_v58 = vpop.f32.mrb[132].mxu0  ;;  %v12891_v40 = vld [vmem:[%s13361_s12 + $0xfd8] sm:$0xff]  }
 0x229   : > { %v11307_v10 = vpop.f32.mrb[123].mxu1  ;;  %11799 = vmatprep.subr.bf16.mxu1 %v12879_v0  ;;  %v11270_v21 = vpop.f32.mrb[133].mxu0 }
 0x22a   : > { %v14837_v26 = vadd.f32 %v11305_v23, %v4451_v14  ;;  %v11308_v15 = vadd.f32 %v11307_v10, %v11306_v24  ;;  %v11271_v49 = vadd.f32 %v11270_v21, %v11269_v58  ;;  %v11272_v52 = vpop.f32.mrb[134].mxu0  ;;  %11762 = vmatpush3.bf16.msra.mxu0 %v12882_v3  ;;  %v13190_v23 = vld [vmem:[%s15612_s1 + $0x9c] ss:$76 sps:$4 sm:$0xff]  }
 0x22b   : > { %v11273_v54 = vpop.f32.mrb[135].mxu0  ;;  %11827 = vmatprep.subr.bf16.mxu0 %v12885_v42  ;;  %v12892_v24 = vld [vmem:[%s13361_s12 + $0xf98] sm:$0xff]   ;;  %v13191_v3 = vld [vmem:[%s15612_s1 + $0x8] ss:$76 sps:$4 sm:$0xff]  }
 0x22c   : > { %v14844_v44 = vadd.f32 %v11308_v15, %v4454_v4  ;;  %11800 = vmatpush3.bf16.msra.mxu1 %v12880_v46  ;;  %v4459_v0 = vadd.f32 %v11271_v49, %v14762_v5  ;;  %v11274_v38 = vadd.f32 %v11273_v54, %v11272_v52  ;;  %v12890_v46 = vld [vmem:[%s13361_s12 + $0xf18] sm:$0xff]   ;;  %v12894_v4 = vld [vmem:[%s13361_s12 + $0xf20] sm:$0xff]   ;;  %v12897_v21 = vld [vmem:[%s13361_s12 + $0xf68] sm:$0xff]  }
 0x22d   : > { %11801 = vmatprep.subr.bf16.mxu1 %v12883_v28  ;;  %7825 = vmatmul.mubr.bf16.vlgmr.msra.gmra.mrb[240].mxu0 %v13189_v51  ;;  %v13192_v28 = vld [vmem:[%s15612_s1 + $0xa4] ss:$76 sps:$4 sm:$0xff]   ;;  %v13195_v51 = vld [vmem:[%s15612_s1 + $0xa0] ss:$76 sps:$4 sm:$0xff]  }
 0x22e   : > { %v11309_v11 = vpop.f32.mrb[124].mxu1  ;;  %v4462_v14 = vadd.f32 %v11274_v38, %v14773_v18  ;;  %11828 = vmatpush3.bf16.msra.mxu0 %v12886_v27  ;;  %7832 = vmatprep.mubr.bf16.mxu0 %v13190_v23  ;;  %v12893_v18 = vld [vmem:[%s13361_s12 + $0xf60] sm:$0xff]   ;;  %v12899_v38 = vld [vmem:[%s13361_s12 + $0xfe8] sm:$0xff]   ;;  %v12902_v23 = vld [vmem:[%s13361_s12 + $0xf30] sm:$0xff]  }
 0x22f   : > { %v11310_v17 = vpop.f32.mrb[125].mxu1  ;;  %11829 = vmatprep.subr.bf16.mxu0 %v12889_v53  ;;  %v12896_v27 = vld [vmem:[%s13361_s12 + $0xfa0] sm:$0xff]  }
 0x230   : > { %v11311_v48 = vadd.f32 %v11310_v17, %v11309_v11  ;;  %v11312_v8 = vpop.f32.mrb[126].mxu1  ;;  %11802 = vmatpush3.bf16.msra.mxu1 %v12884_v22  ;;  %v11275_v55 = vpop.f32.mrb[136].mxu0 }
 0x231   : > { %v11313_v16 = vpop.f32.mrb[127].mxu1  ;;  %11867 = vmatprep.subr.bf16.mxu1 %v12887_v9  ;;  %v11276_v15 = vpop.f32.mrb[137].mxu0 }
 0x232   : > { %v14857_v62 = vadd.f32 %v11311_v48, %v4459_v0  ;;  %v11314_v5 = vadd.f32 %v11313_v16, %v11312_v8  ;;  %v11277_v22 = vadd.f32 %v11276_v15, %v11275_v55  ;;  %v11278_v42 = vpop.f32.mrb[138].mxu0  ;;  %11830 = vmatpush3.bf16.msra.mxu0 %v12890_v46  ;;  %v13193_v0 = vld [vmem:[%s15612_s1 + $0x98] ss:$76 sps:$4 sm:$0xff]   ;;  %v13194_v46 = vld [vmem:[%s15612_s1 + $0x134] ss:$76 sps:$4 sm:$0xff]   ;;  %v12900_v16 = vld [vmem:[%s13361_s12 + $0xfa8] sm:$0xff]  }
 0x233   : > { %7890 = vmatmul.mubr.bf16.vlgmr.msra.gmra.mrb[216].mxu1 %v13191_v3  ;;  %v11279_v9 = vpop.f32.mrb[139].mxu0  ;;  %11831 = vmatprep.subr.bf16.mxu0 %v12893_v18  ;;  %v12903_v3 = vld [vmem:[%s13361_s12 + $0xff0] sm:$0xff]   ;;  %v12905_v15 = vld [vmem:[%s13361_s12 + $0xf78] sm:$0xff]  }
 0x234   : > { %v14867_v10 = vadd.f32 %v11314_v5, %v4462_v14  ;;  %11868 = vmatpush3.bf16.msra.mxu1 %v12888_v41  ;;  %7897 = vmatprep.mubr.bf16.mxu1 %v13192_v28  ;;  %v4467_v52 = vadd.f32 %v11277_v22, %v14790_v37  ;;  %v11280_v11 = vadd.f32 %v11279_v9, %v11278_v42  ;;  %v12898_v41 = vld [vmem:[%s13361_s12 + $0xf28] sm:$0xff]   ;;  %v12906_v9 = vld [vmem:[%s13361_s12 + $0xf38] sm:$0xff]  }
 0x235   : > { %11869 = vmatprep.subr.bf16.mxu1 %v12891_v40  ;;  %7833 = vmatmul.mubr.bf16.gmra.mrb[244].mxu0 %v13193_v0  ;;  %v13196_v5 = vld [vmem:[%s15612_s1 + $0x13c] ss:$76 sps:$4 sm:$0xff]   ;;  %v13199_v0 = vld [vmem:[%s15612_s1 + $0x138] ss:$76 sps:$4 sm:$0xff]  }
 0x236   : > { %v11315_v58 = vpop.f32.mrb[128].mxu1  ;;  %v4470_v48 = vadd.f32 %v11280_v11, %v14801_v7  ;;  %11832 = vmatpush3.bf16.msra.mxu0 %v12894_v4  ;;  %7840 = vmatprep.mubr.bf16.mxu0 %v13194_v46  ;;  %v12901_v7 = vld [vmem:[%s13361_s12 + $0xf70] sm:$0xff]   ;;  %v12907_v11 = vld [vmem:[%s13361_s12 + $0xff8] sm:$0xff]   ;;  %v12910_v46 = vld [vmem:[%s13361_s12 + $0xf40] sm:$0xff]  }
 0x237   : > { %v11316_v49 = vpop.f32.mrb[129].mxu1  ;;  %11833 = vmatprep.subr.bf16.mxu0 %v12897_v21  ;;  %v12904_v4 = vld [vmem:[%s13361_s12 + $0xfb0] sm:$0xff]  }
 0x238   : > { %v11317_v54 = vadd.f32 %v11316_v49, %v11315_v58  ;;  %v11318_v17 = vpop.f32.mrb[130].mxu1  ;;  %11870 = vmatpush3.bf16.msra.mxu1 %v12892_v24  ;;  %v11281_v14 = vpop.f32.mrb[140].mxu0 }
 0x239   : > { %v11319_v53 = vpop.f32.mrb[131].mxu1  ;;  %11871 = vmatprep.subr.bf16.mxu1 %v12895_v36  ;;  %v11282_v24 = vpop.f32.mrb[141].mxu0 }
 0x23a   : > { %v14883_v8 = vadd.f32 %v11317_v54, %v4467_v52  ;;  %v11320_v37 = vadd.f32 %v11319_v53, %v11318_v17  ;;  %v11283_v18 = vadd.f32 %v11282_v24, %v11281_v14  ;;  %v11284_v55 = vpop.f32.mrb[142].mxu0  ;;  %11834 = vmatpush3.bf16.msra.mxu0 %v12898_v41  ;;  %v13197_v52 = vld [vmem:[%s15612_s1 + $0x130] ss:$76 sps:$4 sm:$0xff]   ;;  %v13198_v41 = vld [vmem:[%s15612_s1 + $0x1cc] ss:$76 sps:$4 sm:$0xff]  }
 0x23b   : > { %7898 = vmatmul.mubr.bf16.gmra.mrb[220].mxu1 %v13195_v51  ;;  %v11285_v36 = vpop.f32.mrb[143].mxu0  ;;  %11835 = vmatprep.subr.bf16.mxu0 %v12901_v7  ;;  %v12908_v53 = vld [vmem:[%s13361_s12 + $0xfb8] sm:$0xff]   ;;  %v12911_v51 = vld [vmem:[%s13361_s12 + $0x1000] sm:$0xff]  }
 0x23c   : > { %v14893_v40 = vadd.f32 %v11320_v37, %v4470_v48  ;;  %11872 = vmatpush3.bf16.msra.mxu1 %v12896_v27  ;;  %7905 = vmatprep.mubr.bf16.mxu1 %v13196_v5  ;;  %v4475_v42 = vadd.f32 %v11283_v18, %v14817_v60  ;;  %v11286_v58 = vadd.f32 %v11285_v36, %v11284_v55  ;;  %v13200_v37 = vld [vmem:[%s15612_s1 + $0x1d4] ss:$76 sps:$4 sm:$0xff]   ;;  %v12913_v18 = vld [vmem:[%s13361_s12 + $0xf88] sm:$0xff]  }
 0x23d   : > { %11873 = vmatprep.subr.bf16.mxu1 %v12899_v38  ;;  %7841 = vmatmul.mubr.bf16.gmra.mrb[248].mxu0 %v13197_v52  ;;  %v13201_v36 = vld [vmem:[%s15612_s1 + $0x1c8] ss:$76 sps:$4 sm:$0xff]  }
 0x23e   : > { %v11321_v28 = vpop.f32.mrb[132].mxu1  ;;  %v4478_v54 = vadd.f32 %v11286_v58, %v14824_v43  ;;  %11836 = vmatpush3.bf16.msra.mxu0 %v12902_v23  ;;  %7848 = vmatprep.mubr.bf16.mxu0 %v13198_v41  ;;  %v12909_v43 = vld [vmem:[%s13361_s12 + $0xf80] sm:$0xff]   ;;  %v14958_v41 = vsel %vm2801_vm1, %v14391_v61, %v14414_v19 }
 0x23f   : > { %v11322_v22 = vpop.f32.mrb[133].mxu1  ;;  %11837 = vmatprep.subr.bf16.mxu0 %v12905_v15  ;;  %v12914_v15 = vld [vmem:[%s13361_s12 + $0xf48] sm:$0xff]  }
 0x240   : > { %v11323_v27 = vadd.f32 %v11322_v22, %v11321_v28  ;;  %v11324_v21 = vpop.f32.mrb[134].mxu1  ;;  %11874 = vmatpush3.bf16.msra.mxu1 %v12900_v16  ;;  %v11343_v48 = vpop.f32.mrb[144].mxu0 }
 0x241   : > { %v11325_v49 = vpop.f32.mrb[135].mxu1  ;;  %11875 = vmatprep.subr.bf16.mxu1 %v12903_v3  ;;  %v11344_v16 = vpop.f32.mrb[145].mxu0  ;;  %v12912_v3 = vld [vmem:[%s13361_s12 + $0xfc0] sm:$0xff]  }
 0x242   : > { %v14909_v17 = vadd.f32 %v11323_v27, %v4475_v42  ;;  %v11326_v60 = vadd.f32 %v11325_v49, %v11324_v21  ;;  %v11345_v7 = vadd.f32 %v11344_v16, %v11343_v48  ;;  %v11346_v14 = vpop.f32.mrb[146].mxu0  ;;  %11838 = vmatpush3.bf16.msra.mxu0 %v12906_v9  ;;  %v12915_v42 = vld [vmem:[%s13361_s12 + $0x1008] sm:$0xff]   ;;  %v13203_v21 = vld [vmem:[%s15612_s1 + $0x1d0] ss:$76 sps:$4 sm:$0xff]  }
 0x243   : > { %7906 = vmatmul.mubr.bf16.gmra.mrb[224].mxu1 %v13199_v0  ;;  %v11347_v23 = vpop.f32.mrb[147].mxu0  ;;  %11839 = vmatprep.subr.bf16.mxu0 %v12909_v43  ;;  %v12917_v9 = vld [vmem:[%s13361_s12 + $0x1050] sm:$0xff]  }
 0x244   : > { %v14920_v38 = vadd.f32 %v11326_v60, %v4478_v54  ;;  %11876 = vmatpush3.bf16.msra.mxu1 %v12904_v4  ;;  %7913 = vmatprep.mubr.bf16.mxu1 %v13200_v37  ;;  %v11348_v55 = vadd.f32 %v11347_v23, %v11346_v14  ;;  %v4581_v28 = vadd.f32 %v11345_v7, %v14837_v26  ;;  %v13202_v26 = vld [vmem:[%s15612_s1 + $0x14] ss:$76 sps:$4 sm:$0xff]   ;;  %v13204_v54 = vld [vmem:[%s15612_s1 + $0x1c] ss:$76 sps:$4 sm:$0xff]  }
 0x245   : > { %11877 = vmatprep.subr.bf16.mxu1 %v12907_v11  ;;  %7849 = vmatmul.mubr.bf16.gmra.mrb[252].mxu0 %v13201_v36  ;;  %v12916_v11 = vld [vmem:[%s13361_s12 + $0xfc8] sm:$0xff]   ;;  %v12918_v60 = vld [vmem:[%s13361_s12 + $0x1010] sm:$0xff]   ;;  %v14973_v23 = vsel %vm2802_vm2, %v14402_v6, %v14433_v30  ;;  %v12923_v6 = vld [vmem:[%s13361_s12 + $0x10d8] sm:$0xff]  }
 0x246   : > { %v14928_v5 = vpop.f32.mrb[136].mxu1  ;;  %11840 = vmatpush3.bf16.msra.mxu0 %v12910_v46  ;;  %v4584_v27 = vadd.f32 %v11348_v55, %v14844_v44  ;;  %7954 = vmatprep.mubr.bf16.mxu0 %v13202_v26  ;;  %v12919_v0 = vld [vmem:[%s13361_s12 + $0x10d0] sm:$0xff]   ;;  %v12922_v55 = vld [vmem:[%s13361_s12 + $0x1018] sm:$0xff]   ;;  %v12925_v26 = vld [vmem:[%s13361_s12 + $0x1060] sm:$0xff]  }
 0x247   : > { %v4645_v24 = vpop.f32.mrb[137].mxu1  ;;  %11841 = vmatprep.subr.bf16.mxu0 %v12913_v18  ;;  %v12920_v16 = vld [vmem:[%s13361_s12 + $0x1090] sm:$0xff]  }
 0x248   : > { %11878 = vmatpush3.bf16.msra.mxu1 %v12908_v53  ;;  %v14933_v4 = vpop.f32.mrb[138].mxu1  ;;  %v4646_v58 = vadd.f32 %v4645_v24, %v4581_v28  ;;  %v11349_v44 = vpop.f32.mrb[148].mxu0  ;;  %v13205_v36 = vld [vmem:[%s15612_s1 + $0x10] ss:$76 sps:$4 sm:$0xff]  }
 0x249   : > { %v4648_v22 = vpop.f32.mrb[139].mxu1  ;;  %11879 = vmatprep.subr.bf16.mxu1 %v12911_v51  ;;  %v11350_v53 = vpop.f32.mrb[149].mxu0  ;;  %v12921_v51 = vld [vmem:[%s13361_s12 + $0x1058] sm:$0xff]  }
 0x24a   : > { %vm4676_vm4 = vcmp.ge.f32.partialorder %v4646_v58, 0.0  ;;  %v4684_v49 = vmul.f32 0.01, %v4646_v58  ;;  %v4649_v52 = vadd.f32 %v4648_v22, %v4584_v27  ;;  %v11351_v37 = vadd.f32 %v11350_v53, %v11349_v44  ;;  %v11352_v46 = vpop.f32.mrb[150].mxu0  ;;  %11842 = vmatpush3.bf16.msra.mxu0 %v12914_v15  ;;  %v13207_v27 = vld [vmem:[%s15612_s1 + $0x18] ss:$76 sps:$4 sm:$0xff]  }
 0x24b   : > { %7914 = vmatmul.mubr.bf16.gmra.mrb[228].mxu1 %v13203_v21  ;;  %v11353_v19 = vpop.f32.mrb[151].mxu0  ;;  %11907 = vmatprep.subr.bf16.mxu0 %v12917_v9  ;;  %v13208_v9 = vld [vmem:[%s15612_s1 + $0xb4] ss:$76 sps:$4 sm:$0xff]   ;;  %v15007_v44 = vsel %vm2803_vm3, %v14424_v47, %v14454_v29 }
 0x24c   : > { %11880 = vmatpush3.bf16.msra.mxu1 %v12912_v3  ;;  %8019 = vmatprep.mubr.bf16.mxu1 %v13204_v54  ;;  %v14961_v43 = vsel %vm4676_vm4, %v4646_v58, %v4684_v49  ;;  %vm4677_vm5 = vcmp.ge.f32.partialorder %v4649_v52, 0.0  ;;  %v4685_v48 = vmul.f32 0.01, %v4649_v52  ;;  %v4589_v3 = vadd.f32 %v11351_v37, %v14857_v62  ;;  %v12924_v58 = vld [vmem:[%s13361_s12 + $0x1098] sm:$0xff]   ;;  %v12928_v53 = vld [vmem:[%s13361_s12 + $0x10a0] sm:$0xff]   ;;  %v12929_v37 = vld [vmem:[%s13361_s12 + $0x1068] sm:$0xff]  }
 0x24d   : > { %11881 = vmatprep.subr.bf16.mxu1 %v12915_v42  ;;  %v4700_v61 = vmax.f32 %v14958_v41, %v14961_v43  ;;  %v11354_v18 = vadd.f32 %v11353_v19, %v11352_v46  ;;  %7955 = vmatmul.mubr.bf16.vlgmr.msra.gmra.mrb[0].mxu0 %v13205_v36  ;;  %v13206_v42 = vld [vmem:[%s15612_s1 + $0xac] ss:$76 sps:$4 sm:$0xff]  }
 0x24e   : > { %v14965_v7 = vpop.f32.mrb[140].mxu1  ;;  %v14975_v24 = vsel %vm4677_vm5, %v4649_v52, %v4685_v48  ;;  %v4654_v62 = vadd.f32 %v14928_v5, %v4589_v3  ;;  %11908 = vmatpush3.bf16.msra.mxu0 %v12918_v60  ;;  %7962 = vmatprep.mubr.bf16.mxu0 %v13206_v42  ;;  %v12927_v52 = vld [vmem:[%s13361_s12 + $0x10e0] sm:$0xff]   ;;  %v13209_v3 = vld [vmem:[%s15612_s1 + $0xa8] ss:$76 sps:$4 sm:$0xff]   ;;  %v13212_v42 = vld [vmem:[%s15612_s1 + $0x14c] ss:$76 sps:$4 sm:$0xff]  }
 0x24f   : > { %v4661_v14 = vpop.f32.mrb[141].mxu1  ;;  %v4701_v15 = vmax.f32 %v14973_v23, %v14975_v24  ;;  %v4592_v22 = vadd.f32 %v11354_v18, %v14867_v10  ;;  %11909 = vmatprep.subr.bf16.mxu0 %v12921_v51  ;;  %v12926_v60 = vld [vmem:[%s13361_s12 + $0x1020] sm:$0xff]   ;;  %v15023_v51 = vsel %vm2804_vm6, %v14435_v33, %v14472_v32  ;;  %v12931_v18 = vld [vmem:[%s13361_s12 + $0x10e8] sm:$0xff]  }
 0x250   : > { %11882 = vmatpush3.bf16.msra.mxu1 %v12916_v11  ;;  %v14979_v28 = vpop.f32.mrb[142].mxu1  ;;  %vm4678_vm7 = vcmp.ge.f32.partialorder %v4654_v62, 0.0  ;;  %v4686_v10 = vmul.f32 0.01, %v4654_v62  ;;  %v11355_v21 = vpop.f32.mrb[152].mxu0  ;;  %v12932_v36 = vld [vmem:[%s13361_s12 + $0x10a8] sm:$0xff]  }
 0x251   : > { %11947 = vmatprep.subr.bf16.mxu1 %v12919_v0  ;;  %v4664_v30 = vpop.f32.mrb[143].mxu1  ;;  %v4657_v5 = vadd.f32 %v14933_v4, %v4592_v22  ;;  %v11356_v49 = vpop.f32.mrb[153].mxu0  ;;  %v13210_v32 = vld [vmem:[%s15612_s1 + $0x144] ss:$76 sps:$4 sm:$0xff]  }
 0x252   : > { %v11357_v11 = vadd.f32 %v11356_v49, %v11355_v21  ;;  %v11358_v54 = vpop.f32.mrb[154].mxu0  ;;  %11910 = vmatpush3.bf16.msra.mxu0 %v12922_v55  ;;  %v15012_v0 = vsel %vm4678_vm7, %v4654_v62, %v4686_v10  ;;  %v12933_v62 = vld [vmem:[%s13361_s12 + $0x1070] sm:$0xff]  }
 0x253   : > { %8020 = vmatmul.mubr.bf16.vlgmr.msra.gmra.mrb[232].mxu1 %v13207_v27  ;;  %vm4679_vm8 = vcmp.ge.f32.partialorder %v4657_v5, 0.0  ;;  %v4687_v4 = vmul.f32 0.01, %v4657_v5  ;;  %v11359_v48 = vpop.f32.mrb[155].mxu0  ;;  %11911 = vmatprep.subr.bf16.mxu0 %v12925_v26  ;;  %v4702_v46 = vmax.f32 %v15007_v44, %v15012_v0  ;;  %v12935_v26 = vld [vmem:[%s13361_s12 + $0x10f0] sm:$0xff]  }
 0x254   : > { %11948 = vmatpush3.bf16.msra.mxu1 %v12920_v16  ;;  %8027 = vmatprep.mubr.bf16.mxu1 %v13208_v9  ;;  %v11360_v47 = vadd.f32 %v11359_v48, %v11358_v54  ;;  %v4597_v29 = vadd.f32 %v11357_v11, %v14883_v8  ;;  %v12930_v16 = vld [vmem:[%s13361_s12 + $0x1028] sm:$0xff]   ;;  %v12934_v9 = vld [vmem:[%s13361_s12 + $0x1030] sm:$0xff]  }
 0x255   : > { %11949 = vmatprep.subr.bf16.mxu1 %v12923_v6  ;;  %v15026_v19 = vsel %vm4679_vm8, %v4657_v5, %v4687_v4  ;;  %7963 = vmatmul.mubr.bf16.gmra.mrb[4].mxu0 %v13209_v3  ;;  %v13211_v6 = vld [vmem:[%s15612_s1 + $0xb0] ss:$76 sps:$4 sm:$0xff]  }
 0x256   : > { %v4703_v8 = vmax.f32 %v15023_v51, %v15026_v19  ;;  %v4662_v55 = vadd.f32 %v4661_v14, %v4597_v29  ;;  %11912 = vmatpush3.bf16.msra.mxu0 %v12926_v60  ;;  %v4600_v33 = vadd.f32 %v11360_v47, %v14893_v40  ;;  %7970 = vmatprep.mubr.bf16.mxu0 %v13210_v32  ;;  %v12936_v49 = vld [vmem:[%s13361_s12 + $0x10b0] sm:$0xff]   ;;  %v13214_v47 = vld [vmem:[%s15612_s1 + $0x1dc] ss:$76 sps:$4 sm:$0xff]  }
 0x257   : > { %11913 = vmatprep.subr.bf16.mxu0 %v12929_v37  ;;  %v13213_v37 = vld [vmem:[%s15612_s1 + $0x140] ss:$76 sps:$4 sm:$0xff]   ;;  %v12940_v29 = vld [vmem:[%s13361_s12 + $0x10b8] sm:$0xff]  }
 0x258   : > { %11950 = vmatpush3.bf16.msra.mxu1 %v12924_v58  ;;  %vm4680_vm11 = vcmp.ge.f32.partialorder %v4662_v55, 0.0  ;;  %v4688_v14 = vmul.f32 0.01, %v4662_v55  ;;  %v4665_v40 = vadd.f32 %v4664_v30, %v4600_v33  ;;  %v11361_v22 = vpop.f32.mrb[156].mxu0  ;;  %v15052_v58 = vsel %vm2805_vm9, %v14464_v20, %v14485_v35  ;;  %v12937_v20 = vld [vmem:[%s13361_s12 + $0x1078] sm:$0xff]   ;;  %v12942_v33 = vld [vmem:[%s13361_s12 + $0x1040] sm:$0xff]  }
 0x259   : > { %11951 = vmatprep.subr.bf16.mxu1 %v12927_v52  ;;  %v11362_v27 = vpop.f32.mrb[157].mxu0  ;;  %v15066_v35 = vsel %vm2806_vm10, %v14474_v12, %v14508_v50  ;;  %v12939_v12 = vld [vmem:[%s13361_s12 + $0x10f8] sm:$0xff]   ;;  %vm8474_vm10 = vcmask 56320  }
 0x25a   : > { %v15055_v10 = vsel %vm4680_vm11, %v4662_v55, %v4688_v14  ;;  %vm4681_vm12 = vcmp.ge.f32.partialorder %v4665_v40, 0.0  ;;  %v4689_v30 = vmul.f32 0.01, %v4665_v40  ;;  %v11363_v5 = vadd.f32 %v11362_v27, %v11361_v22  ;;  %v11364_v21 = vpop.f32.mrb[158].mxu0  ;;  %11914 = vmatpush3.bf16.msra.mxu0 %v12930_v16  ;;  %v13215_v16 = vld [vmem:[%s15612_s1 + $0x148] ss:$76 sps:$4 sm:$0xff]  }
 0x25b   : > { %8028 = vmatmul.mubr.bf16.gmra.mrb[236].mxu1 %v13211_v6  ;;  %v4704_v52 = vmax.f32 %v15052_v58, %v15055_v10  ;;  %v11365_v4 = vpop.f32.mrb[159].mxu0  ;;  %11915 = vmatprep.subr.bf16.mxu0 %v12933_v62  ;;  %v13216_v55 = vld [vmem:[%s15612_s1 + $0x1e4] ss:$76 sps:$4 sm:$0xff]   ;;  %v15100_v6 = vsel %vm2807_vm13, %v14496_v2, %v14523_v59  ;;  %v15113_v59 = vsel %vm2808_vm14, %v14510_v31, %v14527_v63  ;;  %v12947_v31 = vld [vmem:[%s13361_s12 + $0x1108] sm:$0xff]  }
 0x25c   : > { %11952 = vmatpush3.bf16.msra.mxu1 %v12928_v53  ;;  %8035 = vmatprep.mubr.bf16.mxu1 %v13212_v42  ;;  %v15068_v11 = vsel %vm4681_vm12, %v4665_v40, %v4689_v30  ;;  %v4605_v54 = vadd.f32 %v11363_v5, %v14909_v17  ;;  %v11366_v60 = vadd.f32 %v11365_v4, %v11364_v21  ;;  %v12938_v53 = vld [vmem:[%s13361_s12 + $0x1038] sm:$0xff]   ;;  %v12944_v22 = vld [vmem:[%s13361_s12 + $0x10c0] sm:$0xff]   ;;  %v12945_v42 = vld [vmem:[%s13361_s12 + $0x1088] sm:$0xff]  }
 0x25d   : > { %11953 = vmatprep.subr.bf16.mxu1 %v12931_v18  ;;  %v4705_v48 = vmax.f32 %v15066_v35, %v15068_v11  ;;  %7971 = vmatmul.mubr.bf16.gmra.mrb[8].mxu0 %v13213_v37  ;;  %v12946_v4 = vld [vmem:[%s13361_s12 + $0x1048] sm:$0xff]  }
 0x25e   : > { %v4670_v50 = vadd.f32 %v14965_v7, %v4605_v54  ;;  %v4608_v17 = vadd.f32 %v11366_v60, %v14920_v38  ;;  %11916 = vmatpush3.bf16.msra.mxu0 %v12934_v9  ;;  %7978 = vmatprep.mubr.bf16.mxu0 %v13214_v47  ;;  %v12941_v7 = vld [vmem:[%s13361_s12 + $0x1080] sm:$0xff]  }
 0x25f   : > { %11917 = vmatprep.subr.bf16.mxu0 %v12937_v20  ;;  %v13217_v60 = vld [vmem:[%s15612_s1 + $0x1d8] ss:$76 sps:$4 sm:$0xff]   ;;  %v13219_v47 = vld [vmem:[%s15612_s1 + $0x1e0] ss:$76 sps:$4 sm:$0xff]  }
 0x260   : > { %11954 = vmatpush3.bf16.msra.mxu1 %v12932_v36  ;;  %vm4682_vm15 = vcmp.ge.f32.partialorder %v4670_v50, 0.0  ;;  %v4690_v38 = vmul.f32 0.01, %v4670_v50  ;;  %v4673_v3 = vadd.f32 %v14979_v28, %v4608_v17  ;;  %v11393_v18 = vpop.f32.mrb[160].mxu0  ;;  %v12943_v36 = vld [vmem:[%s13361_s12 + $0x1100] sm:$0xff]   ;;  %v12948_v17 = vld [vmem:[%s13361_s12 + $0x10c8] sm:$0xff]  }
 0x261   : > { %11955 = vmatprep.subr.bf16.mxu1 %v12935_v26  ;;  %v11394_v32 = vpop.f32.mrb[161].mxu0 }
 0x262   : > { %vm4683_vm1 = vcmp.ge.f32.partialorder %v4673_v3, 0.0  ;;  %v4691_v28 = vmul.f32 0.01, %v4673_v3  ;;  %v11395_v62 = vadd.f32 %v11394_v32, %v11393_v18  ;;  %v11396_v14 = vpop.f32.mrb[162].mxu0  ;;  %11918 = vmatpush3.bf16.msra.mxu0 %v12938_v53  ;;  %v15105_v27 = vsel %vm4682_vm15, %v4670_v50, %v4690_v38  ;;  %v13218_v50 = vld [vmem:[%s15612_s1 + $0x24] ss:$76 sps:$4 sm:$0xff]  }
 0x263   : > { %8036 = vmatmul.mubr.bf16.gmra.mrb[240].mxu1 %v13215_v16  ;;  %v11397_v26 = vpop.f32.mrb[163].mxu0  ;;  %11919 = vmatprep.subr.bf16.mxu0 %v12941_v7  ;;  %v4706_v2 = vmax.f32 %v15100_v6, %v15105_v27  ;;  %v13220_v38 = vld [vmem:[%s15612_s1 + $0x2c] ss:$76 sps:$4 sm:$0xff]  }
 0x264   : > { %11956 = vmatpush3.bf16.msra.mxu1 %v12936_v49  ;;  %8043 = vmatprep.mubr.bf16.mxu1 %v13216_v55  ;;  %v5944_v5 = vadd.f32 %v11395_v62, %v13919_v39  ;;  %v11398_v21 = vadd.f32 %v11397_v26, %v11396_v14  ;;  %v15118_v20 = vsel %vm4683_vm1, %v4673_v3, %v4691_v28  ;;  %v12950_v3 = vld [vmem:[%s13361_s12 + $0x1110] sm:$0xff]   ;;  %v12953_v62 = vld [vmem:[%s13361_s12 + $0x1158] sm:$0xff]  }
 0x265   : > { %11957 = vmatprep.subr.bf16.mxu1 %v12939_v12  ;;  %7979 = vmatmul.mubr.bf16.gmra.mrb[12].mxu0 %v13217_v60  ;;  %v4707_v63 = vmax.f32 %v15113_v59, %v15118_v20  ;;  %v12951_v55 = vld [vmem:[%s13361_s12 + $0x11d0] sm:$0xff]  }
 0x266   : > { %v11433_v40 = vpop.f32.mrb[144].mxu1  ;;  %v5947_v53 = vadd.f32 %v11398_v21, %v13942_v57  ;;  %11920 = vmatpush3.bf16.msra.mxu0 %v12942_v33  ;;  %8084 = vmatprep.mubr.bf16.mxu0 %v13218_v50  ;;  %v12952_v28 = vld [vmem:[%s13361_s12 + $0x1190] sm:$0xff]   ;;  %v12957_v50 = vld [vmem:[%s13361_s12 + $0x1160] sm:$0xff]  }
 0x267   : > { %v11434_v30 = vpop.f32.mrb[145].mxu1  ;;  %11921 = vmatprep.subr.bf16.mxu0 %v12945_v42 }
 0x268   : > { %v11435_v9 = vadd.f32 %v11434_v30, %v11433_v40  ;;  %v11436_v49 = vpop.f32.mrb[146].mxu1  ;;  %11958 = vmatpush3.bf16.msra.mxu1 %v12940_v29  ;;  %v12949_v29 = vld [vmem:[%s13361_s12 + $0x1150] sm:$0xff]   ;;  %v11399_v7 = vpop.f32.mrb[164].mxu0 }
 0x269   : > { %v11437_v54 = vpop.f32.mrb[147].mxu1  ;;  %11959 = vmatprep.subr.bf16.mxu1 %v12943_v36  ;;  %v11400_v18 = vpop.f32.mrb[165].mxu0 }
 0x26a   : > { %v15127_v37 = vadd.f32 %v11435_v9, %v5944_v5  ;;  %v11438_v12 = vadd.f32 %v11437_v54, %v11436_v49  ;;  %v11401_v33 = vadd.f32 %v11400_v18, %v11399_v7  ;;  %v11402_v32 = vpop.f32.mrb[166].mxu0  ;;  %11922 = vmatpush3.bf16.msra.mxu0 %v12946_v4  ;;  %v12954_v5 = vld [vmem:[%s13361_s12 + $0x1118] sm:$0xff]   ;;  %v13221_v9 = vld [vmem:[%s15612_s1 + $0x20] ss:$76 sps:$4 sm:$0xff]  }
 0x26b   : > { %8044 = vmatmul.mubr.bf16.gmra.mrb[244].mxu1 %v13219_v47  ;;  %v11403_v14 = vpop.f32.mrb[167].mxu0  ;;  %11987 = vmatprep.subr.bf16.mxu0 %v12949_v29  ;;  %v12955_v49 = vld [vmem:[%s13361_s12 + $0x11d8] sm:$0xff]   ;;  %v13224_v29 = vld [vmem:[%s15612_s1 + $0xc4] ss:$76 sps:$4 sm:$0xff]  }
 0x26c   : > { %v15137_v16 = vadd.f32 %v11438_v12, %v5947_v53  ;;  %11960 = vmatpush3.bf16.msra.mxu1 %v12944_v22  ;;  %8149 = vmatprep.mubr.bf16.mxu1 %v13220_v38  ;;  %v5952_v22 = vadd.f32 %v11401_v33, %v13964_v13  ;;  %v11404_v42 = vadd.f32 %v11403_v14, %v11402_v32  ;;  %v12956_v53 = vld [vmem:[%s13361_s12 + $0x1198] sm:$0xff]   ;;  %v13223_v12 = vld [vmem:[%s15612_s1 + $0x28] ss:$76 sps:$4 sm:$0xff]   ;;  %v12958_v7 = vld [vmem:[%s13361_s12 + $0x1120] sm:$0xff]  }
 0x26d   : > { %11961 = vmatprep.subr.bf16.mxu1 %v12947_v31  ;;  %8085 = vmatmul.mubr.bf16.vlgmr.msra.gmra.mrb[16].mxu0 %v13221_v9  ;;  %v13222_v31 = vld [vmem:[%s15612_s1 + $0xbc] ss:$76 sps:$4 sm:$0xff]   ;;  %v12960_v32 = vld [vmem:[%s13361_s12 + $0x11a0] sm:$0xff]  }
 0x26e   : > { %v11439_v36 = vpop.f32.mrb[148].mxu1  ;;  %v5955_v4 = vadd.f32 %v11404_v42, %v13992_v34  ;;  %11988 = vmatpush3.bf16.msra.mxu0 %v12950_v3  ;;  %8092 = vmatprep.mubr.bf16.mxu0 %v13222_v31  ;;  %v12959_v3 = vld [vmem:[%s13361_s12 + $0x11e0] sm:$0xff]   ;;  %v12964_v31 = vld [vmem:[%s13361_s12 + $0x11a8] sm:$0xff]  }
 0x26f   : > { %v11440_v40 = vpop.f32.mrb[149].mxu1  ;;  %11989 = vmatprep.subr.bf16.mxu0 %v12953_v62 }
 0x270   : > { %v11441_v26 = vadd.f32 %v11440_v40, %v11439_v36  ;;  %v11442_v30 = vpop.f32.mrb[150].mxu1  ;;  %11962 = vmatpush3.bf16.msra.mxu1 %v12948_v17  ;;  %v11405_v47 = vpop.f32.mrb[168].mxu0  ;;  %v12961_v36 = vld [vmem:[%s13361_s12 + $0x1168] sm:$0xff]  }
 0x271   : > { %v11443_v21 = vpop.f32.mrb[151].mxu1  ;;  %12027 = vmatprep.subr.bf16.mxu1 %v12951_v55  ;;  %v11406_v38 = vpop.f32.mrb[169].mxu0 }
 0x272   : > { %v15153_v54 = vadd.f32 %v11441_v26, %v5952_v22  ;;  %v11444_v60 = vadd.f32 %v11443_v21, %v11442_v30  ;;  %v11407_v18 = vadd.f32 %v11406_v38, %v11405_v47  ;;  %v11408_v55 = vpop.f32.mrb[170].mxu0  ;;  %11990 = vmatpush3.bf16.msra.mxu0 %v12954_v5  ;;  %v12962_v26 = vld [vmem:[%s13361_s12 + $0x1128] sm:$0xff]   ;;  %v13225_v5 = vld [vmem:[%s15612_s1 + $0xb8] ss:$76 sps:$4 sm:$0xff]  }
 0x273   : > { %8150 = vmatmul.mubr.bf16.vlgmr.msra.gmra.mrb[248].mxu1 %v13223_v12  ;;  %v11409_v62 = vpop.f32.mrb[171].mxu0  ;;  %11991 = vmatprep.subr.bf16.mxu0 %v12957_v50  ;;  %v12963_v21 = vld [vmem:[%s13361_s12 + $0x11e8] sm:$0xff]   ;;  %v12965_v12 = vld [vmem:[%s13361_s12 + $0x1170] sm:$0xff]  }
 0x274   : > { %v15163_v17 = vadd.f32 %v11444_v60, %v5955_v4  ;;  %12028 = vmatpush3.bf16.msra.mxu1 %v12952_v28  ;;  %8157 = vmatprep.mubr.bf16.mxu1 %v13224_v29  ;;  %v5960_v28 = vadd.f32 %v11407_v18, %v14008_v56  ;;  %v11410_v40 = vadd.f32 %v11409_v62, %v11408_v55  ;;  %v13226_v60 = vld [vmem:[%s15612_s1 + $0x154] ss:$76 sps:$4 sm:$0xff]   ;;  %v13228_v29 = vld [vmem:[%s15612_s1 + $0x15c] ss:$76 sps:$4 sm:$0xff]  }
 0x275   : > { %12029 = vmatprep.subr.bf16.mxu1 %v12955_v49  ;;  %8093 = vmatmul.mubr.bf16.gmra.mrb[20].mxu0 %v13225_v5 }
 0x276   : > { %v11445_v33 = vpop.f32.mrb[152].mxu1  ;;  %v5963_v9 = vadd.f32 %v11410_v40, %v14029_v25  ;;  %11992 = vmatpush3.bf16.msra.mxu0 %v12958_v7  ;;  %8100 = vmatprep.mubr.bf16.mxu0 %v13226_v60  ;;  %v12966_v7 = vld [vmem:[%s13361_s12 + $0x1130] sm:$0xff]  }
 0x277   : > { %v11446_v14 = vpop.f32.mrb[153].mxu1  ;;  %11993 = vmatprep.subr.bf16.mxu0 %v12961_v36 }
 0x278   : > { %v11447_v22 = vadd.f32 %v11446_v14, %v11445_v33  ;;  %v11448_v42 = vpop.f32.mrb[154].mxu1  ;;  %12030 = vmatpush3.bf16.msra.mxu1 %v12956_v53  ;;  %v13227_v53 = vld [vmem:[%s15612_s1 + $0xc0] ss:$76 sps:$4 sm:$0xff]   ;;  %v11411_v47 = vpop.f32.mrb[172].mxu0  ;;  %v12968_v14 = vld [vmem:[%s13361_s12 + $0x11b0] sm:$0xff]  }
 0x279   : > { %v11449_v30 = vpop.f32.mrb[155].mxu1  ;;  %12031 = vmatprep.subr.bf16.mxu1 %v12959_v3  ;;  %v11412_v38 = vpop.f32.mrb[173].mxu0  ;;  %v12967_v3 = vld [vmem:[%s13361_s12 + $0x11f0] sm:$0xff]  }
 0x27a   : > { %v15179_v49 = vadd.f32 %v11447_v22, %v5960_v28  ;;  %v11450_v4 = vadd.f32 %v11449_v30, %v11448_v42  ;;  %v11413_v18 = vadd.f32 %v11412_v38, %v11411_v47  ;;  %v11414_v55 = vpop.f32.mrb[174].mxu0  ;;  %11994 = vmatpush3.bf16.msra.mxu0 %v12962_v26  ;;  %v12970_v30 = vld [vmem:[%s13361_s12 + $0x1138] sm:$0xff]  }
 0x27b   : > { %8158 = vmatmul.mubr.bf16.gmra.mrb[252].mxu1 %v13227_v53  ;;  %v11415_v36 = vpop.f32.mrb[175].mxu0  ;;  %11995 = vmatprep.subr.bf16.mxu0 %v12965_v12  ;;  %v12971_v26 = vld [vmem:[%s13361_s12 + $0x11f8] sm:$0xff]   ;;  %v12973_v12 = vld [vmem:[%s13361_s12 + $0x1180] sm:$0xff]  }
 0x27c   : > { %v15189_v50 = vadd.f32 %v11450_v4, %v5963_v9  ;;  %12032 = vmatpush3.bf16.msra.mxu1 %v12960_v32  ;;  %8165 = vmatprep.mubr.bf16.mxu1 %v13228_v29  ;;  %v12969_v32 = vld [vmem:[%s13361_s12 + $0x1178] sm:$0xff]   ;;  %v5968_v28 = vadd.f32 %v11413_v18, %v14051_v1  ;;  %v11416_v40 = vadd.f32 %v11415_v36, %v11414_v55  ;;  %v12975_v18 = vld [vmem:[%s13361_s12 + $0x1200] sm:$0xff]  }
 0x27d   : > { %12033 = vmatprep.subr.bf16.mxu1 %v12963_v21  ;;  %v13229_v21 = vld [vmem:[%s15612_s1 + $0x150] ss:$76 sps:$4 sm:$0xff]   ;;  %v13231_v53 = vld [vmem:[%s15612_s1 + $0x158] ss:$76 sps:$4 sm:$0xff]  }
 0x27e   : > { %v11451_v33 = vpop.f32.mrb[156].mxu1  ;;  %8101 = vmatmul.mubr.bf16.gmra.mrb[24].mxu0 %v13229_v21  ;;  %v5971_v9 = vadd.f32 %v11416_v40, %v14067_v45  ;;  %v12972_v38 = vld [vmem:[%s13361_s12 + $0x11b8] sm:$0xff]   ;;  %v12976_v21 = vld [vmem:[%s13361_s12 + $0x11c0] sm:$0xff]  }
 0x27f   : > { %v11452_v62 = vpop.f32.mrb[157].mxu1  ;;  %11996 = vmatpush3.bf16.msra.mxu0 %v12966_v7  ;;  %v13232_v7 = vld [vmem:[%s15612_s1 + $0x1f4] ss:$76 sps:$4 sm:$0xff]  }
 0x280   : > { %v11453_v22 = vadd.f32 %v11452_v62, %v11451_v33  ;;  %v11454_v42 = vpop.f32.mrb[158].mxu1  ;;  %12034 = vmatpush3.bf16.msra.mxu1 %v12964_v31  ;;  %v13230_v31 = vld [vmem:[%s15612_s1 + $0x1ec] ss:$76 sps:$4 sm:$0xff]   ;;  %11997 = vmatprep.subr.bf16.mxu0 %v12969_v32  ;;  %v11473_v29 = vpop.f32.mrb[176].mxu0  ;;  %v12974_v62 = vld [vmem:[%s13361_s12 + $0x1140] sm:$0xff]  }
 0x281   : > { %v11455_v5 = vpop.f32.mrb[159].mxu1  ;;  %12035 = vmatprep.subr.bf16.mxu1 %v12967_v3  ;;  %8108 = vmatprep.mubr.bf16.mxu0 %v13230_v31  ;;  %v11474_v3 = vpop.f32.mrb[177].mxu0  ;;  %v12977_v32 = vld [vmem:[%s13361_s12 + $0x1188] sm:$0xff]  }
 0x282   : > { %v15205_v4 = vadd.f32 %v11453_v22, %v5968_v28  ;;  %v11456_v60 = vadd.f32 %v11455_v5, %v11454_v42  ;;  %v11475_v55 = vadd.f32 %v11474_v3, %v11473_v29  ;;  %v11476_v33 = vpop.f32.mrb[178].mxu0  ;;  %v13235_v29 = vld [vmem:[%s15612_s1 + $0x1f0] ss:$76 sps:$4 sm:$0xff]   ;;  %v12980_v3 = vld [vmem:[%s13361_s12 + $0x11c8] sm:$0xff]  }
 0x283   : > { %8166 = vmatmul.mubr.bf16.gmra.mrb[0].mxu1 %v13231_v53  ;;  %11998 = vmatpush3.bf16.msra.mxu0 %v12970_v30  ;;  %v11477_v28 = vpop.f32.mrb[179].mxu0  ;;  %v13233_v30 = vld [vmem:[%s15612_s1 + $0x1e8] ss:$76 sps:$4 sm:$0xff]  }
 0x284   : > { %v15214_v47 = vadd.f32 %v11456_v60, %v5971_v9  ;;  %12036 = vmatpush3.bf16.msra.mxu1 %v12968_v14  ;;  %8173 = vmatprep.mubr.bf16.mxu1 %v13232_v7  ;;  %v6074_v14 = vadd.f32 %v11475_v55, %v15127_v37  ;;  %v11478_v22 = vadd.f32 %v11477_v28, %v11476_v33  ;;  %v12979_v9 = vld [vmem:[%s13361_s12 + $0x1208] sm:$0xff]   ;;  %v12982_v28 = vld [vmem:[%s13361_s12 + $0x1210] sm:$0xff]  }
 0x285   : > { %12037 = vmatprep.subr.bf16.mxu1 %v12971_v26  ;;  %11999 = vmatprep.subr.bf16.mxu0 %v12973_v12  ;;  %v12978_v53 = vld [vmem:[%s13361_s12 + $0x1148] sm:$0xff]   ;;  %v13234_v12 = vld [vmem:[%s15612_s1 + $0x34] ss:$76 sps:$4 sm:$0xff]  }
 0x286   : > { %v11513_v36 = vpop.f32.mrb[160].mxu1  ;;  %8109 = vmatmul.mubr.bf16.gmra.mrb[28].mxu0 %v13233_v30  ;;  %v6077_v60 = vadd.f32 %v11478_v22, %v15137_v16  ;;  %v13237_v30 = vld [vmem:[%s15612_s1 + $0x30] ss:$76 sps:$4 sm:$0xff]  }
 0x287   : > { %v11514_v40 = vpop.f32.mrb[161].mxu1  ;;  %12000 = vmatpush3.bf16.msra.mxu0 %v12974_v62  ;;  %8214 = vmatprep.mubr.bf16.mxu0 %v13234_v12  ;;  %v12988_v12 = vld [vmem:[%s13361_s12 + $0x1290] sm:$0xff]  }
 0x288   : > { %v11515_v42 = vadd.f32 %v11514_v40, %v11513_v36  ;;  %v11516_v5 = vpop.f32.mrb[162].mxu1  ;;  %12038 = vmatpush3.bf16.msra.mxu1 %v12972_v38  ;;  %12001 = vmatprep.subr.bf16.mxu0 %v12977_v32  ;;  %v12981_v38 = vld [vmem:[%s13361_s12 + $0x1250] sm:$0xff]   ;;  %v11479_v7 = vpop.f32.mrb[180].mxu0  ;;  %v12983_v32 = vld [vmem:[%s13361_s12 + $0x1258] sm:$0xff]  }
 0x289   : > { %v11517_v26 = vpop.f32.mrb[163].mxu1  ;;  %12039 = vmatprep.subr.bf16.mxu1 %v12975_v18  ;;  %v13236_v18 = vld [vmem:[%s15612_s1 + $0x3c] ss:$76 sps:$4 sm:$0xff]   ;;  %v11480_v55 = vpop.f32.mrb[181].mxu0 }
 0x28a   : > { %v15230_v31 = vadd.f32 %v11515_v42, %v6074_v14  ;;  %v11518_v37 = vadd.f32 %v11517_v26, %v11516_v5  ;;  %v11481_v33 = vadd.f32 %v11480_v55, %v11479_v7  ;;  %v11482_v36 = vpop.f32.mrb[182].mxu0 }
 0x28b   : > { %8174 = vmatmul.mubr.bf16.gmra.mrb[4].mxu1 %v13235_v29  ;;  %12002 = vmatpush3.bf16.msra.mxu0 %v12978_v53  ;;  %v11483_v40 = vpop.f32.mrb[183].mxu0  ;;  %v13239_v29 = vld [vmem:[%s15612_s1 + $0x38] ss:$76 sps:$4 sm:$0xff]  }
 0x28c   : > { %v15240_v16 = vadd.f32 %v11518_v37, %v6077_v60  ;;  %12040 = vmatpush3.bf16.msra.mxu1 %v12976_v21  ;;  %8279 = vmatprep.mubr.bf16.mxu1 %v13236_v18  ;;  %v6082_v22 = vadd.f32 %v11481_v33, %v15153_v54  ;;  %v11484_v42 = vadd.f32 %v11483_v40, %v11482_v36  ;;  %v13238_v54 = vld [vmem:[%s15612_s1 + $0xcc] ss:$76 sps:$4 sm:$0xff]   ;;  %v12986_v18 = vld [vmem:[%s13361_s12 + $0x1220] sm:$0xff]  }
 0x28d   : > { %12041 = vmatprep.subr.bf16.mxu1 %v12979_v9  ;;  %12067 = vmatprep.subr.bf16.mxu0 %v12981_v38  ;;  %v12984_v9 = vld [vmem:[%s13361_s12 + $0x1218] sm:$0xff]   ;;  %v12985_v38 = vld [vmem:[%s13361_s12 + $0x1260] sm:$0xff]  }
 0x28e   : > { %v11519_v62 = vpop.f32.mrb[164].mxu1  ;;  %8215 = vmatmul.mubr.bf16.vlgmr.msra.gmra.mrb[32].mxu0 %v13237_v30  ;;  %v6085_v60 = vadd.f32 %v11484_v42, %v15163_v17  ;;  %v12991_v33 = vld [vmem:[%s13361_s12 + $0x1298] sm:$0xff]  }
 0x28f   : > { %v11520_v14 = vpop.f32.mrb[165].mxu1  ;;  %12068 = vmatpush3.bf16.msra.mxu0 %v12982_v28  ;;  %8222 = vmatprep.mubr.bf16.mxu0 %v13238_v54 }
 0x290   : > { %v11521_v5 = vadd.f32 %v11520_v14, %v11519_v62  ;;  %v11522_v21 = vpop.f32.mrb[166].mxu1  ;;  %12042 = vmatpush3.bf16.msra.mxu1 %v12980_v3  ;;  %12069 = vmatprep.subr.bf16.mxu0 %v12983_v32  ;;  %v11485_v17 = vpop.f32.mrb[184].mxu0  ;;  %v13240_v3 = vld [vmem:[%s15612_s1 + $0xd4] ss:$76 sps:$4 sm:$0xff]   ;;  %v12987_v14 = vld [vmem:[%s13361_s12 + $0x1268] sm:$0xff]  }
 0x291   : > { %v11523_v26 = vpop.f32.mrb[167].mxu1  ;;  %12195 = vmatprep.subr.bf16.mxu1 %v12988_v12  ;;  %v11486_v55 = vpop.f32.mrb[185].mxu0 }
 0x292   : > { %v15254_v37 = vadd.f32 %v11521_v5, %v6082_v22  ;;  %v11524_v53 = vadd.f32 %v11523_v26, %v11522_v21  ;;  %v11487_v36 = vadd.f32 %v11486_v55, %v11485_v17  ;;  %v11488_v62 = vpop.f32.mrb[186].mxu0  ;;  %v12994_v26 = vld [vmem:[%s13361_s12 + $0x12a0] sm:$0xff]  }
 0x293   : > { %8280 = vmatmul.mubr.bf16.vlgmr.msra.gmra.mrb[8].mxu1 %v13239_v29  ;;  %12070 = vmatpush3.bf16.msra.mxu0 %v12984_v9  ;;  %v11489_v32 = vpop.f32.mrb[187].mxu0  ;;  %v13243_v29 = vld [vmem:[%s15612_s1 + $0xd0] ss:$76 sps:$4 sm:$0xff]  }
 0x294   : > { %v15264_v7 = vadd.f32 %v11524_v53, %v6085_v60  ;;  %8287 = vmatprep.mubr.bf16.mxu1 %v13240_v3  ;;  %12196 = vmatpush3.bf16.msra.mxu1 %v12988_v12  ;;  %v6090_v22 = vadd.f32 %v11487_v36, %v15179_v49  ;;  %v11490_v42 = vadd.f32 %v11489_v32, %v11488_v62  ;;  %v13241_v60 = vld [vmem:[%s15612_s1 + $0xc8] ss:$76 sps:$4 sm:$0xff]   ;;  %v13242_v49 = vld [vmem:[%s15612_s1 + $0x164] ss:$76 sps:$4 sm:$0xff]   ;;  %v13244_v3 = vld [vmem:[%s15612_s1 + $0x16c] ss:$76 sps:$4 sm:$0xff]  }
 0x295   : > { %12071 = vmatprep.subr.bf16.mxu0 %v12985_v38  ;;  %12197 = vmatprep.subr.bf16.mxu1 %v12991_v33  ;;  %v12989_v53 = vld [vmem:[%s13361_s12 + $0x1228] sm:$0xff]   ;;  %v12990_v38 = vld [vmem:[%s13361_s12 + $0x1270] sm:$0xff]   ;;  %v12993_v32 = vld [vmem:[%s13361_s12 + $0x1278] sm:$0xff]  }
 0x296   : > { %v11525_v28 = vpop.f32.mrb[168].mxu1  ;;  %8223 = vmatmul.mubr.bf16.gmra.mrb[36].mxu0 %v13241_v60  ;;  %v6093_v9 = vadd.f32 %v11490_v42, %v15189_v50  ;;  %v13245_v60 = vld [vmem:[%s15612_s1 + $0x160] ss:$76 sps:$4 sm:$0xff]  }
 0x297   : > { %v11526_v40 = vpop.f32.mrb[169].mxu1  ;;  %12072 = vmatpush3.bf16.msra.mxu0 %v12986_v18  ;;  %8230 = vmatprep.mubr.bf16.mxu0 %v13242_v49  ;;  %v12997_v18 = vld [vmem:[%s13361_s12 + $0x12a8] sm:$0xff]  }
 0x298   : > { %v11527_v5 = vadd.f32 %v11526_v40, %v11525_v28  ;;  %v11528_v21 = vpop.f32.mrb[170].mxu1  ;;  %12198 = vmatpush3.bf16.msra.mxu1 %v12991_v33  ;;  %12073 = vmatprep.subr.bf16.mxu0 %v12987_v14  ;;  %v11491_v50 = vpop.f32.mrb[188].mxu0  ;;  %v12992_v28 = vld [vmem:[%s13361_s12 + $0x1230] sm:$0xff]   ;;  %v13246_v49 = vld [vmem:[%s15612_s1 + $0x1fc] ss:$76 sps:$4 sm:$0xff]  }
 0x299   : > { %v11529_v30 = vpop.f32.mrb[171].mxu1  ;;  %12199 = vmatprep.subr.bf16.mxu1 %v12994_v26  ;;  %v11492_v55 = vpop.f32.mrb[189].mxu0 }
 0x29a   : > { %v15279_v54 = vadd.f32 %v11527_v5, %v6090_v22  ;;  %v11530_v12 = vadd.f32 %v11529_v30, %v11528_v21  ;;  %v11493_v33 = vadd.f32 %v11492_v55, %v11491_v50  ;;  %v11494_v36 = vpop.f32.mrb[190].mxu0  ;;  %v13000_v30 = vld [vmem:[%s13361_s12 + $0x12b0] sm:$0xff]   ;;  %v12996_v50 = vld [vmem:[%s13361_s12 + $0x1280] sm:$0xff]  }
 0x29b   : > { %8288 = vmatmul.mubr.bf16.gmra.mrb[12].mxu1 %v13243_v29  ;;  %12074 = vmatpush3.bf16.msra.mxu0 %v12989_v53  ;;  %v11495_v40 = vpop.f32.mrb[191].mxu0  ;;  %v13002_v29 = vld [vmem:[%s13361_s12 + $0x12b8] sm:$0xff]  }
 0x29c   : > { %v15288_v17 = vadd.f32 %v11530_v12, %v6093_v9  ;;  %8295 = vmatprep.mubr.bf16.mxu1 %v13244_v3  ;;  %12200 = vmatpush3.bf16.msra.mxu1 %v12994_v26  ;;  %v6098_v22 = vadd.f32 %v11493_v33, %v15205_v4  ;;  %v11496_v42 = vadd.f32 %v11495_v40, %v11494_v36  ;;  %v12995_v4 = vld [vmem:[%s13361_s12 + $0x1238] sm:$0xff]  }
 0x29d   : > { %12201 = vmatprep.subr.bf16.mxu1 %v12997_v18  ;;  %12075 = vmatprep.subr.bf16.mxu0 %v12990_v38  ;;  %v13247_v38 = vld [vmem:[%s15612_s1 + $0x168] ss:$76 sps:$4 sm:$0xff]  }
 0x29e   : > { %v11531_v62 = vpop.f32.mrb[172].mxu1  ;;  %8231 = vmatmul.mubr.bf16.gmra.mrb[40].mxu0 %v13245_v60  ;;  %v6101_v53 = vadd.f32 %v11496_v42, %v15214_v47 }
 0x29f   : > { %v11532_v14 = vpop.f32.mrb[173].mxu1  ;;  %12076 = vmatpush3.bf16.msra.mxu0 %v12992_v28  ;;  %8238 = vmatprep.mubr.bf16.mxu0 %v13246_v49  ;;  %v12998_v28 = vld [vmem:[%s13361_s12 + $0x1240] sm:$0xff]  }
 0x2a0   : > { %v11533_v5 = vadd.f32 %v11532_v14, %v11531_v62  ;;  %v11534_v21 = vpop.f32.mrb[174].mxu1  ;;  %12202 = vmatpush3.bf16.msra.mxu1 %v12997_v18  ;;  %12077 = vmatprep.subr.bf16.mxu0 %v12993_v32  ;;  %v11553_v3 = vpop.f32.mrb[192].mxu0  ;;  %v13248_v18 = vld [vmem:[%s15612_s1 + $0x204] ss:$76 sps:$4 sm:$0xff]   ;;  %v12999_v14 = vld [vmem:[%s13361_s12 + $0x1288] sm:$0xff]  }
 0x2a1   : > { %v11535_v26 = vpop.f32.mrb[175].mxu1  ;;  %12203 = vmatprep.subr.bf16.mxu1 %v13000_v30  ;;  %v11554_v55 = vpop.f32.mrb[193].mxu0  ;;  %v13251_v49 = vld [vmem:[%s15612_s1 + $0x200] ss:$76 sps:$4 sm:$0xff]  }
 0x2a2   : > { %v15302_v9 = vadd.f32 %v11533_v5, %v6098_v22  ;;  %v11536_v12 = vadd.f32 %v11535_v26, %v11534_v21  ;;  %v11555_v33 = vadd.f32 %v11554_v55, %v11553_v3  ;;  %v11556_v36 = vpop.f32.mrb[194].mxu0 }
 0x2a3   : > { %8296 = vmatmul.mubr.bf16.gmra.mrb[16].mxu1 %v13247_v38  ;;  %12078 = vmatpush3.bf16.msra.mxu0 %v12995_v4  ;;  %v11557_v32 = vpop.f32.mrb[195].mxu0  ;;  %v13001_v4 = vld [vmem:[%s13361_s12 + $0x1248] sm:$0xff]  }
 0x2a4   : > { %v15313_v47 = vadd.f32 %v11536_v12, %v6101_v53  ;;  %8303 = vmatprep.mubr.bf16.mxu1 %v13248_v18  ;;  %12204 = vmatpush3.bf16.msra.mxu1 %v13000_v30  ;;  %v6204_v22 = vadd.f32 %v11555_v33, %v15230_v31  ;;  %v11558_v42 = vadd.f32 %v11557_v32, %v11556_v36  ;;  %v13249_v30 = vld [vmem:[%s15612_s1 + $0x1f8] ss:$76 sps:$4 sm:$0xff]  }
 0x2a5   : > { %12205 = vmatprep.subr.bf16.mxu1 %v13002_v29  ;;  %12079 = vmatprep.subr.bf16.mxu0 %v12996_v50  ;;  %v13250_v31 = vld [vmem:[%s15612_s1 + $0x44] ss:$76 sps:$4 sm:$0xff]  }
 0x2a6   : > { %v11593_v62 = vpop.f32.mrb[176].mxu1  ;;  %8239 = vmatmul.mubr.bf16.gmra.mrb[44].mxu0 %v13249_v30  ;;  %v6207_v60 = vadd.f32 %v11558_v42, %v15240_v16  ;;  %v13252_v16 = vld [vmem:[%s15612_s1 + $0x48] ss:$76 sps:$4 sm:$0xff]  }
 0x2a7   : > { %v11594_v40 = vpop.f32.mrb[177].mxu1  ;;  %12080 = vmatpush3.bf16.msra.mxu0 %v12998_v28  ;;  %8344 = vmatprep.mubr.bf16.mxu0 %v13250_v31 }
 0x2a8   : > { %v11595_v5 = vadd.f32 %v11594_v40, %v11593_v62  ;;  %v11596_v21 = vpop.f32.mrb[178].mxu1  ;;  %12206 = vmatpush3.bf16.msra.mxu1 %v13002_v29  ;;  %12081 = vmatprep.subr.bf16.mxu0 %v12999_v14  ;;  %v11559_v29 = vpop.f32.mrb[196].mxu0 }
 0x2a9   : > { %v11597_v26 = vpop.f32.mrb[179].mxu1  ;;  %v11560_v50 = vpop.f32.mrb[197].mxu0 }
 0x2aa   : > { %v15325_v53 = vadd.f32 %v11595_v5, %v6204_v22  ;;  %v11598_v12 = vadd.f32 %v11597_v26, %v11596_v21  ;;  %v11561_v3 = vadd.f32 %v11560_v50, %v11559_v29  ;;  %v11562_v18 = vpop.f32.mrb[198].mxu0  ;;  %v13253_v22 = vld [vmem:[%s15612_s1 + $0x40] ss:$76 sps:$4 sm:$0xff]   ;;  %v13254_v26 = vld [vmem:[%s15612_s1 + $0xdc] ss:$76 sps:$4 sm:$0xff]  }
 0x2ab   : > { %8304 = vmatmul.mubr.bf16.gmra.mrb[20].mxu1 %v13251_v49  ;;  %12082 = vmatpush3.bf16.msra.mxu0 %v13001_v4  ;;  %v11563_v33 = vpop.f32.mrb[199].mxu0 }
 0x2ac   : > { %v15334_v38 = vadd.f32 %v11598_v12, %v6207_v60  ;;  %12207 = vmatprep.mubr.msk.bf16.mxu1 %vm2138_vm0, %v13252_v16  ;;  %v6212_v62 = vadd.f32 %v11561_v3, %v15254_v37  ;;  %v11564_v28 = vadd.f32 %v11563_v33, %v11562_v18  ;;  %v13255_v37 = vld [vmem:[%s15612_s1 + $0xe0] ss:$76 sps:$4 sm:$0xff]  }
 0x2ae   : > { %v11599_v55 = vpop.f32.mrb[180].mxu1  ;;  %8345 = vmatmul.mubr.bf16.vlgmr.msra.gmra.mrb[48].mxu0 %v13253_v22  ;;  %v6215_v42 = vadd.f32 %v11564_v28, %v15264_v7  ;;  %v13256_v7 = vld [vmem:[%s15612_s1 + $0x178] ss:$76 sps:$4 sm:$0xff]  }
 0x2af   : > { %v11600_v36 = vpop.f32.mrb[181].mxu1  ;;  %8352 = vmatprep.mubr.bf16.mxu0 %v13254_v26 }
 0x2b0   : > { %v11601_v32 = vadd.f32 %v11600_v36, %v11599_v55  ;;  %v11602_v40 = vpop.f32.mrb[182].mxu1  ;;  %v11565_v60 = vpop.f32.mrb[200].mxu0  ;;  %v13257_v36 = vld [vmem:[%s15612_s1 + $0xd8] ss:$76 sps:$4 sm:$0xff]  }
 0x2b1   : > { %v11603_v14 = vpop.f32.mrb[183].mxu1  ;;  %v11566_v12 = vpop.f32.mrb[201].mxu0 }
 0x2b2   : > { %v15345_v5 = vadd.f32 %v11601_v32, %v6212_v62  ;;  %v11604_v21 = vadd.f32 %v11603_v14, %v11602_v40  ;;  %v11567_v4 = vadd.f32 %v11566_v12, %v11565_v60  ;;  %v11568_v31 = vpop.f32.mrb[202].mxu0  ;;  %v13258_v40 = vld [vmem:[%s15612_s1 + $0x174] ss:$76 sps:$4 sm:$0xff]  }
 0x2b3   : > { %12208 = vmatmul.mubr.msk.bf16.vlgmr.msra.gmra.mrb[24].mxu1 %vm2138_vm0, %v13255_v37  ;;  %v11569_v29 = vpop.f32.mrb[203].mxu0 }
 0x2b4   : > { %v15354_v30 = vadd.f32 %v11604_v21, %v6215_v42  ;;  %12211 = vmatprep.mubr.msk.bf16.mxu1 %vm2138_vm0, %v13256_v7  ;;  %v6220_v50 = vadd.f32 %v11567_v4, %v15279_v54  ;;  %v11570_v3 = vadd.f32 %v11569_v29, %v11568_v31  ;;  %v13259_v54 = vld [vmem:[%s15612_s1 + $0x210] ss:$76 sps:$4 sm:$0xff]  }
 0x2b5   : > { %v13260_v29 = vld [vmem:[%s15612_s1 + $0x170] ss:$76 sps:$4 sm:$0xff]  }
 0x2b6   : > { %v11605_v49 = vpop.f32.mrb[184].mxu1  ;;  %8353 = vmatmul.mubr.bf16.gmra.mrb[52].mxu0 %v13257_v36  ;;  %v6223_v62 = vadd.f32 %v11570_v3, %v15288_v17 }
 0x2b7   : > { %v11606_v16 = vpop.f32.mrb[185].mxu1  ;;  %8360 = vmatprep.mubr.bf16.mxu0 %v13258_v40 }
 0x2b8   : > { %v11607_v18 = vadd.f32 %v11606_v16, %v11605_v49  ;;  %v11608_v55 = vpop.f32.mrb[186].mxu1  ;;  %v11571_v22 = vpop.f32.mrb[204].mxu0 }
 0x2b9   : > { %v11609_v33 = vpop.f32.mrb[187].mxu1  ;;  %v11572_v42 = vpop.f32.mrb[205].mxu0 }
 0x2ba   : > { %v15365_v28 = vadd.f32 %v11607_v18, %v6220_v50  ;;  %v11610_v32 = vadd.f32 %v11609_v33, %v11608_v55  ;;  %v11573_v21 = vadd.f32 %v11572_v42, %v11571_v22  ;;  %v11574_v17 = vpop.f32.mrb[206].mxu0  ;;  %v13261_v18 = vld [vmem:[%s15612_s1 + $0x20c] ss:$76 sps:$4 sm:$0xff]  }
 0x2bb   : > { %12212 = vmatmul.mubr.msk.bf16.gmra.mrb[28].mxu1 %vm2138_vm0, %v13259_v54  ;;  %v11575_v37 = vpop.f32.mrb[207].mxu0 }
 0x2bc   : > { %v15374_v14 = vadd.f32 %v11610_v32, %v6223_v62  ;;  %v6228_v7 = vadd.f32 %v11573_v21, %v15302_v9  ;;  %v11576_v12 = vadd.f32 %v11575_v37, %v11574_v17 }
 0x2be   : > { %v11611_v26 = vpop.f32.mrb[188].mxu1  ;;  %8361 = vmatmul.mubr.bf16.gmra.mrb[56].mxu0 %v13260_v29  ;;  %v6231_v16 = vadd.f32 %v11576_v12, %v15313_v47 }
 0x2bf   : > { %v11612_v60 = vpop.f32.mrb[189].mxu1  ;;  %8368 = vmatprep.mubr.bf16.mxu0 %v13261_v18 }
 0x2c0   : > { %v11613_v4 = vadd.f32 %v11612_v60, %v11611_v26  ;;  %v11614_v31 = vpop.f32.mrb[190].mxu1  ;;  %v11633_v9 = vpop.f32.mrb[208].mxu0  ;;  %v13262_v26 = vld [vmem:[%s15612_s1 + $0x208] ss:$76 sps:$4 sm:$0xff]  }
 0x2c1   : > { %v11615_v49 = vpop.f32.mrb[191].mxu1  ;;  %v11634_v33 = vpop.f32.mrb[209].mxu0 }
 0x2c2   : > { %v6293_v50 = vadd.f32 %v11613_v4, %v6228_v7  ;;  %v11616_v3 = vadd.f32 %v11615_v49, %v11614_v31  ;;  %v11635_v36 = vadd.f32 %v11634_v33, %v11633_v9  ;;  %v11636_v62 = vpop.f32.mrb[210].mxu0 }
 0x2c3   : > { %v11637_v40 = vpop.f32.mrb[211].mxu0 }
 0x2c4   : > { %v15384_v55 = vadd.f32 %v11616_v3, %v6231_v16  ;;  %v6334_v22 = vadd.f32 %v11635_v36, %v15325_v53  ;;  %v11638_v42 = vadd.f32 %v11637_v40, %v11636_v62 }
 0x2c6   : > { %v11673_v32 = vpop.f32.mrb[192].mxu1  ;;  %8369 = vmatmul.mubr.bf16.gmra.mrb[60].mxu0 %v13262_v26  ;;  %v6337_v37 = vadd.f32 %v11638_v42, %v15334_v38 }
 0x2c7   : > { %v11674_v54 = vpop.f32.mrb[193].mxu1 }
 0x2c8   : > { %v11675_v47 = vadd.f32 %v11674_v54, %v11673_v32  ;;  %v11676_v21 = vpop.f32.mrb[194].mxu1  ;;  %v11639_v4 = vpop.f32.mrb[212].mxu0 }
 0x2c9   : > { %v11677_v17 = vpop.f32.mrb[195].mxu1  ;;  %v11640_v31 = vpop.f32.mrb[213].mxu0 }
 0x2ca   : > { %v6399_v60 = vadd.f32 %v11675_v47, %v6334_v22  ;;  %v11678_v7 = vadd.f32 %v11677_v17, %v11676_v21  ;;  %v11641_v49 = vadd.f32 %v11640_v31, %v11639_v4  ;;  %v11642_v29 = vpop.f32.mrb[214].mxu0 }
 0x2cb   : > { %v11643_v53 = vpop.f32.mrb[215].mxu0 }
 0x2cc   : > { %v6402_v12 = vadd.f32 %v11678_v7, %v6337_v37  ;;  %v6342_v18 = vadd.f32 %v11641_v49, %v15345_v5  ;;  %v11644_v9 = vadd.f32 %v11643_v53, %v11642_v29 }
 0x2ce   : > { %v11679_v16 = vpop.f32.mrb[196].mxu1  ;;  %v6345_v32 = vadd.f32 %v11644_v9, %v15354_v30 }
 0x2cf   : > { %v11680_v3 = vpop.f32.mrb[197].mxu1 }
 0x2d0   : > { %v11681_v33 = vadd.f32 %v11680_v3, %v11679_v16  ;;  %v11682_v36 = vpop.f32.mrb[198].mxu1  ;;  %v11645_v22 = vpop.f32.mrb[216].mxu0 }
 0x2d1   : > { %v11683_v62 = vpop.f32.mrb[199].mxu1  ;;  %v11646_v42 = vpop.f32.mrb[217].mxu0 }
 0x2d2   : > { %v15393_v40 = vadd.f32 %v11681_v33, %v6342_v18  ;;  %v11684_v38 = vadd.f32 %v11683_v62, %v11682_v36  ;;  %v11647_v47 = vadd.f32 %v11646_v42, %v11645_v22  ;;  %v11648_v21 = vpop.f32.mrb[218].mxu0 }
 0x2d3   : > { %v11649_v26 = vpop.f32.mrb[219].mxu0 }
 0x2d4   : > { %v15395_v54 = vadd.f32 %v11684_v38, %v6345_v32  ;;  %v6350_v5 = vadd.f32 %v11647_v47, %v15365_v28  ;;  %v11650_v7 = vadd.f32 %v11649_v26, %v11648_v21 }
 0x2d6   : > { %v11685_v17 = vpop.f32.mrb[200].mxu1  ;;  %v6353_v30 = vadd.f32 %v11650_v7, %v15374_v14 }
 0x2d7   : > { %v11686_v37 = vpop.f32.mrb[201].mxu1 }
 0x2d8   : > { %v11687_v4 = vadd.f32 %v11686_v37, %v11685_v17  ;;  %v11688_v31 = vpop.f32.mrb[202].mxu1  ;;  %v11651_v3 = vpop.f32.mrb[220].mxu0 }
 0x2d9   : > { %v11689_v49 = vpop.f32.mrb[203].mxu1  ;;  %v11652_v18 = vpop.f32.mrb[221].mxu0 }
 0x2da   : > { %v15399_v29 = vadd.f32 %v11687_v4, %v6350_v5  ;;  %v11690_v16 = vadd.f32 %v11689_v49, %v11688_v31  ;;  %v11653_v9 = vadd.f32 %v11652_v18, %v11651_v3  ;;  %v11654_v33 = vpop.f32.mrb[222].mxu0 }
 0x2db   : > { %v11655_v62 = vpop.f32.mrb[223].mxu0 }
 0x2dc   : > { %v15401_v53 = vadd.f32 %v11690_v16, %v6353_v30  ;;  %v6358_v38 = vadd.f32 %v11653_v9, %v6293_v50  ;;  %v11656_v28 = vadd.f32 %v11655_v62, %v11654_v33 }
 0x2de   : > { %v11691_v36 = vpop.f32.mrb[204].mxu1  ;;  %v6361_v21 = vadd.f32 %v11656_v28, %v15384_v55 }
 0x2df   : > { %v11692_v32 = vpop.f32.mrb[205].mxu1 }
 0x2e0   : > { %v11693_v22 = vadd.f32 %v11692_v32, %v11691_v36  ;;  %v11694_v42 = vpop.f32.mrb[206].mxu1  ;;  %v11713_v37 = vpop.f32.mrb[224].mxu0 }
 0x2e1   : > { %v11695_v47 = vpop.f32.mrb[207].mxu1  ;;  %v11714_v5 = vpop.f32.mrb[225].mxu0 }
 0x2e2   : > { %v15404_v14 = vadd.f32 %v11693_v22, %v6358_v38  ;;  %v11696_v17 = vadd.f32 %v11695_v47, %v11694_v42  ;;  %v11715_v7 = vadd.f32 %v11714_v5, %v11713_v37  ;;  %v11716_v4 = vpop.f32.mrb[226].mxu0 }
 0x2e3   : > { %v11717_v49 = vpop.f32.mrb[227].mxu0 }
 0x2e4   : > { %v15406_v26 = vadd.f32 %v11696_v17, %v6361_v21  ;;  %v11718_v16 = vadd.f32 %v11717_v49, %v11716_v4  ;;  %v6464_v50 = vadd.f32 %v11715_v7, %v6399_v60 }
 0x2e6   : > { %v12189_v31 = vpop.f32.mrb[208].mxu1  ;;  %v6467_v33 = vadd.f32 %v11718_v16, %v6402_v12 }
 0x2e7   : > { %v6528_v30 = vpop.f32.mrb[209].mxu1 }
 0x2e8   : > { %v12190_v3 = vpop.f32.mrb[210].mxu1  ;;  %v6529_v9 = vadd.f32 %v6528_v30, %v6464_v50  ;;  %v11719_v62 = vpop.f32.mrb[228].mxu0 }
 0x2e9   : > { %v6531_v18 = vpop.f32.mrb[211].mxu1  ;;  %v11720_v32 = vpop.f32.mrb[229].mxu0 }
 0x2ea   : > { %vm6559_vm0 = vcmp.ge.f32.partialorder %v6529_v9, 0.0  ;;  %v6567_v55 = vmul.f32 0.01, %v6529_v9  ;;  %v6532_v36 = vadd.f32 %v6531_v18, %v6467_v33  ;;  %v11721_v22 = vadd.f32 %v11720_v32, %v11719_v62  ;;  %v11722_v42 = vpop.f32.mrb[230].mxu0 }
 0x2eb   : > { %v11723_v21 = vpop.f32.mrb[231].mxu0 }
 0x2ec   : > { %v6575_v38 = vsel %vm6559_vm0, %v6529_v9, %v6567_v55  ;;  %vm6560_vm2 = vcmp.ge.f32.partialorder %v6532_v36, 0.0  ;;  %v6568_v28 = vmul.f32 0.01, %v6532_v36  ;;  %v6472_v12 = vadd.f32 %v11721_v22, %v15393_v40 }
 0x2ed   : > { %v15411_v60 = vmax.f32 %v4700_v61, %v6575_v38  ;;  %v11724_v5 = vadd.f32 %v11723_v21, %v11722_v42 }
 0x2ee   : > { %v12193_v47 = vpop.f32.mrb[212].mxu1  ;;  %v6576_v37 = vsel %vm6560_vm2, %v6532_v36, %v6568_v28  ;;  %v6537_v30 = vadd.f32 %v12189_v31, %v6472_v12  ;;  %vm13289_vm2 = vmmov 0  }
 0x2ef   : > { %v6544_v17 = vpop.f32.mrb[213].mxu1  ;;  %v15417_v49 = vmax.f32 %v4701_v15, %v6576_v37  ;;  %v6475_v16 = vadd.f32 %v11724_v5, %v15395_v54 }
 0x2f0   : > { %v12194_v7 = vpop.f32.mrb[214].mxu1  ;;  %v6569_v50 = vmul.f32 0.01, %v6537_v30  ;;  %v11725_v9 = vpop.f32.mrb[232].mxu0  ;;  %vm6561_vm3 = vcmp.ge.f32.partialorder %v6537_v30, 0.0 }
 0x2f1   : > { %v6547_v4 = vpop.f32.mrb[215].mxu1  ;;  %v6540_v18 = vadd.f32 %v12190_v3, %v6475_v16  ;;  %v11726_v41 = vpop.f32.mrb[233].mxu0 }
 0x2f2   : > { %v11727_v61 = vadd.f32 %v11726_v41, %v11725_v9  ;;  %v11728_v33 = vpop.f32.mrb[234].mxu0  ;;  %v6577_v40 = vsel %vm6561_vm3, %v6537_v30, %v6569_v50  ;;  %vm8510_vm3 = vcmask 523264  }
 0x2f3   : > { %v6570_v43 = vmul.f32 0.01, %v6540_v18  ;;  %vm6562_vm4 = vcmp.ge.f32.partialorder %v6540_v18, 0.0  ;;  %v11729_v55 = vpop.f32.mrb[235].mxu0  ;;  %v15423_v23 = vmax.f32 %v4702_v46, %v6577_v40 }
 0x2f4   : > { %v11730_v24 = vadd.f32 %v11729_v55, %v11728_v33  ;;  %v6480_v15 = vadd.f32 %v11727_v61, %v15399_v29 }
 0x2f5   : > { %v6578_v54 = vsel %vm6562_vm4, %v6540_v18, %v6570_v43  ;;  %vm8601_vm4 = vcmask 64512  }
 0x2f6   : > { %v15429_v31 = vmax.f32 %v4703_v8, %v6578_v54  ;;  %v6545_v3 = vadd.f32 %v6544_v17, %v6480_v15  ;;  %v6483_v36 = vadd.f32 %v11730_v24, %v15401_v53 }
 0x2f8   : > { %vm6563_vm5 = vcmp.ge.f32.partialorder %v6545_v3, 0.0  ;;  %v6571_v62 = vmul.f32 0.01, %v6545_v3  ;;  %v6548_v32 = vadd.f32 %v6547_v4, %v6483_v36  ;;  %v11731_v38 = vpop.f32.mrb[236].mxu0 }
 0x2f9   : > { %v11732_v28 = vpop.f32.mrb[237].mxu0 }
 0x2fa   : > { %v6579_v44 = vsel %vm6563_vm5, %v6545_v3, %v6571_v62  ;;  %vm6564_vm6 = vcmp.ge.f32.partialorder %v6548_v32, 0.0  ;;  %v6572_v0 = vmul.f32 0.01, %v6548_v32  ;;  %v11733_v46 = vadd.f32 %v11732_v28, %v11731_v38  ;;  %v11734_v22 = vpop.f32.mrb[238].mxu0 }
 0x2fb   : > { %v11735_v29 = vpop.f32.mrb[239].mxu0  ;;  %v15435_v51 = vmax.f32 %v4704_v52, %v6579_v44 }
 0x2fc   : > { %v6580_v19 = vsel %vm6564_vm6, %v6548_v32, %v6572_v0  ;;  %v6488_v8 = vadd.f32 %v11733_v46, %v15404_v14  ;;  %v11736_v53 = vadd.f32 %v11735_v29, %v11734_v22 }
 0x2fd   : > { %v15441_v42 = vmax.f32 %v4705_v48, %v6580_v19 }
 0x2fe   : > { %v6553_v21 = vadd.f32 %v12193_v47, %v6488_v8  ;;  %v6491_v17 = vadd.f32 %v11736_v53, %v15406_v26 }
 0x300   : > { %v6573_v37 = vmul.f32 0.01, %v6553_v21  ;;  %v6556_v12 = vadd.f32 %v12194_v7, %v6491_v17  ;;  %v11763_v5 = vpop.f32.mrb[240].mxu0  ;;  %vm6565_vm7 = vcmp.ge.f32.partialorder %v6553_v21, 0.0 }
 0x301   : > { %v11764_v4 = vpop.f32.mrb[241].mxu0 }
 0x302   : > { %v6574_v58 = vmul.f32 0.01, %v6556_v12  ;;  %v11765_v10 = vadd.f32 %v11764_v4, %v11763_v5  ;;  %v11766_v52 = vpop.f32.mrb[242].mxu0  ;;  %v6581_v16 = vsel %vm6565_vm7, %v6553_v21, %v6573_v37  ;;  %vm6566_vm8 = vcmp.ge.f32.partialorder %v6556_v12, 0.0 }
 0x303   : > { %v11767_v14 = vpop.f32.mrb[243].mxu0  ;;  %v15447_v35 = vmax.f32 %v4706_v2, %v6581_v16 }
 0x304   : > { %v7827_v11 = vadd.f32 %v11765_v10, %v13919_v39  ;;  %v11768_v48 = vadd.f32 %v11767_v14, %v11766_v52  ;;  %v6582_v7 = vsel %vm6566_vm8, %v6556_v12, %v6574_v58 }
 0x305   : > { %v15453_v9 = vmax.f32 %v4707_v63, %v6582_v7 }
 0x306   : > { %v11803_v30 = vpop.f32.mrb[216].mxu1  ;;  %v7830_v41 = vadd.f32 %v11768_v48, %v13942_v57 }
 0x307   : > { %v11804_v50 = vpop.f32.mrb[217].mxu1 }
 0x308   : > { %v11805_v26 = vadd.f32 %v11804_v50, %v11803_v30  ;;  %v11806_v47 = vpop.f32.mrb[218].mxu1  ;;  %v11769_v6 = vpop.f32.mrb[244].mxu0 }
 0x309   : > { %v11807_v18 = vpop.f32.mrb[219].mxu1  ;;  %v11770_v27 = vpop.f32.mrb[245].mxu0 }
 0x30a   : > { %v7892_v43 = vadd.f32 %v11805_v26, %v7827_v11  ;;  %v11808_v61 = vadd.f32 %v11807_v18, %v11806_v47  ;;  %v11771_v2 = vadd.f32 %v11770_v27, %v11769_v6  ;;  %v11772_v40 = vpop.f32.mrb[246].mxu0 }
 0x30b   : > { %v11773_v55 = vpop.f32.mrb[247].mxu0 }
 0x30c   : > { %v7895_v33 = vadd.f32 %v11808_v61, %v7830_v41  ;;  %v7835_v15 = vadd.f32 %v11771_v2, %v13964_v13  ;;  %v11774_v54 = vadd.f32 %v11773_v55, %v11772_v40 }
 0x30e   : > { %v11809_v39 = vpop.f32.mrb[220].mxu1  ;;  %v7838_v20 = vadd.f32 %v11774_v54, %v13992_v34 }
 0x30f   : > { %v11810_v24 = vpop.f32.mrb[221].mxu1 }
 0x310   : > { %v11811_v3 = vadd.f32 %v11810_v24, %v11809_v39  ;;  %v11812_v36 = vpop.f32.mrb[222].mxu1  ;;  %v11775_v32 = vpop.f32.mrb[248].mxu0 }
 0x311   : > { %v11813_v59 = vpop.f32.mrb[223].mxu1  ;;  %v11776_v38 = vpop.f32.mrb[249].mxu0 }
 0x312   : > { %v7900_v63 = vadd.f32 %v11811_v3, %v7835_v15  ;;  %v11814_v57 = vadd.f32 %v11813_v59, %v11812_v36  ;;  %v11777_v28 = vadd.f32 %v11776_v38, %v11775_v32  ;;  %v11778_v44 = vpop.f32.mrb[250].mxu0 }
 0x313   : > { %v11779_v46 = vpop.f32.mrb[251].mxu0 }
 0x314   : > { %v7903_v62 = vadd.f32 %v11814_v57, %v7838_v20  ;;  %v7843_v29 = vadd.f32 %v11777_v28, %v14008_v56  ;;  %v11780_v19 = vadd.f32 %v11779_v46, %v11778_v44 }
 0x316   : > { %v11815_v0 = vpop.f32.mrb[224].mxu1  ;;  %v7846_v21 = vadd.f32 %v11780_v19, %v14029_v25 }
 0x317   : > { %v11816_v22 = vpop.f32.mrb[225].mxu1 }
 0x318   : > { %v11817_v13 = vadd.f32 %v11816_v22, %v11815_v0  ;;  %v11818_v8 = vpop.f32.mrb[226].mxu1  ;;  %v11781_v12 = vpop.f32.mrb[252].mxu0 }
 0x319   : > { %v11819_v53 = vpop.f32.mrb[227].mxu1  ;;  %v11782_v5 = vpop.f32.mrb[253].mxu0 }
 0x31a   : > { %v7908_v17 = vadd.f32 %v11817_v13, %v7843_v29  ;;  %v11820_v34 = vadd.f32 %v11819_v53, %v11818_v8  ;;  %v11783_v4 = vadd.f32 %v11782_v5, %v11781_v12  ;;  %v11784_v58 = vpop.f32.mrb[254].mxu0 }
 0x31b   : > { %v11785_v52 = vpop.f32.mrb[255].mxu0 }
 0x31c   : > { %v7911_v37 = vadd.f32 %v11820_v34, %v7846_v21  ;;  %v7851_v16 = vadd.f32 %v11783_v4, %v14051_v1  ;;  %v11786_v14 = vadd.f32 %v11785_v52, %v11784_v58 }
 0x31e   : > { %v11821_v10 = vpop.f32.mrb[228].mxu1  ;;  %v7854_v48 = vadd.f32 %v11786_v14, %v14067_v45 }
 0x31f   : > { %v11822_v30 = vpop.f32.mrb[229].mxu1 }
 0x320   : > { %v11823_v56 = vadd.f32 %v11822_v30, %v11821_v10  ;;  %v11824_v50 = vpop.f32.mrb[230].mxu1  ;;  %v11843_v7 = vpop.f32.mrb[0].mxu0 }
 0x321   : > { %v11825_v11 = vpop.f32.mrb[231].mxu1  ;;  %v11844_v18 = vpop.f32.mrb[1].mxu0 }
 0x322   : > { %v7916_v26 = vadd.f32 %v11823_v56, %v7851_v16  ;;  %v11826_v25 = vadd.f32 %v11825_v11, %v11824_v50  ;;  %v11845_v41 = vadd.f32 %v11844_v18, %v11843_v7  ;;  %v11846_v61 = vpop.f32.mrb[2].mxu0 }
 0x323   : > { %v11847_v27 = vpop.f32.mrb[3].mxu0 }
 0x324   : > { %v7919_v47 = vadd.f32 %v11826_v25, %v7854_v48  ;;  %v7957_v40 = vadd.f32 %v11845_v41, %v7892_v43  ;;  %v11848_v39 = vadd.f32 %v11847_v27, %v11846_v61 }
 0x326   : > { %v11883_v6 = vpop.f32.mrb[232].mxu1  ;;  %v7960_v15 = vadd.f32 %v11848_v39, %v7895_v33 }
 0x327   : > { %v11884_v2 = vpop.f32.mrb[233].mxu1 }
 0x328   : > { %v11885_v55 = vadd.f32 %v11884_v2, %v11883_v6  ;;  %v11886_v1 = vpop.f32.mrb[234].mxu1  ;;  %v11849_v45 = vpop.f32.mrb[4].mxu0 }
 0x329   : > { %v11887_v24 = vpop.f32.mrb[235].mxu1  ;;  %v11850_v59 = vpop.f32.mrb[5].mxu0 }
 0x32a   : > { %v8022_v54 = vadd.f32 %v11885_v55, %v7957_v40  ;;  %v11888_v3 = vadd.f32 %v11887_v24, %v11886_v1  ;;  %v11851_v20 = vadd.f32 %v11850_v59, %v11849_v45  ;;  %v11852_v57 = vpop.f32.mrb[6].mxu0 }
 0x32b   : > { %v11853_v38 = vpop.f32.mrb[7].mxu0 }
 0x32c   : > { %v8025_v36 = vadd.f32 %v11888_v3, %v7960_v15  ;;  %v7965_v44 = vadd.f32 %v11851_v20, %v7900_v63  ;;  %v11854_v0 = vadd.f32 %v11853_v38, %v11852_v57 }
 0x32e   : > { %v11889_v32 = vpop.f32.mrb[236].mxu1  ;;  %v7968_v29 = vadd.f32 %v11854_v0, %v7903_v62 }
 0x32f   : > { %v11890_v28 = vpop.f32.mrb[237].mxu1 }
 0x330   : > { %v11891_v46 = vadd.f32 %v11890_v28, %v11889_v32  ;;  %v11892_v22 = vpop.f32.mrb[238].mxu1  ;;  %v11855_v33 = vpop.f32.mrb[8].mxu0 }
 0x331   : > { %v11893_v43 = vpop.f32.mrb[239].mxu1  ;;  %v11856_v53 = vpop.f32.mrb[9].mxu0 }
 0x332   : > { %v8030_v19 = vadd.f32 %v11891_v46, %v7965_v44  ;;  %v11894_v13 = vadd.f32 %v11893_v43, %v11892_v22  ;;  %v11857_v21 = vadd.f32 %v11856_v53, %v11855_v33  ;;  %v11858_v34 = vpop.f32.mrb[10].mxu0 }
 0x333   : > { %v11859_v5 = vpop.f32.mrb[11].mxu0 }
 0x334   : > { %v8033_v8 = vadd.f32 %v11894_v13, %v7968_v29  ;;  %v7973_v58 = vadd.f32 %v11857_v21, %v7908_v17  ;;  %v11860_v10 = vadd.f32 %v11859_v5, %v11858_v34 }
 0x336   : > { %v11895_v12 = vpop.f32.mrb[240].mxu1  ;;  %v7976_v16 = vadd.f32 %v11860_v10, %v7911_v37 }
 0x337   : > { %v11896_v4 = vpop.f32.mrb[241].mxu1 }
 0x338   : > { %v11897_v52 = vadd.f32 %v11896_v4, %v11895_v12  ;;  %v11898_v30 = vpop.f32.mrb[242].mxu1  ;;  %v11861_v62 = vpop.f32.mrb[12].mxu0 }
 0x339   : > { %v11899_v63 = vpop.f32.mrb[243].mxu1  ;;  %v11862_v11 = vpop.f32.mrb[13].mxu0 }
 0x33a   : > { %v8038_v14 = vadd.f32 %v11897_v52, %v7973_v58  ;;  %v11900_v56 = vadd.f32 %v11899_v63, %v11898_v30  ;;  %v11863_v48 = vadd.f32 %v11862_v11, %v11861_v62  ;;  %v11864_v25 = vpop.f32.mrb[14].mxu0 }
 0x33b   : > { %v11865_v18 = vpop.f32.mrb[15].mxu0 }
 0x33c   : > { %v8041_v50 = vadd.f32 %v11900_v56, %v7976_v16  ;;  %v7981_v61 = vadd.f32 %v11863_v48, %v7916_v26  ;;  %v11866_v6 = vadd.f32 %v11865_v18, %v11864_v25 }
 0x33e   : > { %v11901_v7 = vpop.f32.mrb[244].mxu1  ;;  %v7984_v40 = vadd.f32 %v11866_v6, %v7919_v47 }
 0x33f   : > { %v11902_v41 = vpop.f32.mrb[245].mxu1 }
 0x340   : > { %v11903_v27 = vadd.f32 %v11902_v41, %v11901_v7  ;;  %v11904_v2 = vpop.f32.mrb[246].mxu1  ;;  %v11923_v37 = vpop.f32.mrb[16].mxu0 }
 0x341   : > { %v11905_v17 = vpop.f32.mrb[247].mxu1  ;;  %v11924_v24 = vpop.f32.mrb[17].mxu0 }
 0x342   : > { %v8046_v39 = vadd.f32 %v11903_v27, %v7981_v61  ;;  %v11906_v55 = vadd.f32 %v11905_v17, %v11904_v2  ;;  %v11925_v15 = vadd.f32 %v11924_v24, %v11923_v37  ;;  %v11926_v3 = vpop.f32.mrb[18].mxu0 }
 0x343   : > { %v11927_v59 = vpop.f32.mrb[19].mxu0 }
 0x344   : > { %v8049_v1 = vadd.f32 %v11906_v55, %v7984_v40  ;;  %v8087_v57 = vadd.f32 %v11925_v15, %v8022_v54  ;;  %v11928_v32 = vadd.f32 %v11927_v59, %v11926_v3 }
 0x346   : > { %v11963_v45 = vpop.f32.mrb[248].mxu1  ;;  %v8090_v44 = vadd.f32 %v11928_v32, %v8025_v36 }
 0x347   : > { %v11964_v20 = vpop.f32.mrb[249].mxu1 }
 0x348   : > { %v11965_v38 = vadd.f32 %v11964_v20, %v11963_v45  ;;  %v11966_v28 = vpop.f32.mrb[250].mxu1  ;;  %v11929_v47 = vpop.f32.mrb[20].mxu0 }
 0x349   : > { %v11967_v26 = vpop.f32.mrb[251].mxu1  ;;  %v11930_v43 = vpop.f32.mrb[21].mxu0 }
 0x34a   : > { %v8152_v0 = vadd.f32 %v11965_v38, %v8087_v57  ;;  %v11968_v46 = vadd.f32 %v11967_v26, %v11966_v28  ;;  %v11931_v29 = vadd.f32 %v11930_v43, %v11929_v47  ;;  %v11932_v13 = vpop.f32.mrb[22].mxu0 }
 0x34b   : > { %v11933_v53 = vpop.f32.mrb[23].mxu0 }
 0x34c   : > { %v8155_v22 = vadd.f32 %v11968_v46, %v8090_v44  ;;  %v8095_v34 = vadd.f32 %v11931_v29, %v8030_v19  ;;  %v11934_v12 = vadd.f32 %v11933_v53, %v11932_v13 }
 0x34e   : > { %v11969_v33 = vpop.f32.mrb[252].mxu1  ;;  %v8098_v58 = vadd.f32 %v11934_v12, %v8033_v8 }
 0x34f   : > { %v11970_v21 = vpop.f32.mrb[253].mxu1 }
 0x350   : > { %v11971_v5 = vadd.f32 %v11970_v21, %v11969_v33  ;;  %v11972_v4 = vpop.f32.mrb[254].mxu1 }
 0x351   : > { %v11973_v54 = vpop.f32.mrb[255].mxu1  ;;  %v11935_v36 = vpop.f32.mrb[24].mxu0 }
 0x352   : > { %v8160_v10 = vadd.f32 %v11971_v5, %v8095_v34  ;;  %v11974_v52 = vadd.f32 %v11973_v54, %v11972_v4  ;;  %v11936_v63 = vpop.f32.mrb[25].mxu0 }
 0x353   : > { %v11937_v16 = vadd.f32 %v11936_v63, %v11935_v36  ;;  %v11938_v56 = vpop.f32.mrb[26].mxu0 }
 0x354   : > { %v8163_v30 = vadd.f32 %v11974_v52, %v8098_v58  ;;  %v11939_v11 = vpop.f32.mrb[27].mxu0 }
 0x355   : > { %v8103_v25 = vadd.f32 %v11937_v16, %v8038_v14  ;;  %v11940_v7 = vadd.f32 %v11939_v11, %v11938_v56 }
 0x356   : > { %v11975_v62 = vpop.f32.mrb[0].mxu1 }
 0x357   : > { %v11976_v48 = vpop.f32.mrb[1].mxu1  ;;  %v8106_v61 = vadd.f32 %v11940_v7, %v8041_v50 }
 0x358   : > { %v11977_v18 = vadd.f32 %v11976_v48, %v11975_v62  ;;  %v11978_v41 = vpop.f32.mrb[2].mxu1 }
 0x359   : > { %v11979_v19 = vpop.f32.mrb[3].mxu1  ;;  %v11941_v8 = vpop.f32.mrb[28].mxu0 }
 0x35a   : > { %v8168_v6 = vadd.f32 %v11977_v18, %v8103_v25  ;;  %v11980_v27 = vadd.f32 %v11979_v19, %v11978_v41  ;;  %v11942_v17 = vpop.f32.mrb[29].mxu0 }
 0x35b   : > { %v11943_v40 = vadd.f32 %v11942_v17, %v11941_v8  ;;  %v11944_v55 = vpop.f32.mrb[30].mxu0 }
 0x35c   : > { %v8171_v2 = vadd.f32 %v11980_v27, %v8106_v61  ;;  %v11945_v24 = vpop.f32.mrb[31].mxu0 }
 0x35d   : > { %v8111_v3 = vadd.f32 %v11943_v40, %v8046_v39  ;;  %v11946_v45 = vadd.f32 %v11945_v24, %v11944_v55 }
 0x35e   : > { %v11981_v37 = vpop.f32.mrb[4].mxu1 }
 0x35f   : > { %v11982_v15 = vpop.f32.mrb[5].mxu1  ;;  %v8114_v57 = vadd.f32 %v11946_v45, %v8049_v1 }
 0x360   : > { %v11983_v59 = vadd.f32 %v11982_v15, %v11981_v37  ;;  %v11984_v20 = vpop.f32.mrb[6].mxu1 }
 0x361   : > { %v11985_v14 = vpop.f32.mrb[7].mxu1  ;;  %v12003_v50 = vpop.f32.mrb[32].mxu0 }
 0x362   : > { %v8176_v32 = vadd.f32 %v11983_v59, %v8111_v3  ;;  %v11986_v38 = vadd.f32 %v11985_v14, %v11984_v20  ;;  %v12004_v26 = vpop.f32.mrb[33].mxu0 }
 0x363   : > { %v12005_v44 = vadd.f32 %v12004_v26, %v12003_v50  ;;  %v12006_v46 = vpop.f32.mrb[34].mxu0 }
 0x364   : > { %v8179_v28 = vadd.f32 %v11986_v38, %v8114_v57  ;;  %v12007_v43 = vpop.f32.mrb[35].mxu0 }
 0x365   : > { %v8217_v13 = vadd.f32 %v12005_v44, %v8152_v0  ;;  %v12008_v33 = vadd.f32 %v12007_v43, %v12006_v46 }
 0x366   : > { %v12043_v47 = vpop.f32.mrb[8].mxu1 }
 0x367   : > { %v12044_v29 = vpop.f32.mrb[9].mxu1  ;;  %v8220_v34 = vadd.f32 %v12008_v33, %v8155_v22 }
 0x368   : > { %v12045_v53 = vadd.f32 %v12044_v29, %v12043_v47  ;;  %v12046_v21 = vpop.f32.mrb[10].mxu1 }
 0x369   : > { %v12047_v39 = vpop.f32.mrb[11].mxu1  ;;  %v12009_v1 = vpop.f32.mrb[36].mxu0 }
 0x36a   : > { %v8282_v12 = vadd.f32 %v12045_v53, %v8217_v13  ;;  %v12048_v5 = vadd.f32 %v12047_v39, %v12046_v21  ;;  %v12010_v54 = vpop.f32.mrb[37].mxu0 }
 0x36b   : > { %v12011_v58 = vadd.f32 %v12010_v54, %v12009_v1  ;;  %v12012_v52 = vpop.f32.mrb[38].mxu0 }
 0x36c   : > { %v8285_v4 = vadd.f32 %v12048_v5, %v8220_v34  ;;  %v12013_v63 = vpop.f32.mrb[39].mxu0 }
 0x36d   : > { %v8225_v56 = vadd.f32 %v12011_v58, %v8160_v10  ;;  %v12014_v62 = vadd.f32 %v12013_v63, %v12012_v52 }
 0x36e   : > { %v12049_v36 = vpop.f32.mrb[12].mxu1 }
 0x36f   : > { %v12050_v16 = vpop.f32.mrb[13].mxu1  ;;  %v8228_v25 = vadd.f32 %v12014_v62, %v8163_v30 }
 0x370   : > { %v12051_v11 = vadd.f32 %v12050_v16, %v12049_v36  ;;  %v12052_v48 = vpop.f32.mrb[14].mxu1 }
 0x371   : > { %v12053_v0 = vpop.f32.mrb[15].mxu1  ;;  %v12015_v41 = vpop.f32.mrb[40].mxu0 }
 0x372   : > { %v15462_v7 = vadd.f32 %v12051_v11, %v8225_v56  ;;  %v12054_v18 = vadd.f32 %v12053_v0, %v12052_v48  ;;  %v12016_v19 = vpop.f32.mrb[41].mxu0 }
 0x373   : > { %v12017_v61 = vadd.f32 %v12016_v19, %v12015_v41  ;;  %v12018_v27 = vpop.f32.mrb[42].mxu0 }
 0x374   : > { %v15464_v22 = vadd.f32 %v12054_v18, %v8228_v25  ;;  %v12019_v17 = vpop.f32.mrb[43].mxu0 }
 0x375   : > { %v8233_v55 = vadd.f32 %v12017_v61, %v8168_v6  ;;  %v12020_v37 = vadd.f32 %v12019_v17, %v12018_v27 }
 0x376   : > { %v12055_v8 = vpop.f32.mrb[16].mxu1 }
 0x377   : > { %v12056_v40 = vpop.f32.mrb[17].mxu1  ;;  %v8236_v3 = vadd.f32 %v12020_v37, %v8171_v2 }
 0x378   : > { %v12057_v10 = vadd.f32 %v12056_v40, %v12055_v8  ;;  %v12058_v24 = vpop.f32.mrb[18].mxu1 }
 0x379   : > { %v12059_v15 = vpop.f32.mrb[19].mxu1  ;;  %v12021_v20 = vpop.f32.mrb[44].mxu0 }
 0x37a   : > { %v15466_v45 = vadd.f32 %v12057_v10, %v8233_v55  ;;  %v12060_v30 = vadd.f32 %v12059_v15, %v12058_v24  ;;  %v12022_v14 = vpop.f32.mrb[45].mxu0 }
 0x37b   : > { %v12023_v57 = vadd.f32 %v12022_v14, %v12021_v20  ;;  %v12024_v38 = vpop.f32.mrb[46].mxu0 }
 0x37c   : > { %v15468_v59 = vadd.f32 %v12060_v30, %v8236_v3  ;;  %v12025_v26 = vpop.f32.mrb[47].mxu0 }
 0x37d   : > { %v8241_v46 = vadd.f32 %v12023_v57, %v8176_v32  ;;  %v12026_v47 = vadd.f32 %v12025_v26, %v12024_v38 }
 0x37e   : > { %v12061_v50 = vpop.f32.mrb[20].mxu1 }
 0x37f   : > { %v12062_v44 = vpop.f32.mrb[21].mxu1  ;;  %v8244_v13 = vadd.f32 %v12026_v47, %v8179_v28 }
 0x380   : > { %v12063_v6 = vadd.f32 %v12062_v44, %v12061_v50  ;;  %v12064_v43 = vpop.f32.mrb[22].mxu1 }
 0x381   : > { %v12065_v29 = vpop.f32.mrb[23].mxu1  ;;  %v12083_v21 = vpop.f32.mrb[48].mxu0 }
 0x382   : > { %v15470_v33 = vadd.f32 %v12063_v6, %v8241_v46  ;;  %v12066_v2 = vadd.f32 %v12065_v29, %v12064_v43  ;;  %v12084_v39 = vpop.f32.mrb[49].mxu0 }
 0x383   : > { %v12085_v34 = vadd.f32 %v12084_v39, %v12083_v21  ;;  %v12086_v5 = vpop.f32.mrb[50].mxu0 }
 0x384   : > { %v15472_v53 = vadd.f32 %v12066_v2, %v8244_v13  ;;  %v12087_v54 = vpop.f32.mrb[51].mxu0 }
 0x385   : > { %v12088_v52 = vadd.f32 %v12087_v54, %v12086_v5  ;;  %v8347_v36 = vadd.f32 %v12085_v34, %v8282_v12 }
 0x386   : > { %v12209_v1 = vpop.f32.mrb[24].mxu1 }
 0x387   : > { %v8411_v58 = vpop.f32.mrb[25].mxu1  ;;  %v8350_v56 = vadd.f32 %v12088_v52, %v8285_v4 }
 0x388   : > { %v12210_v32 = vpop.f32.mrb[26].mxu1  ;;  %v8412_v16 = vadd.f32 %v8411_v58, %v8347_v36 }
 0x389   : > { %v8414_v63 = vpop.f32.mrb[27].mxu1  ;;  %v12089_v11 = vpop.f32.mrb[52].mxu0 }
 0x38a   : > { %vm8442_vm9 = vcmp.ge.f32.partialorder %v8412_v16, 0.0  ;;  %v8450_v28 = vmul.f32 0.01, %v8412_v16  ;;  %v8415_v62 = vadd.f32 %v8414_v63, %v8350_v56  ;;  %v12090_v48 = vpop.f32.mrb[53].mxu0 }
 0x38b   : > { %v12091_v25 = vadd.f32 %v12090_v48, %v12089_v11  ;;  %v12092_v18 = vpop.f32.mrb[54].mxu0 }
 0x38c   : > { %vm8443_vm11 = vcmp.ge.f32.partialorder %v8415_v62, 0.0  ;;  %v8451_v0 = vmul.f32 0.01, %v8415_v62  ;;  %v8458_v41 = vsel %vm8442_vm9, %v8412_v16, %v8450_v28  ;;  %v12093_v61 = vpop.f32.mrb[55].mxu0 }
 0x38d   : > { %v15475_v27 = vmax.f32 %v15411_v60, %v8458_v41  ;;  %v8355_v8 = vadd.f32 %v12091_v25, %v15462_v7  ;;  %v12094_v4 = vadd.f32 %v12093_v61, %v12092_v18  ;;  %v13290_v18 = vmov 0.0  }
 0x38e   : > { %v12213_v19 = vpop.f32.mrb[28].mxu1  ;;  %v8459_v17 = vsel %vm8443_vm11, %v8415_v62, %v8451_v0  ;;  %12231 = vmatprep.mubr.msk.f32.mxu1 %vm13289_vm2, %v13290_v18 }
 0x38f   : > { %v8427_v12 = vpop.f32.mrb[29].mxu1  ;;  %v8475_v55 = vsel %vm8474_vm10, %v15475_v27, 0.0  ;;  %v15481_v37 = vmax.f32 %v15417_v49, %v8459_v17  ;;  %v8420_v24 = vadd.f32 %v12209_v1, %v8355_v8  ;;  %v8358_v15 = vadd.f32 %v12094_v4, %v15464_v22 }
 0x390   : > { %v12214_v40 = vpop.f32.mrb[30].mxu1  ;;  %8476 = vadd.xlane.f32.xlu0 %v8475_v55 }
 0x391   : > { %v8430_v10 = vpop.f32.mrb[31].mxu1  ;;  %v8478_v60 = vsel %vm8474_vm10, %v15481_v37, 0.0  ;;  %v8423_v3 = vadd.f32 %v12210_v32, %v8358_v15  ;;  %v12095_v30 = vpop.f32.mrb[56].mxu0  ;;  %vm8444_vm12 = vcmp.ge.f32.partialorder %v8420_v24, 0.0  ;;  %v8452_v7 = vmul.f32 0.01, %v8420_v24 }
 0x392   : > { %8479 = vadd.xlane.f32.xlu1 %v8478_v60  ;;  %v12096_v20 = vpop.f32.mrb[57].mxu0 }
 0x393   : > { %v12097_v14 = vadd.f32 %v12096_v20, %v12095_v30  ;;  %v12098_v57 = vpop.f32.mrb[58].mxu0  ;;  %v8460_v38 = vsel %vm8444_vm12, %v8420_v24, %v8452_v7  ;;  %vm8445_vm13 = vcmp.ge.f32.partialorder %v8423_v3, 0.0  ;;  %v8453_v49 = vmul.f32 0.01, %v8423_v3 }
 0x394   : > { %v12099_v50 = vpop.f32.mrb[59].mxu0  ;;  %v15487_v26 = vmax.f32 %v15423_v23, %v8460_v38  ;;  %v8585_v38 = vld [vmem:[%s15616_s5] sm:$0xff] }
 0x395   : > { %v12100_v22 = vadd.f32 %v12099_v50, %v12098_v57  ;;  %v8363_v44 = vadd.f32 %v12097_v14, %v15466_v45  ;;  %v8461_v46 = vsel %vm8445_vm13, %v8423_v3, %v8453_v49  ;;  %v8508_v57 = vld [vmem:[%s15614_s3] sm:$0xff] }
 0x396   : > { %v8481_v47 = vsel %vm8474_vm10, %v15487_v26, 0.0  ;;  %v15493_v6 = vmax.f32 %v15429_v31, %v8461_v46  ;;  %v8509_v49 = vld [vmem:[%s15615_s4] sm:$0xff] }
 0x397   : > { %v8428_v43 = vadd.f32 %v8427_v12, %v8363_v44  ;;  %8482 = vadd.xlane.f32.xlu0 %v8481_v47  ;;  %v8366_v29 = vadd.f32 %v12100_v22, %v15468_v59  ;;  %v8586_v47 = vld [vmem:[%s15616_s5 + $0x8] sm:$0xff] }
 0x398   : > { %v8484_v39 = vsel %vm8474_vm10, %v15493_v6, 0.0 }
 0x399   : > { %vm8446_vm14 = vcmp.ge.f32.partialorder %v8428_v43, 0.0  ;;  %v8454_v13 = vmul.f32 0.01, %v8428_v43  ;;  %v8431_v2 = vadd.f32 %v8430_v10, %v8366_v29  ;;  %v12101_v21 = vpop.f32.mrb[60].mxu0  ;;  %v8588_v29 = vld [vmem:[%s15616_s5 + $0x18] sm:$0xff] }
 0x39a   : > { %v12102_v23 = vpop.f32.mrb[61].mxu0 }
 0x39b   : > { %vm8447_vm15 = vcmp.ge.f32.partialorder %v8431_v2, 0.0  ;;  %v8455_v45 = vmul.f32 0.01, %v8431_v2  ;;  %v12103_v34 = vadd.f32 %v12102_v23, %v12101_v21  ;;  %v12104_v5 = vpop.f32.mrb[62].mxu0  ;;  %8485 = vadd.xlane.f32.xlu0 %v8484_v39  ;;  %v8462_v1 = vsel %vm8446_vm14, %v8428_v43, %v8454_v13  ;;  %v8587_v43 = vld [vmem:[%s15616_s5 + $0x10] sm:$0xff]  ;;  %v8589_v13 = vld [vmem:[%s15616_s5 + $0x20] sm:$0xff] }
 0x39c   : > { %v12105_v31 = vpop.f32.mrb[63].mxu0  ;;  %v15499_v54 = vmax.f32 %v15435_v51, %v8462_v1  ;;  %v8591_v21 = vld [vmem:[%s15616_s5 + $0x30] sm:$0xff]  ;;  %v8592_v23 = vld [vmem:[%s15616_s5 + $0x38] sm:$0xff]  ;;  %v8594_v39 = vld [vmem:[%s15617_s6 + $0x8] sm:$0xff] }
 0x39d   : > { %v8371_v59 = vadd.f32 %v12103_v34, %v15470_v33  ;;  %v12106_v58 = vadd.f32 %v12105_v31, %v12104_v5  ;;  %v8463_v52 = vsel %vm8447_vm15, %v8431_v2, %v8455_v45  ;;  %v13288_v33 = vmov 0.0|0.0   ;;  %v8590_v2 = vld [vmem:[%s15616_s5 + $0x28] sm:$0xff]  ;;  %v8593_v45 = vld [vmem:[%s15617_s6] sm:$0xff] }
 0x39e   : > { %v8487_v36 = vsel %vm8474_vm10, %v15499_v54, 0.0  ;;  %v15505_v32 = vmax.f32 %v15441_v42, %v8463_v52  ;;  %12248 = vmatprep.subr.bf16.mxu1 %v13288_v33  ;;  %v8595_v52 = vld [vmem:[%s15617_s6 + $0x10] sm:$0xff] }
 0x39f   : > { %v8436_v63 = vadd.f32 %v12213_v19, %v8371_v59  ;;  %v8374_v16 = vadd.f32 %v12106_v58, %v15472_v53  ;;  %8488 = vadd.xlane.f32.xlu1 %v8487_v36  ;;  %v8596_v59 = vld [vmem:[%s15617_s6 + $0x18] sm:$0xff] }
 0x3a0   : > { %v8490_v56 = vsel %vm8474_vm10, %v15505_v32, 0.0 }
 0x3a1   : > { %v8439_v28 = vadd.f32 %v12214_v40, %v8374_v16  ;;  %8491 = vadd.xlane.f32.xlu0 %v8490_v56  ;;  %vm8448_vm1 = vcmp.ge.f32.partialorder %v8436_v63, 0.0  ;;  %v8456_v51 = vmul.f32 0.01, %v8436_v63 }
 0x3a3   : > { %v8464_v62 = vsel %vm8448_vm1, %v8436_v63, %v8456_v51  ;;  %vm8449_vm0 = vcmp.ge.f32.partialorder %v8439_v28, 0.0  ;;  %v8457_v11 = vmul.f32 0.01, %v8439_v28  ;;  %v8598_v51 = vld [vmem:[%s15617_s6 + $0x28] sm:$0xff] }
 0x3a4   : > { %v15511_v48 = vmax.f32 %v15447_v35, %v8464_v62  ;;  %v8597_v62 = vld [vmem:[%s15617_s6 + $0x20] sm:$0xff] }
 0x3a5   : > { %v8465_v42 = vsel %vm8449_vm0, %v8439_v28, %v8457_v11 }
 0x3a6   : > { %v8493_v53 = vsel %vm8474_vm10, %v15511_v48, 0.0  ;;  %v15516_v0 = vmax.f32 %v15453_v9, %v8465_v42 }
 0x3a7   : > { %8494 = vadd.xlane.f32.xlu1 %v8493_v53 }
 0x3a8   : > { %v8496_v25 = vsel %vm8474_vm10, %v15516_v0, 0.0 }
 0x3a9   : > { %8497 = vadd.xlane.f32.xlu0 %v8496_v25 }
 0x41d   : > { %v8477_v41 = vpop.xlane.xlu0 %8476 }
 0x41e   : > { %v8500_v61 = vmul.f32 0.14285715, %v8477_v41  ;;  %v8600_v41 = vld [vmem:[%s15617_s6 + $0x38] sm:$0xff] }
 0x41f   : > { %v8480_v19 = vpop.xlane.xlu1 %8479 }
 0x420   : > { %v8501_v35 = vmul.f32 0.14285715, %v8480_v19 }
 0x422   : > { %v12249_v12 = vpack.c.bf16 %v8501_v35, %v8500_v61  ;;  %v8599_v61 = vld [vmem:[%s15617_s6 + $0x30] sm:$0xff] }
 0x424   : > { %12250 = vmatpush3.bf16.msra.mxu1 %v12249_v12  ;;  %v8483_v8 = vpop.xlane.xlu0 %8482 }
 0x425   : > { %12251 = vmatprep.subr.bf16.mxu1 %v13288_v33  ;;  %v8502_v17 = vmul.f32 0.14285715, %v8483_v8 }
 0x428   : > { %v8486_v4 = vpop.xlane.xlu0 %8485 }
 0x429   : > { %v8503_v9 = vmul.f32 0.14285715, %v8486_v4 }
 0x42b   : > { %v12252_v40 = vpack.c.bf16 %v8503_v9, %v8502_v17 }
 0x42c   : > { %v8489_v55 = vpop.xlane.xlu1 %8488 }
 0x42d   : > { %12253 = vmatpush3.bf16.msra.mxu1 %v12252_v40  ;;  %v8504_v24 = vmul.f32 0.14285715, %v8489_v55 }
 0x42e   : > { %v8492_v10 = vpop.xlane.xlu0 %8491  ;;  %12254 = vmatprep.subr.bf16.mxu1 %v13288_v33 }
 0x42f   : > { %v8505_v15 = vmul.f32 0.14285715, %v8492_v10 }
 0x431   : > { %v12255_v60 = vpack.c.bf16 %v8505_v15, %v8504_v24 }
 0x433   : > { %12256 = vmatpush3.bf16.msra.mxu1 %v12255_v60 }
 0x434   : > { %v8495_v3 = vpop.xlane.xlu1 %8494  ;;  %12257 = vmatprep.subr.bf16.mxu1 %v13288_v33 }
 0x435   : > { %v8506_v7 = vmul.f32 0.14285715, %v8495_v3 }
 0x436   : > { %v8498_v30 = vpop.xlane.xlu0 %8497 }
 0x437   : > { %v8507_v20 = vmul.f32 0.14285715, %v8498_v30 }
 0x439   : > { %v12258_v14 = vpack.c.bf16 %v8507_v20, %v8506_v7 }
 0x43b   : > { %12259 = vmatpush3.bf16.msra.mxu1 %v12258_v14 }
 0x43e   : > { %12232 = vmatmul.mubr.msk.f32.vlgmr.msra.gmra.mrb[32].mxu1 %vm8510_vm3, %v8508_v57 }
 0x43f   : > { %12236 = vmatprep.mubr.msk.f32.mxu1 %vm8601_vm4, %v8585_v38 }
 0x511   : > { %v8580_v50 = vpop.f32.mrb[32].mxu1 }
 0x512   : > { %v8581_v22 = vadd.f32 %v8580_v50, %v8509_v49  ;;  %v12233_v44 = vpop.f32.mrb[33].mxu1 }
 0x514   : > { %v8584_v46 = vmax.f32 %v8581_v22, 0.0 }
 0x516   : > { %12234 = vmatprep.subr.mxu1 %v8584_v46 }
 0x517   : > { %12235 = vmatpush3.msra.mxu1 %v8584_v46 }
 0x518   : > { %12237 = vmatmul.mubr.msk.f32.vlgmr.msra.gmra.mrb[34].mxu1 %vm8601_vm4, %v8586_v47 }
 0x519   : > { %12239 = vmatprep.mubr.msk.f32.mxu1 %vm8601_vm4, %v8587_v43 }
 0x51c   : > { %12240 = vmatmul.mubr.msk.f32.gmra.mrb[36].mxu1 %vm8601_vm4, %v8588_v29 }
 0x51d   : > { %12242 = vmatprep.mubr.msk.f32.mxu1 %vm8601_vm4, %v8589_v13 }
 0x520   : > { %12243 = vmatmul.mubr.msk.f32.gmra.mrb[38].mxu1 %vm8601_vm4, %v8590_v2 }
 0x521   : > { %12245 = vmatprep.mubr.msk.f32.mxu1 %vm8601_vm4, %v8591_v21 }
 0x524   : > { %12246 = vmatmul.mubr.msk.f32.gmra.mrb[40].mxu1 %vm8601_vm4, %v8592_v23 }
 0x5eb   : > { %v12238_v34 = vpop.f32.mrb[34].mxu1 }
 0x5ec   : > { %v8698_v5 = vadd.f32 %v12238_v34, %v8594_v39  ;;  %v8692_v1 = vpop.f32.mrb[35].mxu1 }
 0x5ed   : > { %v8693_v31 = vadd.f32 %v8692_v1, %v8593_v45 }
 0x5ee   : > { %v10627_v58 = vmul.f32 -1.442695, %v8698_v5 }
 0x5ef   : > { %v10626_v36 = vmul.f32 -1.442695, %v8693_v31  ;;  %v12241_v63 = vpop.f32.mrb[36].mxu1 }
 0x5f0   : > { %13003 = vpow2.f32 %v10627_v58  ;;  %v8708_v16 = vadd.f32 %v12241_v63, %v8596_v59  ;;  %v8702_v56 = vpop.f32.mrb[37].mxu1 }
 0x5f1   : > { %13005 = vpow2.f32 %v10626_v36  ;;  %v8703_v28 = vadd.f32 %v8702_v56, %v8595_v52 }
 0x5f2   : > { %v10629_v33 = vmul.f32 -1.442695, %v8708_v16 }
 0x5f3   : > { %v10628_v11 = vmul.f32 -1.442695, %v8703_v28  ;;  %v12244_v42 = vpop.f32.mrb[38].mxu1 }
 0x5f4   : > { %13007 = vpow2.f32 %v10629_v33  ;;  %v8718_v53 = vadd.f32 %v12244_v42, %v8598_v51  ;;  %v8712_v25 = vpop.f32.mrb[39].mxu1 }
 0x5f5   : > { %13009 = vpow2.f32 %v10628_v11  ;;  %v8713_v18 = vadd.f32 %v8712_v25, %v8597_v62 }
 0x5f6   : > { %v10631_v19 = vmul.f32 -1.442695, %v8718_v53 }
 0x5f7   : > { %v10630_v35 = vmul.f32 -1.442695, %v8713_v18  ;;  %v12247_v12 = vpop.f32.mrb[40].mxu1 }
 0x5f8   : > { %13011 = vpow2.f32 %v10631_v19  ;;  %v8728_v8 = vadd.f32 %v12247_v12, %v8600_v41  ;;  %v8722_v4 = vpop.f32.mrb[41].mxu1 }
 0x5f9   : > { %13013 = vpow2.f32 %v10630_v35  ;;  %v8723_v17 = vadd.f32 %v8722_v4, %v8599_v61 }
 0x5fa   : > { %v13004_v9 = vpop.eup %13003  ;;  %v10633_v40 = vmul.f32 -1.442695, %v8728_v8 }
 0x5fb   : > { %v13006_v55 = vpop.eup %13005  ;;  %v8756_v10 = vadd.f32 1.0, %v13004_v9  ;;  %v10632_v24 = vmul.f32 -1.442695, %v8723_v17 }
 0x5fc   : > { %v8755_v15 = vadd.f32 1.0, %v13006_v55  ;;  %13015 = vpow2.f32 %v10633_v40 }
 0x5fd   : > { %13017 = vrcp.f32 %v8756_v10 }
 0x5fe   : > { %v13008_v60 = vpop.eup %13007  ;;  %13019 = vrcp.f32 %v8755_v15 }
 0x5ff   : > { %v13010_v3 = vpop.eup %13009  ;;  %v8758_v30 = vadd.f32 1.0, %v13008_v60  ;;  %13021 = vpow2.f32 %v10632_v24 }
 0x600   : > { %v8757_v7 = vadd.f32 1.0, %v13010_v3 }
 0x601   : > { %13023 = vrcp.f32 %v8758_v30 }
 0x602   : > { %v13012_v20 = vpop.eup %13011  ;;  %13025 = vrcp.f32 %v8757_v7 }
 0x603   : > { %v13014_v14 = vpop.eup %13013  ;;  %v8760_v57 = vadd.f32 1.0, %v13012_v20 }
 0x604   : > { %v8759_v38 = vadd.f32 1.0, %v13014_v14 }
 0x605   : > { %13027 = vrcp.f32 %v8760_v57 }
 0x606   : > { %v13016_v49 = vpop.eup %13015  ;;  %13029 = vrcp.f32 %v8759_v38 }
 0x607   : > { %v13018_v50 = vpop.eup %13017  ;;  %v8762_v22 = vadd.f32 1.0, %v13016_v49 }
 0x608   : > { %v13020_v44 = vpop.eup %13019  ;;  %v8780_v46 = vadd.f32 1.0, %v13018_v50 }
 0x609   : > { %v13022_v47 = vpop.eup %13021  ;;  %v8779_v43 = vadd.f32 1.0, %v13020_v44  ;;  %13031 = vrcp.f32 %v8762_v22 }
 0x60a   : > { %v8761_v29 = vadd.f32 1.0, %v13022_v47  ;;  %8794 = vperm.xlu0 %12289, %v8780_v46  }
 0x60b   : > { %v13024_v13 = vpop.eup %13023  ;;  %8789 = vperm.xlu1 %12290, %v8779_v43  }
 0x60c   : > { %13033 = vrcp.f32 %v8761_v29  ;;  %v8782_v2 = vadd.f32 1.0, %v13024_v13  ;;  %v13026_v21 = vpop.eup %13025 }
 0x60d   : > { %v8781_v34 = vadd.f32 1.0, %v13026_v21 }
 0x60f   : > { %v13028_v23 = vpop.eup %13027  ;;  %8804 = vperm.xlu1 %12290, %v8782_v2  }
 0x610   : > { %v13030_v39 = vpop.eup %13029  ;;  %v8784_v5 = vadd.f32 1.0, %v13028_v23 }
 0x611   : > { %v8783_v45 = vadd.f32 1.0, %v13030_v39 }
 0x613   : > { %8809 = vperm.xlu0 %12289, %v8783_v45   ;;  %8799 = vperm.xlu1 %12290, %v8781_v34   ;;  %v13032_v1 = vpop.eup %13031 }
 0x614   : > { %v8786_v58 = vadd.f32 1.0, %v13032_v1 }
 0x616   : > { %v13034_v31 = vpop.eup %13033 }
 0x617   : > { %v8785_v59 = vadd.f32 1.0, %v13034_v31  ;;  %8814 = vperm.xlu1 %12290, %v8784_v5  }
 0x619   : > { %8819 = vperm.xlu0 %12289, %v8785_v59  }
 0x61b   : > { %8824 = vperm.xlu1 %12290, %v8786_v58  }
 0x689   : > { %v8795_v52 = vpop.permute.xlu0 %8794 }
 0x68a   : > { %v8828_v36 = vmul.f32 %v8795_v52, %v15481_v37  ;;  %v8790_v63 = vpop.permute.xlu1 %8789 }
 0x68b   : > { %v8827_v16 = vmul.f32 %v8790_v63, %v15475_v27 }
 0x68c   : > { %v8836_v56 = vmax.f32 %v8828_v36, 0.0 }
 0x68d   : > { %v8835_v28 = vmax.f32 %v8827_v16, 0.0 }
 0x68e   : > { %8844 = vst.msk [vmem:[%s426_s20 + $0x8] sm:$0xff] %vm8474_vm10, %v8836_v56  ;;  %v8805_v51 = vpop.permute.xlu1 %8804 }
 0x68f   : > { %8843 = vst.msk [vmem:[%s426_s20] sm:$0xff] %vm8474_vm10, %v8835_v28  ;;  %v8830_v33 = vmul.f32 %v8805_v51, %v15493_v6 }
 0x691   : > { %v8838_v62 = vmax.f32 %v8830_v33, 0.0 }
 0x692   : > { %v8810_v11 = vpop.permute.xlu0 %8809  ;;  %v8800_v42 = vpop.permute.xlu1 %8799 }
 0x693   : > { %8846 = vst.msk [vmem:[%s426_s20 + $0x18] sm:$0xff] %vm8474_vm10, %v8838_v62  ;;  %v8831_v37 = vmul.f32 %v8810_v11, %v15499_v54  ;;  %v8829_v53 = vmul.f32 %v8800_v42, %v15487_v26 }
 0x695   : > { %v8839_v25 = vmax.f32 %v8831_v37, 0.0  ;;  %v8837_v27 = vmax.f32 %v8829_v53, 0.0 }
 0x696   : > { %v8815_v18 = vpop.permute.xlu1 %8814 }
 0x697   : > { %8847 = vst.msk [vmem:[%s426_s20 + $0x20] sm:$0xff] %vm8474_vm10, %v8839_v25  ;;  %8845 = vst.msk [vmem:[%s426_s20 + $0x10] sm:$0xff] %vm8474_vm10, %v8837_v27  ;;  %v8832_v41 = vmul.f32 %v8815_v18, %v15505_v32 }
 0x698   : > { %v8820_v19 = vpop.permute.xlu0 %8819 }
 0x699   : > { %v8833_v6 = vmul.f32 %v8820_v19, %v15511_v48  ;;  %v8840_v61 = vmax.f32 %v8832_v41, 0.0 }
 0x69a   : > { %v8825_v35 = vpop.permute.xlu1 %8824 }
 0x69b   : > { %v8841_v12 = vmax.f32 %v8833_v6, 0.0  ;;  %8848 = vst.msk [vmem:[%s426_s20 + $0x28] sm:$0xff] %vm8474_vm10, %v8840_v61  ;;  %v8834_v54 = vmul.f32 %v8825_v35, %v15516_v0 }
 0x69d   : > { %8849 = vst.msk [vmem:[%s426_s20 + $0x30] sm:$0xff] %vm8474_vm10, %v8841_v12  ;;  %v8842_v26 = vmax.f32 %v8834_v54, 0.0 }
 0x69f   : > { %8850 = vst.msk [vmem:[%s426_s20 + $0x38] sm:$0xff] %vm8474_vm10, %v8842_v26 }
 0x6a0 PF: > { %s17_s26 = sadd.s32 1, %s13285_s26   ;;  %s15619_s24 = smov %s13281_s25 }
 0x6a1   : > { %p14_p5 = scmp.ge.s32.totalorder %s17_s26, 4   ;;  %s15620_s25 = smov %s15622_s27 }
 0x6a3   :  { %16 = sbr.rel (!%p14_p5) target bundleno = 2 (0x2), region = 99 }

</bundles_post_ra>
